<compile_context>
chip_gen: v6e
topology: v6e:2x2x1
jax: 0.10.0
libtpu: 0.0.40
codegen_flags: <defaults>
</compile_context>

<pallas_src>
import jax
import jax.numpy as jnp
from jax.experimental import pallas as pl
from jax.experimental.pallas import tpu as pltpu

D_MODEL = 512
D_FF = 2048
LN_EPS = 1e-5

MAX_ROW_TILE = 1024          # tm=1024 fits all generations (incl. v7x 64 MiB/TC)
_STEP_OVERHEAD_ROWS = 64     # ~0.35us per grid step expressed in "row equivalents"


def _round_up(x, m):
    return (x + m - 1) // m * m


def _choose_row_tile(m_tokens):
    """Pick tm minimizing (padded rows) + (grid steps * per-step overhead),
    preferring >=2 (and even) grid steps so v7x's two TensorCores are both used."""
    m8 = max(8, _round_up(m_tokens, 8))
    best_t, best_cost = 8, None
    for t in (8, 16, 32, 64, 128, 256, 512, 1024):
        if t > MAX_ROW_TILE:
            break
        steps = -(-m8 // t)
        cost = float(steps * t + steps * _STEP_OVERHEAD_ROWS)
        if steps == 1 and m8 > 8:
            cost *= 2.0                          # single step leaves one v7x core idle
        elif steps > 1 and steps % 2 == 1:
            cost *= 1.0 + 1.0 / (2.0 * steps)    # odd step count -> slight core imbalance
        if best_cost is None or cost < best_cost:
            best_t, best_cost = t, cost
    return best_t


def _vmem_budget_bytes():
    """Generous explicit VMEM budget, always below physical capacity."""
    cap = 128 << 20
    try:
        cap = int(pltpu.get_tpu_info().vmem_capacity_bytes)
    except Exception:
        pass
    return min(96 << 20, cap - (8 << 20))


def ffn_kernel(x_ref, w1_ref, w2_ref, o_ref):
    # x_ref: (TM, 512) f32; w1_ref: (512, 2048) bf16; w2_ref: (2048, 512) bf16
    x = x_ref[...]                               # f32, read once (residual path)
    x_bf = x.astype(jnp.bfloat16)                # single cast for the MXU

    # Linear -> ReLU -> Linear: bf16 MXU inputs, f32 accumulation.
    h = jnp.dot(x_bf, w1_ref[...], preferred_element_type=jnp.float32)
    h = jnp.maximum(h, 0.0)
    ffn_out = jnp.dot(h.astype(jnp.bfloat16), w2_ref[...],
                      preferred_element_type=jnp.float32)

    # Residual + LayerNorm over d_model (gamma=1, beta=0, biased variance), f32.
    y = x + ffn_out
    mean = jnp.mean(y, axis=-1, keepdims=True)
    centered = y - mean
    var = jnp.mean(centered * centered, axis=-1, keepdims=True)
    o_ref[...] = (centered * jax.lax.rsqrt(var + LN_EPS)).astype(o_ref.dtype)


def _build_ffn_call(tm, m_pad, out_dtype, weight_pipeline_mode):
    spec_kwargs = {}
    if weight_pipeline_mode is not None:
        spec_kwargs["pipeline_mode"] = weight_pipeline_mode

    cost = pl.CostEstimate(
        flops=2 * m_pad * D_MODEL * D_FF * 2,           # two matmuls
        transcendentals=m_pad,                           # one rsqrt per token
        bytes_accessed=(m_pad * D_MODEL * 4              # x in (f32)
                        + m_pad * D_MODEL * 4            # out (f32)
                        + D_MODEL * D_FF * 2 * 2),       # both weights (bf16), resident
    )

    return pl.pallas_call(
        ffn_kernel,
        out_shape=jax.ShapeDtypeStruct((m_pad, D_MODEL), out_dtype),
        grid_spec=pltpu.PrefetchScalarGridSpec(
            num_scalar_prefetch=0,
            grid=(m_pad // tm,),
            in_specs=[
                pl.BlockSpec((tm, D_MODEL), lambda i: (i, 0)),
                # Constant index_map -> weights stay resident in VMEM; Buffered(1)
                # drops the unused second buffer of each weight.
                pl.BlockSpec((D_MODEL, D_FF), lambda i: (0, 0), **spec_kwargs),
                pl.BlockSpec((D_FF, D_MODEL), lambda i: (0, 0), **spec_kwargs),
            ],
            out_specs=pl.BlockSpec((tm, D_MODEL), lambda i: (i, 0)),
        ),
        compiler_params=pltpu.CompilerParams(
            # Parallel token axis: shards grid steps across v7x's 2 TensorCores.
            dimension_semantics=("parallel",),
            vmem_limit_bytes=_vmem_budget_bytes(),
        ),
        cost_estimate=cost,
    )


def poswise_ffn(x, w1, w2, *, tm=None):
    """x: [B, S, D_MODEL]; w1: [D_MODEL, D_FF]; w2: [D_FF, D_MODEL] (transposed nn.Linear)."""
    B, S, D = x.shape
    assert D == D_MODEL
    M = B * S
    x2d = x.reshape(M, D)

    if tm is None:
        tm = _choose_row_tile(M)
    tm = min(tm, _round_up(M, 8))
    m_pad = _round_up(M, tm)
    if m_pad != M:
        # Zero-padded rows are LayerNorm-safe (var=0 -> output 0) and sliced off.
        x2d = jnp.pad(x2d, ((0, m_pad - M), (0, 0)))

    # bf16 weights: MXU bf16 peak on v6e/v7x, half the VMEM/HBM traffic.
    w1b = w1.astype(jnp.bfloat16)
    w2b = w2.astype(jnp.bfloat16)

    # Prefer single-buffered resident weights; fall back to the default pipeline
    # mode if this JAX version rejects Buffered(1) (costs ~4 MiB VMEM, never
    # correctness).
    try:
        out2d = _build_ffn_call(tm, m_pad, x.dtype, pl.Buffered(1))(x2d, w1b, w2b)
    except Exception:
        out2d = _build_ffn_call(tm, m_pad, x.dtype, None)(x2d, w1b, w2b)

    if m_pad != M:
        out2d = out2d[:M]
    return out2d.reshape(B, S, D)


def reference(x, w1, w2):
    """Same math with identical bf16 casts (f32 accumulation, f32 residual + LN)."""
    xb = x.astype(jnp.bfloat16)
    h = jnp.dot(xb, w1.astype(jnp.bfloat16), preferred_element_type=jnp.float32)
    h = jnp.maximum(h, 0.0)
    y = x + jnp.dot(h.astype(jnp.bfloat16), w2.astype(jnp.bfloat16),
                    preferred_element_type=jnp.float32)
    mean = jnp.mean(y, axis=-1, keepdims=True)
    var = jnp.mean((y - mean) ** 2, axis=-1, keepdims=True)
    return (y - mean) * jax.lax.rsqrt(var + LN_EPS)


if __name__ == "__main__":
    key = jax.random.PRNGKey(0)
    kx, k1, k2 = jax.random.split(key, 3)

    B, S = 2, 8
    x = jax.random.normal(kx, (B, S, D_MODEL), dtype=jnp.float32)

    # Deterministic init matching nn.Linear shapes (stored transposed):
    # fc[0].weight: [2048, 512] -> w1: [512, 2048]; fc[2].weight: [512, 2048] -> w2: [2048, 512]
    bound1 = 1.0 / (D_MODEL ** 0.5)
    bound2 = 1.0 / (D_FF ** 0.5)
    w1 = jax.random.uniform(k1, (D_MODEL, D_FF), jnp.float32, -bound1, bound1)
    w2 = jax.random.uniform(k2, (D_FF, D_MODEL), jnp.float32, -bound2, bound2)

    out = poswise_ffn(x, w1, w2)
    out = jax.block_until_ready(out)

    ref = reference(x, w1, w2)
    assert out.shape == (B, S, D_MODEL)
    # Kernel and reference use identical bf16 matmul inputs with f32 accumulation;
    # remaining difference is accumulation-order noise only.
    assert jnp.allclose(out, ref, atol=2e-3, rtol=2e-3), "mismatch vs reference"

    print("KERNEL_OK")
</pallas_src>

<mosaic_0001>
module attributes {stable_mosaic.version = 11 : i64} {
  func.func @ffn_kernel(%arg0: i32, %arg1: memref<8x512xf32, #tpu.memory_space<vmem>>, %arg2: memref<512x2048xbf16, #tpu.memory_space<vmem>>, %arg3: memref<2048x512xbf16, #tpu.memory_space<vmem>>, %arg4: memref<8x512xf32, #tpu.memory_space<vmem>>) attributes {dimension_semantics = [#tpu.dimension_semantics<parallel>], iteration_bounds = array<i64: 2>, scalar_prefetch = 0 : i64, scratch_operands = 0 : i64, tpu.core_type = #tpu.core_type<tc>, window_params = [{transform_indices = @transform_0, window_bounds = array<i64: 8, 512>}, {pipeline_mode = #tpu.pipeline_mode<synchronous>, transform_indices = @transform_1, window_bounds = array<i64: 512, 2048>}, {pipeline_mode = #tpu.pipeline_mode<synchronous>, transform_indices = @transform_2, window_bounds = array<i64: 2048, 512>}, {transform_indices = @transform_3, window_bounds = array<i64: 8, 512>}]} {
    %c0 = arith.constant 0 : index
    %c0_0 = arith.constant 0 : index
    %0 = vector.load %arg1[%c0, %c0_0] : memref<8x512xf32, #tpu.memory_space<vmem>>, vector<8x512xf32>
    %1 = arith.truncf %0 : vector<8x512xf32> to vector<8x512xbf16>
    %c0_1 = arith.constant 0 : index
    %c0_2 = arith.constant 0 : index
    %2 = vector.load %arg2[%c0_1, %c0_2] : memref<512x2048xbf16, #tpu.memory_space<vmem>>, vector<512x2048xbf16>
    %cst = arith.constant dense<0.000000e+00> : vector<8x2048xf32>
    %3 = tpu.matmul %1, %2, %cst {dimension_numbers = #tpu.dot_dimension_numbers<[1], [0], [0], [1], [0, 0, 1, 1], [], []>} : vector<8x512xbf16>, vector<512x2048xbf16>, vector<8x2048xf32> -> vector<8x2048xf32>
    %cst_3 = arith.constant 0.000000e+00 : f32
    %4 = vector.broadcast %cst_3 : f32 to vector<8x2048xf32>
    %5 = arith.maximumf %3, %4 : vector<8x2048xf32>
    %6 = arith.truncf %5 : vector<8x2048xf32> to vector<8x2048xbf16>
    %c0_4 = arith.constant 0 : index
    %c0_5 = arith.constant 0 : index
    %7 = vector.load %arg3[%c0_4, %c0_5] : memref<2048x512xbf16, #tpu.memory_space<vmem>>, vector<2048x512xbf16>
    %cst_6 = arith.constant dense<0.000000e+00> : vector<8x512xf32>
    %8 = tpu.matmul %6, %7, %cst_6 {dimension_numbers = #tpu.dot_dimension_numbers<[1], [0], [0], [1], [0, 0, 1, 1], [], []>} : vector<8x2048xbf16>, vector<2048x512xbf16>, vector<8x512xf32> -> vector<8x512xf32>
    %9 = arith.addf %0, %8 : vector<8x512xf32>
    %cst_7 = arith.constant dense<0.000000e+00> : vector<8xf32>
    %10 = vector.multi_reduction <add>, %9, %cst_7 [1] : vector<8x512xf32> to vector<8xf32>
    %11 = vector.shape_cast %10 : vector<8xf32> to vector<8x1xf32>
    %cst_8 = arith.constant 5.120000e+02 : f32
    %12 = vector.broadcast %cst_8 : f32 to vector<8x1xf32>
    %13 = arith.divf %11, %12 : vector<8x1xf32>
    %14 = vector.broadcast %13 : vector<8x1xf32> to vector<8x512xf32>
    %15 = arith.subf %9, %14 : vector<8x512xf32>
    %16 = arith.mulf %15, %15 : vector<8x512xf32>
    %cst_9 = arith.constant dense<0.000000e+00> : vector<8xf32>
    %17 = vector.multi_reduction <add>, %16, %cst_9 [1] : vector<8x512xf32> to vector<8xf32>
    %18 = vector.shape_cast %17 : vector<8xf32> to vector<8x1xf32>
    %cst_10 = arith.constant 5.120000e+02 : f32
    %19 = vector.broadcast %cst_10 : f32 to vector<8x1xf32>
    %20 = arith.divf %18, %19 : vector<8x1xf32>
    %cst_11 = arith.constant 9.99999974E-6 : f32
    %21 = vector.broadcast %cst_11 : f32 to vector<8x1xf32>
    %22 = arith.addf %20, %21 : vector<8x1xf32>
    %23 = math.rsqrt %22 : vector<8x1xf32>
    %24 = vector.broadcast %23 : vector<8x1xf32> to vector<8x512xf32>
    %25 = arith.mulf %15, %24 : vector<8x512xf32>
    %c0_12 = arith.constant 0 : index
    %c0_13 = arith.constant 0 : index
    %26 = vector.load %arg4[%c0_12, %c0_13] : memref<8x512xf32, #tpu.memory_space<vmem>>, vector<8x512xf32>
    tpu.vector_store %arg4[%c0_12, %c0_13], %25 {strides = array<i32>} : memref<8x512xf32, #tpu.memory_space<vmem>>, vector<8x512xf32>,
    return
  }
  func.func @transform_0(%arg0: i32) -> (i32, i32) {
    %c0_i32 = arith.constant 0 : i32
    %c0_i32_0 = arith.constant 0 : i32
    return %arg0, %c0_i32 : i32, i32
  }
  func.func @transform_1(%arg0: i32) -> (i32, i32) {
    %c0_i32 = arith.constant 0 : i32
    %c0_i32_0 = arith.constant 0 : i32
    %c0_i32_1 = arith.constant 0 : i32
    return %c0_i32, %c0_i32_0 : i32, i32
  }
  func.func @transform_2(%arg0: i32) -> (i32, i32) {
    %c0_i32 = arith.constant 0 : i32
    %c0_i32_0 = arith.constant 0 : i32
    %c0_i32_1 = arith.constant 0 : i32
    return %c0_i32, %c0_i32_0 : i32, i32
  }
  func.func @transform_3(%arg0: i32) -> (i32, i32) {
    %c0_i32 = arith.constant 0 : i32
    %c0_i32_0 = arith.constant 0 : i32
    return %arg0, %c0_i32 : i32, i32
  }
}

module attributes {stable_mosaic.version = 11 : i64} {
  func.func @ffn_kernel(%arg0: i32, %arg1: memref<8x512xf32, #tpu.memory_space<vmem>>, %arg2: memref<512x2048xbf16, #tpu.memory_space<vmem>>, %arg3: memref<2048x512xbf16, #tpu.memory_space<vmem>>, %arg4: memref<8x512xf32, #tpu.memory_space<vmem>>) attributes {dimension_semantics = [#tpu.dimension_semantics<parallel>], iteration_bounds = array<i64: 2>, scalar_prefetch = 0 : i64, scratch_operands = 0 : i64, tpu.core_type = #tpu.core_type<tc>, window_params = [{transform_indices = @transform_0, window_bounds = array<i64: 8, 512>}, {pipeline_mode = #tpu.pipeline_mode<synchronous>, transform_indices = @transform_1, window_bounds = array<i64: 512, 2048>}, {pipeline_mode = #tpu.pipeline_mode<synchronous>, transform_indices = @transform_2, window_bounds = array<i64: 2048, 512>}, {transform_indices = @transform_3, window_bounds = array<i64: 8, 512>}]} {
    %c0 = arith.constant 0 : index
    %c0_0 = arith.constant 0 : index
    %0 = vector.load %arg1[%c0, %c0_0] : memref<8x512xf32, #tpu.memory_space<vmem>>, vector<8x512xf32>
    %1 = arith.truncf %0 : vector<8x512xf32> to vector<8x512xbf16>
    %c0_1 = arith.constant 0 : index
    %c0_2 = arith.constant 0 : index
    %2 = vector.load %arg2[%c0_1, %c0_2] : memref<512x2048xbf16, #tpu.memory_space<vmem>>, vector<512x2048xbf16>
    %cst = arith.constant dense<0.000000e+00> : vector<8x2048xf32>
    %3 = tpu.matmul %1, %2, %cst {dimension_numbers = #tpu.dot_dimension_numbers<[1], [0], [0], [1], [0, 0, 1, 1], [], []>} : vector<8x512xbf16>, vector<512x2048xbf16>, vector<8x2048xf32> -> vector<8x2048xf32>
    %cst_3 = arith.constant 0.000000e+00 : f32
    %4 = vector.broadcast %cst_3 : f32 to vector<8x2048xf32>
    %5 = arith.maximumf %3, %4 : vector<8x2048xf32>
    %6 = arith.truncf %5 : vector<8x2048xf32> to vector<8x2048xbf16>
    %c0_4 = arith.constant 0 : index
    %c0_5 = arith.constant 0 : index
    %7 = vector.load %arg3[%c0_4, %c0_5] : memref<2048x512xbf16, #tpu.memory_space<vmem>>, vector<2048x512xbf16>
    %cst_6 = arith.constant dense<0.000000e+00> : vector<8x512xf32>
    %8 = tpu.matmul %6, %7, %cst_6 {dimension_numbers = #tpu.dot_dimension_numbers<[1], [0], [0], [1], [0, 0, 1, 1], [], []>} : vector<8x2048xbf16>, vector<2048x512xbf16>, vector<8x512xf32> -> vector<8x512xf32>
    %9 = arith.addf %0, %8 : vector<8x512xf32>
    %cst_7 = arith.constant dense<0.000000e+00> : vector<8xf32>
    %10 = vector.multi_reduction <add>, %9, %cst_7 [1] : vector<8x512xf32> to vector<8xf32>
    %11 = vector.shape_cast %10 : vector<8xf32> to vector<8x1xf32>
    %cst_8 = arith.constant 5.120000e+02 : f32
    %12 = vector.broadcast %cst_8 : f32 to vector<8x1xf32>
    %13 = arith.divf %11, %12 : vector<8x1xf32>
    %14 = vector.broadcast %13 : vector<8x1xf32> to vector<8x512xf32>
    %15 = arith.subf %9, %14 : vector<8x512xf32>
    %16 = arith.mulf %15, %15 : vector<8x512xf32>
    %cst_9 = arith.constant dense<0.000000e+00> : vector<8xf32>
    %17 = vector.multi_reduction <add>, %16, %cst_9 [1] : vector<8x512xf32> to vector<8xf32>
    %18 = vector.shape_cast %17 : vector<8xf32> to vector<8x1xf32>
    %cst_10 = arith.constant 5.120000e+02 : f32
    %19 = vector.broadcast %cst_10 : f32 to vector<8x1xf32>
    %20 = arith.divf %18, %19 : vector<8x1xf32>
    %cst_11 = arith.constant 9.99999974E-6 : f32
    %21 = vector.broadcast %cst_11 : f32 to vector<8x1xf32>
    %22 = arith.addf %20, %21 : vector<8x1xf32>
    %23 = math.rsqrt %22 : vector<8x1xf32>
    %24 = vector.broadcast %23 : vector<8x1xf32> to vector<8x512xf32>
    %25 = arith.mulf %15, %24 : vector<8x512xf32>
    %c0_12 = arith.constant 0 : index
    %c0_13 = arith.constant 0 : index
    %26 = vector.load %arg4[%c0_12, %c0_13] : memref<8x512xf32, #tpu.memory_space<vmem>>, vector<8x512xf32>
    tpu.vector_store %arg4[%c0_12, %c0_13], %25 {strides = array<i32>} : memref<8x512xf32, #tpu.memory_space<vmem>>, vector<8x512xf32>,
    return
  }
  func.func @transform_0(%arg0: i32) -> (i32, i32) {
    %c0_i32 = arith.constant 0 : i32
    %c0_i32_0 = arith.constant 0 : i32
    return %arg0, %c0_i32 : i32, i32
  }
  func.func @transform_1(%arg0: i32) -> (i32, i32) {
    %c0_i32 = arith.constant 0 : i32
    %c0_i32_0 = arith.constant 0 : i32
    %c0_i32_1 = arith.constant 0 : i32
    return %c0_i32, %c0_i32_0 : i32, i32
  }
  func.func @transform_2(%arg0: i32) -> (i32, i32) {
    %c0_i32 = arith.constant 0 : i32
    %c0_i32_0 = arith.constant 0 : i32
    %c0_i32_1 = arith.constant 0 : i32
    return %c0_i32, %c0_i32_0 : i32, i32
  }
  func.func @transform_3(%arg0: i32) -> (i32, i32) {
    %c0_i32 = arith.constant 0 : i32
    %c0_i32_0 = arith.constant 0 : i32
    return %arg0, %c0_i32 : i32, i32
  }
}

</mosaic_0001>

<bundles_post_ra>
// kernel: tpu_custom_call.1
= control target key start
LH: loop header
LB: loop body
LE: loop exit
PB: predicated region body
PF: predicated region fallthrough
CT: control target
= control target key end

     0   :  { %8 = vsyncpa [#allocation3], 0  ;;  %s10291_s0 = inlined_call_operand.hbm [shape: f32[16,512], index: 0, kind: input, shape index: {}]   ;;  %s10292_s1 = inlined_call_operand.hbm [shape: bf16[512,2048], index: 1, kind: input, shape index: {}]   ;;  %s10293_s2 = inlined_call_operand.hbm [shape: bf16[2048,512], index: 2, kind: input, shape index: {}]   ;;  %s10294_s3 = inlined_call_operand.hbm [shape: f32[16,512], index: 3, kind: output, shape index: {}]  }
   0x1   :  { %10 = vsyncpa [#allocation3 + $0x1], 0 }
   0x2   :  { %11 = vsyncpa [#allocation6], 0 }
   0x3   :  { %12 = vsyncpa [#allocation4], 0 }
   0x4   :  { %14 = vsyncpa [#allocation4 + $0x1], 0  ;;  %s9918_s12 = smov 0   ;;  %s9920_s13 = smov 0  }
   0x5   :  { %s9922_s14 = smov 0   ;;  %s9924_s15 = smov 0  }
   0x6 LB: > { %s9939_s16 = sadd.s32 4294967295, %s9888_s15   ;;  %s7851_s17 = sadd.s32 4294967294, %s9888_s15   ;;  %s9888_s15 = sphi %s9924_s15, %s10316_s15   ;;  %s9884_s14 = sphi %s9922_s14, %s10315_s14   ;;  %s9880_s13 = sphi %s9920_s13, %s10314_s13   ;;  %s9876_s12 = sphi %s9918_s12, %s10313_s12  }
   0x7   : > { %p40_p0 = scmp.ne.s32.totalorder %s9880_s13, %s9876_s12  ;;  %p10295_p1 = scmp.eq.s32.totalorder %s9939_s16, 0 }
   0x8   : > { %p112_p3 = scmp.eq.s32.totalorder %s7851_s17, 1  ;;  %p7852_p5 = scmp.ge.s32.totalorder %s9888_s15, 1 }
   0x9   : > { %p9948_p4 = por %p10295_p1, %p40_p0  ;;  %p119_p7 = scmp.lt.s32.totalorder %s9888_s15, 3 }
   0xa   : > { %p9953_p6 = por %p112_p3, %p40_p0  ;;  %s9890_s21 = smov [#allocation5]  }
   0xb   : > { %s10299_s18 = scalar_select %p9948_p4, 1, 0 }
   0xc   : > { %s10300_s19 = scalar_select %p9953_p6, 1, 0 }
   0xd   : > { %p9958_p8 = pnand %p7852_p5, %p119_p7  ;;  %s131_s22 = sshll.u32 %s9890_s21, 4  ;;  %s132_s22 = int_to_ptr.vmem [resolvable:$true] %s131_s22 }
   0xe   : > { %s9891_s24 = smov [#allocation7]   ;;  %s9751_s26 = scalar_lea.vmem %s132_s22, 65536 }
   0xf   : > { %s10301_s20 = scalar_select %p9958_p8, 1, 0 }
  0x10   : > { %p8907_p9 = pneg %p9958_p8  ;;  %s144_s25 = sshll.u32 %s9891_s24, 4  ;;  %s145_s25 = int_to_ptr.vmem [resolvable:$true] %s144_s25 }
  0x11   : > { %p9752_p13 = scmp.ne.s32.totalorder %s132_s22, %s9751_s26  ;;  %p9759_p5 = scmp.lt.s32.totalorder %s132_s22, %s132_s22 }
  0x12   : > { %p9967_p11 = pnand %p8907_p9, %p10295_p1  ;;  %p9760_p7 = scmp.lt.s32.totalorder %s9751_s26, %s9751_s26 }
  0x14   : > { %p9742_p12 = pneg %p9967_p11  ;;  %p9761_p10 = por %p9760_p7, %p9759_p5 }
  0x16   : > { %p9754_p0 = pnand %p9752_p13, %p9742_p12 }
  0x18   : > { %p9755_p3 = pneg %p9754_p0 }
  0x1a   : > { %p9762_p9 = pnand %p9761_p10, %p9755_p3 }
  0x1c   : > { %9765 = shalt.err (!%p9762_p9)
}
  0x1d   : > { %s9892_s27 = smov 1024   ;;  %s9893_s28 = smov 64  }
  0x1e   : > { %8910 = dma.hbm_to_vmem [thread:$0]  (!%p9967_p11), %s10292_s1, 65536, %s132_s22, [#allocation6], %s9892_s27, %s9892_s27, %s9893_s28  }
  0x1f   : > { %s9777_s4 = scalar_lea.vmem %s145_s25, 65536  ;;  %p9785_p2 = scmp.lt.s32.totalorder %s145_s25, %s145_s25 }
  0x20   : > { %p9778_p1 = scmp.ne.s32.totalorder %s145_s25, %s9777_s4  ;;  %p9786_p6 = scmp.lt.s32.totalorder %s9777_s4, %s9777_s4 }
  0x22   : > { %p9780_p13 = pnand %p9778_p1, %p9742_p12  ;;  %p9787_p5 = por %p9786_p6, %p9785_p2 }
  0x24   : > { %p9781_p0 = pneg %p9780_p13 }
  0x26   : > { %p9788_p10 = pnand %p9787_p5, %p9781_p0 }
  0x28   : > { %9791 = shalt.err (!%p9788_p10)
}
  0x29   : > { %s9894_s5 = smov 256   ;;  %s9895_s6 = smov 16  }
  0x2a   : > { %8913 = dma.hbm_to_vmem [thread:$0]  (!%p9967_p11), %s10293_s2, 65536, %s145_s25, [#allocation6], %s9894_s5, %s9894_s5, %s9895_s6  }
  0x2b   : > { %s9990_s9 = sadd.s32 1, %s9888_s15   ;;  %s27_s11 = sadd.s32 1, %s9884_s14 }
  0x2c   : > { %s24_s10 = ssub.s32 %s9888_s15, %s9990_s9  ;;  %p34_p2 = scmp.ne.s32.totalorder %s9884_s14, %s9880_s13 }
  0x2d   : > { %p25_p1 = scmp.eq.s32.totalorder %s24_s10, 0  ;;  %p35_p6 = scmp.eq.s32.totalorder %s9888_s15, 0 }
  0x2e   : > { %p10303_p3 = scmp.eq.s32.totalorder %s9939_s16, 1  ;;  %p8924_p9 = scmp.lt.s32.totalorder %s9888_s15, 2 }
  0x2f   : > { %s9999_s17 = scalar_select %p25_p1, %s9884_s14, %s27_s11  }
  0x30   : > { %p36_p12 = por %p35_p6, %p34_p2  ;;  %p10003_p7 = por %p10303_p3, %p34_p2 }
  0x31   : > { %s158_s22 = sand.u32 1, %s9884_s14   ;;  %s8893_s24 = sshll.u32 %s9888_s15, 9 }
  0x32   : > { %s10304_s21 = scalar_select %p10003_p7, 1, 0 }
  0x33   : > { %s7856_s23 = sshll.u32 %s158_s22, 5  ;;  %s10013_s27 = scalar_lea.hbm %s10291_s0, %s8893_s24 }
  0x34   : > { %s162_s28 = scalar_lea.vmem [#allocation2], %s7856_s23  ;;  %p10015_p11 = pnand %p8924_p9, %p36_p12 }
  0x35   : > { %s170_s29 = sshll.u32 %s162_s28, 4  ;;  %s159_s4 = scalar_lea.sflag [#allocation3], %s158_s22  ;;  %s171_s29 = int_to_ptr.vmem [resolvable:$true] %s170_s29 }
  0x36   : > { %s9792_s5 = scalar_lea.hbm %s10013_s27, 512  ;;  %p9794_p0 = pneg %p10015_p11 }
  0x37   : > { %p9793_p13 = scmp.ne.s32.totalorder %s10013_s27, %s9792_s5  ;;  %s9797_s8 = scalar_lea.hbm %s10291_s0, 1024 }
  0x38   : > { %p9798_p1 = scmp.lt.s32.totalorder %s10013_s27, %s10291_s0  ;;  %p9799_p2 = scmp.lt.s32.totalorder %s9797_s8, %s9792_s5 }
  0x39   : > { %p9795_p5 = pnand %p9794_p0, %p9793_p13 }
  0x3a   : > { %p9800_p6 = por %p9799_p2, %p9798_p1 }
  0x3b   : > { %p9796_p10 = pneg %p9795_p5 }
  0x3d   : > { %p9801_p12 = pnand %p9800_p6, %p9796_p10 }
  0x3f   : > { %9804 = shalt.err (!%p9801_p12)
}
  0x40   : > { %s9805_s23 = scalar_lea.vmem %s171_s29, 512  ;;  %s9896_s22 = smov [#allocation2]  }
  0x41   : > { %p9806_p3 = scmp.ne.s32.totalorder %s171_s29, %s9805_s23  ;;  %s9810_s24 = sshll.u32 %s9896_s22, 4  ;;  %s9811_s24 = int_to_ptr.vmem [resolvable:$false] %s9810_s24 }
  0x42   : > { %s9812_s25 = scalar_lea.vmem %s9811_s24, 1024  ;;  %p9813_p13 = scmp.lt.s32.totalorder %s171_s29, %s9811_s24 }
  0x43   : > { %p9808_p9 = pnand %p9806_p3, %p9794_p0  ;;  %p9814_p5 = scmp.lt.s32.totalorder %s9812_s25, %s9805_s23 }
  0x45   : > { %p9809_p7 = pneg %p9808_p9  ;;  %p9815_p4 = por %p9814_p5, %p9813_p13 }
  0x47   : > { %p9816_p8 = pnand %p9815_p4, %p9809_p7 }
  0x49   : > { %9819 = shalt.err (!%p9816_p8)
}
  0x4a   : > { %8917 = dma.hbm_to_vmem [thread:$0]  (!%p10015_p11), %s10013_s27, 512, %s171_s29, %s159_s4  }
  0x4b   : > { %p10306_p10 = scmp.ne.s32.totalorder %s10301_s20, 0 }
  0x4c   : > { %s10036_s26 = sand.u32 (!%p10306_p10), 1, %s9880_s13   ;;  %p10307_p4 = scmp.ne.s32.totalorder (!%p10306_p10), %s10299_s18, 0 }
  0x4d   : > { %179 = sbr.rel (%p10306_p10) target bundleno = 1639 (0x667), region = 32  ;;  %s7860_s28 = sshll.u32 (!%p10306_p10), %s10036_s26, 5 }
  0x4e   : > { %s182_s5 = scalar_lea.sflag (!%p10306_p10), [#allocation3], %s10036_s26  ;;  %s10042_s6 = scalar_lea.vmem (!%p10306_p10), [#allocation2], %s7860_s28 }
  0x52   : > { %9863 = dma.done.wait (%p10307_p4), %s182_s5, 512  }
  0x53   : > { %9865 = vsyncadd (%p10307_p4), %s182_s5, 4294966784  ;;  %p10308_p8 = scmp.eq.s32.totalorder %s9939_s16, 0 }
  0x55   : > { %9867 = dma.done.wait (%p10308_p8), [#allocation6], 131072   ;;  %p10309_p7 = pmov %p10308_p8 }
  0x56   : > { %v336_v0 = vld [vmem:[#allocation5 + $0x380] sm:$0xff]  ;;  %v217_v53 = vld [vmem:[%s10042_s6 + $0x8] sm:$0xff]  ;;  %v219_v54 = vld [vmem:[%s10042_s6 + $0x18] sm:$0xff]  ;;  %s8894_s18 = sshll.u32 %s9939_s16, 9  ;;  %s215_s20 = scalar_lea.vmem [#allocation8], %s7860_s28 }
  0x57   : > { %9869 = vsyncadd (%p10309_p7), [#allocation6], 4294836224  ;;  %v344_v1 = vld [vmem:[#allocation5 + $0x3c0] sm:$0xff]  ;;  %v10054_v58 = vpack.c.bf16 %v217_v53, %v217_v53  ;;  %v10056_v59 = vpack.c.bf16 %v219_v54, %v219_v54  ;;  %s7762_s27 = sshll.u32 %s215_s20, 4  ;;  %s10248_s4 = scalar_lea.hbm %s10294_s3, %s8894_s18  ;;  %s10250_s27 = int_to_ptr.vmem [resolvable:$true] %s7762_s27 }
  0x58   : > { %v592_v2 = vld [vmem:[#allocation5 + $0xb80] sm:$0xff]  ;;  %v7977_v3 = vcombine.high %v336_v0, %v344_v1  ;;  %v7976_v5 = vcombine.low %v336_v0, %v344_v1  ;;  %s7748_s16 = scalar_lea.sflag [#allocation4], %s10036_s26  ;;  %s9820_s7 = scalar_lea.vmem %s10250_s27, 512 }
  0x59   : > { %v600_v4 = vld [vmem:[#allocation5 + $0xbc0] sm:$0xff]  ;;  %3328 = vmatprep.mubr.bf16.mxu0 %v10054_v58  ;;  %3369 = vmatprep.mubr.bf16.mxu1 %v10056_v59  ;;  %p9821_p11 = scmp.ne.s32.totalorder %s10250_s27, %s9820_s7  ;;  %p10310_p0 = scmp.ne.s32.totalorder %s10304_s21, 0 }
  0x5a   : > { %v320_v6 = vld [vmem:[#allocation5 + $0x300] sm:$0xff]  ;;  %v8233_v8 = vcombine.high %v592_v2, %v600_v4  ;;  %v8232_v9 = vcombine.low %v592_v2, %v600_v4  ;;  %3296 = vmatprep.subr.bf16.mxu0 %v7977_v3  ;;  %s9897_s8 = smov [#allocation8]  }
  0x5b   : > { %v328_v7 = vld [vmem:[#allocation5 + $0x340] sm:$0xff]  ;;  %3297 = vmatpush1.bf16.msra.mxu0 %v7976_v5  ;;  %p9822_p1 = pnand %p9821_p11, %p10310_p0  ;;  %s9824_s10 = sshll.u32 %s9897_s8, 4  ;;  %s9825_s10 = int_to_ptr.vmem [resolvable:$false] %s9824_s10 }
  0x5c   : > { %v7961_v10 = vcombine.high %v320_v6, %v328_v7  ;;  %v576_v11 = vld [vmem:[#allocation5 + $0xb00] sm:$0xff]  ;;  %3337 = vmatprep.subr.bf16.mxu1 %v8233_v8  ;;  %v7960_v18 = vcombine.low %v320_v6, %v328_v7  ;;  %s9826_s11 = scalar_lea.vmem %s9825_s10, 1024  ;;  %p9827_p6 = scmp.lt.s32.totalorder %s10250_s27, %s9825_s10 }
  0x5d   : > { %v584_v12 = vld [vmem:[#allocation5 + $0xb40] sm:$0xff]  ;;  %3338 = vmatpush1.bf16.msra.mxu1 %v8232_v9  ;;  %p9823_p2 = pneg %p9822_p1  ;;  %p9828_p12 = scmp.lt.s32.totalorder %s9826_s11, %s9820_s7 }
  0x5e   : > { %v304_v13 = vld [vmem:[#allocation5 + $0x280] sm:$0xff]  ;;  %v8217_v14 = vcombine.high %v576_v11, %v584_v12  ;;  %3298 = vmatprep.subr.bf16.mxu0 %v7961_v10  ;;  %v8216_v19 = vcombine.low %v576_v11, %v584_v12 }
  0x5f   : > { %v312_v15 = vld [vmem:[#allocation5 + $0x2c0] sm:$0xff]  ;;  %3299 = vmatpush1.bf16.msra.mxu0 %v7960_v18  ;;  %p9829_p3 = por %p9828_p12, %p9827_p6 }
  0x60   : > { %v560_v16 = vld [vmem:[#allocation5 + $0xa80] sm:$0xff]  ;;  %v7945_v20 = vcombine.high %v304_v13, %v312_v15  ;;  %3339 = vmatprep.subr.bf16.mxu1 %v8217_v14  ;;  %v7944_v26 = vcombine.low %v304_v13, %v312_v15 }
  0x61   : > { %v568_v17 = vld [vmem:[#allocation5 + $0xac0] sm:$0xff]  ;;  %3340 = vmatpush1.bf16.msra.mxu1 %v8216_v19  ;;  %p9830_p9 = pnand %p9829_p3, %p9823_p2 }
  0x62   : > { %v8201_v21 = vcombine.high %v560_v16, %v568_v17  ;;  %v288_v22 = vld [vmem:[#allocation5 + $0x200] sm:$0xff]  ;;  %3300 = vmatprep.subr.bf16.mxu0 %v7945_v20  ;;  %v8200_v27 = vcombine.low %v560_v16, %v568_v17 }
  0x63   : > { %v296_v23 = vld [vmem:[#allocation5 + $0x240] sm:$0xff]  ;;  %3301 = vmatpush1.bf16.msra.mxu0 %v7944_v26 }
  0x64   : > { %v544_v24 = vld [vmem:[#allocation5 + $0xa00] sm:$0xff]  ;;  %v7929_v28 = vcombine.high %v288_v22, %v296_v23  ;;  %3341 = vmatprep.subr.bf16.mxu1 %v8201_v21  ;;  %v7928_v34 = vcombine.low %v288_v22, %v296_v23 }
  0x65   : > { %v552_v25 = vld [vmem:[#allocation5 + $0xa40] sm:$0xff]  ;;  %3342 = vmatpush1.bf16.msra.mxu1 %v8200_v27 }
  0x66   : > { %v8185_v29 = vcombine.high %v544_v24, %v552_v25  ;;  %v272_v30 = vld [vmem:[#allocation5 + $0x180] sm:$0xff]  ;;  %3302 = vmatprep.subr.bf16.mxu0 %v7929_v28  ;;  %v8184_v35 = vcombine.low %v544_v24, %v552_v25 }
  0x67   : > { %v280_v31 = vld [vmem:[#allocation5 + $0x1c0] sm:$0xff]  ;;  %3303 = vmatpush1.bf16.msra.mxu0 %v7928_v34 }
  0x68   : > { %v528_v32 = vld [vmem:[#allocation5 + $0x980] sm:$0xff]  ;;  %v7913_v36 = vcombine.high %v272_v30, %v280_v31  ;;  %3343 = vmatprep.subr.bf16.mxu1 %v8185_v29  ;;  %v7912_v42 = vcombine.low %v272_v30, %v280_v31 }
  0x69   : > { %v536_v33 = vld [vmem:[#allocation5 + $0x9c0] sm:$0xff]  ;;  %3344 = vmatpush1.bf16.msra.mxu1 %v8184_v35 }
  0x6a   : > { %v8169_v37 = vcombine.high %v528_v32, %v536_v33  ;;  %v256_v38 = vld [vmem:[#allocation5 + $0x100] sm:$0xff]  ;;  %3304 = vmatprep.subr.bf16.mxu0 %v7913_v36  ;;  %v8168_v43 = vcombine.low %v528_v32, %v536_v33 }
  0x6b   : > { %v264_v39 = vld [vmem:[#allocation5 + $0x140] sm:$0xff]  ;;  %3305 = vmatpush1.bf16.msra.mxu0 %v7912_v42 }
  0x6c   : > { %v512_v40 = vld [vmem:[#allocation5 + $0x900] sm:$0xff]  ;;  %v7897_v44 = vcombine.high %v256_v38, %v264_v39  ;;  %3345 = vmatprep.subr.bf16.mxu1 %v8169_v37  ;;  %v7896_v50 = vcombine.low %v256_v38, %v264_v39 }
  0x6d   : > { %v520_v41 = vld [vmem:[#allocation5 + $0x940] sm:$0xff]  ;;  %3346 = vmatpush1.bf16.msra.mxu1 %v8168_v43 }
  0x6e   : > { %v8153_v45 = vcombine.high %v512_v40, %v520_v41  ;;  %v240_v46 = vld [vmem:[#allocation5 + $0x80] sm:$0xff]  ;;  %3306 = vmatprep.subr.bf16.mxu0 %v7897_v44  ;;  %v8152_v51 = vcombine.low %v512_v40, %v520_v41 }
  0x6f   : > { %v248_v47 = vld [vmem:[#allocation5 + $0xc0] sm:$0xff]  ;;  %3307 = vmatpush1.bf16.msra.mxu0 %v7896_v50 }
  0x70   : > { %v496_v48 = vld [vmem:[#allocation5 + $0x880] sm:$0xff]  ;;  %v7881_v52 = vcombine.high %v240_v46, %v248_v47  ;;  %3347 = vmatprep.subr.bf16.mxu1 %v8153_v45  ;;  %v7880_v62 = vcombine.low %v240_v46, %v248_v47 }
  0x71   : > { %v504_v49 = vld [vmem:[#allocation5 + $0x8c0] sm:$0xff]  ;;  %3348 = vmatpush1.bf16.msra.mxu1 %v8152_v51 }
  0x72   : > { %v8137_v55 = vcombine.high %v496_v48, %v504_v49  ;;  %v224_v56 = vld [vmem:[#allocation5] sm:$0xff]  ;;  %3308 = vmatprep.subr.bf16.mxu0 %v7881_v52  ;;  %v8136_v63 = vcombine.low %v496_v48, %v504_v49 }
  0x73   : > { %v232_v57 = vld [vmem:[#allocation5 + $0x40] sm:$0xff]  ;;  %3309 = vmatpush1.bf16.msra.mxu0 %v7880_v62 }
  0x74   : > { %v480_v60 = vld [vmem:[#allocation5 + $0x800] sm:$0xff]  ;;  %v7865_v0 = vcombine.high %v224_v56, %v232_v57  ;;  %3349 = vmatprep.subr.bf16.mxu1 %v8137_v55  ;;  %v7864_v6 = vcombine.low %v224_v56, %v232_v57 }
  0x75   : > { %v488_v61 = vld [vmem:[#allocation5 + $0x840] sm:$0xff]  ;;  %3350 = vmatpush1.bf16.msra.mxu1 %v8136_v63 }
  0x76   : > { %v8121_v1 = vcombine.high %v480_v60, %v488_v61  ;;  %v464_v2 = vld [vmem:[#allocation5 + $0x780] sm:$0xff]  ;;  %3310 = vmatprep.subr.bf16.mxu0 %v7865_v0  ;;  %v8120_v7 = vcombine.low %v480_v60, %v488_v61 }
  0x77   : > { %v472_v3 = vld [vmem:[#allocation5 + $0x7c0] sm:$0xff]  ;;  %3311 = vmatpush1.bf16.msra.mxu0 %v7864_v6  ;;  %v593_v6 = vld [vmem:[#allocation5 + $0xb88] sm:$0xff] }
  0x78   : > { %v720_v4 = vld [vmem:[#allocation5 + $0xf80] sm:$0xff]  ;;  %v8105_v8 = vcombine.high %v464_v2, %v472_v3  ;;  %3351 = vmatprep.subr.bf16.mxu1 %v8121_v1  ;;  %v8104_v14 = vcombine.low %v464_v2, %v472_v3 }
  0x79   : > { %v728_v5 = vld [vmem:[#allocation5 + $0xfc0] sm:$0xff]  ;;  %3352 = vmatpush1.bf16.msra.mxu1 %v8120_v7  ;;  %v601_v7 = vld [vmem:[#allocation5 + $0xbc8] sm:$0xff] }
  0x7a   : > { %v8361_v9 = vcombine.high %v720_v4, %v728_v5  ;;  %v448_v10 = vld [vmem:[#allocation5 + $0x700] sm:$0xff]  ;;  %3312 = vmatprep.subr.bf16.mxu0 %v8105_v8  ;;  %v8360_v15 = vcombine.low %v720_v4, %v728_v5  ;;  %v337_v4 = vld [vmem:[#allocation5 + $0x388] sm:$0xff] }
  0x7b   : > { %v456_v11 = vld [vmem:[#allocation5 + $0x740] sm:$0xff]  ;;  %3313 = vmatpush2.bf16.msra.mxu0 %v8104_v14  ;;  %v345_v5 = vld [vmem:[#allocation5 + $0x3c8] sm:$0xff] }
  0x7c   : > { %v704_v12 = vld [vmem:[#allocation5 + $0xf00] sm:$0xff]  ;;  %v8089_v16 = vcombine.high %v448_v10, %v456_v11  ;;  %3353 = vmatprep.subr.bf16.mxu1 %v8361_v9  ;;  %v8088_v22 = vcombine.low %v448_v10, %v456_v11  ;;  %v218_v11 = vld [vmem:[%s10042_s6 + $0x10] sm:$0xff]  ;;  %v321_v14 = vld [vmem:[#allocation5 + $0x308] sm:$0xff] }
  0x7d   : > { %v712_v13 = vld [vmem:[#allocation5 + $0xf40] sm:$0xff]  ;;  %3354 = vmatpush2.bf16.msra.mxu1 %v8360_v15  ;;  %v329_v15 = vld [vmem:[#allocation5 + $0x348] sm:$0xff] }
  0x7e   : > { %v8345_v17 = vcombine.high %v704_v12, %v712_v13  ;;  %v432_v18 = vld [vmem:[#allocation5 + $0x680] sm:$0xff]  ;;  %3314 = vmatprep.subr.bf16.mxu0 %v8089_v16  ;;  %v8344_v23 = vcombine.low %v704_v12, %v712_v13  ;;  %v7979_v12 = vcombine.high %v337_v4, %v345_v5  ;;  %v8235_v13 = vcombine.high %v593_v6, %v601_v7 }
  0x7f   : > { %v440_v19 = vld [vmem:[#allocation5 + $0x6c0] sm:$0xff]  ;;  %3315 = vmatpush2.bf16.msra.mxu0 %v8088_v22  ;;  %v7963_v22 = vcombine.high %v321_v14, %v329_v15 }
  0x80   : > { %v688_v20 = vld [vmem:[#allocation5 + $0xe80] sm:$0xff]  ;;  %v8073_v24 = vcombine.high %v432_v18, %v440_v19  ;;  %3355 = vmatprep.subr.bf16.mxu1 %v8345_v17  ;;  %v8072_v30 = vcombine.low %v432_v18, %v440_v19  ;;  %v577_v17 = vld [vmem:[#allocation5 + $0xb08] sm:$0xff]  ;;  %v10064_v19 = vpack.c.bf16 %v218_v11, %v218_v11 }
  0x81   : > { %v696_v21 = vld [vmem:[#allocation5 + $0xec0] sm:$0xff]  ;;  %3356 = vmatpush2.bf16.msra.mxu1 %v8344_v23  ;;  %v585_v18 = vld [vmem:[#allocation5 + $0xb48] sm:$0xff] }
  0x82   : > { %v8329_v25 = vcombine.high %v688_v20, %v696_v21  ;;  %v416_v26 = vld [vmem:[#allocation5 + $0x600] sm:$0xff]  ;;  %3316 = vmatprep.subr.bf16.mxu0 %v8073_v24  ;;  %v8328_v31 = vcombine.low %v688_v20, %v696_v21  ;;  %v7978_v20 = vcombine.low %v337_v4, %v345_v5  ;;  %v8234_v21 = vcombine.low %v593_v6, %v601_v7  ;;  %v305_v23 = vld [vmem:[#allocation5 + $0x288] sm:$0xff] }
  0x83   : > { %v424_v27 = vld [vmem:[#allocation5 + $0x640] sm:$0xff]  ;;  %3317 = vmatpush2.bf16.msra.mxu0 %v8072_v30  ;;  %v313_v24 = vld [vmem:[#allocation5 + $0x2c8] sm:$0xff] }
  0x84   : > { %v672_v28 = vld [vmem:[#allocation5 + $0xe00] sm:$0xff]  ;;  %v8057_v32 = vcombine.high %v416_v26, %v424_v27  ;;  %3357 = vmatprep.subr.bf16.mxu1 %v8329_v25  ;;  %v8056_v38 = vcombine.low %v416_v26, %v424_v27  ;;  %v8219_v25 = vcombine.high %v577_v17, %v585_v18  ;;  %v561_v26 = vld [vmem:[#allocation5 + $0xa88] sm:$0xff]  ;;  %v7947_v30 = vcombine.high %v305_v23, %v313_v24 }
  0x85   : > { %v680_v29 = vld [vmem:[#allocation5 + $0xe40] sm:$0xff]  ;;  %3358 = vmatpush2.bf16.msra.mxu1 %v8328_v31  ;;  %v569_v27 = vld [vmem:[#allocation5 + $0xac8] sm:$0xff] }
  0x86   : > { %v8313_v33 = vcombine.high %v672_v28, %v680_v29  ;;  %v400_v34 = vld [vmem:[#allocation5 + $0x580] sm:$0xff]  ;;  %3318 = vmatprep.subr.bf16.mxu0 %v8057_v32  ;;  %v8312_v39 = vcombine.low %v672_v28, %v680_v29  ;;  %v7962_v28 = vcombine.low %v321_v14, %v329_v15  ;;  %v8218_v29 = vcombine.low %v577_v17, %v585_v18  ;;  %v289_v31 = vld [vmem:[#allocation5 + $0x208] sm:$0xff] }
  0x87   : > { %v408_v35 = vld [vmem:[#allocation5 + $0x5c0] sm:$0xff]  ;;  %3319 = vmatpush2.bf16.msra.mxu0 %v8056_v38  ;;  %v297_v32 = vld [vmem:[#allocation5 + $0x248] sm:$0xff] }
  0x88   : > { %v656_v36 = vld [vmem:[#allocation5 + $0xd80] sm:$0xff]  ;;  %v8041_v40 = vcombine.high %v400_v34, %v408_v35  ;;  %3359 = vmatprep.subr.bf16.mxu1 %v8313_v33  ;;  %v8040_v46 = vcombine.low %v400_v34, %v408_v35  ;;  %v545_v33 = vld [vmem:[#allocation5 + $0xa08] sm:$0xff]  ;;  %v8203_v34 = vcombine.high %v561_v26, %v569_v27  ;;  %v7931_v38 = vcombine.high %v289_v31, %v297_v32 }
  0x89   : > { %v664_v37 = vld [vmem:[#allocation5 + $0xdc0] sm:$0xff]  ;;  %3360 = vmatpush2.bf16.msra.mxu1 %v8312_v39  ;;  %v553_v35 = vld [vmem:[#allocation5 + $0xa48] sm:$0xff] }
  0x8a   : > { %v8297_v41 = vcombine.high %v656_v36, %v664_v37  ;;  %v384_v42 = vld [vmem:[#allocation5 + $0x500] sm:$0xff]  ;;  %3320 = vmatprep.subr.bf16.mxu0 %v8041_v40  ;;  %v8296_v47 = vcombine.low %v656_v36, %v664_v37  ;;  %v7946_v36 = vcombine.low %v305_v23, %v313_v24  ;;  %v8202_v37 = vcombine.low %v561_v26, %v569_v27  ;;  %v273_v39 = vld [vmem:[#allocation5 + $0x188] sm:$0xff] }
  0x8b   : > { %v392_v43 = vld [vmem:[#allocation5 + $0x540] sm:$0xff]  ;;  %3321 = vmatpush2.bf16.msra.mxu0 %v8040_v46  ;;  %v281_v40 = vld [vmem:[#allocation5 + $0x1c8] sm:$0xff] }
  0x8c   : > { %v640_v44 = vld [vmem:[#allocation5 + $0xd00] sm:$0xff]  ;;  %v8025_v48 = vcombine.high %v384_v42, %v392_v43  ;;  %3361 = vmatprep.subr.bf16.mxu1 %v8297_v41  ;;  %v8024_v54 = vcombine.low %v384_v42, %v392_v43  ;;  %v529_v41 = vld [vmem:[#allocation5 + $0x988] sm:$0xff]  ;;  %v8187_v42 = vcombine.high %v545_v33, %v553_v35  ;;  %v7915_v46 = vcombine.high %v273_v39, %v281_v40 }
  0x8d   : > { %v648_v45 = vld [vmem:[#allocation5 + $0xd40] sm:$0xff]  ;;  %3362 = vmatpush2.bf16.msra.mxu1 %v8296_v47  ;;  %v537_v43 = vld [vmem:[#allocation5 + $0x9c8] sm:$0xff] }
  0x8e   : > { %v8281_v49 = vcombine.high %v640_v44, %v648_v45  ;;  %v368_v50 = vld [vmem:[#allocation5 + $0x480] sm:$0xff]  ;;  %3322 = vmatprep.subr.bf16.mxu0 %v8025_v48  ;;  %v8280_v55 = vcombine.low %v640_v44, %v648_v45  ;;  %v7930_v44 = vcombine.low %v289_v31, %v297_v32  ;;  %v8186_v45 = vcombine.low %v545_v33, %v553_v35  ;;  %v257_v47 = vld [vmem:[#allocation5 + $0x108] sm:$0xff] }
  0x8f   : > { %v376_v51 = vld [vmem:[#allocation5 + $0x4c0] sm:$0xff]  ;;  %3323 = vmatpush2.bf16.msra.mxu0 %v8024_v54  ;;  %v265_v48 = vld [vmem:[#allocation5 + $0x148] sm:$0xff] }
  0x90   : > { %v624_v52 = vld [vmem:[#allocation5 + $0xc80] sm:$0xff]  ;;  %v8009_v56 = vcombine.high %v368_v50, %v376_v51  ;;  %3363 = vmatprep.subr.bf16.mxu1 %v8281_v49  ;;  %v8008_v0 = vcombine.low %v368_v50, %v376_v51  ;;  %v513_v49 = vld [vmem:[#allocation5 + $0x908] sm:$0xff]  ;;  %v8171_v50 = vcombine.high %v529_v41, %v537_v43  ;;  %v7899_v54 = vcombine.high %v257_v47, %v265_v48 }
  0x91   : > { %v632_v53 = vld [vmem:[#allocation5 + $0xcc0] sm:$0xff]  ;;  %3364 = vmatpush2.bf16.msra.mxu1 %v8280_v55  ;;  %v521_v51 = vld [vmem:[#allocation5 + $0x948] sm:$0xff] }
  0x92   : > { %v8265_v57 = vcombine.high %v624_v52, %v632_v53  ;;  %v352_v60 = vld [vmem:[#allocation5 + $0x400] sm:$0xff]  ;;  %3324 = vmatprep.subr.bf16.mxu0 %v8009_v56  ;;  %v8264_v1 = vcombine.low %v624_v52, %v632_v53  ;;  %v7914_v52 = vcombine.low %v273_v39, %v281_v40  ;;  %v8170_v53 = vcombine.low %v529_v41, %v537_v43  ;;  %v241_v55 = vld [vmem:[#allocation5 + $0x88] sm:$0xff] }
  0x93   : > { %v360_v61 = vld [vmem:[#allocation5 + $0x440] sm:$0xff]  ;;  %3325 = vmatpush2.bf16.msra.mxu0 %v8008_v0  ;;  %v249_v56 = vld [vmem:[#allocation5 + $0xc8] sm:$0xff] }
  0x94   : > { %v608_v62 = vld [vmem:[#allocation5 + $0xc00] sm:$0xff]  ;;  %v7993_v2 = vcombine.high %v352_v60, %v360_v61  ;;  %3365 = vmatprep.subr.bf16.mxu1 %v8265_v57  ;;  %v7992_v8 = vcombine.low %v352_v60, %v360_v61  ;;  %v497_v57 = vld [vmem:[#allocation5 + $0x888] sm:$0xff]  ;;  %v8155_v60 = vcombine.high %v513_v49, %v521_v51  ;;  %v7883_v0 = vcombine.high %v241_v55, %v249_v56 }
  0x95   : > { %v616_v63 = vld [vmem:[#allocation5 + $0xc40] sm:$0xff]  ;;  %3366 = vmatpush2.bf16.msra.mxu1 %v8264_v1  ;;  %v505_v61 = vld [vmem:[#allocation5 + $0x8c8] sm:$0xff]  ;;  %v7882_v6 = vcombine.low %v241_v55, %v249_v56 }
  0x96   : > { %v8249_v3 = vcombine.high %v608_v62, %v616_v63  ;;  %v216_v9 = vld [vmem:[%s10042_s6] sm:$0xff]  ;;  %3326 = vmatprep.subr.bf16.mxu0 %v7993_v2  ;;  %v8248_v10 = vcombine.low %v608_v62, %v616_v63  ;;  %v7898_v62 = vcombine.low %v257_v47, %v265_v48  ;;  %v8154_v63 = vcombine.low %v513_v49, %v521_v51  ;;  %v225_v1 = vld [vmem:[#allocation5 + $0x8] sm:$0xff] }
  0x97   : > { %v10062_v16 = vpack.c.bf16 %v216_v9, %v216_v9  ;;  %3327 = vmatpush2.bf16.msra.mxu0 %v7992_v8  ;;  %v233_v2 = vld [vmem:[#allocation5 + $0x48] sm:$0xff]  ;;  %v8139_v4 = vcombine.high %v497_v57, %v505_v61  ;;  %v8138_v7 = vcombine.low %v497_v57, %v505_v61 }
  0x98   : > { %3367 = vmatprep.subr.bf16.mxu1 %v8249_v3  ;;  %3378 = vmatprep.subr.bf16.mxu0 %v7979_v12  ;;  %v481_v3 = vld [vmem:[#allocation5 + $0x808] sm:$0xff]  ;;  %v7867_v8 = vcombine.high %v225_v1, %v233_v2  ;;  %v7866_v14 = vcombine.low %v225_v1, %v233_v2 }
  0x99   : > { %3368 = vmatpush2.bf16.msra.mxu1 %v8248_v10  ;;  %v489_v5 = vld [vmem:[#allocation5 + $0x848] sm:$0xff] }
  0x9a   : > { %3419 = vmatprep.subr.bf16.mxu1 %v8235_v13  ;;  %3329 = vmatmul.mubr.bf16.vlgmr.msra.gmra.mxu0 %v10062_v16  ;;  %v465_v9 = vld [vmem:[#allocation5 + $0x788] sm:$0xff]  ;;  %v8123_v12 = vcombine.high %v481_v3, %v489_v5  ;;  %v8122_v15 = vcombine.low %v481_v3, %v489_v5 }
  0x9b   : > { %3379 = vmatpush1.bf16.msra.mxu0 %v7978_v20  ;;  %3410 = vmatprep.mubr.bf16.mxu0 %v10054_v58  ;;  %v473_v10 = vld [vmem:[#allocation5 + $0x7c8] sm:$0xff] }
  0x9c   : > { %3370 = vmatmul.mubr.bf16.vlgmr.msra.gmra.mxu1 %v10064_v19  ;;  %3380 = vmatprep.subr.bf16.mxu0 %v7963_v22  ;;  %v721_v11 = vld [vmem:[#allocation5 + $0xf88] sm:$0xff]  ;;  %v8107_v17 = vcombine.high %v465_v9, %v473_v10  ;;  %v8106_v24 = vcombine.low %v465_v9, %v473_v10 }
  0x9d   : > { %3420 = vmatpush1.bf16.msra.mxu1 %v8234_v21  ;;  %3451 = vmatprep.mubr.bf16.mxu1 %v10056_v59  ;;  %v729_v13 = vld [vmem:[#allocation5 + $0xfc8] sm:$0xff] }
  0x9e   : > { %3421 = vmatprep.subr.bf16.mxu1 %v8219_v25  ;;  %v449_v18 = vld [vmem:[#allocation5 + $0x708] sm:$0xff]  ;;  %v8363_v22 = vcombine.high %v721_v11, %v729_v13  ;;  %v8362_v25 = vcombine.low %v721_v11, %v729_v13  ;;  %v338_v13 = vld [vmem:[#allocation5 + $0x390] sm:$0xff] }
  0x9f   : > { %3381 = vmatpush1.bf16.msra.mxu0 %v7962_v28  ;;  %v457_v20 = vld [vmem:[#allocation5 + $0x748] sm:$0xff] }
  0xa0   : > { %3382 = vmatprep.subr.bf16.mxu0 %v7947_v30  ;;  %v705_v21 = vld [vmem:[#allocation5 + $0xf08] sm:$0xff]  ;;  %v8091_v26 = vcombine.high %v449_v18, %v457_v20  ;;  %v8090_v32 = vcombine.low %v449_v18, %v457_v20  ;;  %v602_v18 = vld [vmem:[#allocation5 + $0xbd0] sm:$0xff] }
  0xa1   : > { %3422 = vmatpush1.bf16.msra.mxu1 %v8218_v29  ;;  %v713_v23 = vld [vmem:[#allocation5 + $0xf48] sm:$0xff] }
  0xa2   : > { %3423 = vmatprep.subr.bf16.mxu1 %v8203_v34  ;;  %v433_v27 = vld [vmem:[#allocation5 + $0x688] sm:$0xff]  ;;  %v8347_v30 = vcombine.high %v705_v21, %v713_v23  ;;  %v8346_v33 = vcombine.low %v705_v21, %v713_v23  ;;  %v322_v23 = vld [vmem:[#allocation5 + $0x310] sm:$0xff] }
  0xa3   : > { %3383 = vmatpush1.bf16.msra.mxu0 %v7946_v36  ;;  %v441_v28 = vld [vmem:[#allocation5 + $0x6c8] sm:$0xff] }
  0xa4   : > { %3384 = vmatprep.subr.bf16.mxu0 %v7931_v38  ;;  %v689_v29 = vld [vmem:[#allocation5 + $0xe88] sm:$0xff]  ;;  %v8075_v34 = vcombine.high %v433_v27, %v441_v28  ;;  %v8074_v40 = vcombine.low %v433_v27, %v441_v28  ;;  %v586_v27 = vld [vmem:[#allocation5 + $0xb50] sm:$0xff] }
  0xa5   : > { %3424 = vmatpush1.bf16.msra.mxu1 %v8202_v37  ;;  %v697_v31 = vld [vmem:[#allocation5 + $0xec8] sm:$0xff] }
  0xa6   : > { %3425 = vmatprep.subr.bf16.mxu1 %v8187_v42  ;;  %v417_v35 = vld [vmem:[#allocation5 + $0x608] sm:$0xff]  ;;  %v8331_v38 = vcombine.high %v689_v29, %v697_v31  ;;  %v8330_v41 = vcombine.low %v689_v29, %v697_v31  ;;  %v306_v31 = vld [vmem:[#allocation5 + $0x290] sm:$0xff] }
  0xa7   : > { %3385 = vmatpush1.bf16.msra.mxu0 %v7930_v44  ;;  %v425_v36 = vld [vmem:[#allocation5 + $0x648] sm:$0xff] }
  0xa8   : > { %3386 = vmatprep.subr.bf16.mxu0 %v7915_v46  ;;  %v673_v37 = vld [vmem:[#allocation5 + $0xe08] sm:$0xff]  ;;  %v8059_v42 = vcombine.high %v417_v35, %v425_v36  ;;  %v8058_v48 = vcombine.low %v417_v35, %v425_v36  ;;  %v570_v35 = vld [vmem:[#allocation5 + $0xad0] sm:$0xff] }
  0xa9   : > { %3426 = vmatpush1.bf16.msra.mxu1 %v8186_v45  ;;  %v681_v39 = vld [vmem:[#allocation5 + $0xe48] sm:$0xff] }
  0xaa   : > { %3427 = vmatprep.subr.bf16.mxu1 %v8171_v50  ;;  %v401_v43 = vld [vmem:[#allocation5 + $0x588] sm:$0xff]  ;;  %v8315_v46 = vcombine.high %v673_v37, %v681_v39  ;;  %v8314_v49 = vcombine.low %v673_v37, %v681_v39  ;;  %v290_v39 = vld [vmem:[#allocation5 + $0x210] sm:$0xff] }
  0xab   : > { %3387 = vmatpush1.bf16.msra.mxu0 %v7914_v52  ;;  %v409_v44 = vld [vmem:[#allocation5 + $0x5c8] sm:$0xff] }
  0xac   : > { %3388 = vmatprep.subr.bf16.mxu0 %v7899_v54  ;;  %v657_v45 = vld [vmem:[#allocation5 + $0xd88] sm:$0xff]  ;;  %v8043_v50 = vcombine.high %v401_v43, %v409_v44  ;;  %v8042_v56 = vcombine.low %v401_v43, %v409_v44  ;;  %v554_v43 = vld [vmem:[#allocation5 + $0xa50] sm:$0xff] }
  0xad   : > { %3428 = vmatpush1.bf16.msra.mxu1 %v8170_v53  ;;  %v665_v47 = vld [vmem:[#allocation5 + $0xdc8] sm:$0xff] }
  0xae   : > { %3429 = vmatprep.subr.bf16.mxu1 %v8155_v60  ;;  %v385_v51 = vld [vmem:[#allocation5 + $0x508] sm:$0xff]  ;;  %v8299_v54 = vcombine.high %v657_v45, %v665_v47  ;;  %v8298_v57 = vcombine.low %v657_v45, %v665_v47  ;;  %v274_v47 = vld [vmem:[#allocation5 + $0x190] sm:$0xff] }
  0xaf   : > { %3389 = vmatpush1.bf16.msra.mxu0 %v7898_v62  ;;  %v393_v52 = vld [vmem:[#allocation5 + $0x548] sm:$0xff] }
  0xb0   : > { %3390 = vmatprep.subr.bf16.mxu0 %v7883_v0  ;;  %v641_v53 = vld [vmem:[#allocation5 + $0xd08] sm:$0xff]  ;;  %v8027_v60 = vcombine.high %v385_v51, %v393_v52  ;;  %v8026_v2 = vcombine.low %v385_v51, %v393_v52  ;;  %v538_v51 = vld [vmem:[#allocation5 + $0x9d0] sm:$0xff] }
  0xb1   : > { %3430 = vmatpush1.bf16.msra.mxu1 %v8154_v63  ;;  %v649_v55 = vld [vmem:[#allocation5 + $0xd48] sm:$0xff] }
  0xb2   : > { %3431 = vmatprep.subr.bf16.mxu1 %v8139_v4  ;;  %v369_v61 = vld [vmem:[#allocation5 + $0x488] sm:$0xff]  ;;  %v8283_v0 = vcombine.high %v641_v53, %v649_v55  ;;  %v8282_v3 = vcombine.low %v641_v53, %v649_v55  ;;  %v258_v55 = vld [vmem:[#allocation5 + $0x110] sm:$0xff] }
  0xb3   : > { %3391 = vmatpush1.bf16.msra.mxu0 %v7882_v6  ;;  %v377_v62 = vld [vmem:[#allocation5 + $0x4c8] sm:$0xff] }
  0xb4   : > { %3392 = vmatprep.subr.bf16.mxu0 %v7867_v8  ;;  %v625_v63 = vld [vmem:[#allocation5 + $0xc88] sm:$0xff]  ;;  %v8011_v4 = vcombine.high %v369_v61, %v377_v62  ;;  %v8010_v10 = vcombine.low %v369_v61, %v377_v62  ;;  %v522_v61 = vld [vmem:[#allocation5 + $0x950] sm:$0xff] }
  0xb5   : > { %3432 = vmatpush1.bf16.msra.mxu1 %v8138_v7  ;;  %v633_v1 = vld [vmem:[#allocation5 + $0xcc8] sm:$0xff] }
  0xb6   : > { %3433 = vmatprep.subr.bf16.mxu1 %v8123_v12  ;;  %v353_v5 = vld [vmem:[#allocation5 + $0x408] sm:$0xff]  ;;  %v8267_v8 = vcombine.high %v625_v63, %v633_v1  ;;  %v8266_v11 = vcombine.low %v625_v63, %v633_v1  ;;  %v242_v1 = vld [vmem:[#allocation5 + $0x90] sm:$0xff] }
  0xb7   : > { %3393 = vmatpush1.bf16.msra.mxu0 %v7866_v14  ;;  %v361_v6 = vld [vmem:[#allocation5 + $0x448] sm:$0xff]  ;;  %v346_v14 = vld [vmem:[#allocation5 + $0x3d0] sm:$0xff] }
  0xb8   : > { %3394 = vmatprep.subr.bf16.mxu0 %v8107_v17  ;;  %v609_v7 = vld [vmem:[#allocation5 + $0xc08] sm:$0xff]  ;;  %v7995_v12 = vcombine.high %v353_v5, %v361_v6  ;;  %v7994_v20 = vcombine.low %v353_v5, %v361_v6  ;;  %v7980_v28 = vcombine.low %v338_v13, %v346_v14  ;;  %v506_v5 = vld [vmem:[#allocation5 + $0x8d0] sm:$0xff] }
  0xb9   : > { %3434 = vmatpush1.bf16.msra.mxu1 %v8122_v15  ;;  %v617_v9 = vld [vmem:[#allocation5 + $0xc48] sm:$0xff]  ;;  %v594_v15 = vld [vmem:[#allocation5 + $0xb90] sm:$0xff] }
  0xba   : > { %3435 = vmatprep.subr.bf16.mxu1 %v8363_v22  ;;  %v8251_v17 = vcombine.high %v609_v7, %v617_v9  ;;  %v8250_v21 = vcombine.low %v609_v7, %v617_v9  ;;  %v7981_v22 = vcombine.high %v338_v13, %v346_v14  ;;  %v8236_v29 = vcombine.low %v594_v15, %v602_v18  ;;  %v226_v9 = vld [vmem:[#allocation5 + $0x10] sm:$0xff] }
  0xbb   : > { %3395 = vmatpush2.bf16.msra.mxu0 %v8106_v24  ;;  %v330_v24 = vld [vmem:[#allocation5 + $0x350] sm:$0xff] }
  0xbc   : > { %3396 = vmatprep.subr.bf16.mxu0 %v8091_v26  ;;  %v8237_v26 = vcombine.high %v594_v15, %v602_v18  ;;  %v7964_v36 = vcombine.low %v322_v23, %v330_v24  ;;  %v490_v13 = vld [vmem:[#allocation5 + $0x850] sm:$0xff] }
  0xbd   : > { %3436 = vmatpush2.bf16.msra.mxu1 %v8362_v25  ;;  %v578_v25 = vld [vmem:[#allocation5 + $0xb10] sm:$0xff] }
  0xbe   : > { %3437 = vmatprep.subr.bf16.mxu1 %v8347_v30  ;;  %v7965_v30 = vcombine.high %v322_v23, %v330_v24  ;;  %v8220_v37 = vcombine.low %v578_v25, %v586_v27  ;;  %v466_v18 = vld [vmem:[#allocation5 + $0x790] sm:$0xff] }
  0xbf   : > { %3397 = vmatpush2.bf16.msra.mxu0 %v8090_v32  ;;  %v314_v32 = vld [vmem:[#allocation5 + $0x2d0] sm:$0xff] }
  0xc0   : > { %3398 = vmatprep.subr.bf16.mxu0 %v8075_v34  ;;  %v8221_v34 = vcombine.high %v578_v25, %v586_v27  ;;  %v7948_v44 = vcombine.low %v306_v31, %v314_v32  ;;  %v730_v23 = vld [vmem:[#allocation5 + $0xfd0] sm:$0xff] }
  0xc1   : > { %3438 = vmatpush2.bf16.msra.mxu1 %v8346_v33  ;;  %v562_v33 = vld [vmem:[#allocation5 + $0xa90] sm:$0xff] }
  0xc2   : > { %3439 = vmatprep.subr.bf16.mxu1 %v8331_v38  ;;  %v7949_v38 = vcombine.high %v306_v31, %v314_v32  ;;  %v8204_v45 = vcombine.low %v562_v33, %v570_v35  ;;  %v450_v27 = vld [vmem:[#allocation5 + $0x710] sm:$0xff] }
  0xc3   : > { %3399 = vmatpush2.bf16.msra.mxu0 %v8074_v40  ;;  %v298_v40 = vld [vmem:[#allocation5 + $0x250] sm:$0xff] }
  0xc4   : > { %3400 = vmatprep.subr.bf16.mxu0 %v8059_v42  ;;  %v8205_v42 = vcombine.high %v562_v33, %v570_v35  ;;  %v7932_v52 = vcombine.low %v290_v39, %v298_v40  ;;  %v714_v31 = vld [vmem:[#allocation5 + $0xf50] sm:$0xff] }
  0xc5   : > { %3440 = vmatpush2.bf16.msra.mxu1 %v8330_v41  ;;  %v546_v41 = vld [vmem:[#allocation5 + $0xa10] sm:$0xff] }
  0xc6   : > { %3441 = vmatprep.subr.bf16.mxu1 %v8315_v46  ;;  %v7933_v46 = vcombine.high %v290_v39, %v298_v40  ;;  %v8188_v53 = vcombine.low %v546_v41, %v554_v43  ;;  %v434_v35 = vld [vmem:[#allocation5 + $0x690] sm:$0xff] }
  0xc7   : > { %3401 = vmatpush2.bf16.msra.mxu0 %v8058_v48  ;;  %v282_v48 = vld [vmem:[#allocation5 + $0x1d0] sm:$0xff] }
  0xc8   : > { %3402 = vmatprep.subr.bf16.mxu0 %v8043_v50  ;;  %v8189_v50 = vcombine.high %v546_v41, %v554_v43  ;;  %v7916_v62 = vcombine.low %v274_v47, %v282_v48  ;;  %v698_v39 = vld [vmem:[#allocation5 + $0xed0] sm:$0xff] }
  0xc9   : > { %3442 = vmatpush2.bf16.msra.mxu1 %v8314_v49  ;;  %v530_v49 = vld [vmem:[#allocation5 + $0x990] sm:$0xff] }
  0xca   : > { %3443 = vmatprep.subr.bf16.mxu1 %v8299_v54  ;;  %v7917_v54 = vcombine.high %v274_v47, %v282_v48  ;;  %v8172_v63 = vcombine.low %v530_v49, %v538_v51  ;;  %v418_v43 = vld [vmem:[#allocation5 + $0x610] sm:$0xff] }
  0xcb   : > { %3403 = vmatpush2.bf16.msra.mxu0 %v8042_v56  ;;  %v266_v56 = vld [vmem:[#allocation5 + $0x150] sm:$0xff] }
  0xcc   : > { %3404 = vmatprep.subr.bf16.mxu0 %v8027_v60  ;;  %v8173_v60 = vcombine.high %v530_v49, %v538_v51  ;;  %v7900_v6 = vcombine.low %v258_v55, %v266_v56  ;;  %v682_v47 = vld [vmem:[#allocation5 + $0xe50] sm:$0xff] }
  0xcd   : > { %3444 = vmatpush2.bf16.msra.mxu1 %v8298_v57  ;;  %v514_v57 = vld [vmem:[#allocation5 + $0x910] sm:$0xff] }
  0xce   : > { %3445 = vmatprep.subr.bf16.mxu1 %v8283_v0  ;;  %v7901_v0 = vcombine.high %v258_v55, %v266_v56  ;;  %v8156_v7 = vcombine.low %v514_v57, %v522_v61  ;;  %v402_v51 = vld [vmem:[#allocation5 + $0x590] sm:$0xff] }
  0xcf   : > { %3405 = vmatpush2.bf16.msra.mxu0 %v8026_v2  ;;  %v250_v2 = vld [vmem:[#allocation5 + $0xd0] sm:$0xff] }
  0xd0   : > { %3406 = vmatprep.subr.bf16.mxu0 %v8011_v4  ;;  %v8157_v4 = vcombine.high %v514_v57, %v522_v61  ;;  %v7884_v14 = vcombine.low %v242_v1, %v250_v2  ;;  %v666_v55 = vld [vmem:[#allocation5 + $0xdd0] sm:$0xff] }
  0xd1   : > { %3446 = vmatpush2.bf16.msra.mxu1 %v8282_v3  ;;  %v498_v3 = vld [vmem:[#allocation5 + $0x890] sm:$0xff] }
  0xd2   : > { %3447 = vmatprep.subr.bf16.mxu1 %v8267_v8  ;;  %v7885_v8 = vcombine.high %v242_v1, %v250_v2  ;;  %v8140_v15 = vcombine.low %v498_v3, %v506_v5  ;;  %v386_v61 = vld [vmem:[#allocation5 + $0x510] sm:$0xff] }
  0xd3   : > { %3407 = vmatpush2.bf16.msra.mxu0 %v8010_v10  ;;  %v234_v10 = vld [vmem:[#allocation5 + $0x50] sm:$0xff] }
  0xd4   : > { %3408 = vmatprep.subr.bf16.mxu0 %v7995_v12  ;;  %v8141_v12 = vcombine.high %v498_v3, %v506_v5  ;;  %v7868_v24 = vcombine.low %v226_v9, %v234_v10  ;;  %v650_v1 = vld [vmem:[#allocation5 + $0xd50] sm:$0xff] }
  0xd5   : > { %3448 = vmatpush2.bf16.msra.mxu1 %v8266_v11  ;;  %v482_v11 = vld [vmem:[#allocation5 + $0x810] sm:$0xff] }
  0xd6   : > { %3449 = vmatprep.subr.bf16.mxu1 %v8251_v17  ;;  %v7869_v17 = vcombine.high %v226_v9, %v234_v10  ;;  %v8124_v25 = vcombine.low %v482_v11, %v490_v13  ;;  %v370_v5 = vld [vmem:[#allocation5 + $0x490] sm:$0xff] }
  0xd7   : > { %3409 = vmatpush2.bf16.msra.mxu0 %v7994_v20  ;;  %v474_v20 = vld [vmem:[#allocation5 + $0x7d0] sm:$0xff] }
  0xd8   : > { %3460 = vmatprep.subr.bf16.mxu0 %v7981_v22  ;;  %v8125_v22 = vcombine.high %v482_v11, %v490_v13  ;;  %v8108_v32 = vcombine.low %v466_v18, %v474_v20  ;;  %v634_v9 = vld [vmem:[#allocation5 + $0xcd0] sm:$0xff] }
  0xd9   : > { %3450 = vmatpush2.bf16.msra.mxu1 %v8250_v21  ;;  %v722_v21 = vld [vmem:[#allocation5 + $0xf90] sm:$0xff] }
  0xda   : > { %3501 = vmatprep.subr.bf16.mxu1 %v8237_v26  ;;  %3411 = vmatmul.mubr.bf16.vlgmr.msra.gmra.mxu0 %v10062_v16  ;;  %v8109_v26 = vcombine.high %v466_v18, %v474_v20  ;;  %v8364_v33 = vcombine.low %v722_v21, %v730_v23  ;;  %v354_v13 = vld [vmem:[#allocation5 + $0x410] sm:$0xff] }
  0xdb   : > { %3461 = vmatpush1.bf16.msra.mxu0 %v7980_v28  ;;  %3492 = vmatprep.mubr.bf16.mxu0 %v10054_v58  ;;  %v458_v28 = vld [vmem:[#allocation5 + $0x750] sm:$0xff] }
  0xdc   : > { %3452 = vmatmul.mubr.bf16.vlgmr.msra.gmra.mxu1 %v10064_v19  ;;  %3462 = vmatprep.subr.bf16.mxu0 %v7965_v30  ;;  %v8365_v30 = vcombine.high %v722_v21, %v730_v23  ;;  %v8092_v40 = vcombine.low %v450_v27, %v458_v28  ;;  %v618_v18 = vld [vmem:[#allocation5 + $0xc50] sm:$0xff]  ;;  %v339_v23 = vld [vmem:[#allocation5 + $0x398] sm:$0xff] }
  0xdd   : > { %3502 = vmatpush1.bf16.msra.mxu1 %v8236_v29  ;;  %3533 = vmatprep.mubr.bf16.mxu1 %v10056_v59  ;;  %v706_v29 = vld [vmem:[#allocation5 + $0xf10] sm:$0xff] }
  0xde   : > { %3503 = vmatprep.subr.bf16.mxu1 %v8221_v34  ;;  %v8093_v34 = vcombine.high %v450_v27, %v458_v28  ;;  %v8348_v41 = vcombine.low %v706_v29, %v714_v31  ;;  %v603_v27 = vld [vmem:[#allocation5 + $0xbd8] sm:$0xff] }
  0xdf   : > { %3463 = vmatpush1.bf16.msra.mxu0 %v7964_v36  ;;  %v442_v36 = vld [vmem:[#allocation5 + $0x6d0] sm:$0xff] }
  0xe0   : > { %3464 = vmatprep.subr.bf16.mxu0 %v7949_v38  ;;  %v8349_v38 = vcombine.high %v706_v29, %v714_v31  ;;  %v8076_v48 = vcombine.low %v434_v35, %v442_v36  ;;  %v323_v31 = vld [vmem:[#allocation5 + $0x318] sm:$0xff] }
  0xe1   : > { %3504 = vmatpush1.bf16.msra.mxu1 %v8220_v37  ;;  %v690_v37 = vld [vmem:[#allocation5 + $0xe90] sm:$0xff] }
  0xe2   : > { %3505 = vmatprep.subr.bf16.mxu1 %v8205_v42  ;;  %v8077_v42 = vcombine.high %v434_v35, %v442_v36  ;;  %v8332_v49 = vcombine.low %v690_v37, %v698_v39  ;;  %v587_v35 = vld [vmem:[#allocation5 + $0xb58] sm:$0xff] }
  0xe3   : > { %3465 = vmatpush1.bf16.msra.mxu0 %v7948_v44  ;;  %v426_v44 = vld [vmem:[#allocation5 + $0x650] sm:$0xff] }
  0xe4   : > { %3466 = vmatprep.subr.bf16.mxu0 %v7933_v46  ;;  %v8333_v46 = vcombine.high %v690_v37, %v698_v39  ;;  %v8060_v56 = vcombine.low %v418_v43, %v426_v44  ;;  %v307_v39 = vld [vmem:[#allocation5 + $0x298] sm:$0xff] }
  0xe5   : > { %3506 = vmatpush1.bf16.msra.mxu1 %v8204_v45  ;;  %v674_v45 = vld [vmem:[#allocation5 + $0xe10] sm:$0xff] }
  0xe6   : > { %3507 = vmatprep.subr.bf16.mxu1 %v8189_v50  ;;  %v8061_v50 = vcombine.high %v418_v43, %v426_v44  ;;  %v8316_v57 = vcombine.low %v674_v45, %v682_v47  ;;  %v571_v43 = vld [vmem:[#allocation5 + $0xad8] sm:$0xff] }
  0xe7   : > { %3467 = vmatpush1.bf16.msra.mxu0 %v7932_v52  ;;  %v410_v52 = vld [vmem:[#allocation5 + $0x5d0] sm:$0xff] }
  0xe8   : > { %3468 = vmatprep.subr.bf16.mxu0 %v7917_v54  ;;  %v8317_v54 = vcombine.high %v674_v45, %v682_v47  ;;  %v8044_v2 = vcombine.low %v402_v51, %v410_v52  ;;  %v291_v47 = vld [vmem:[#allocation5 + $0x218] sm:$0xff] }
  0xe9   : > { %3508 = vmatpush1.bf16.msra.mxu1 %v8188_v53  ;;  %v658_v53 = vld [vmem:[#allocation5 + $0xd90] sm:$0xff] }
  0xea   : > { %3509 = vmatprep.subr.bf16.mxu1 %v8173_v60  ;;  %v8045_v60 = vcombine.high %v402_v51, %v410_v52  ;;  %v8300_v3 = vcombine.low %v658_v53, %v666_v55  ;;  %v555_v51 = vld [vmem:[#allocation5 + $0xa58] sm:$0xff] }
  0xeb   : > { %3469 = vmatpush1.bf16.msra.mxu0 %v7916_v62  ;;  %v394_v62 = vld [vmem:[#allocation5 + $0x550] sm:$0xff] }
  0xec   : > { %3470 = vmatprep.subr.bf16.mxu0 %v7901_v0  ;;  %v8301_v0 = vcombine.high %v658_v53, %v666_v55  ;;  %v8028_v10 = vcombine.low %v386_v61, %v394_v62  ;;  %v275_v55 = vld [vmem:[#allocation5 + $0x198] sm:$0xff] }
  0xed   : > { %3510 = vmatpush1.bf16.msra.mxu1 %v8172_v63  ;;  %v642_v63 = vld [vmem:[#allocation5 + $0xd10] sm:$0xff] }
  0xee   : > { %3511 = vmatprep.subr.bf16.mxu1 %v8157_v4  ;;  %v8029_v4 = vcombine.high %v386_v61, %v394_v62  ;;  %v8284_v11 = vcombine.low %v642_v63, %v650_v1  ;;  %v539_v61 = vld [vmem:[#allocation5 + $0x9d8] sm:$0xff] }
  0xef   : > { %3471 = vmatpush1.bf16.msra.mxu0 %v7900_v6  ;;  %v378_v6 = vld [vmem:[#allocation5 + $0x4d0] sm:$0xff] }
  0xf0   : > { %3472 = vmatprep.subr.bf16.mxu0 %v7885_v8  ;;  %v8285_v8 = vcombine.high %v642_v63, %v650_v1  ;;  %v8012_v20 = vcombine.low %v370_v5, %v378_v6  ;;  %v259_v1 = vld [vmem:[#allocation5 + $0x118] sm:$0xff] }
  0xf1   : > { %3512 = vmatpush1.bf16.msra.mxu1 %v8156_v7  ;;  %v626_v7 = vld [vmem:[#allocation5 + $0xc90] sm:$0xff] }
  0xf2   : > { %3513 = vmatprep.subr.bf16.mxu1 %v8141_v12  ;;  %v8013_v12 = vcombine.high %v370_v5, %v378_v6  ;;  %v8268_v21 = vcombine.low %v626_v7, %v634_v9  ;;  %v523_v5 = vld [vmem:[#allocation5 + $0x958] sm:$0xff] }
  0xf3   : > { %3473 = vmatpush1.bf16.msra.mxu0 %v7884_v14  ;;  %v362_v14 = vld [vmem:[#allocation5 + $0x450] sm:$0xff] }
  0xf4   : > { %3474 = vmatprep.subr.bf16.mxu0 %v7869_v17  ;;  %v8269_v17 = vcombine.high %v626_v7, %v634_v9  ;;  %v7996_v28 = vcombine.low %v354_v13, %v362_v14  ;;  %v243_v9 = vld [vmem:[#allocation5 + $0x98] sm:$0xff] }
  0xf5   : > { %3514 = vmatpush1.bf16.msra.mxu1 %v8140_v15  ;;  %v610_v15 = vld [vmem:[#allocation5 + $0xc10] sm:$0xff] }
  0xf6   : > { %3515 = vmatprep.subr.bf16.mxu1 %v8125_v22  ;;  %v7997_v22 = vcombine.high %v354_v13, %v362_v14  ;;  %v8252_v29 = vcombine.low %v610_v15, %v618_v18  ;;  %v507_v13 = vld [vmem:[#allocation5 + $0x8d8] sm:$0xff] }
  0xf7   : > { %3475 = vmatpush1.bf16.msra.mxu0 %v7868_v24  ;;  %v347_v24 = vld [vmem:[#allocation5 + $0x3d8] sm:$0xff] }
  0xf8   : > { %3476 = vmatprep.subr.bf16.mxu0 %v8109_v26  ;;  %v8253_v26 = vcombine.high %v610_v15, %v618_v18  ;;  %v7982_v36 = vcombine.low %v339_v23, %v347_v24  ;;  %v227_v18 = vld [vmem:[#allocation5 + $0x18] sm:$0xff] }
  0xf9   : > { %3516 = vmatpush1.bf16.msra.mxu1 %v8124_v25  ;;  %v595_v25 = vld [vmem:[#allocation5 + $0xb98] sm:$0xff] }
  0xfa   : > { %3517 = vmatprep.subr.bf16.mxu1 %v8365_v30  ;;  %v7983_v30 = vcombine.high %v339_v23, %v347_v24  ;;  %v8238_v37 = vcombine.low %v595_v25, %v603_v27  ;;  %v491_v23 = vld [vmem:[#allocation5 + $0x858] sm:$0xff] }
  0xfb   : > { %3477 = vmatpush2.bf16.msra.mxu0 %v8108_v32  ;;  %v331_v32 = vld [vmem:[#allocation5 + $0x358] sm:$0xff] }
  0xfc   : > { %3478 = vmatprep.subr.bf16.mxu0 %v8093_v34  ;;  %v8239_v34 = vcombine.high %v595_v25, %v603_v27  ;;  %v7966_v44 = vcombine.low %v323_v31, %v331_v32  ;;  %v467_v27 = vld [vmem:[#allocation5 + $0x798] sm:$0xff] }
  0xfd   : > { %3518 = vmatpush2.bf16.msra.mxu1 %v8364_v33  ;;  %v579_v33 = vld [vmem:[#allocation5 + $0xb18] sm:$0xff] }
  0xfe   : > { %3519 = vmatprep.subr.bf16.mxu1 %v8349_v38  ;;  %v7967_v38 = vcombine.high %v323_v31, %v331_v32  ;;  %v8222_v45 = vcombine.low %v579_v33, %v587_v35  ;;  %v731_v31 = vld [vmem:[#allocation5 + $0xfd8] sm:$0xff] }
  0xff   : > { %3479 = vmatpush2.bf16.msra.mxu0 %v8092_v40  ;;  %v315_v40 = vld [vmem:[#allocation5 + $0x2d8] sm:$0xff] }
 0x100   : > { %3480 = vmatprep.subr.bf16.mxu0 %v8077_v42  ;;  %v8223_v42 = vcombine.high %v579_v33, %v587_v35  ;;  %v7950_v52 = vcombine.low %v307_v39, %v315_v40  ;;  %v451_v35 = vld [vmem:[#allocation5 + $0x718] sm:$0xff] }
 0x101   : > { %3520 = vmatpush2.bf16.msra.mxu1 %v8348_v41  ;;  %v563_v41 = vld [vmem:[#allocation5 + $0xa98] sm:$0xff] }
 0x102   : > { %3521 = vmatprep.subr.bf16.mxu1 %v8333_v46  ;;  %v7951_v46 = vcombine.high %v307_v39, %v315_v40  ;;  %v8206_v53 = vcombine.low %v563_v41, %v571_v43  ;;  %v715_v39 = vld [vmem:[#allocation5 + $0xf58] sm:$0xff] }
 0x103   : > { %3481 = vmatpush2.bf16.msra.mxu0 %v8076_v48  ;;  %v299_v48 = vld [vmem:[#allocation5 + $0x258] sm:$0xff] }
 0x104   : > { %3482 = vmatprep.subr.bf16.mxu0 %v8061_v50  ;;  %v8207_v50 = vcombine.high %v563_v41, %v571_v43  ;;  %v7934_v62 = vcombine.low %v291_v47, %v299_v48  ;;  %v435_v43 = vld [vmem:[#allocation5 + $0x698] sm:$0xff] }
 0x105   : > { %3522 = vmatpush2.bf16.msra.mxu1 %v8332_v49  ;;  %v547_v49 = vld [vmem:[#allocation5 + $0xa18] sm:$0xff] }
 0x106   : > { %3523 = vmatprep.subr.bf16.mxu1 %v8317_v54  ;;  %v7935_v54 = vcombine.high %v291_v47, %v299_v48  ;;  %v8190_v63 = vcombine.low %v547_v49, %v555_v51  ;;  %v699_v47 = vld [vmem:[#allocation5 + $0xed8] sm:$0xff] }
 0x107   : > { %3483 = vmatpush2.bf16.msra.mxu0 %v8060_v56  ;;  %v283_v56 = vld [vmem:[#allocation5 + $0x1d8] sm:$0xff] }
 0x108   : > { %3484 = vmatprep.subr.bf16.mxu0 %v8045_v60  ;;  %v8191_v60 = vcombine.high %v547_v49, %v555_v51  ;;  %v7918_v6 = vcombine.low %v275_v55, %v283_v56  ;;  %v419_v51 = vld [vmem:[#allocation5 + $0x618] sm:$0xff] }
 0x109   : > { %3524 = vmatpush2.bf16.msra.mxu1 %v8316_v57  ;;  %v531_v57 = vld [vmem:[#allocation5 + $0x998] sm:$0xff] }
 0x10a   : > { %3525 = vmatprep.subr.bf16.mxu1 %v8301_v0  ;;  %v7919_v0 = vcombine.high %v275_v55, %v283_v56  ;;  %v8174_v7 = vcombine.low %v531_v57, %v539_v61  ;;  %v683_v55 = vld [vmem:[#allocation5 + $0xe58] sm:$0xff] }
 0x10b   : > { %3485 = vmatpush2.bf16.msra.mxu0 %v8044_v2  ;;  %v267_v2 = vld [vmem:[#allocation5 + $0x158] sm:$0xff] }
 0x10c   : > { %3486 = vmatprep.subr.bf16.mxu0 %v8029_v4  ;;  %v8175_v4 = vcombine.high %v531_v57, %v539_v61  ;;  %v7902_v14 = vcombine.low %v259_v1, %v267_v2  ;;  %v403_v61 = vld [vmem:[#allocation5 + $0x598] sm:$0xff] }
 0x10d   : > { %3526 = vmatpush2.bf16.msra.mxu1 %v8300_v3  ;;  %v515_v3 = vld [vmem:[#allocation5 + $0x918] sm:$0xff] }
 0x10e   : > { %3527 = vmatprep.subr.bf16.mxu1 %v8285_v8  ;;  %v7903_v8 = vcombine.high %v259_v1, %v267_v2  ;;  %v8158_v15 = vcombine.low %v515_v3, %v523_v5  ;;  %v667_v1 = vld [vmem:[#allocation5 + $0xdd8] sm:$0xff] }
 0x10f   : > { %3487 = vmatpush2.bf16.msra.mxu0 %v8028_v10  ;;  %v251_v10 = vld [vmem:[#allocation5 + $0xd8] sm:$0xff] }
 0x110   : > { %3488 = vmatprep.subr.bf16.mxu0 %v8013_v12  ;;  %v8159_v12 = vcombine.high %v515_v3, %v523_v5  ;;  %v7886_v24 = vcombine.low %v243_v9, %v251_v10  ;;  %v387_v5 = vld [vmem:[#allocation5 + $0x518] sm:$0xff] }
 0x111   : > { %3528 = vmatpush2.bf16.msra.mxu1 %v8284_v11  ;;  %v499_v11 = vld [vmem:[#allocation5 + $0x898] sm:$0xff] }
 0x112   : > { %3529 = vmatprep.subr.bf16.mxu1 %v8269_v17  ;;  %v7887_v17 = vcombine.high %v243_v9, %v251_v10  ;;  %v8142_v25 = vcombine.low %v499_v11, %v507_v13  ;;  %v651_v9 = vld [vmem:[#allocation5 + $0xd58] sm:$0xff] }
 0x113   : > { %3489 = vmatpush2.bf16.msra.mxu0 %v8012_v20  ;;  %v235_v20 = vld [vmem:[#allocation5 + $0x58] sm:$0xff] }
 0x114   : > { %3490 = vmatprep.subr.bf16.mxu0 %v7997_v22  ;;  %v8143_v22 = vcombine.high %v499_v11, %v507_v13  ;;  %v7870_v32 = vcombine.low %v227_v18, %v235_v20  ;;  %v371_v13 = vld [vmem:[#allocation5 + $0x498] sm:$0xff] }
 0x115   : > { %3530 = vmatpush2.bf16.msra.mxu1 %v8268_v21  ;;  %v483_v21 = vld [vmem:[#allocation5 + $0x818] sm:$0xff] }
 0x116   : > { %3531 = vmatprep.subr.bf16.mxu1 %v8253_v26  ;;  %v7871_v26 = vcombine.high %v227_v18, %v235_v20  ;;  %v8126_v33 = vcombine.low %v483_v21, %v491_v23  ;;  %v635_v18 = vld [vmem:[#allocation5 + $0xcd8] sm:$0xff] }
 0x117   : > { %3491 = vmatpush2.bf16.msra.mxu0 %v7996_v28  ;;  %v475_v28 = vld [vmem:[#allocation5 + $0x7d8] sm:$0xff] }
 0x118   : > { %3542 = vmatprep.subr.bf16.mxu0 %v7983_v30  ;;  %v8127_v30 = vcombine.high %v483_v21, %v491_v23  ;;  %v8110_v40 = vcombine.low %v467_v27, %v475_v28  ;;  %v355_v23 = vld [vmem:[#allocation5 + $0x418] sm:$0xff] }
 0x119   : > { %3532 = vmatpush2.bf16.msra.mxu1 %v8252_v29  ;;  %v723_v29 = vld [vmem:[#allocation5 + $0xf98] sm:$0xff] }
 0x11a   : > { %3583 = vmatprep.subr.bf16.mxu1 %v8239_v34  ;;  %3493 = vmatmul.mubr.bf16.vlgmr.msra.gmra.mxu0 %v10062_v16  ;;  %v8111_v34 = vcombine.high %v467_v27, %v475_v28  ;;  %v8366_v41 = vcombine.low %v723_v29, %v731_v31  ;;  %v619_v27 = vld [vmem:[#allocation5 + $0xc58] sm:$0xff] }
 0x11b   : > { %3543 = vmatpush1.bf16.msra.mxu0 %v7982_v36  ;;  %3574 = vmatprep.mubr.bf16.mxu0 %v10054_v58  ;;  %v459_v36 = vld [vmem:[#allocation5 + $0x758] sm:$0xff] }
 0x11c   : > { %3534 = vmatmul.mubr.bf16.vlgmr.msra.gmra.mxu1 %v10064_v19  ;;  %3544 = vmatprep.subr.bf16.mxu0 %v7967_v38  ;;  %v8367_v38 = vcombine.high %v723_v29, %v731_v31  ;;  %v8094_v48 = vcombine.low %v451_v35, %v459_v36  ;;  %v340_v31 = vld [vmem:[#allocation5 + $0x3a0] sm:$0xff] }
 0x11d   : > { %3584 = vmatpush1.bf16.msra.mxu1 %v8238_v37  ;;  %3615 = vmatprep.mubr.bf16.mxu1 %v10056_v59  ;;  %v707_v37 = vld [vmem:[#allocation5 + $0xf18] sm:$0xff] }
 0x11e   : > { %3585 = vmatprep.subr.bf16.mxu1 %v8223_v42  ;;  %v8095_v42 = vcombine.high %v451_v35, %v459_v36  ;;  %v8350_v49 = vcombine.low %v707_v37, %v715_v39  ;;  %v604_v35 = vld [vmem:[#allocation5 + $0xbe0] sm:$0xff] }
 0x11f   : > { %3545 = vmatpush1.bf16.msra.mxu0 %v7966_v44  ;;  %v443_v44 = vld [vmem:[#allocation5 + $0x6d8] sm:$0xff] }
 0x120   : > { %3546 = vmatprep.subr.bf16.mxu0 %v7951_v46  ;;  %v8351_v46 = vcombine.high %v707_v37, %v715_v39  ;;  %v8078_v56 = vcombine.low %v435_v43, %v443_v44  ;;  %v324_v39 = vld [vmem:[#allocation5 + $0x320] sm:$0xff] }
 0x121   : > { %3586 = vmatpush1.bf16.msra.mxu1 %v8222_v45  ;;  %v691_v45 = vld [vmem:[#allocation5 + $0xe98] sm:$0xff] }
 0x122   : > { %3587 = vmatprep.subr.bf16.mxu1 %v8207_v50  ;;  %v8079_v50 = vcombine.high %v435_v43, %v443_v44  ;;  %v8334_v57 = vcombine.low %v691_v45, %v699_v47  ;;  %v588_v43 = vld [vmem:[#allocation5 + $0xb60] sm:$0xff] }
 0x123   : > { %3547 = vmatpush1.bf16.msra.mxu0 %v7950_v52  ;;  %v427_v52 = vld [vmem:[#allocation5 + $0x658] sm:$0xff] }
 0x124   : > { %3548 = vmatprep.subr.bf16.mxu0 %v7935_v54  ;;  %v8335_v54 = vcombine.high %v691_v45, %v699_v47  ;;  %v8062_v2 = vcombine.low %v419_v51, %v427_v52  ;;  %v308_v47 = vld [vmem:[#allocation5 + $0x2a0] sm:$0xff] }
 0x125   : > { %3588 = vmatpush1.bf16.msra.mxu1 %v8206_v53  ;;  %v675_v53 = vld [vmem:[#allocation5 + $0xe18] sm:$0xff] }
 0x126   : > { %3589 = vmatprep.subr.bf16.mxu1 %v8191_v60  ;;  %v8063_v60 = vcombine.high %v419_v51, %v427_v52  ;;  %v8318_v3 = vcombine.low %v675_v53, %v683_v55  ;;  %v572_v51 = vld [vmem:[#allocation5 + $0xae0] sm:$0xff] }
 0x127   : > { %3549 = vmatpush1.bf16.msra.mxu0 %v7934_v62  ;;  %v411_v62 = vld [vmem:[#allocation5 + $0x5d8] sm:$0xff] }
 0x128   : > { %3550 = vmatprep.subr.bf16.mxu0 %v7919_v0  ;;  %v8319_v0 = vcombine.high %v675_v53, %v683_v55  ;;  %v8046_v10 = vcombine.low %v403_v61, %v411_v62 }
 0x129   : > { %3590 = vmatpush1.bf16.msra.mxu1 %v8190_v63  ;;  %v659_v63 = vld [vmem:[#allocation5 + $0xd98] sm:$0xff] }
 0x12a   : > { %3591 = vmatprep.subr.bf16.mxu1 %v8175_v4  ;;  %v8047_v4 = vcombine.high %v403_v61, %v411_v62  ;;  %v8302_v11 = vcombine.low %v659_v63, %v667_v1  ;;  %v292_v61 = vld [vmem:[#allocation5 + $0x220] sm:$0xff] }
 0x12b   : > { %3551 = vmatpush1.bf16.msra.mxu0 %v7918_v6  ;;  %v395_v6 = vld [vmem:[#allocation5 + $0x558] sm:$0xff]  ;;  %v300_v62 = vld [vmem:[#allocation5 + $0x260] sm:$0xff] }
 0x12c   : > { %3552 = vmatprep.subr.bf16.mxu0 %v7903_v8  ;;  %v8303_v8 = vcombine.high %v659_v63, %v667_v1  ;;  %v8030_v20 = vcombine.low %v387_v5, %v395_v6  ;;  %v548_v63 = vld [vmem:[#allocation5 + $0xa20] sm:$0xff] }
 0x12d   : > { %3592 = vmatpush1.bf16.msra.mxu1 %v8174_v7  ;;  %v643_v7 = vld [vmem:[#allocation5 + $0xd18] sm:$0xff] }
 0x12e   : > { %3593 = vmatprep.subr.bf16.mxu1 %v8159_v12  ;;  %v8031_v12 = vcombine.high %v387_v5, %v395_v6  ;;  %v8286_v21 = vcombine.low %v643_v7, %v651_v9 }
 0x12f   : > { %3553 = vmatpush1.bf16.msra.mxu0 %v7902_v14  ;;  %v379_v14 = vld [vmem:[#allocation5 + $0x4d8] sm:$0xff] }
 0x130   : > { %3554 = vmatprep.subr.bf16.mxu0 %v7887_v17  ;;  %v8287_v17 = vcombine.high %v643_v7, %v651_v9  ;;  %v8014_v28 = vcombine.low %v371_v13, %v379_v14  ;;  %v7937_v9 = vcombine.high %v292_v61, %v300_v62 }
 0x131   : > { %3594 = vmatpush1.bf16.msra.mxu1 %v8158_v15  ;;  %v627_v15 = vld [vmem:[#allocation5 + $0xc98] sm:$0xff] }
 0x132   : > { %3595 = vmatprep.subr.bf16.mxu1 %v8143_v22  ;;  %v8015_v22 = vcombine.high %v371_v13, %v379_v14  ;;  %v8270_v29 = vcombine.low %v627_v15, %v635_v18 }
 0x133   : > { %3555 = vmatpush1.bf16.msra.mxu0 %v7886_v24  ;;  %v363_v24 = vld [vmem:[#allocation5 + $0x458] sm:$0xff] }
 0x134   : > { %3556 = vmatprep.subr.bf16.mxu0 %v7871_v26  ;;  %v8271_v26 = vcombine.high %v627_v15, %v635_v18  ;;  %v7998_v36 = vcombine.low %v355_v23, %v363_v24  ;;  %v540_v15 = vld [vmem:[#allocation5 + $0x9e0] sm:$0xff] }
 0x135   : > { %3596 = vmatpush1.bf16.msra.mxu1 %v8142_v25  ;;  %v611_v25 = vld [vmem:[#allocation5 + $0xc18] sm:$0xff] }
 0x136   : > { %3597 = vmatprep.subr.bf16.mxu1 %v8127_v30  ;;  %v7999_v30 = vcombine.high %v355_v23, %v363_v24  ;;  %v8254_v37 = vcombine.low %v611_v25, %v619_v27  ;;  %v516_v23 = vld [vmem:[#allocation5 + $0x920] sm:$0xff] }
 0x137   : > { %3557 = vmatpush1.bf16.msra.mxu0 %v7870_v32  ;;  %v348_v32 = vld [vmem:[#allocation5 + $0x3e0] sm:$0xff] }
 0x138   : > { %3558 = vmatprep.subr.bf16.mxu0 %v8111_v34  ;;  %v8255_v34 = vcombine.high %v611_v25, %v619_v27  ;;  %v7984_v44 = vcombine.low %v340_v31, %v348_v32  ;;  %v524_v25 = vld [vmem:[#allocation5 + $0x960] sm:$0xff] }
 0x139   : > { %3598 = vmatpush1.bf16.msra.mxu1 %v8126_v33  ;;  %v596_v33 = vld [vmem:[#allocation5 + $0xba0] sm:$0xff] }
 0x13a   : > { %3599 = vmatprep.subr.bf16.mxu1 %v8367_v38  ;;  %v7985_v38 = vcombine.high %v340_v31, %v348_v32  ;;  %v8240_v45 = vcombine.low %v596_v33, %v604_v35  ;;  %v500_v31 = vld [vmem:[#allocation5 + $0x8a0] sm:$0xff]  ;;  %v8161_v32 = vcombine.high %v516_v23, %v524_v25 }
 0x13b   : > { %3559 = vmatpush2.bf16.msra.mxu0 %v8110_v40  ;;  %v332_v40 = vld [vmem:[#allocation5 + $0x360] sm:$0xff] }
 0x13c   : > { %3560 = vmatprep.subr.bf16.mxu0 %v8095_v42  ;;  %v8241_v42 = vcombine.high %v596_v33, %v604_v35  ;;  %v508_v33 = vld [vmem:[#allocation5 + $0x8e0] sm:$0xff]  ;;  %v8160_v35 = vcombine.low %v516_v23, %v524_v25 }
 0x13d   : > { %3600 = vmatpush2.bf16.msra.mxu1 %v8366_v41  ;;  %v580_v41 = vld [vmem:[#allocation5 + $0xb20] sm:$0xff] }
 0x13e   : > { %3601 = vmatprep.subr.bf16.mxu1 %v8351_v46  ;;  %v7969_v46 = vcombine.high %v324_v39, %v332_v40  ;;  %v668_v23 = vld [vmem:[#allocation5 + $0xde0] sm:$0xff] }
 0x13f   : > { %3561 = vmatpush2.bf16.msra.mxu0 %v8094_v48  ;;  %v316_v48 = vld [vmem:[#allocation5 + $0x2e0] sm:$0xff] }
 0x140   : > { %3562 = vmatprep.subr.bf16.mxu0 %v8079_v50  ;;  %v8225_v50 = vcombine.high %v580_v41, %v588_v43  ;;  %v7952_v6 = vcombine.low %v308_v47, %v316_v48 }
 0x141   : > { %3602 = vmatpush2.bf16.msra.mxu1 %v8350_v49  ;;  %v564_v49 = vld [vmem:[#allocation5 + $0xaa0] sm:$0xff] }
 0x142   : > { %3603 = vmatprep.subr.bf16.mxu1 %v8335_v54  ;;  %v7968_v54 = vcombine.low %v324_v39, %v332_v40  ;;  %v8209_v1 = vcombine.high %v564_v49, %v572_v51  ;;  %v484_v39 = vld [vmem:[#allocation5 + $0x820] sm:$0xff]  ;;  %v8145_v40 = vcombine.high %v500_v31, %v508_v33 }
 0x143   : > { %3563 = vmatpush2.bf16.msra.mxu0 %v8078_v56 }
 0x144   : > { %3564 = vmatprep.subr.bf16.mxu0 %v8063_v60  ;;  %v7953_v60 = vcombine.high %v308_v47, %v316_v48  ;;  %v724_v47 = vld [vmem:[#allocation5 + $0xfa0] sm:$0xff] }
 0x145   : > { %3604 = vmatpush2.bf16.msra.mxu1 %v8334_v57  ;;  %v8224_v57 = vcombine.low %v580_v41, %v588_v43  ;;  %v492_v41 = vld [vmem:[#allocation5 + $0x860] sm:$0xff]  ;;  %v8144_v43 = vcombine.low %v500_v31, %v508_v33 }
 0x146   : > { %3605 = vmatprep.subr.bf16.mxu1 %v8319_v0  ;;  %v8129_v48 = vcombine.high %v484_v39, %v492_v41  ;;  %v652_v31 = vld [vmem:[#allocation5 + $0xd60] sm:$0xff] }
 0x147   : > { %3565 = vmatpush2.bf16.msra.mxu0 %v8062_v2  ;;  %v556_v2 = vld [vmem:[#allocation5 + $0xa60] sm:$0xff] }
 0x148   : > { %3566 = vmatprep.subr.bf16.mxu0 %v8047_v4  ;;  %v8193_v14 = vcombine.high %v548_v63, %v556_v2  ;;  %v8192_v18 = vcombine.low %v548_v63, %v556_v2  ;;  %v692_v2 = vld [vmem:[#allocation5 + $0xea0] sm:$0xff] }
 0x149   : > { %3606 = vmatpush2.bf16.msra.mxu1 %v8318_v3 }
 0x14a   : > { %3607 = vmatprep.subr.bf16.mxu1 %v8303_v8  ;;  %v8208_v8 = vcombine.low %v564_v49, %v572_v51  ;;  %v732_v49 = vld [vmem:[#allocation5 + $0xfe0] sm:$0xff]  ;;  %v8128_v51 = vcombine.low %v484_v39, %v492_v41 }
 0x14b   : > { %3567 = vmatpush2.bf16.msra.mxu0 %v8046_v10  ;;  %v276_v10 = vld [vmem:[#allocation5 + $0x1a0] sm:$0xff] }
 0x14c   : > { %3568 = vmatprep.subr.bf16.mxu0 %v8031_v12  ;;  %v532_v12 = vld [vmem:[#allocation5 + $0x9a0] sm:$0xff] }
 0x14d   : > { %3608 = vmatpush2.bf16.msra.mxu1 %v8302_v11  ;;  %v284_v11 = vld [vmem:[#allocation5 + $0x1e0] sm:$0xff]  ;;  %v8177_v24 = vcombine.high %v532_v12, %v540_v15  ;;  %v8176_v27 = vcombine.low %v532_v12, %v540_v15 }
 0x14e   : > { %3609 = vmatprep.subr.bf16.mxu1 %v8287_v17  ;;  %v7936_v17 = vcombine.low %v292_v61, %v300_v62  ;;  %v8368_v62 = vcombine.low %v724_v47, %v732_v49  ;;  %v636_v39 = vld [vmem:[#allocation5 + $0xce0] sm:$0xff] }
 0x14f   : > { %3569 = vmatpush2.bf16.msra.mxu0 %v8030_v20  ;;  %v7921_v20 = vcombine.high %v276_v10, %v284_v11 }
 0x150   : > { %3570 = vmatprep.subr.bf16.mxu0 %v8015_v22  ;;  %v268_v22 = vld [vmem:[#allocation5 + $0x160] sm:$0xff] }
 0x151   : > { %3610 = vmatpush2.bf16.msra.mxu1 %v8286_v21  ;;  %v260_v21 = vld [vmem:[#allocation5 + $0x120] sm:$0xff] }
 0x152   : > { %3611 = vmatprep.subr.bf16.mxu1 %v8271_v26  ;;  %v7920_v26 = vcombine.low %v276_v10, %v284_v11  ;;  %v428_v10 = vld [vmem:[#allocation5 + $0x660] sm:$0xff] }
 0x153   : > { %3571 = vmatpush2.bf16.msra.mxu0 %v8014_v28  ;;  %v7905_v28 = vcombine.high %v260_v21, %v268_v22  ;;  %v676_v11 = vld [vmem:[#allocation5 + $0xe20] sm:$0xff] }
 0x154   : > { %3572 = vmatprep.subr.bf16.mxu0 %v7999_v30  ;;  %v252_v30 = vld [vmem:[#allocation5 + $0xe0] sm:$0xff] }
 0x155   : > { %3612 = vmatpush2.bf16.msra.mxu1 %v8270_v29  ;;  %v244_v29 = vld [vmem:[#allocation5 + $0xa0] sm:$0xff] }
 0x156   : > { %3613 = vmatprep.subr.bf16.mxu1 %v8255_v34  ;;  %v7904_v34 = vcombine.low %v260_v21, %v268_v22  ;;  %v660_v21 = vld [vmem:[#allocation5 + $0xda0] sm:$0xff] }
 0x157   : > { %3573 = vmatpush2.bf16.msra.mxu0 %v7998_v36  ;;  %v7889_v36 = vcombine.high %v244_v29, %v252_v30  ;;  %v8304_v33 = vcombine.low %v660_v21, %v668_v23 }
 0x158   : > { %3624 = vmatprep.subr.bf16.mxu0 %v7985_v38  ;;  %v236_v38 = vld [vmem:[#allocation5 + $0x60] sm:$0xff] }
 0x159   : > { %3614 = vmatpush2.bf16.msra.mxu1 %v8254_v37  ;;  %v228_v37 = vld [vmem:[#allocation5 + $0x20] sm:$0xff] }
 0x15a   : > { %3665 = vmatprep.subr.bf16.mxu1 %v8241_v42  ;;  %v3330_v52 = vpop.f32.mrf.mxu0  ;;  %3575 = vmatmul.mubr.bf16.vlgmr.msra.gmra.mxu0 %v10062_v16  ;;  %v7888_v42 = vcombine.low %v244_v29, %v252_v30  ;;  %v644_v29 = vld [vmem:[#allocation5 + $0xd20] sm:$0xff]  ;;  %v8305_v30 = vcombine.high %v660_v21, %v668_v23  ;;  %v293_v23 = vld [vmem:[#allocation5 + $0x228] sm:$0xff] }
 0x15b   : > { %3625 = vmatpush1.bf16.msra.mxu0 %v7984_v44  ;;  %3656 = vmatprep.mubr.bf16.mxu0 %v10054_v58  ;;  %v7873_v44 = vcombine.high %v228_v37, %v236_v38  ;;  %v8288_v41 = vcombine.low %v644_v29, %v652_v31 }
 0x15c   : > { %v3371_v53 = vpop.f32.mrf.mxu1  ;;  %3616 = vmatmul.mubr.bf16.vlgmr.msra.gmra.mxu1 %v10064_v19  ;;  %v3332_v56 = vpop.f32.mrf.mxu0  ;;  %3626 = vmatprep.subr.bf16.mxu0 %v7969_v46  ;;  %v476_v46 = vld [vmem:[#allocation5 + $0x7e0] sm:$0xff] }
 0x15d   : > { %v10080_v55 = vadd.f32 %v3371_v53, %v3330_v52  ;;  %3666 = vmatpush1.bf16.msra.mxu1 %v8240_v45  ;;  %3697 = vmatprep.mubr.bf16.mxu1 %v10056_v59  ;;  %v468_v45 = vld [vmem:[#allocation5 + $0x7a0] sm:$0xff] }
 0x15e   : > { %v3373_v0 = vpop.f32.mrf.mxu1  ;;  %3667 = vmatprep.subr.bf16.mxu1 %v8225_v50  ;;  %v3334_v4 = vpop.f32.mrf.mxu0  ;;  %v7872_v50 = vcombine.low %v228_v37, %v236_v38  ;;  %v8113_v52 = vcombine.high %v468_v45, %v476_v46  ;;  %v452_v53 = vld [vmem:[#allocation5 + $0x720] sm:$0xff]  ;;  %v8112_v61 = vcombine.low %v468_v45, %v476_v46  ;;  %v8289_v38 = vcombine.high %v644_v29, %v652_v31 }
 0x15f   : > { %v10083_v3 = vadd.f32 %v3373_v0, %v3332_v56  ;;  %3627 = vmatpush1.bf16.msra.mxu0 %v7968_v54  ;;  %v460_v54 = vld [vmem:[#allocation5 + $0x760] sm:$0xff] }
 0x160   : > { %v3375_v5 = vpop.f32.mrf.mxu1  ;;  %v3335_v7 = vpop.f32.mrf.mxu0  ;;  %3628 = vmatprep.subr.bf16.mxu0 %v7953_v60  ;;  %v708_v56 = vld [vmem:[#allocation5 + $0xf20] sm:$0xff]  ;;  %v8097_v63 = vcombine.high %v452_v53, %v460_v54 }
 0x161   : > { %3668 = vmatpush1.bf16.msra.mxu1 %v8224_v57  ;;  %v8369_v57 = vcombine.high %v724_v47, %v732_v49  ;;  %v716_v60 = vld [vmem:[#allocation5 + $0xf60] sm:$0xff] }
 0x162   : > { %v3376_v13 = vpop.f32.mrf.mxu1  ;;  %3669 = vmatprep.subr.bf16.mxu1 %v8209_v1  ;;  %v436_v0 = vld [vmem:[#allocation5 + $0x6a0] sm:$0xff]  ;;  %v8353_v4 = vcombine.high %v708_v56, %v716_v60  ;;  %v8352_v7 = vcombine.low %v708_v56, %v716_v60  ;;  %v605_v56 = vld [vmem:[#allocation5 + $0xbe8] sm:$0xff] }
 0x163   : > { %3629 = vmatpush1.bf16.msra.mxu0 %v7952_v6  ;;  %v444_v1 = vld [vmem:[#allocation5 + $0x6e0] sm:$0xff]  ;;  %v8096_v6 = vcombine.low %v452_v53, %v460_v54  ;;  %v597_v53 = vld [vmem:[#allocation5 + $0xba8] sm:$0xff] }
 0x164   : > { %3630 = vmatprep.subr.bf16.mxu0 %v7937_v9  ;;  %v700_v5 = vld [vmem:[#allocation5 + $0xee0] sm:$0xff] }
 0x165   : > { %3670 = vmatpush1.bf16.msra.mxu1 %v8208_v8  ;;  %v8081_v8 = vcombine.high %v436_v0, %v444_v1  ;;  %v420_v9 = vld [vmem:[#allocation5 + $0x620] sm:$0xff]  ;;  %v8337_v12 = vcombine.high %v692_v2, %v700_v5  ;;  %v8336_v15 = vcombine.low %v692_v2, %v700_v5  ;;  %v589_v2 = vld [vmem:[#allocation5 + $0xb68] sm:$0xff]  ;;  %v8242_v5 = vcombine.low %v597_v53, %v605_v56 }
 0x166   : > { %3671 = vmatprep.subr.bf16.mxu1 %v8193_v14  ;;  %v684_v13 = vld [vmem:[#allocation5 + $0xe60] sm:$0xff]  ;;  %v8080_v14 = vcombine.low %v436_v0, %v444_v1  ;;  %v581_v0 = vld [vmem:[#allocation5 + $0xb28] sm:$0xff]  ;;  %v8243_v1 = vcombine.high %v597_v53, %v605_v56 }
 0x167   : > { %3631 = vmatpush1.bf16.msra.mxu0 %v7936_v17  ;;  %v8065_v17 = vcombine.high %v420_v9, %v428_v10  ;;  %v8321_v22 = vcombine.high %v676_v11, %v684_v13  ;;  %v8320_v25 = vcombine.low %v676_v11, %v684_v13  ;;  %v628_v37 = vld [vmem:[#allocation5 + $0xca0] sm:$0xff]  ;;  %v565_v11 = vld [vmem:[#allocation5 + $0xaa8] sm:$0xff] }
 0x168   : > { %3632 = vmatprep.subr.bf16.mxu0 %v7921_v20  ;;  %v412_v20 = vld [vmem:[#allocation5 + $0x5e0] sm:$0xff]  ;;  %v8273_v46 = vcombine.high %v628_v37, %v636_v39  ;;  %v8272_v49 = vcombine.low %v628_v37, %v636_v39  ;;  %v285_v37 = vld [vmem:[#allocation5 + $0x1e8] sm:$0xff] }
 0x169   : > { %3672 = vmatpush1.bf16.msra.mxu1 %v8192_v18  ;;  %v404_v18 = vld [vmem:[#allocation5 + $0x5a0] sm:$0xff]  ;;  %v541_v39 = vld [vmem:[#allocation5 + $0x9e8] sm:$0xff] }
 0x16a   : > { %3673 = vmatprep.subr.bf16.mxu1 %v8177_v24  ;;  %v8064_v24 = vcombine.low %v420_v9, %v428_v10  ;;  %v612_v45 = vld [vmem:[#allocation5 + $0xc20] sm:$0xff]  ;;  %v317_v9 = vld [vmem:[#allocation5 + $0x2e8] sm:$0xff] }
 0x16b   : > { %3633 = vmatpush1.bf16.msra.mxu0 %v7920_v26  ;;  %v8049_v26 = vcombine.high %v404_v18, %v412_v20  ;;  %v620_v47 = vld [vmem:[#allocation5 + $0xc60] sm:$0xff]  ;;  %v253_v53 = vld [vmem:[#allocation5 + $0xe8] sm:$0xff] }
 0x16c   : > { %3634 = vmatprep.subr.bf16.mxu0 %v7905_v28  ;;  %v396_v28 = vld [vmem:[#allocation5 + $0x560] sm:$0xff]  ;;  %v8257_v54 = vcombine.high %v612_v45, %v620_v47  ;;  %v8256_v60 = vcombine.low %v612_v45, %v620_v47  ;;  %v269_v45 = vld [vmem:[#allocation5 + $0x168] sm:$0xff] }
 0x16d   : > { %3674 = vmatpush1.bf16.msra.mxu1 %v8176_v27  ;;  %v388_v27 = vld [vmem:[#allocation5 + $0x520] sm:$0xff]  ;;  %v525_v47 = vld [vmem:[#allocation5 + $0x968] sm:$0xff] }
 0x16e   : > { %3675 = vmatprep.subr.bf16.mxu1 %v8161_v32  ;;  %v8048_v32 = vcombine.low %v404_v18, %v412_v20  ;;  %v8226_v18 = vcombine.low %v581_v0, %v589_v2  ;;  %v509_v56 = vld [vmem:[#allocation5 + $0x8e8] sm:$0xff] }
 0x16f   : > { %3635 = vmatpush1.bf16.msra.mxu0 %v7904_v34  ;;  %v8033_v34 = vcombine.high %v388_v27, %v396_v28 }
 0x170   : > { %3636 = vmatprep.subr.bf16.mxu0 %v7889_v36  ;;  %v380_v36 = vld [vmem:[#allocation5 + $0x4e0] sm:$0xff] }
 0x171   : > { %3676 = vmatpush1.bf16.msra.mxu1 %v8160_v35  ;;  %v372_v35 = vld [vmem:[#allocation5 + $0x4a0] sm:$0xff] }
 0x172   : > { %3677 = vmatprep.subr.bf16.mxu1 %v8145_v40  ;;  %v8032_v40 = vcombine.low %v388_v27, %v396_v28  ;;  %v549_v27 = vld [vmem:[#allocation5 + $0xa28] sm:$0xff] }
 0x173   : > { %3637 = vmatpush1.bf16.msra.mxu0 %v7888_v42  ;;  %v8017_v42 = vcombine.high %v372_v35, %v380_v36  ;;  %v557_v28 = vld [vmem:[#allocation5 + $0xa68] sm:$0xff] }
 0x174   : > { %3638 = vmatprep.subr.bf16.mxu0 %v7873_v44  ;;  %v364_v44 = vld [vmem:[#allocation5 + $0x460] sm:$0xff] }
 0x175   : > { %3678 = vmatpush1.bf16.msra.mxu1 %v8144_v43  ;;  %v356_v43 = vld [vmem:[#allocation5 + $0x420] sm:$0xff] }
 0x176   : > { %3679 = vmatprep.subr.bf16.mxu1 %v8129_v48  ;;  %v8016_v48 = vcombine.low %v372_v35, %v380_v36  ;;  %v8195_v35 = vcombine.high %v549_v27, %v557_v28  ;;  %v277_v36 = vld [vmem:[#allocation5 + $0x1a8] sm:$0xff] }
 0x177   : > { %3639 = vmatpush1.bf16.msra.mxu0 %v7872_v50  ;;  %v8001_v50 = vcombine.high %v356_v43, %v364_v44 }
 0x178   : > { %3640 = vmatprep.subr.bf16.mxu0 %v8113_v52  ;;  %v349_v52 = vld [vmem:[#allocation5 + $0x3e8] sm:$0xff] }
 0x179   : > { %3680 = vmatpush1.bf16.msra.mxu1 %v8128_v51  ;;  %v341_v51 = vld [vmem:[#allocation5 + $0x3a8] sm:$0xff] }
 0x17a   : > { %3681 = vmatprep.subr.bf16.mxu1 %v8369_v57  ;;  %v8000_v57 = vcombine.low %v356_v43, %v364_v44  ;;  %v261_v44 = vld [vmem:[#allocation5 + $0x128] sm:$0xff] }
 0x17b   : > { %3641 = vmatpush2.bf16.msra.mxu0 %v8112_v61  ;;  %v7987_v61 = vcombine.high %v341_v51, %v349_v52 }
 0x17c   : > { %3642 = vmatprep.subr.bf16.mxu0 %v8097_v63  ;;  %v333_v63 = vld [vmem:[#allocation5 + $0x368] sm:$0xff] }
 0x17d   : > { %3682 = vmatpush2.bf16.msra.mxu1 %v8368_v62  ;;  %v325_v62 = vld [vmem:[#allocation5 + $0x328] sm:$0xff] }
 0x17e   : > { %3683 = vmatprep.subr.bf16.mxu1 %v8353_v4  ;;  %v7986_v4 = vcombine.low %v341_v51, %v349_v52  ;;  %v245_v52 = vld [vmem:[#allocation5 + $0xa8] sm:$0xff] }
 0x17f   : > { %3643 = vmatpush2.bf16.msra.mxu0 %v8096_v6  ;;  %v7971_v6 = vcombine.high %v325_v62, %v333_v63 }
 0x180   : > { %3644 = vmatprep.subr.bf16.mxu0 %v8081_v8  ;;  %v309_v8 = vld [vmem:[#allocation5 + $0x2a8] sm:$0xff] }
 0x181   : > { %3684 = vmatpush2.bf16.msra.mxu1 %v8352_v7  ;;  %v8227_v7 = vcombine.high %v581_v0, %v589_v2  ;;  %v7955_v20 = vcombine.high %v309_v8, %v317_v9  ;;  %v237_v0 = vld [vmem:[#allocation5 + $0x68] sm:$0xff] }
 0x182   : > { %3685 = vmatprep.subr.bf16.mxu1 %v8337_v12  ;;  %v573_v12 = vld [vmem:[#allocation5 + $0xae8] sm:$0xff] }
 0x183   : > { %3645 = vmatpush2.bf16.msra.mxu0 %v8080_v14  ;;  %v7970_v14 = vcombine.low %v325_v62, %v333_v63  ;;  %v229_v63 = vld [vmem:[#allocation5 + $0x28] sm:$0xff] }
 0x184   : > { %3646 = vmatprep.subr.bf16.mxu0 %v8065_v17  ;;  %v493_v2 = vld [vmem:[#allocation5 + $0x868] sm:$0xff] }
 0x185   : > { %3686 = vmatpush2.bf16.msra.mxu1 %v8336_v15 }
 0x186   : > { %3687 = vmatprep.subr.bf16.mxu1 %v8321_v22  ;;  %v8211_v22 = vcombine.high %v565_v11, %v573_v12 }
 0x187   : > { %3647 = vmatpush2.bf16.msra.mxu0 %v8064_v24  ;;  %v301_v24 = vld [vmem:[#allocation5 + $0x268] sm:$0xff] }
 0x188   : > { %3648 = vmatprep.subr.bf16.mxu0 %v8049_v26 }
 0x189   : > { %3688 = vmatpush2.bf16.msra.mxu1 %v8320_v25 }
 0x18a   : > { %3689 = vmatprep.subr.bf16.mxu1 %v8305_v30  ;;  %v7954_v30 = vcombine.low %v309_v8, %v317_v9  ;;  %v469_v8 = vld [vmem:[#allocation5 + $0x7a8] sm:$0xff] }
 0x18b   : > { %3649 = vmatpush2.bf16.msra.mxu0 %v8048_v32  ;;  %v8210_v32 = vcombine.low %v565_v11, %v573_v12  ;;  %v477_v9 = vld [vmem:[#allocation5 + $0x7e8] sm:$0xff]  ;;  %v7874_v12 = vcombine.low %v229_v63, %v237_v0 }
 0x18c   : > { %3650 = vmatprep.subr.bf16.mxu0 %v8033_v34  ;;  %v733_v11 = vld [vmem:[#allocation5 + $0xfe8] sm:$0xff] }
 0x18d   : > { %3690 = vmatpush2.bf16.msra.mxu1 %v8304_v33  ;;  %v7939_v33 = vcombine.high %v293_v23, %v301_v24 }
 0x18e   : > { %3691 = vmatprep.subr.bf16.mxu1 %v8289_v38  ;;  %v533_v38 = vld [vmem:[#allocation5 + $0x9a8] sm:$0xff] }
 0x18f   : > { %3651 = vmatpush2.bf16.msra.mxu0 %v8032_v40  ;;  %v7938_v40 = vcombine.low %v293_v23, %v301_v24  ;;  %v8179_v43 = vcombine.high %v533_v38, %v541_v39  ;;  %v8114_v23 = vcombine.low %v469_v8, %v477_v9 }
 0x190   : > { %3652 = vmatprep.subr.bf16.mxu0 %v8017_v42  ;;  %v7923_v42 = vcombine.high %v277_v36, %v285_v37 }
 0x191   : > { %3692 = vmatpush2.bf16.msra.mxu1 %v8288_v41  ;;  %v8194_v41 = vcombine.low %v549_v27, %v557_v28  ;;  %v437_v28 = vld [vmem:[#allocation5 + $0x6a8] sm:$0xff] }
 0x192   : > { %3693 = vmatprep.subr.bf16.mxu1 %v8273_v46  ;;  %v517_v46 = vld [vmem:[#allocation5 + $0x928] sm:$0xff] }
 0x193   : > { %3653 = vmatpush2.bf16.msra.mxu0 %v8016_v48  ;;  %v7922_v48 = vcombine.low %v277_v36, %v285_v37  ;;  %v8163_v51 = vcombine.high %v517_v46, %v525_v47  ;;  %v421_v36 = vld [vmem:[#allocation5 + $0x628] sm:$0xff] }
 0x194   : > { %3654 = vmatprep.subr.bf16.mxu0 %v8001_v50  ;;  %v7907_v50 = vcombine.high %v261_v44, %v269_v45  ;;  %v429_v37 = vld [vmem:[#allocation5 + $0x668] sm:$0xff] }
 0x195   : > { %3694 = vmatpush2.bf16.msra.mxu1 %v8272_v49  ;;  %v8178_v49 = vcombine.low %v533_v38, %v541_v39  ;;  %v677_v38 = vld [vmem:[#allocation5 + $0xe28] sm:$0xff] }
 0x196   : > { %3695 = vmatprep.subr.bf16.mxu1 %v8257_v54  ;;  %v501_v54 = vld [vmem:[#allocation5 + $0x8a8] sm:$0xff] }
 0x197   : > { %3655 = vmatpush2.bf16.msra.mxu0 %v8000_v57  ;;  %v7906_v57 = vcombine.low %v261_v44, %v269_v45  ;;  %v8147_v62 = vcombine.high %v501_v54, %v509_v56  ;;  %v685_v39 = vld [vmem:[#allocation5 + $0xe68] sm:$0xff] }
 0x198   : > { %3706 = vmatprep.subr.bf16.mxu0 %v7987_v61  ;;  %v7891_v61 = vcombine.high %v245_v52, %v253_v53  ;;  %v405_v44 = vld [vmem:[#allocation5 + $0x5a8] sm:$0xff] }
 0x199   : > { %3696 = vmatpush2.bf16.msra.mxu1 %v8256_v60  ;;  %v8162_v60 = vcombine.low %v517_v46, %v525_v47  ;;  %v413_v45 = vld [vmem:[#allocation5 + $0x5e8] sm:$0xff] }
 0x19a   : > { %3747 = vmatprep.subr.bf16.mxu1 %v8243_v1  ;;  %v3412_v10 = vpop.f32.mrf.mxu0  ;;  %3657 = vmatmul.mubr.bf16.vlgmr.msra.gmra.mxu0 %v10062_v16  ;;  %v485_v1 = vld [vmem:[#allocation5 + $0x828] sm:$0xff] }
 0x19b   : > { %3707 = vmatpush1.bf16.msra.mxu0 %v7986_v4  ;;  %3738 = vmatprep.mubr.bf16.mxu0 %v10054_v58  ;;  %v7890_v4 = vcombine.low %v245_v52, %v253_v53  ;;  %v661_v46 = vld [vmem:[#allocation5 + $0xda8] sm:$0xff] }
 0x19c   : > { %v3453_v13 = vpop.f32.mrf.mxu1  ;;  %3698 = vmatmul.mubr.bf16.vlgmr.msra.gmra.mxu1 %v10064_v19  ;;  %v3414_v17 = vpop.f32.mrf.mxu0  ;;  %3708 = vmatprep.subr.bf16.mxu0 %v7971_v6  ;;  %v7875_v6 = vcombine.high %v229_v63, %v237_v0  ;;  %v669_v47 = vld [vmem:[#allocation5 + $0xde8] sm:$0xff] }
 0x19d   : > { %v10088_v15 = vadd.f32 %v3453_v13, %v3412_v10  ;;  %3748 = vmatpush1.bf16.msra.mxu1 %v8242_v5  ;;  %3779 = vmatprep.mubr.bf16.mxu1 %v10056_v59  ;;  %v8146_v5 = vcombine.low %v501_v54, %v509_v56  ;;  %v725_v10 = vld [vmem:[#allocation5 + $0xfa8] sm:$0xff]  ;;  %v8130_v13 = vcombine.low %v485_v1, %v493_v2 }
 0x19e   : > { %v3455_v21 = vpop.f32.mrf.mxu1  ;;  %3749 = vmatprep.subr.bf16.mxu1 %v8227_v7  ;;  %v3416_v26 = vpop.f32.mrf.mxu0  ;;  %v8131_v7 = vcombine.high %v485_v1, %v493_v2  ;;  %v8370_v24 = vcombine.low %v725_v10, %v733_v11  ;;  %v389_v52 = vld [vmem:[#allocation5 + $0x528] sm:$0xff] }
 0x19f   : > { %v10091_v25 = vadd.f32 %v3455_v21, %v3414_v17  ;;  %3709 = vmatpush1.bf16.msra.mxu0 %v7970_v14  ;;  %v8115_v14 = vcombine.high %v469_v8, %v477_v9  ;;  %v8371_v17 = vcombine.high %v725_v10, %v733_v11  ;;  %v709_v21 = vld [vmem:[#allocation5 + $0xf28] sm:$0xff] }
 0x1a0   : > { %v3457_v29 = vpop.f32.mrf.mxu1  ;;  %v3417_v31 = vpop.f32.mrf.mxu0  ;;  %3710 = vmatprep.subr.bf16.mxu0 %v7955_v20  ;;  %v461_v20 = vld [vmem:[#allocation5 + $0x768] sm:$0xff] }
 0x1a1   : > { %3750 = vmatpush1.bf16.msra.mxu1 %v8226_v18  ;;  %v453_v18 = vld [vmem:[#allocation5 + $0x728] sm:$0xff] }
 0x1a2   : > { %v3458_v34 = vpop.f32.mrf.mxu1  ;;  %3751 = vmatprep.subr.bf16.mxu1 %v8211_v22  ;;  %v717_v22 = vld [vmem:[#allocation5 + $0xf68] sm:$0xff]  ;;  %v8099_v26 = vcombine.high %v453_v18, %v461_v20 }
 0x1a3   : > { %3711 = vmatpush1.bf16.msra.mxu0 %v7954_v30  ;;  %v8355_v27 = vcombine.high %v709_v21, %v717_v22  ;;  %v445_v29 = vld [vmem:[#allocation5 + $0x6e8] sm:$0xff] }
 0x1a4   : > { %3712 = vmatprep.subr.bf16.mxu0 %v7939_v33  ;;  %v693_v30 = vld [vmem:[#allocation5 + $0xea8] sm:$0xff]  ;;  %v8354_v33 = vcombine.low %v709_v21, %v717_v22  ;;  %v8083_v34 = vcombine.high %v437_v28, %v445_v29  ;;  %v598_v21 = vld [vmem:[#allocation5 + $0xbb0] sm:$0xff] }
 0x1a5   : > { %3752 = vmatpush1.bf16.msra.mxu1 %v8210_v32  ;;  %v701_v31 = vld [vmem:[#allocation5 + $0xee8] sm:$0xff]  ;;  %v8098_v32 = vcombine.low %v453_v18, %v461_v20  ;;  %v342_v18 = vld [vmem:[#allocation5 + $0x3b0] sm:$0xff] }
 0x1a6   : > { %3753 = vmatprep.subr.bf16.mxu1 %v8195_v35  ;;  %v8339_v35 = vcombine.high %v693_v30, %v701_v31  ;;  %v397_v53 = vld [vmem:[#allocation5 + $0x568] sm:$0xff]  ;;  %v350_v20 = vld [vmem:[#allocation5 + $0x3f0] sm:$0xff] }
 0x1a7   : > { %3713 = vmatpush1.bf16.msra.mxu0 %v7938_v40  ;;  %v8082_v40 = vcombine.low %v437_v28, %v445_v29  ;;  %v645_v54 = vld [vmem:[#allocation5 + $0xd28] sm:$0xff]  ;;  %v606_v22 = vld [vmem:[#allocation5 + $0xbf0] sm:$0xff] }
 0x1a8   : > { %3714 = vmatprep.subr.bf16.mxu0 %v7923_v42  ;;  %v8067_v42 = vcombine.high %v421_v36, %v429_v37  ;;  %v653_v56 = vld [vmem:[#allocation5 + $0xd68] sm:$0xff]  ;;  %v326_v28 = vld [vmem:[#allocation5 + $0x330] sm:$0xff] }
 0x1a9   : > { %3754 = vmatpush1.bf16.msra.mxu1 %v8194_v41  ;;  %v8338_v41 = vcombine.low %v693_v30, %v701_v31  ;;  %v373_v63 = vld [vmem:[#allocation5 + $0x4a8] sm:$0xff]  ;;  %v334_v29 = vld [vmem:[#allocation5 + $0x370] sm:$0xff] }
 0x1aa   : > { %3755 = vmatprep.subr.bf16.mxu1 %v8179_v43  ;;  %v8323_v43 = vcombine.high %v677_v38, %v685_v39  ;;  %v381_v0 = vld [vmem:[#allocation5 + $0x4e8] sm:$0xff]  ;;  %v582_v30 = vld [vmem:[#allocation5 + $0xb30] sm:$0xff] }
 0x1ab   : > { %3715 = vmatpush1.bf16.msra.mxu0 %v7922_v48  ;;  %v8066_v48 = vcombine.low %v421_v36, %v429_v37  ;;  %v629_v1 = vld [vmem:[#allocation5 + $0xca8] sm:$0xff]  ;;  %v590_v31 = vld [vmem:[#allocation5 + $0xb70] sm:$0xff] }
 0x1ac   : > { %3716 = vmatprep.subr.bf16.mxu0 %v7907_v50  ;;  %v8051_v50 = vcombine.high %v405_v44, %v413_v45  ;;  %v637_v2 = vld [vmem:[#allocation5 + $0xce8] sm:$0xff]  ;;  %v310_v36 = vld [vmem:[#allocation5 + $0x2b0] sm:$0xff] }
 0x1ad   : > { %3756 = vmatpush1.bf16.msra.mxu1 %v8178_v49  ;;  %v8322_v49 = vcombine.low %v677_v38, %v685_v39  ;;  %v357_v8 = vld [vmem:[#allocation5 + $0x428] sm:$0xff]  ;;  %v318_v37 = vld [vmem:[#allocation5 + $0x2f0] sm:$0xff] }
 0x1ae   : > { %3757 = vmatprep.subr.bf16.mxu1 %v8163_v51  ;;  %v8307_v51 = vcombine.high %v661_v46, %v669_v47  ;;  %v365_v9 = vld [vmem:[#allocation5 + $0x468] sm:$0xff]  ;;  %v566_v39 = vld [vmem:[#allocation5 + $0xab0] sm:$0xff] }
 0x1af   : > { %3717 = vmatpush1.bf16.msra.mxu0 %v7906_v57  ;;  %v8050_v57 = vcombine.low %v405_v44, %v413_v45  ;;  %v613_v10 = vld [vmem:[#allocation5 + $0xc28] sm:$0xff]  ;;  %v8228_v45 = vcombine.low %v582_v30, %v590_v31 }
 0x1b0   : > { %3718 = vmatprep.subr.bf16.mxu0 %v7891_v61  ;;  %v8035_v61 = vcombine.high %v389_v52, %v397_v53  ;;  %v621_v11 = vld [vmem:[#allocation5 + $0xc68] sm:$0xff] }
 0x1b1   : > { %3758 = vmatpush1.bf16.msra.mxu1 %v8162_v60  ;;  %v8306_v60 = vcombine.low %v661_v46, %v669_v47  ;;  %v7957_v46 = vcombine.high %v310_v36, %v318_v37 }
 0x1b2   : > { %3759 = vmatprep.subr.bf16.mxu1 %v8147_v62  ;;  %v8291_v62 = vcombine.high %v645_v54, %v653_v56 }
 0x1b3   : > { %3719 = vmatpush1.bf16.msra.mxu0 %v7890_v4  ;;  %v8034_v4 = vcombine.low %v389_v52, %v397_v53  ;;  %v550_v53 = vld [vmem:[#allocation5 + $0xa30] sm:$0xff] }
 0x1b4   : > { %3720 = vmatprep.subr.bf16.mxu0 %v7875_v6  ;;  %v8019_v6 = vcombine.high %v373_v63, %v381_v0 }
 0x1b5   : > { %3760 = vmatpush1.bf16.msra.mxu1 %v8146_v5  ;;  %v8290_v5 = vcombine.low %v645_v54, %v653_v56  ;;  %v558_v54 = vld [vmem:[#allocation5 + $0xa70] sm:$0xff] }
 0x1b6   : > { %3761 = vmatprep.subr.bf16.mxu1 %v8131_v7  ;;  %v8275_v7 = vcombine.high %v629_v1, %v637_v2 }
 0x1b7   : > { %3721 = vmatpush1.bf16.msra.mxu0 %v7874_v12  ;;  %v8018_v12 = vcombine.low %v373_v63, %v381_v0  ;;  %v8197_v0 = vcombine.high %v550_v53, %v558_v54 }
 0x1b8   : > { %3722 = vmatprep.subr.bf16.mxu0 %v8115_v14  ;;  %v8003_v14 = vcombine.high %v357_v8, %v365_v9 }
 0x1b9   : > { %3762 = vmatpush1.bf16.msra.mxu1 %v8130_v13  ;;  %v8274_v13 = vcombine.low %v629_v1, %v637_v2  ;;  %v278_v1 = vld [vmem:[#allocation5 + $0x1b0] sm:$0xff] }
 0x1ba   : > { %3763 = vmatprep.subr.bf16.mxu1 %v8371_v17  ;;  %v8259_v17 = vcombine.high %v613_v10, %v621_v11  ;;  %v286_v2 = vld [vmem:[#allocation5 + $0x1f0] sm:$0xff] }
 0x1bb   : > { %3723 = vmatpush2.bf16.msra.mxu0 %v8114_v23  ;;  %v8002_v23 = vcombine.low %v357_v8, %v365_v9  ;;  %v7925_v8 = vcombine.high %v278_v1, %v286_v2 }
 0x1bc   : > { %3724 = vmatprep.subr.bf16.mxu0 %v8099_v26  ;;  %v7989_v26 = vcombine.high %v342_v18, %v350_v20 }
 0x1bd   : > { %3764 = vmatpush2.bf16.msra.mxu1 %v8370_v24  ;;  %v8258_v24 = vcombine.low %v613_v10, %v621_v11  ;;  %v262_v10 = vld [vmem:[#allocation5 + $0x130] sm:$0xff] }
 0x1be   : > { %3765 = vmatprep.subr.bf16.mxu1 %v8355_v27  ;;  %v8245_v27 = vcombine.high %v598_v21, %v606_v22  ;;  %v270_v11 = vld [vmem:[#allocation5 + $0x170] sm:$0xff] }
 0x1bf   : > { %3725 = vmatpush2.bf16.msra.mxu0 %v8098_v32  ;;  %v7988_v32 = vcombine.low %v342_v18, %v350_v20  ;;  %v7909_v18 = vcombine.high %v262_v10, %v270_v11 }
 0x1c0   : > { %3726 = vmatprep.subr.bf16.mxu0 %v8083_v34  ;;  %v7973_v34 = vcombine.high %v326_v28, %v334_v29 }
 0x1c1   : > { %3766 = vmatpush2.bf16.msra.mxu1 %v8354_v33  ;;  %v8244_v33 = vcombine.low %v598_v21, %v606_v22  ;;  %v246_v21 = vld [vmem:[#allocation5 + $0xb0] sm:$0xff] }
 0x1c2   : > { %3767 = vmatprep.subr.bf16.mxu1 %v8339_v35  ;;  %v8229_v35 = vcombine.high %v582_v30, %v590_v31  ;;  %v254_v22 = vld [vmem:[#allocation5 + $0xf0] sm:$0xff] }
 0x1c3   : > { %3727 = vmatpush2.bf16.msra.mxu0 %v8082_v40  ;;  %v574_v40 = vld [vmem:[#allocation5 + $0xaf0] sm:$0xff] }
 0x1c4   : > { %3728 = vmatprep.subr.bf16.mxu0 %v8067_v42  ;;  %v7972_v42 = vcombine.low %v326_v28, %v334_v29  ;;  %v7893_v28 = vcombine.high %v246_v21, %v254_v22  ;;  %v230_v30 = vld [vmem:[#allocation5 + $0x30] sm:$0xff] }
 0x1c5   : > { %3768 = vmatpush2.bf16.msra.mxu1 %v8338_v41  ;;  %v238_v31 = vld [vmem:[#allocation5 + $0x70] sm:$0xff] }
 0x1c6   : > { %3769 = vmatprep.subr.bf16.mxu1 %v8323_v43 }
 0x1c7   : > { %3729 = vmatpush2.bf16.msra.mxu0 %v8066_v48  ;;  %v8213_v48 = vcombine.high %v566_v39, %v574_v40 }
 0x1c8   : > { %3730 = vmatprep.subr.bf16.mxu0 %v8051_v50  ;;  %v302_v50 = vld [vmem:[#allocation5 + $0x270] sm:$0xff] }
 0x1c9   : > { %3770 = vmatpush2.bf16.msra.mxu1 %v8322_v49  ;;  %v294_v49 = vld [vmem:[#allocation5 + $0x230] sm:$0xff] }
 0x1ca   : > { %3771 = vmatprep.subr.bf16.mxu1 %v8307_v51 }
 0x1cb   : > { %3731 = vmatpush2.bf16.msra.mxu0 %v8050_v57  ;;  %v7956_v57 = vcombine.low %v310_v36, %v318_v37  ;;  %v7877_v36 = vcombine.high %v230_v30, %v238_v31 }
 0x1cc   : > { %3732 = vmatprep.subr.bf16.mxu0 %v8035_v61  ;;  %v8212_v61 = vcombine.low %v566_v39, %v574_v40  ;;  %v478_v39 = vld [vmem:[#allocation5 + $0x7f0] sm:$0xff] }
 0x1cd   : > { %3772 = vmatpush2.bf16.msra.mxu1 %v8306_v60  ;;  %v726_v40 = vld [vmem:[#allocation5 + $0xfb0] sm:$0xff] }
 0x1ce   : > { %3773 = vmatprep.subr.bf16.mxu1 %v8291_v62  ;;  %v7941_v62 = vcombine.high %v294_v49, %v302_v50 }
 0x1cf   : > { %3733 = vmatpush2.bf16.msra.mxu0 %v8034_v4  ;;  %v534_v4 = vld [vmem:[#allocation5 + $0x9b0] sm:$0xff] }
 0x1d0   : > { %3734 = vmatprep.subr.bf16.mxu0 %v8019_v6  ;;  %v7940_v6 = vcombine.low %v294_v49, %v302_v50  ;;  %v710_v49 = vld [vmem:[#allocation5 + $0xf30] sm:$0xff] }
 0x1d1   : > { %3774 = vmatpush2.bf16.msra.mxu1 %v8290_v5  ;;  %v542_v5 = vld [vmem:[#allocation5 + $0x9f0] sm:$0xff] }
 0x1d2   : > { %3775 = vmatprep.subr.bf16.mxu1 %v8275_v7  ;;  %v8196_v7 = vcombine.low %v550_v53, %v558_v54  ;;  %v8181_v9 = vcombine.high %v534_v4, %v542_v5  ;;  %v718_v50 = vld [vmem:[#allocation5 + $0xf70] sm:$0xff] }
 0x1d3   : > { %3735 = vmatpush2.bf16.msra.mxu0 %v8018_v12  ;;  %v518_v12 = vld [vmem:[#allocation5 + $0x930] sm:$0xff] }
 0x1d4   : > { %3736 = vmatprep.subr.bf16.mxu0 %v8003_v14  ;;  %v7924_v14 = vcombine.low %v278_v1, %v286_v2 }
 0x1d5   : > { %3776 = vmatpush2.bf16.msra.mxu1 %v8274_v13  ;;  %v526_v13 = vld [vmem:[#allocation5 + $0x970] sm:$0xff] }
 0x1d6   : > { %3777 = vmatprep.subr.bf16.mxu1 %v8259_v17  ;;  %v8180_v17 = vcombine.low %v534_v4, %v542_v5  ;;  %v8165_v20 = vcombine.high %v518_v12, %v526_v13  ;;  %v422_v4 = vld [vmem:[#allocation5 + $0x630] sm:$0xff] }
 0x1d7   : > { %3737 = vmatpush2.bf16.msra.mxu0 %v8002_v23  ;;  %v502_v23 = vld [vmem:[#allocation5 + $0x8b0] sm:$0xff] }
 0x1d8   : > { %3788 = vmatprep.subr.bf16.mxu0 %v7989_v26  ;;  %v7908_v26 = vcombine.low %v262_v10, %v270_v11  ;;  %v430_v5 = vld [vmem:[#allocation5 + $0x670] sm:$0xff] }
 0x1d9   : > { %3778 = vmatpush2.bf16.msra.mxu1 %v8258_v24  ;;  %v510_v24 = vld [vmem:[#allocation5 + $0x8f0] sm:$0xff]  ;;  %v8069_v10 = vcombine.high %v422_v4, %v430_v5 }
 0x1da   : > { %3829 = vmatprep.subr.bf16.mxu1 %v8245_v27  ;;  %v3494_v38 = vpop.f32.mrf.mxu0  ;;  %3739 = vmatmul.mubr.bf16.vlgmr.msra.gmra.mxu0 %v10062_v16  ;;  %v8164_v27 = vcombine.low %v518_v12, %v526_v13  ;;  %v8149_v29 = vcombine.high %v502_v23, %v510_v24  ;;  %v406_v12 = vld [vmem:[#allocation5 + $0x5b0] sm:$0xff] }
 0x1db   : > { %3789 = vmatpush1.bf16.msra.mxu0 %v7988_v32  ;;  %3820 = vmatprep.mubr.bf16.mxu0 %v10054_v58  ;;  %v486_v32 = vld [vmem:[#allocation5 + $0x830] sm:$0xff] }
 0x1dc   : > { %v3535_v41 = vpop.f32.mrf.mxu1  ;;  %3780 = vmatmul.mubr.bf16.vlgmr.msra.gmra.mxu1 %v10064_v19  ;;  %v3496_v44 = vpop.f32.mrf.mxu0  ;;  %3790 = vmatprep.subr.bf16.mxu0 %v7973_v34  ;;  %v7892_v34 = vcombine.low %v246_v21, %v254_v22  ;;  %v414_v13 = vld [vmem:[#allocation5 + $0x5f0] sm:$0xff] }
 0x1dd   : > { %v10096_v43 = vadd.f32 %v3535_v41, %v3494_v38  ;;  %3830 = vmatpush1.bf16.msra.mxu1 %v8244_v33  ;;  %3861 = vmatprep.mubr.bf16.mxu1 %v10056_v59  ;;  %v494_v33 = vld [vmem:[#allocation5 + $0x870] sm:$0xff]  ;;  %v8053_v21 = vcombine.high %v406_v12, %v414_v13 }
 0x1de   : > { %v3537_v47 = vpop.f32.mrf.mxu1  ;;  %3831 = vmatprep.subr.bf16.mxu1 %v8229_v35  ;;  %v3498_v52 = vpop.f32.mrf.mxu0  ;;  %v8148_v35 = vcombine.low %v502_v23, %v510_v24  ;;  %v8133_v37 = vcombine.high %v486_v32, %v494_v33  ;;  %v470_v38 = vld [vmem:[#allocation5 + $0x7b0] sm:$0xff] }
 0x1df   : > { %v10099_v51 = vadd.f32 %v3537_v47, %v3496_v44  ;;  %3791 = vmatpush1.bf16.msra.mxu0 %v7972_v42  ;;  %v734_v41 = vld [vmem:[#allocation5 + $0xff0] sm:$0xff]  ;;  %v7876_v42 = vcombine.low %v230_v30, %v238_v31  ;;  %v8132_v44 = vcombine.low %v486_v32, %v494_v33  ;;  %v8116_v52 = vcombine.low %v470_v38, %v478_v39 }
 0x1e0   : > { %v3539_v56 = vpop.f32.mrf.mxu1  ;;  %v3499_v60 = vpop.f32.mrf.mxu0  ;;  %3792 = vmatprep.subr.bf16.mxu0 %v7957_v46  ;;  %v8373_v46 = vcombine.high %v726_v40, %v734_v41  ;;  %v454_v47 = vld [vmem:[#allocation5 + $0x730] sm:$0xff]  ;;  %v8372_v53 = vcombine.low %v726_v40, %v734_v41 }
 0x1e1   : > { %3832 = vmatpush1.bf16.msra.mxu1 %v8228_v45  ;;  %v8117_v45 = vcombine.high %v470_v38, %v478_v39  ;;  %v8357_v56 = vcombine.high %v710_v49, %v718_v50  ;;  %v446_v60 = vld [vmem:[#allocation5 + $0x6f0] sm:$0xff] }
 0x1e2   : > { %v3540_v63 = vpop.f32.mrf.mxu1  ;;  %3833 = vmatprep.subr.bf16.mxu1 %v8213_v48  ;;  %v462_v48 = vld [vmem:[#allocation5 + $0x770] sm:$0xff] }
 0x1e3   : > { %3793 = vmatpush1.bf16.msra.mxu0 %v7956_v57  ;;  %v8101_v54 = vcombine.high %v454_v47, %v462_v48  ;;  %v438_v57 = vld [vmem:[#allocation5 + $0x6b0] sm:$0xff]  ;;  %v8100_v63 = vcombine.low %v454_v47, %v462_v48 }
 0x1e4   : > { %3794 = vmatprep.subr.bf16.mxu0 %v7941_v62  ;;  %v702_v62 = vld [vmem:[#allocation5 + $0xef0] sm:$0xff]  ;;  %v8085_v1 = vcombine.high %v438_v57, %v446_v60 }
 0x1e5   : > { %3834 = vmatpush1.bf16.msra.mxu1 %v8212_v61  ;;  %v694_v61 = vld [vmem:[#allocation5 + $0xeb0] sm:$0xff] }
 0x1e6   : > { %3835 = vmatprep.subr.bf16.mxu1 %v8197_v0  ;;  %v8356_v0 = vcombine.low %v710_v49, %v718_v50  ;;  %v8341_v2 = vcombine.high %v694_v61, %v702_v62  ;;  %v390_v23 = vld [vmem:[#allocation5 + $0x530] sm:$0xff]  ;;  %v343_v49 = vld [vmem:[#allocation5 + $0x3b8] sm:$0xff] }
 0x1e7   : > { %3795 = vmatpush1.bf16.msra.mxu0 %v7940_v6  ;;  %v678_v6 = vld [vmem:[#allocation5 + $0xe30] sm:$0xff]  ;;  %v351_v50 = vld [vmem:[#allocation5 + $0x3f8] sm:$0xff] }
 0x1e8   : > { %3796 = vmatprep.subr.bf16.mxu0 %v7925_v8  ;;  %v8084_v8 = vcombine.low %v438_v57, %v446_v60  ;;  %v398_v24 = vld [vmem:[#allocation5 + $0x570] sm:$0xff]  ;;  %v7991_v57 = vcombine.high %v343_v49, %v351_v50 }
 0x1e9   : > { %3836 = vmatpush1.bf16.msra.mxu1 %v8196_v7  ;;  %v686_v7 = vld [vmem:[#allocation5 + $0xe70] sm:$0xff]  ;;  %v8037_v30 = vcombine.high %v390_v23, %v398_v24 }
 0x1ea   : > { %3837 = vmatprep.subr.bf16.mxu1 %v8181_v9  ;;  %v8340_v9 = vcombine.low %v694_v61, %v702_v62  ;;  %v8325_v11 = vcombine.high %v678_v6, %v686_v7  ;;  %v374_v32 = vld [vmem:[#allocation5 + $0x4b0] sm:$0xff]  ;;  %v327_v61 = vld [vmem:[#allocation5 + $0x338] sm:$0xff] }
 0x1eb   : > { %3797 = vmatpush1.bf16.msra.mxu0 %v7924_v14  ;;  %v662_v14 = vld [vmem:[#allocation5 + $0xdb0] sm:$0xff]  ;;  %v335_v62 = vld [vmem:[#allocation5 + $0x378] sm:$0xff] }
 0x1ec   : > { %3798 = vmatprep.subr.bf16.mxu0 %v7909_v18  ;;  %v8068_v18 = vcombine.low %v422_v4, %v430_v5  ;;  %v382_v33 = vld [vmem:[#allocation5 + $0x4f0] sm:$0xff]  ;;  %v7975_v4 = vcombine.high %v327_v61, %v335_v62 }
 0x1ed   : > { %3838 = vmatpush1.bf16.msra.mxu1 %v8180_v17  ;;  %v670_v17 = vld [vmem:[#allocation5 + $0xdf0] sm:$0xff]  ;;  %v8021_v38 = vcombine.high %v374_v32, %v382_v33 }
 0x1ee   : > { %3839 = vmatprep.subr.bf16.mxu1 %v8165_v20  ;;  %v8324_v20 = vcombine.low %v678_v6, %v686_v7  ;;  %v8309_v22 = vcombine.high %v662_v14, %v670_v17  ;;  %v358_v40 = vld [vmem:[#allocation5 + $0x430] sm:$0xff]  ;;  %v311_v6 = vld [vmem:[#allocation5 + $0x2b8] sm:$0xff] }
 0x1ef   : > { %3799 = vmatpush1.bf16.msra.mxu0 %v7908_v26  ;;  %v646_v26 = vld [vmem:[#allocation5 + $0xd30] sm:$0xff]  ;;  %v319_v7 = vld [vmem:[#allocation5 + $0x2f8] sm:$0xff] }
 0x1f0   : > { %3800 = vmatprep.subr.bf16.mxu0 %v7893_v28  ;;  %v8052_v28 = vcombine.low %v406_v12, %v414_v13  ;;  %v366_v41 = vld [vmem:[#allocation5 + $0x470] sm:$0xff]  ;;  %v7974_v12 = vcombine.low %v327_v61, %v335_v62 }
 0x1f1   : > { %3840 = vmatpush1.bf16.msra.mxu1 %v8164_v27  ;;  %v654_v27 = vld [vmem:[#allocation5 + $0xd70] sm:$0xff]  ;;  %v8005_v47 = vcombine.high %v358_v40, %v366_v41 }
 0x1f2   : > { %3841 = vmatprep.subr.bf16.mxu1 %v8149_v29  ;;  %v8308_v29 = vcombine.low %v662_v14, %v670_v17  ;;  %v8293_v31 = vcombine.high %v646_v26, %v654_v27 }
 0x1f3   : > { %3801 = vmatpush1.bf16.msra.mxu0 %v7892_v34  ;;  %v630_v34 = vld [vmem:[#allocation5 + $0xcb0] sm:$0xff] }
 0x1f4   : > { %3802 = vmatprep.subr.bf16.mxu0 %v7877_v36  ;;  %v8036_v36 = vcombine.low %v390_v23, %v398_v24  ;;  %v303_v23 = vld [vmem:[#allocation5 + $0x278] sm:$0xff] }
 0x1f5   : > { %3842 = vmatpush1.bf16.msra.mxu1 %v8148_v35  ;;  %v638_v35 = vld [vmem:[#allocation5 + $0xcf0] sm:$0xff] }
 0x1f6   : > { %3843 = vmatprep.subr.bf16.mxu1 %v8133_v37  ;;  %v8292_v37 = vcombine.low %v646_v26, %v654_v27  ;;  %v8277_v39 = vcombine.high %v630_v34, %v638_v35  ;;  %v551_v27 = vld [vmem:[#allocation5 + $0xa38] sm:$0xff] }
 0x1f7   : > { %3803 = vmatpush1.bf16.msra.mxu0 %v7876_v42  ;;  %v614_v42 = vld [vmem:[#allocation5 + $0xc30] sm:$0xff] }
 0x1f8   : > { %3804 = vmatprep.subr.bf16.mxu0 %v8117_v45  ;;  %v8020_v45 = vcombine.low %v374_v32, %v382_v33 }
 0x1f9   : > { %3844 = vmatpush1.bf16.msra.mxu1 %v8132_v44  ;;  %v622_v44 = vld [vmem:[#allocation5 + $0xc70] sm:$0xff] }
 0x1fa   : > { %3845 = vmatprep.subr.bf16.mxu1 %v8373_v46  ;;  %v8276_v46 = vcombine.low %v630_v34, %v638_v35  ;;  %v8261_v48 = vcombine.high %v614_v42, %v622_v44 }
 0x1fb   : > { %3805 = vmatpush2.bf16.msra.mxu0 %v8116_v52  ;;  %v599_v52 = vld [vmem:[#allocation5 + $0xbb8] sm:$0xff] }
 0x1fc   : > { %3806 = vmatprep.subr.bf16.mxu0 %v8101_v54  ;;  %v8004_v54 = vcombine.low %v358_v40, %v366_v41 }
 0x1fd   : > { %3846 = vmatpush2.bf16.msra.mxu1 %v8372_v53  ;;  %v607_v53 = vld [vmem:[#allocation5 + $0xbf8] sm:$0xff] }
 0x1fe   : > { %3847 = vmatprep.subr.bf16.mxu1 %v8357_v56  ;;  %v8260_v56 = vcombine.low %v614_v42, %v622_v44  ;;  %v8247_v60 = vcombine.high %v599_v52, %v607_v53  ;;  %v263_v42 = vld [vmem:[#allocation5 + $0x138] sm:$0xff] }
 0x1ff   : > { %3807 = vmatpush2.bf16.msra.mxu0 %v8100_v63  ;;  %v583_v63 = vld [vmem:[#allocation5 + $0xb38] sm:$0xff] }
 0x200   : > { %3808 = vmatprep.subr.bf16.mxu0 %v8085_v1  ;;  %v7990_v1 = vcombine.low %v343_v49, %v351_v50  ;;  %v271_v44 = vld [vmem:[#allocation5 + $0x178] sm:$0xff] }
 0x201   : > { %3848 = vmatpush2.bf16.msra.mxu1 %v8356_v0  ;;  %v591_v0 = vld [vmem:[#allocation5 + $0xb78] sm:$0xff]  ;;  %v7911_v49 = vcombine.high %v263_v42, %v271_v44 }
 0x202   : > { %3849 = vmatprep.subr.bf16.mxu1 %v8341_v2  ;;  %v8246_v2 = vcombine.low %v599_v52, %v607_v53  ;;  %v8231_v5 = vcombine.high %v583_v63, %v591_v0  ;;  %v8230_v17 = vcombine.low %v583_v63, %v591_v0  ;;  %v247_v52 = vld [vmem:[#allocation5 + $0xb8] sm:$0xff] }
 0x203   : > { %3809 = vmatpush2.bf16.msra.mxu0 %v8084_v8  ;;  %v255_v53 = vld [vmem:[#allocation5 + $0xf8] sm:$0xff] }
 0x204   : > { %3810 = vmatprep.subr.bf16.mxu0 %v8069_v10  ;;  %v575_v10 = vld [vmem:[#allocation5 + $0xaf8] sm:$0xff]  ;;  %v7895_v61 = vcombine.high %v247_v52, %v255_v53 }
 0x205   : > { %3850 = vmatpush2.bf16.msra.mxu1 %v8340_v9  ;;  %v567_v9 = vld [vmem:[#allocation5 + $0xab8] sm:$0xff] }
 0x206   : > { %3851 = vmatprep.subr.bf16.mxu1 %v8325_v11  ;;  %v8214_v32 = vcombine.low %v567_v9, %v575_v10  ;;  %v231_v63 = vld [vmem:[#allocation5 + $0x38] sm:$0xff] }
 0x207   : > { %3811 = vmatpush2.bf16.msra.mxu0 %v8068_v18  ;;  %v7959_v18 = vcombine.high %v311_v6, %v319_v7  ;;  %v239_v0 = vld [vmem:[#allocation5 + $0x78] sm:$0xff] }
 0x208   : > { %3812 = vmatprep.subr.bf16.mxu0 %v8053_v21  ;;  %v8215_v21 = vcombine.high %v567_v9, %v575_v10  ;;  %v479_v9 = vld [vmem:[#allocation5 + $0x7f8] sm:$0xff] }
 0x209   : > { %3852 = vmatpush2.bf16.msra.mxu1 %v8324_v20  ;;  %v727_v10 = vld [vmem:[#allocation5 + $0xfb8] sm:$0xff] }
 0x20a   : > { %3853 = vmatprep.subr.bf16.mxu1 %v8309_v22  ;;  %v295_v22 = vld [vmem:[#allocation5 + $0x238] sm:$0xff] }
 0x20b   : > { %3813 = vmatpush2.bf16.msra.mxu0 %v8052_v28  ;;  %v559_v28 = vld [vmem:[#allocation5 + $0xa78] sm:$0xff]  ;;  %v7943_v33 = vcombine.high %v295_v22, %v303_v23 }
 0x20c   : > { %3814 = vmatprep.subr.bf16.mxu0 %v8037_v30  ;;  %v7958_v30 = vcombine.low %v311_v6, %v319_v7  ;;  %v8199_v35 = vcombine.high %v551_v27, %v559_v28  ;;  %v7879_v6 = vcombine.high %v231_v63, %v239_v0 }
 0x20d   : > { %3854 = vmatpush2.bf16.msra.mxu1 %v8308_v29 }
 0x20e   : > { %3855 = vmatprep.subr.bf16.mxu1 %v8293_v31 }
 0x20f   : > { %3815 = vmatpush2.bf16.msra.mxu0 %v8036_v36  ;;  %v279_v36 = vld [vmem:[#allocation5 + $0x1b8] sm:$0xff] }
 0x210   : > { %3816 = vmatprep.subr.bf16.mxu0 %v8021_v38  ;;  %v543_v38 = vld [vmem:[#allocation5 + $0x9f8] sm:$0xff] }
 0x211   : > { %3856 = vmatpush2.bf16.msra.mxu1 %v8292_v37  ;;  %v535_v37 = vld [vmem:[#allocation5 + $0x9b8] sm:$0xff] }
 0x212   : > { %3857 = vmatprep.subr.bf16.mxu1 %v8277_v39  ;;  %v7942_v39 = vcombine.low %v295_v22, %v303_v23  ;;  %v8183_v41 = vcombine.high %v535_v37, %v543_v38  ;;  %v711_v22 = vld [vmem:[#allocation5 + $0xf38] sm:$0xff] }
 0x213   : > { %3817 = vmatpush2.bf16.msra.mxu0 %v8020_v45  ;;  %v519_v45 = vld [vmem:[#allocation5 + $0x938] sm:$0xff] }
 0x214   : > { %3818 = vmatprep.subr.bf16.mxu0 %v8005_v47  ;;  %v719_v23 = vld [vmem:[#allocation5 + $0xf78] sm:$0xff] }
 0x215   : > { %3858 = vmatpush2.bf16.msra.mxu1 %v8276_v46  ;;  %v527_v46 = vld [vmem:[#allocation5 + $0x978] sm:$0xff] }
 0x216   : > { %3859 = vmatprep.subr.bf16.mxu1 %v8261_v48  ;;  %v8182_v48 = vcombine.low %v535_v37, %v543_v38  ;;  %v8167_v50 = vcombine.high %v519_v45, %v527_v46  ;;  %v423_v37 = vld [vmem:[#allocation5 + $0x638] sm:$0xff] }
 0x217   : > { %3819 = vmatpush2.bf16.msra.mxu0 %v8004_v54  ;;  %v503_v54 = vld [vmem:[#allocation5 + $0x8b8] sm:$0xff] }
 0x218   : > { %3870 = vmatprep.subr.bf16.mxu0 %v7991_v57  ;;  %v7910_v57 = vcombine.low %v263_v42, %v271_v44  ;;  %v431_v38 = vld [vmem:[#allocation5 + $0x678] sm:$0xff] }
 0x219   : > { %3860 = vmatpush2.bf16.msra.mxu1 %v8260_v56  ;;  %v511_v56 = vld [vmem:[#allocation5 + $0x8f8] sm:$0xff]  ;;  %v8071_v42 = vcombine.high %v423_v37, %v431_v38 }
 0x21a   : > { %3911 = vmatprep.subr.bf16.mxu1 %v8247_v60  ;;  %v3576_v8 = vpop.f32.mrf.mxu0  ;;  %3821 = vmatmul.mubr.bf16.vlgmr.msra.gmra.mxu0 %v10062_v16  ;;  %v8166_v60 = vcombine.low %v519_v45, %v527_v46  ;;  %v8151_v62 = vcombine.high %v503_v54, %v511_v56  ;;  %v407_v45 = vld [vmem:[#allocation5 + $0x5b8] sm:$0xff] }
 0x21b   : > { %3871 = vmatpush1.bf16.msra.mxu0 %v7990_v1  ;;  %3902 = vmatprep.mubr.bf16.mxu0 %v10054_v58  ;;  %v287_v58 = vld [vmem:[#allocation5 + $0x1f8] sm:$0xff] }
 0x21c   : > { %v3617_v11 = vpop.f32.mrf.mxu1  ;;  %3862 = vmatmul.mubr.bf16.vlgmr.msra.gmra.mxu1 %v10064_v19  ;;  %v3578_v14 = vpop.f32.mrf.mxu0  ;;  %3872 = vmatprep.subr.bf16.mxu0 %v7975_v4  ;;  %v7927_v40 = vcombine.high %v279_v36, %v287_v58  ;;  %v7926_v47 = vcombine.low %v279_v36, %v287_v58  ;;  %v487_v1 = vld [vmem:[#allocation5 + $0x838] sm:$0xff]  ;;  %v7894_v4 = vcombine.low %v247_v52, %v255_v53 }
 0x21d   : > { %v10104_v13 = vadd.f32 %v3617_v11, %v3576_v8  ;;  %3912 = vmatpush1.bf16.msra.mxu1 %v8246_v2  ;;  %3943 = vmatprep.mubr.bf16.mxu1 %v10056_v59  ;;  %v8198_v59 = vcombine.low %v551_v27, %v559_v28  ;;  %v495_v2 = vld [vmem:[#allocation5 + $0x878] sm:$0xff] }
 0x21e   : > { %v3619_v20 = vpop.f32.mrf.mxu1  ;;  %3913 = vmatprep.subr.bf16.mxu1 %v8231_v5  ;;  %v3580_v26 = vpop.f32.mrf.mxu0  ;;  %v8150_v5 = vcombine.low %v503_v54, %v511_v56  ;;  %v8135_v7 = vcombine.high %v487_v1, %v495_v2  ;;  %v471_v8 = vld [vmem:[#allocation5 + $0x7b8] sm:$0xff] }
 0x21f   : > { %v10107_v24 = vadd.f32 %v3619_v20, %v3578_v14  ;;  %3873 = vmatpush1.bf16.msra.mxu0 %v7974_v12  ;;  %v735_v11 = vld [vmem:[#allocation5 + $0xff8] sm:$0xff]  ;;  %v7878_v12 = vcombine.low %v231_v63, %v239_v0  ;;  %v8134_v14 = vcombine.low %v487_v1, %v495_v2  ;;  %v8118_v26 = vcombine.low %v471_v8, %v479_v9 }
 0x220   : > { %v3621_v29 = vpop.f32.mrf.mxu1  ;;  %v3581_v31 = vpop.f32.mrf.mxu0  ;;  %3874 = vmatprep.subr.bf16.mxu0 %v7959_v18  ;;  %v8375_v18 = vcombine.high %v727_v10, %v735_v11  ;;  %v455_v20 = vld [vmem:[#allocation5 + $0x738] sm:$0xff]  ;;  %v8374_v27 = vcombine.low %v727_v10, %v735_v11 }
 0x221   : > { %3914 = vmatpush1.bf16.msra.mxu1 %v8230_v17  ;;  %v8119_v17 = vcombine.high %v471_v8, %v479_v9  ;;  %v8359_v29 = vcombine.high %v711_v22, %v719_v23  ;;  %v447_v31 = vld [vmem:[#allocation5 + $0x6f8] sm:$0xff] }
 0x222   : > { %v3622_v34 = vpop.f32.mrf.mxu1  ;;  %3915 = vmatprep.subr.bf16.mxu1 %v8215_v21  ;;  %v463_v21 = vld [vmem:[#allocation5 + $0x778] sm:$0xff] }
 0x223   : > { %3875 = vmatpush1.bf16.msra.mxu0 %v7958_v30  ;;  %v8103_v28 = vcombine.high %v455_v20, %v463_v21  ;;  %v439_v30 = vld [vmem:[#allocation5 + $0x6b8] sm:$0xff]  ;;  %v8102_v34 = vcombine.low %v455_v20, %v463_v21 }
 0x224   : > { %3876 = vmatprep.subr.bf16.mxu0 %v7943_v33  ;;  %v703_v33 = vld [vmem:[#allocation5 + $0xef8] sm:$0xff]  ;;  %v8087_v36 = vcombine.high %v439_v30, %v447_v31 }
 0x225   : > { %3916 = vmatpush1.bf16.msra.mxu1 %v8214_v32  ;;  %v695_v32 = vld [vmem:[#allocation5 + $0xeb8] sm:$0xff] }
 0x226   : > { %3917 = vmatprep.subr.bf16.mxu1 %v8199_v35  ;;  %v8358_v35 = vcombine.low %v711_v22, %v719_v23  ;;  %v8343_v58 = vcombine.high %v695_v32, %v703_v33  ;;  %v415_v46 = vld [vmem:[#allocation5 + $0x5f8] sm:$0xff] }
 0x227   : > { %3877 = vmatpush1.bf16.msra.mxu0 %v7942_v39  ;;  %v679_v39 = vld [vmem:[#allocation5 + $0xe38] sm:$0xff]  ;;  %v8055_v52 = vcombine.high %v407_v45, %v415_v46 }
 0x228   : > { %3878 = vmatprep.subr.bf16.mxu0 %v7927_v40  ;;  %v8086_v40 = vcombine.low %v439_v30, %v447_v31  ;;  %v391_v54 = vld [vmem:[#allocation5 + $0x538] sm:$0xff]  ;;  %v8966_v30 = vld [vmem:[#allocation7 + $0xe0] ss:$16 sps:$4 sm:$0xff]  }
 0x229   : > { %3918 = vmatpush1.bf16.msra.mxu1 %v8198_v59  ;;  %v687_v59 = vld [vmem:[#allocation5 + $0xe78] sm:$0xff]  ;;  %v8969_v31 = vld [vmem:[#allocation7 + $0x2e0] ss:$16 sps:$4 sm:$0xff]  }
 0x22a   : > { %3919 = vmatprep.subr.bf16.mxu1 %v8183_v41  ;;  %v8342_v41 = vcombine.low %v695_v32, %v703_v33  ;;  %v8327_v44 = vcombine.high %v679_v39, %v687_v59  ;;  %v399_v56 = vld [vmem:[#allocation5 + $0x578] sm:$0xff]  ;;  %v8974_v32 = vld [vmem:[#allocation7 + $0xc4] ss:$16 sps:$4 sm:$0xff]  }
 0x22b   : > { %3879 = vmatpush1.bf16.msra.mxu0 %v7926_v47  ;;  %v663_v47 = vld [vmem:[#allocation5 + $0xdb8] sm:$0xff]  ;;  %v8039_v63 = vcombine.high %v391_v54, %v399_v56 }
 0x22c   : > { %3880 = vmatprep.subr.bf16.mxu0 %v7911_v49  ;;  %v8070_v49 = vcombine.low %v423_v37, %v431_v38  ;;  %v375_v1 = vld [vmem:[#allocation5 + $0x4b8] sm:$0xff]  ;;  %v8975_v38 = vld [vmem:[#allocation7 + $0x2c0] ss:$16 sps:$4 sm:$0xff]  }
 0x22d   : > { %3920 = vmatpush1.bf16.msra.mxu1 %v8182_v48  ;;  %v671_v48 = vld [vmem:[#allocation5 + $0xdf8] sm:$0xff] }
 0x22e   : > { %3921 = vmatprep.subr.bf16.mxu1 %v8167_v50  ;;  %v8326_v50 = vcombine.low %v679_v39, %v687_v59  ;;  %v8311_v53 = vcombine.high %v663_v47, %v671_v48  ;;  %v383_v2 = vld [vmem:[#allocation5 + $0x4f8] sm:$0xff]  ;;  %v8980_v39 = vld [vmem:[#allocation7 + $0xa4] ss:$16 sps:$4 sm:$0xff]  }
 0x22f   : > { %3881 = vmatpush1.bf16.msra.mxu0 %v7910_v57  ;;  %v647_v57 = vld [vmem:[#allocation5 + $0xd38] sm:$0xff]  ;;  %v8023_v8 = vcombine.high %v375_v1, %v383_v2 }
 0x230   : > { %3882 = vmatprep.subr.bf16.mxu0 %v7895_v61  ;;  %v8054_v61 = vcombine.low %v407_v45, %v415_v46  ;;  %v359_v10 = vld [vmem:[#allocation5 + $0x438] sm:$0xff]  ;;  %v8981_v45 = vld [vmem:[#allocation7 + $0x2a0] ss:$16 sps:$4 sm:$0xff]   ;;  %v8986_v46 = vld [vmem:[#allocation7 + $0x84] ss:$16 sps:$4 sm:$0xff]  }
 0x231   : > { %3922 = vmatpush1.bf16.msra.mxu1 %v8166_v60  ;;  %v655_v60 = vld [vmem:[#allocation5 + $0xd78] sm:$0xff] }
 0x232   : > { %3923 = vmatprep.subr.bf16.mxu1 %v8151_v62  ;;  %v8310_v62 = vcombine.low %v663_v47, %v671_v48  ;;  %v8295_v0 = vcombine.high %v647_v57, %v655_v60  ;;  %v367_v11 = vld [vmem:[#allocation5 + $0x478] sm:$0xff]  ;;  %v8989_v48 = vld [vmem:[#allocation7 + $0x284] ss:$16 sps:$4 sm:$0xff]  }
 0x233   : > { %3883 = vmatpush1.bf16.msra.mxu0 %v7894_v4  ;;  %v631_v4 = vld [vmem:[#allocation5 + $0xcb8] sm:$0xff]  ;;  %v8007_v20 = vcombine.high %v359_v10, %v367_v11  ;;  %v8006_v22 = vcombine.low %v359_v10, %v367_v11  ;;  %v9014_v10 = vld [vmem:[#allocation7 + $0x1e0] ss:$16 sps:$4 sm:$0xff]  }
 0x234   : > { %3884 = vmatprep.subr.bf16.mxu0 %v7879_v6  ;;  %v8038_v6 = vcombine.low %v391_v54, %v399_v56  ;;  %v8990_v54 = vld [vmem:[#allocation7 + $0x60] ss:$16 sps:$4 sm:$0xff]  }
 0x235   : > { %3924 = vmatpush1.bf16.msra.mxu1 %v8150_v5  ;;  %v639_v5 = vld [vmem:[#allocation5 + $0xcf8] sm:$0xff]  ;;  %v8993_v56 = vld [vmem:[#allocation7 + $0x260] ss:$16 sps:$4 sm:$0xff]  }
 0x236   : > { %3925 = vmatprep.subr.bf16.mxu1 %v8135_v7  ;;  %v8294_v7 = vcombine.low %v647_v57, %v655_v60  ;;  %v8279_v9 = vcombine.high %v631_v4, %v639_v5  ;;  %v8998_v57 = vld [vmem:[#allocation7 + $0x44] ss:$16 sps:$4 sm:$0xff]   ;;  %v9017_v11 = vld [vmem:[#allocation7 + $0x3e0] ss:$16 sps:$4 sm:$0xff]  }
 0x237   : > { %3885 = vmatpush1.bf16.msra.mxu0 %v7878_v12  ;;  %v615_v12 = vld [vmem:[#allocation5 + $0xc38] sm:$0xff]  ;;  %v9001_v60 = vld [vmem:[#allocation7 + $0x244] ss:$16 sps:$4 sm:$0xff]  }
 0x238   : > { %3886 = vmatprep.subr.bf16.mxu0 %v8119_v17  ;;  %v8022_v17 = vcombine.low %v375_v1, %v383_v2  ;;  %v9002_v1 = vld [vmem:[#allocation7 + $0x20] ss:$16 sps:$4 sm:$0xff]  }
 0x239   : > { %3926 = vmatpush1.bf16.msra.mxu1 %v8134_v14  ;;  %v623_v14 = vld [vmem:[#allocation5 + $0xc78] sm:$0xff]  ;;  %v9005_v2 = vld [vmem:[#allocation7 + $0x220] ss:$16 sps:$4 sm:$0xff]  }
 0x23a   : > { %3927 = vmatprep.subr.bf16.mxu1 %v8375_v18  ;;  %v8278_v18 = vcombine.low %v631_v4, %v639_v5  ;;  %v8263_v21 = vcombine.high %v615_v12, %v623_v14  ;;  %v8262_v23 = vcombine.low %v615_v12, %v623_v14  ;;  %v9010_v4 = vld [vmem:[#allocation7 + $0x4] ss:$16 sps:$4 sm:$0xff]  }
 0x23b   : > { %3887 = vmatpush2.bf16.msra.mxu0 %v8118_v26  ;;  %v8968_v26 = vld [vmem:[#allocation7 + $0xe4] ss:$16 sps:$4 sm:$0xff]  }
 0x23c   : > { %3888 = vmatprep.subr.bf16.mxu0 %v8103_v28  ;;  %v3953_v28 = vmax.f32 %v10083_v3, 0.0  ;;  %v8972_v3 = vld [vmem:[#allocation7 + $0xc0] ss:$16 sps:$4 sm:$0xff]   ;;  %v9013_v5 = vld [vmem:[#allocation7 + $0x204] ss:$16 sps:$4 sm:$0xff]  }
 0x23d   : > { %3928 = vmatpush2.bf16.msra.mxu1 %v8374_v27  ;;  %v8971_v27 = vld [vmem:[#allocation7 + $0x2e4] ss:$16 sps:$4 sm:$0xff]  }
 0x23e   : > { %3929 = vmatprep.subr.bf16.mxu1 %v8359_v29  ;;  %v3955_v29 = vmax.f32 %v10091_v25, 0.0  ;;  %v10112_v33 = vpack.c.bf16 %v3953_v28, %v3953_v28  ;;  %v9022_v12 = vld [vmem:[#allocation7 + $0x1c4] ss:$16 sps:$4 sm:$0xff]   ;;  %v9032_v28 = vld [vmem:[#allocation7 + $0x180] ss:$16 sps:$4 sm:$0xff]  }
 0x23f   : > { %3889 = vmatpush2.bf16.msra.mxu0 %v8102_v34  ;;  %v9025_v14 = vld [vmem:[#allocation7 + $0x3c4] ss:$16 sps:$4 sm:$0xff]  }
 0x240   : > { %3890 = vmatprep.subr.bf16.mxu0 %v8087_v36  ;;  %v10115_v36 = vpack.c.bf16 %v3955_v29, %v3955_v29  ;;  %v9035_v29 = vld [vmem:[#allocation7 + $0x380] ss:$16 sps:$4 sm:$0xff]  }
 0x241   : > { %3930 = vmatpush2.bf16.msra.mxu1 %v8358_v35  ;;  %v8977_v35 = vld [vmem:[#allocation7 + $0x2c4] ss:$16 sps:$4 sm:$0xff]  }
 0x242   : > { %3931 = vmatprep.subr.bf16.mxu1 %v8343_v58 }
 0x243   : > { %3891 = vmatpush2.bf16.msra.mxu0 %v8086_v40 }
 0x244   : > { %3892 = vmatprep.subr.bf16.mxu0 %v8071_v42  ;;  %v8978_v42 = vld [vmem:[#allocation7 + $0xa0] ss:$16 sps:$4 sm:$0xff]  }
 0x245   : > { %3932 = vmatpush2.bf16.msra.mxu1 %v8342_v41 }
 0x246   : > { %3933 = vmatprep.subr.bf16.mxu1 %v8327_v44 }
 0x247   : > { %3893 = vmatpush2.bf16.msra.mxu0 %v8070_v49  ;;  %v8984_v49 = vld [vmem:[#allocation7 + $0x80] ss:$16 sps:$4 sm:$0xff]  }
 0x248   : > { %3894 = vmatprep.subr.bf16.mxu0 %v8055_v52  ;;  %v8992_v52 = vld [vmem:[#allocation7 + $0x64] ss:$16 sps:$4 sm:$0xff]  }
 0x249   : > { %3934 = vmatpush2.bf16.msra.mxu1 %v8326_v50  ;;  %v8987_v50 = vld [vmem:[#allocation7 + $0x280] ss:$16 sps:$4 sm:$0xff]  }
 0x24a   : > { %3935 = vmatprep.subr.bf16.mxu1 %v8311_v53  ;;  %v8995_v53 = vld [vmem:[#allocation7 + $0x264] ss:$16 sps:$4 sm:$0xff]  }
 0x24b   : > { %3895 = vmatpush2.bf16.msra.mxu0 %v8054_v61  ;;  %v8996_v61 = vld [vmem:[#allocation7 + $0x40] ss:$16 sps:$4 sm:$0xff]  }
 0x24c   : > { %3896 = vmatprep.subr.bf16.mxu0 %v8039_v63  ;;  %v9004_v63 = vld [vmem:[#allocation7 + $0x24] ss:$16 sps:$4 sm:$0xff]  }
 0x24d   : > { %3936 = vmatpush2.bf16.msra.mxu1 %v8310_v62  ;;  %v8999_v62 = vld [vmem:[#allocation7 + $0x240] ss:$16 sps:$4 sm:$0xff]  }
 0x24e   : > { %3937 = vmatprep.subr.bf16.mxu1 %v8295_v0  ;;  %v9007_v0 = vld [vmem:[#allocation7 + $0x224] ss:$16 sps:$4 sm:$0xff]  }
 0x24f   : > { %3897 = vmatpush2.bf16.msra.mxu0 %v8038_v6  ;;  %v9008_v6 = vld [vmem:[#allocation7] ss:$16 sps:$4 sm:$0xff]  }
 0x250   : > { %3898 = vmatprep.subr.bf16.mxu0 %v8023_v8  ;;  %v9016_v8 = vld [vmem:[#allocation7 + $0x1e4] ss:$16 sps:$4 sm:$0xff]  }
 0x251   : > { %3938 = vmatpush2.bf16.msra.mxu1 %v8294_v7  ;;  %v9011_v7 = vld [vmem:[#allocation7 + $0x200] ss:$16 sps:$4 sm:$0xff]  }
 0x252   : > { %3939 = vmatprep.subr.bf16.mxu1 %v8279_v9  ;;  %v9019_v9 = vld [vmem:[#allocation7 + $0x3e4] ss:$16 sps:$4 sm:$0xff]  }
 0x253   : > { %3899 = vmatpush2.bf16.msra.mxu0 %v8022_v17  ;;  %v9020_v17 = vld [vmem:[#allocation7 + $0x1c0] ss:$16 sps:$4 sm:$0xff]  }
 0x254   : > { %3900 = vmatprep.subr.bf16.mxu0 %v8007_v20  ;;  %v9028_v20 = vld [vmem:[#allocation7 + $0x1a4] ss:$16 sps:$4 sm:$0xff]  }
 0x255   : > { %3940 = vmatpush2.bf16.msra.mxu1 %v8278_v18  ;;  %v9023_v18 = vld [vmem:[#allocation7 + $0x3c0] ss:$16 sps:$4 sm:$0xff]  }
 0x256   : > { %3941 = vmatprep.subr.bf16.mxu1 %v8263_v21  ;;  %v9031_v21 = vld [vmem:[#allocation7 + $0x3a4] ss:$16 sps:$4 sm:$0xff]  }
 0x257   : > { %3901 = vmatpush2.bf16.msra.mxu0 %v8006_v22  ;;  %v9026_v22 = vld [vmem:[#allocation7 + $0x1a0] ss:$16 sps:$4 sm:$0xff]  }
 0x258   : > { %7056 = vmatprep.subr.bf16.mxu0 %v8968_v26  ;;  %v9034_v26 = vld [vmem:[#allocation7 + $0x184] ss:$16 sps:$4 sm:$0xff]  }
 0x259   : > { %3942 = vmatpush2.bf16.msra.mxu1 %v8262_v23  ;;  %v9029_v23 = vld [vmem:[#allocation7 + $0x3a0] ss:$16 sps:$4 sm:$0xff]  }
 0x25a   : > { %7097 = vmatprep.subr.bf16.mxu1 %v8971_v27  ;;  %v3658_v34 = vpop.f32.mrf.mxu0  ;;  %3903 = vmatmul.mubr.bf16.vlgmr.msra.gmra.mxu0 %v10062_v16  ;;  %v8983_v16 = vld [vmem:[#allocation7 + $0x2a4] ss:$16 sps:$4 sm:$0xff]  }
 0x25b   : > { %7057 = vmatpush1.bf16.msra.mxu0 %v8966_v30  ;;  %7088 = vmatprep.mubr.bf16.mxu0 %v10112_v33  ;;  %v9037_v27 = vld [vmem:[#allocation7 + $0x384] ss:$16 sps:$4 sm:$0xff]  }
 0x25c   : > { %v3699_v58 = vpop.f32.mrf.mxu1  ;;  %3944 = vmatmul.mubr.bf16.vlgmr.msra.gmra.mxu1 %v10064_v19  ;;  %v3660_v37 = vpop.f32.mrf.mxu0  ;;  %7058 = vmatprep.subr.bf16.mxu0 %v8974_v32  ;;  %v9040_v30 = vld [vmem:[#allocation7 + $0x164] ss:$16 sps:$4 sm:$0xff]   ;;  %v9038_v32 = vld [vmem:[#allocation7 + $0x160] ss:$16 sps:$4 sm:$0xff]  }
 0x25d   : > { %v10118_v25 = vadd.f32 %v3699_v58, %v3658_v34  ;;  %7098 = vmatpush1.bf16.msra.mxu1 %v8969_v31  ;;  %7129 = vmatprep.mubr.bf16.mxu1 %v10115_v36  ;;  %v9043_v31 = vld [vmem:[#allocation7 + $0x364] ss:$16 sps:$4 sm:$0xff]   ;;  %v9041_v34 = vld [vmem:[#allocation7 + $0x360] ss:$16 sps:$4 sm:$0xff]  }
 0x25e   : > { %v3701_v59 = vpop.f32.mrf.mxu1  ;;  %v3662_v41 = vpop.f32.mrf.mxu0  ;;  %7099 = vmatprep.subr.bf16.mxu1 %v8977_v35  ;;  %v9046_v35 = vld [vmem:[#allocation7 + $0x144] ss:$16 sps:$4 sm:$0xff]  }
 0x25f   : > { %v10122_v40 = vadd.f32 %v3701_v59, %v3660_v37  ;;  %7059 = vmatpush1.bf16.msra.mxu0 %v8972_v3  ;;  %v9049_v58 = vld [vmem:[#allocation7 + $0x344] ss:$16 sps:$4 sm:$0xff]   ;;  %v9044_v3 = vld [vmem:[#allocation7 + $0x140] ss:$16 sps:$4 sm:$0xff]  }
 0x260   : > { %v3703_v19 = vpop.f32.mrf.mxu1  ;;  %v3663_v44 = vpop.f32.mrf.mxu0  ;;  %7060 = vmatprep.subr.bf16.mxu0 %v8980_v39  ;;  %v9047_v37 = vld [vmem:[#allocation7 + $0x340] ss:$16 sps:$4 sm:$0xff]   ;;  %v9055_v39 = vld [vmem:[#allocation7 + $0x324] ss:$16 sps:$4 sm:$0xff]  }
 0x261   : > { %7100 = vmatpush1.bf16.msra.mxu1 %v8975_v38  ;;  %v9052_v38 = vld [vmem:[#allocation7 + $0x124] ss:$16 sps:$4 sm:$0xff]   ;;  %v9050_v59 = vld [vmem:[#allocation7 + $0x120] ss:$16 sps:$4 sm:$0xff]   ;;  %v3952_v44 = vmax.f32 %v10080_v55, 0.0 }
 0x262   : > { %v3704_v47 = vpop.f32.mrf.mxu1  ;;  %7101 = vmatprep.subr.bf16.mxu1 %v8983_v16  ;;  %v9053_v16 = vld [vmem:[#allocation7 + $0x320] ss:$16 sps:$4 sm:$0xff]   ;;  %v9058_v41 = vld [vmem:[#allocation7 + $0x104] ss:$16 sps:$4 sm:$0xff]  }
 0x263   : > { %7061 = vmatpush1.bf16.msra.mxu0 %v8978_v42  ;;  %v9061_v19 = vld [vmem:[#allocation7 + $0x304] ss:$16 sps:$4 sm:$0xff]   ;;  %v9056_v42 = vld [vmem:[#allocation7 + $0x100] ss:$16 sps:$4 sm:$0xff]   ;;  %v3954_v47 = vmax.f32 %v10088_v15, 0.0 }
 0x264   : > { %7062 = vmatprep.subr.bf16.mxu0 %v8986_v46  ;;  %v9064_v46 = vld [vmem:[#allocation7 + $0x4e4] ss:$16 sps:$4 sm:$0xff]  }
 0x265   : > { %7102 = vmatpush1.bf16.msra.mxu1 %v8981_v45  ;;  %v9059_v45 = vld [vmem:[#allocation7 + $0x300] ss:$16 sps:$4 sm:$0xff]   ;;  %v10130_v55 = vpack.c.bf16 %v3954_v47, %v3954_v47 }
 0x266   : > { %7103 = vmatprep.subr.bf16.mxu1 %v8989_v48  ;;  %v9067_v48 = vld [vmem:[#allocation7 + $0x6e4] ss:$16 sps:$4 sm:$0xff]   ;;  %v9125_v47 = vld [vmem:[#allocation7 + $0x7a0] ss:$16 sps:$4 sm:$0xff]  }
 0x267   : > { %7063 = vmatpush1.bf16.msra.mxu0 %v8984_v49  ;;  %v3957_v49 = vmax.f32 %v10099_v51, 0.0 }
 0x268   : > { %7064 = vmatprep.subr.bf16.mxu0 %v8992_v52  ;;  %v9062_v52 = vld [vmem:[#allocation7 + $0x4e0] ss:$16 sps:$4 sm:$0xff]  }
 0x269   : > { %7104 = vmatpush1.bf16.msra.mxu1 %v8987_v50  ;;  %v3959_v50 = vmax.f32 %v10107_v24, 0.0 }
 0x26a   : > { %7105 = vmatprep.subr.bf16.mxu1 %v8995_v53  ;;  %v10128_v53 = vpack.c.bf16 %v3952_v44, %v3952_v44  ;;  %v9124_v44 = vld [vmem:[#allocation7 + $0x5a4] ss:$16 sps:$4 sm:$0xff]  }
 0x26b   : > { %7065 = vmatpush1.bf16.msra.mxu0 %v8990_v54  ;;  %v9065_v54 = vld [vmem:[#allocation7 + $0x6e0] ss:$16 sps:$4 sm:$0xff]   ;;  %v10135_v51 = vpack.c.bf16 %v3959_v50, %v3959_v50 }
 0x26c   : > { %7066 = vmatprep.subr.bf16.mxu0 %v8998_v57  ;;  %v10132_v57 = vpack.c.bf16 %v3957_v49, %v3957_v49  ;;  %v9133_v49 = vld [vmem:[#allocation7 + $0x784] ss:$16 sps:$4 sm:$0xff]   ;;  %v9128_v50 = vld [vmem:[#allocation7 + $0x580] ss:$16 sps:$4 sm:$0xff]  }
 0x26d   : > { %7106 = vmatpush1.bf16.msra.mxu1 %v8993_v56  ;;  %v9070_v56 = vld [vmem:[#allocation7 + $0x4c4] ss:$16 sps:$4 sm:$0xff]  }
 0x26e   : > { %7107 = vmatprep.subr.bf16.mxu1 %v9001_v60  ;;  %v9073_v60 = vld [vmem:[#allocation7 + $0x6c4] ss:$16 sps:$4 sm:$0xff]  }
 0x26f   : > { %7067 = vmatpush1.bf16.msra.mxu0 %v8996_v61  ;;  %v9068_v61 = vld [vmem:[#allocation7 + $0x4c0] ss:$16 sps:$4 sm:$0xff]  }
 0x270   : > { %7068 = vmatprep.subr.bf16.mxu0 %v9004_v63 }
 0x271   : > { %7108 = vmatpush1.bf16.msra.mxu1 %v8999_v62 }
 0x272   : > { %7109 = vmatprep.subr.bf16.mxu1 %v9007_v0  ;;  %v9071_v0 = vld [vmem:[#allocation7 + $0x6c0] ss:$16 sps:$4 sm:$0xff]  }
 0x273   : > { %7069 = vmatpush1.bf16.msra.mxu0 %v9002_v1  ;;  %v9076_v1 = vld [vmem:[#allocation7 + $0x4a4] ss:$16 sps:$4 sm:$0xff]  }
 0x274   : > { %7070 = vmatprep.subr.bf16.mxu0 %v9010_v4  ;;  %v9079_v4 = vld [vmem:[#allocation7 + $0x6a4] ss:$16 sps:$4 sm:$0xff]  }
 0x275   : > { %7110 = vmatpush1.bf16.msra.mxu1 %v9005_v2 }
 0x276   : > { %7111 = vmatprep.subr.bf16.mxu1 %v9013_v5 }
 0x277   : > { %7071 = vmatpush1.bf16.msra.mxu0 %v9008_v6 }
 0x278   : > { %7072 = vmatprep.subr.bf16.mxu0 %v9016_v8 }
 0x279   : > { %7112 = vmatpush1.bf16.msra.mxu1 %v9011_v7  ;;  %v9074_v7 = vld [vmem:[#allocation7 + $0x4a0] ss:$16 sps:$4 sm:$0xff]  }
 0x27a   : > { %7113 = vmatprep.subr.bf16.mxu1 %v9019_v9  ;;  %v9077_v9 = vld [vmem:[#allocation7 + $0x6a0] ss:$16 sps:$4 sm:$0xff]  }
 0x27b   : > { %7073 = vmatpush2.bf16.msra.mxu0 %v9014_v10  ;;  %v9082_v10 = vld [vmem:[#allocation7 + $0x484] ss:$16 sps:$4 sm:$0xff]  }
 0x27c   : > { %7074 = vmatprep.subr.bf16.mxu0 %v9022_v12  ;;  %v9085_v12 = vld [vmem:[#allocation7 + $0x684] ss:$16 sps:$4 sm:$0xff]  }
 0x27d   : > { %7114 = vmatpush2.bf16.msra.mxu1 %v9017_v11 }
 0x27e   : > { %7115 = vmatprep.subr.bf16.mxu1 %v9025_v14  ;;  %v9080_v14 = vld [vmem:[#allocation7 + $0x480] ss:$16 sps:$4 sm:$0xff]  }
 0x27f   : > { %7075 = vmatpush2.bf16.msra.mxu0 %v9020_v17  ;;  %v9083_v17 = vld [vmem:[#allocation7 + $0x680] ss:$16 sps:$4 sm:$0xff]  }
 0x280   : > { %7076 = vmatprep.subr.bf16.mxu0 %v9028_v20  ;;  %v9091_v20 = vld [vmem:[#allocation7 + $0x664] ss:$16 sps:$4 sm:$0xff]  }
 0x281   : > { %7116 = vmatpush2.bf16.msra.mxu1 %v9023_v18  ;;  %v9088_v18 = vld [vmem:[#allocation7 + $0x464] ss:$16 sps:$4 sm:$0xff]  }
 0x282   : > { %7117 = vmatprep.subr.bf16.mxu1 %v9031_v21  ;;  %v9086_v21 = vld [vmem:[#allocation7 + $0x460] ss:$16 sps:$4 sm:$0xff]  }
 0x283   : > { %7077 = vmatpush2.bf16.msra.mxu0 %v9026_v22  ;;  %v9089_v22 = vld [vmem:[#allocation7 + $0x660] ss:$16 sps:$4 sm:$0xff]  }
 0x284   : > { %7078 = vmatprep.subr.bf16.mxu0 %v9034_v26  ;;  %v9097_v26 = vld [vmem:[#allocation7 + $0x644] ss:$16 sps:$4 sm:$0xff]  }
 0x285   : > { %7118 = vmatpush2.bf16.msra.mxu1 %v9029_v23  ;;  %v9094_v23 = vld [vmem:[#allocation7 + $0x444] ss:$16 sps:$4 sm:$0xff]  }
 0x286   : > { %7119 = vmatprep.subr.bf16.mxu1 %v9037_v27  ;;  %v9092_v27 = vld [vmem:[#allocation7 + $0x440] ss:$16 sps:$4 sm:$0xff]  }
 0x287   : > { %7079 = vmatpush2.bf16.msra.mxu0 %v9032_v28  ;;  %v9095_v28 = vld [vmem:[#allocation7 + $0x640] ss:$16 sps:$4 sm:$0xff]  }
 0x288   : > { %7080 = vmatprep.subr.bf16.mxu0 %v9040_v30  ;;  %v9103_v30 = vld [vmem:[#allocation7 + $0x624] ss:$16 sps:$4 sm:$0xff]  }
 0x289   : > { %7120 = vmatpush2.bf16.msra.mxu1 %v9035_v29  ;;  %v9100_v29 = vld [vmem:[#allocation7 + $0x424] ss:$16 sps:$4 sm:$0xff]  }
 0x28a   : > { %7121 = vmatprep.subr.bf16.mxu1 %v9043_v31  ;;  %v9098_v31 = vld [vmem:[#allocation7 + $0x420] ss:$16 sps:$4 sm:$0xff]  }
 0x28b   : > { %7081 = vmatpush2.bf16.msra.mxu0 %v9038_v32  ;;  %v9101_v32 = vld [vmem:[#allocation7 + $0x620] ss:$16 sps:$4 sm:$0xff]  }
 0x28c   : > { %7082 = vmatprep.subr.bf16.mxu0 %v9046_v35  ;;  %v9109_v35 = vld [vmem:[#allocation7 + $0x604] ss:$16 sps:$4 sm:$0xff]  }
 0x28d   : > { %7122 = vmatpush2.bf16.msra.mxu1 %v9041_v34  ;;  %v9106_v34 = vld [vmem:[#allocation7 + $0x404] ss:$16 sps:$4 sm:$0xff]  }
 0x28e   : > { %7123 = vmatprep.subr.bf16.mxu1 %v9049_v58  ;;  %v9104_v58 = vld [vmem:[#allocation7 + $0x400] ss:$16 sps:$4 sm:$0xff]  }
 0x28f   : > { %7083 = vmatpush2.bf16.msra.mxu0 %v9044_v3  ;;  %v9107_v3 = vld [vmem:[#allocation7 + $0x600] ss:$16 sps:$4 sm:$0xff]  }
 0x290   : > { %7084 = vmatprep.subr.bf16.mxu0 %v9052_v38  ;;  %v9115_v38 = vld [vmem:[#allocation7 + $0x7e4] ss:$16 sps:$4 sm:$0xff]  }
 0x291   : > { %7124 = vmatpush2.bf16.msra.mxu1 %v9047_v37  ;;  %v9112_v37 = vld [vmem:[#allocation7 + $0x5e4] ss:$16 sps:$4 sm:$0xff]  }
 0x292   : > { %7125 = vmatprep.subr.bf16.mxu1 %v9055_v39  ;;  %v9110_v39 = vld [vmem:[#allocation7 + $0x5e0] ss:$16 sps:$4 sm:$0xff]  }
 0x293   : > { %7085 = vmatpush2.bf16.msra.mxu0 %v9050_v59  ;;  %v9113_v59 = vld [vmem:[#allocation7 + $0x7e0] ss:$16 sps:$4 sm:$0xff]  }
 0x294   : > { %7086 = vmatprep.subr.bf16.mxu0 %v9058_v41  ;;  %v9121_v41 = vld [vmem:[#allocation7 + $0x7c4] ss:$16 sps:$4 sm:$0xff]  }
 0x295   : > { %7126 = vmatpush2.bf16.msra.mxu1 %v9053_v16  ;;  %v9118_v16 = vld [vmem:[#allocation7 + $0x5c4] ss:$16 sps:$4 sm:$0xff]  }
 0x296   : > { %7127 = vmatprep.subr.bf16.mxu1 %v9061_v19  ;;  %v9116_v19 = vld [vmem:[#allocation7 + $0x5c0] ss:$16 sps:$4 sm:$0xff]  }
 0x297   : > { %7087 = vmatpush2.bf16.msra.mxu0 %v9056_v42  ;;  %v9119_v42 = vld [vmem:[#allocation7 + $0x7c0] ss:$16 sps:$4 sm:$0xff]  }
 0x298   : > { %7138 = vmatprep.subr.bf16.mxu0 %v9064_v46  ;;  %v9122_v46 = vld [vmem:[#allocation7 + $0x5a0] ss:$16 sps:$4 sm:$0xff]  }
 0x299   : > { %7128 = vmatpush2.bf16.msra.mxu1 %v9059_v45  ;;  %v9127_v45 = vld [vmem:[#allocation7 + $0x7a4] ss:$16 sps:$4 sm:$0xff]  }
 0x29a   : > { %7179 = vmatprep.subr.bf16.mxu1 %v9067_v48  ;;  %v3740_v15 = vpop.f32.mrf.mxu0  ;;  %7089 = vmatmul.mubr.bf16.vlgmr.msra.gmra.mxu0 %v10128_v53  ;;  %v9130_v48 = vld [vmem:[#allocation7 + $0x584] ss:$16 sps:$4 sm:$0xff]  }
 0x29b   : > { %7139 = vmatpush1.bf16.msra.mxu0 %v9062_v52  ;;  %7170 = vmatprep.mubr.bf16.mxu0 %v10132_v57  ;;  %v9131_v52 = vld [vmem:[#allocation7 + $0x780] ss:$16 sps:$4 sm:$0xff]  }
 0x29c   : > { %v3781_v24 = vpop.f32.mrf.mxu1  ;;  %7130 = vmatmul.mubr.bf16.vlgmr.msra.gmra.mxu1 %v10130_v55  ;;  %v10141_v63 = vpop.f32.mrf.mxu0  ;;  %7140 = vmatprep.subr.bf16.mxu0 %v9070_v56  ;;  %v9139_v56 = vld [vmem:[#allocation7 + $0x764] ss:$16 sps:$4 sm:$0xff]  }
 0x29d   : > { %v10138_v62 = vadd.f32 %v3781_v24, %v3740_v15  ;;  %7180 = vmatpush1.bf16.msra.mxu1 %v9065_v54  ;;  %7211 = vmatprep.mubr.bf16.mxu1 %v10135_v51  ;;  %v9136_v54 = vld [vmem:[#allocation7 + $0x564] ss:$16 sps:$4 sm:$0xff]   ;;  %v9134_v15 = vld [vmem:[#allocation7 + $0x560] ss:$16 sps:$4 sm:$0xff]  }
 0x29e   : > { %v10144_v2 = vpop.f32.mrf.mxu1  ;;  %v3744_v5 = vpop.f32.mrf.mxu0  ;;  %7181 = vmatprep.subr.bf16.mxu1 %v9073_v60  ;;  %v9137_v60 = vld [vmem:[#allocation7 + $0x760] ss:$16 sps:$4 sm:$0xff]   ;;  %v9142_v24 = vld [vmem:[#allocation7 + $0x544] ss:$16 sps:$4 sm:$0xff]  }
 0x29f   : > { %7141 = vmatpush1.bf16.msra.mxu0 %v9068_v61  ;;  %v9145_v61 = vld [vmem:[#allocation7 + $0x744] ss:$16 sps:$4 sm:$0xff]  }
 0x2a0   : > { %v3785_v6 = vpop.f32.mrf.mxu1  ;;  %v3745_v8 = vpop.f32.mrf.mxu0  ;;  %7142 = vmatprep.subr.bf16.mxu0 %v9076_v1  ;;  %v9143_v1 = vld [vmem:[#allocation7 + $0x740] ss:$16 sps:$4 sm:$0xff]   ;;  %v9151_v5 = vld [vmem:[#allocation7 + $0x724] ss:$16 sps:$4 sm:$0xff]  }
 0x2a1   : > { %7182 = vmatpush1.bf16.msra.mxu1 %v9071_v0  ;;  %v9140_v0 = vld [vmem:[#allocation7 + $0x540] ss:$16 sps:$4 sm:$0xff]   ;;  %v9154_v8 = vld [vmem:[#allocation7 + $0x504] ss:$16 sps:$4 sm:$0xff]  }
 0x2a2   : > { %v3786_v11 = vpop.f32.mrf.mxu1  ;;  %7183 = vmatprep.subr.bf16.mxu1 %v9079_v4  ;;  %v9148_v4 = vld [vmem:[#allocation7 + $0x524] ss:$16 sps:$4 sm:$0xff]   ;;  %v9146_v6 = vld [vmem:[#allocation7 + $0x520] ss:$16 sps:$4 sm:$0xff]  }
 0x2a3   : > { %7143 = vmatpush1.bf16.msra.mxu0 %v9074_v7  ;;  %v9149_v7 = vld [vmem:[#allocation7 + $0x720] ss:$16 sps:$4 sm:$0xff]  }
 0x2a4   : > { %7144 = vmatprep.subr.bf16.mxu0 %v9082_v10  ;;  %v3784_v10 = vadd.f32 %v10144_v2, %v10141_v63  ;;  %v9152_v11 = vld [vmem:[#allocation7 + $0x500] ss:$16 sps:$4 sm:$0xff]  }
 0x2a5   : > { %7184 = vmatpush1.bf16.msra.mxu1 %v9077_v9  ;;  %v9157_v9 = vld [vmem:[#allocation7 + $0x704] ss:$16 sps:$4 sm:$0xff]   ;;  %v9161_v63 = vld [vmem:[#allocation7 + $0xae0] ss:$16 sps:$4 sm:$0xff]  }
 0x2a6   : > { %7185 = vmatprep.subr.bf16.mxu1 %v9085_v12  ;;  %v3956_v12 = vmax.f32 %v10096_v43, 0.0  ;;  %v9166_v43 = vld [vmem:[#allocation7 + $0x8c4] ss:$16 sps:$4 sm:$0xff]  }
 0x2a7   : > { %7145 = vmatpush1.bf16.msra.mxu0 %v9080_v14  ;;  %v9155_v14 = vld [vmem:[#allocation7 + $0x700] ss:$16 sps:$4 sm:$0xff]  }
 0x2a8   : > { %7146 = vmatprep.subr.bf16.mxu0 %v9088_v18  ;;  %v3958_v18 = vmax.f32 %v10104_v13, 0.0  ;;  %v9169_v13 = vld [vmem:[#allocation7 + $0xac4] ss:$16 sps:$4 sm:$0xff]  }
 0x2a9   : > { %7186 = vmatpush1.bf16.msra.mxu1 %v9083_v17  ;;  %v9160_v17 = vld [vmem:[#allocation7 + $0x8e4] ss:$16 sps:$4 sm:$0xff]  }
 0x2aa   : > { %7187 = vmatprep.subr.bf16.mxu1 %v9091_v20  ;;  %v9163_v20 = vld [vmem:[#allocation7 + $0xae4] ss:$16 sps:$4 sm:$0xff]   ;;  %v10153_v2 = vpack.c.bf16 %v3958_v18, %v3958_v18 }
 0x2ab   : > { %7147 = vmatpush1.bf16.msra.mxu0 %v9086_v21  ;;  %v3961_v21 = vmax.f32 %v10122_v40, 0.0  ;;  %v9223_v18 = vld [vmem:[#allocation7 + $0xba4] ss:$16 sps:$4 sm:$0xff]  }
 0x2ac   : > { %7148 = vmatprep.subr.bf16.mxu0 %v9094_v23  ;;  %v9158_v23 = vld [vmem:[#allocation7 + $0x8e0] ss:$16 sps:$4 sm:$0xff]  }
 0x2ad   : > { %7188 = vmatpush1.bf16.msra.mxu1 %v9089_v22  ;;  %v3963_v22 = vmax.f32 %v3784_v10, 0.0  ;;  %v9214_v10 = vld [vmem:[#allocation7 + $0x9c4] ss:$16 sps:$4 sm:$0xff]  }
 0x2ae   : > { %7189 = vmatprep.subr.bf16.mxu1 %v9097_v26  ;;  %v10151_v26 = vpack.c.bf16 %v3956_v12, %v3956_v12  ;;  %v9212_v12 = vld [vmem:[#allocation7 + $0x9c0] ss:$16 sps:$4 sm:$0xff]  }
 0x2af   : > { %7149 = vmatpush1.bf16.msra.mxu0 %v9092_v27  ;;  %v10155_v27 = vpack.c.bf16 %v3961_v21, %v3961_v21  ;;  %v9221_v21 = vld [vmem:[#allocation7 + $0xba0] ss:$16 sps:$4 sm:$0xff]  }
 0x2b0   : > { %7150 = vmatprep.subr.bf16.mxu0 %v9100_v29  ;;  %v10158_v29 = vpack.c.bf16 %v3963_v22, %v3963_v22  ;;  %v9226_v22 = vld [vmem:[#allocation7 + $0x984] ss:$16 sps:$4 sm:$0xff]  }
 0x2b1   : > { %7190 = vmatpush1.bf16.msra.mxu1 %v9095_v28 }
 0x2b2   : > { %7191 = vmatprep.subr.bf16.mxu1 %v9103_v30  ;;  %v9164_v30 = vld [vmem:[#allocation7 + $0x8c0] ss:$16 sps:$4 sm:$0xff]  }
 0x2b3   : > { %7151 = vmatpush1.bf16.msra.mxu0 %v9098_v31 }
 0x2b4   : > { %7152 = vmatprep.subr.bf16.mxu0 %v9106_v34  ;;  %v9167_v34 = vld [vmem:[#allocation7 + $0xac0] ss:$16 sps:$4 sm:$0xff]  }
 0x2b5   : > { %7192 = vmatpush1.bf16.msra.mxu1 %v9101_v32 }
 0x2b6   : > { %7193 = vmatprep.subr.bf16.mxu1 %v9109_v35  ;;  %v9172_v35 = vld [vmem:[#allocation7 + $0x8a4] ss:$16 sps:$4 sm:$0xff]  }
 0x2b7   : > { %7153 = vmatpush1.bf16.msra.mxu0 %v9104_v58 }
 0x2b8   : > { %7154 = vmatprep.subr.bf16.mxu0 %v9112_v37 }
 0x2b9   : > { %7194 = vmatpush1.bf16.msra.mxu1 %v9107_v3  ;;  %v9175_v3 = vld [vmem:[#allocation7 + $0xaa4] ss:$16 sps:$4 sm:$0xff]  }
 0x2ba   : > { %7195 = vmatprep.subr.bf16.mxu1 %v9115_v38 }
 0x2bb   : > { %7155 = vmatpush2.bf16.msra.mxu0 %v9110_v39  ;;  %v9170_v39 = vld [vmem:[#allocation7 + $0x8a0] ss:$16 sps:$4 sm:$0xff]  }
 0x2bc   : > { %7156 = vmatprep.subr.bf16.mxu0 %v9118_v16  ;;  %v9173_v16 = vld [vmem:[#allocation7 + $0xaa0] ss:$16 sps:$4 sm:$0xff]  }
 0x2bd   : > { %7196 = vmatpush2.bf16.msra.mxu1 %v9113_v59 }
 0x2be   : > { %7197 = vmatprep.subr.bf16.mxu1 %v9121_v41  ;;  %v9178_v41 = vld [vmem:[#allocation7 + $0x884] ss:$16 sps:$4 sm:$0xff]  }
 0x2bf   : > { %7157 = vmatpush2.bf16.msra.mxu0 %v9116_v19 }
 0x2c0   : > { %7158 = vmatprep.subr.bf16.mxu0 %v9124_v44  ;;  %v9176_v44 = vld [vmem:[#allocation7 + $0x880] ss:$16 sps:$4 sm:$0xff]  }
 0x2c1   : > { %7198 = vmatpush2.bf16.msra.mxu1 %v9119_v42  ;;  %v9181_v42 = vld [vmem:[#allocation7 + $0xa84] ss:$16 sps:$4 sm:$0xff]  }
 0x2c2   : > { %7199 = vmatprep.subr.bf16.mxu1 %v9127_v45  ;;  %v9179_v45 = vld [vmem:[#allocation7 + $0xa80] ss:$16 sps:$4 sm:$0xff]  }
 0x2c3   : > { %7159 = vmatpush2.bf16.msra.mxu0 %v9122_v46  ;;  %v9184_v46 = vld [vmem:[#allocation7 + $0x864] ss:$16 sps:$4 sm:$0xff]  }
 0x2c4   : > { %7160 = vmatprep.subr.bf16.mxu0 %v9130_v48  ;;  %v9182_v48 = vld [vmem:[#allocation7 + $0x860] ss:$16 sps:$4 sm:$0xff]  }
 0x2c5   : > { %7200 = vmatpush2.bf16.msra.mxu1 %v9125_v47  ;;  %v9187_v47 = vld [vmem:[#allocation7 + $0xa64] ss:$16 sps:$4 sm:$0xff]  }
 0x2c6   : > { %7201 = vmatprep.subr.bf16.mxu1 %v9133_v49  ;;  %v9185_v49 = vld [vmem:[#allocation7 + $0xa60] ss:$16 sps:$4 sm:$0xff]  }
 0x2c7   : > { %7161 = vmatpush2.bf16.msra.mxu0 %v9128_v50  ;;  %v9190_v50 = vld [vmem:[#allocation7 + $0x844] ss:$16 sps:$4 sm:$0xff]  }
 0x2c8   : > { %7162 = vmatprep.subr.bf16.mxu0 %v9136_v54  ;;  %v9188_v54 = vld [vmem:[#allocation7 + $0x840] ss:$16 sps:$4 sm:$0xff]  }
 0x2c9   : > { %7202 = vmatpush2.bf16.msra.mxu1 %v9131_v52  ;;  %v9193_v52 = vld [vmem:[#allocation7 + $0xa44] ss:$16 sps:$4 sm:$0xff]  }
 0x2ca   : > { %7203 = vmatprep.subr.bf16.mxu1 %v9139_v56  ;;  %v9191_v56 = vld [vmem:[#allocation7 + $0xa40] ss:$16 sps:$4 sm:$0xff]  }
 0x2cb   : > { %7163 = vmatpush2.bf16.msra.mxu0 %v9134_v15  ;;  %v9196_v15 = vld [vmem:[#allocation7 + $0x824] ss:$16 sps:$4 sm:$0xff]  }
 0x2cc   : > { %7164 = vmatprep.subr.bf16.mxu0 %v9142_v24  ;;  %v9194_v24 = vld [vmem:[#allocation7 + $0x820] ss:$16 sps:$4 sm:$0xff]  }
 0x2cd   : > { %7204 = vmatpush2.bf16.msra.mxu1 %v9137_v60  ;;  %v9199_v60 = vld [vmem:[#allocation7 + $0xa24] ss:$16 sps:$4 sm:$0xff]  }
 0x2ce   : > { %7205 = vmatprep.subr.bf16.mxu1 %v9145_v61  ;;  %v9197_v61 = vld [vmem:[#allocation7 + $0xa20] ss:$16 sps:$4 sm:$0xff]  }
 0x2cf   : > { %7165 = vmatpush2.bf16.msra.mxu0 %v9140_v0  ;;  %v9202_v0 = vld [vmem:[#allocation7 + $0x804] ss:$16 sps:$4 sm:$0xff]  }
 0x2d0   : > { %7166 = vmatprep.subr.bf16.mxu0 %v9148_v4  ;;  %v9200_v4 = vld [vmem:[#allocation7 + $0x800] ss:$16 sps:$4 sm:$0xff]  }
 0x2d1   : > { %7206 = vmatpush2.bf16.msra.mxu1 %v9143_v1  ;;  %v9205_v1 = vld [vmem:[#allocation7 + $0xa04] ss:$16 sps:$4 sm:$0xff]  }
 0x2d2   : > { %7207 = vmatprep.subr.bf16.mxu1 %v9151_v5  ;;  %v9203_v5 = vld [vmem:[#allocation7 + $0xa00] ss:$16 sps:$4 sm:$0xff]  }
 0x2d3   : > { %7167 = vmatpush2.bf16.msra.mxu0 %v9146_v6  ;;  %v9208_v6 = vld [vmem:[#allocation7 + $0x9e4] ss:$16 sps:$4 sm:$0xff]  }
 0x2d4   : > { %7168 = vmatprep.subr.bf16.mxu0 %v9154_v8  ;;  %v9206_v8 = vld [vmem:[#allocation7 + $0x9e0] ss:$16 sps:$4 sm:$0xff]  }
 0x2d5   : > { %7208 = vmatpush2.bf16.msra.mxu1 %v9149_v7  ;;  %v9211_v7 = vld [vmem:[#allocation7 + $0xbe4] ss:$16 sps:$4 sm:$0xff]  }
 0x2d6   : > { %7209 = vmatprep.subr.bf16.mxu1 %v9157_v9  ;;  %v9209_v9 = vld [vmem:[#allocation7 + $0xbe0] ss:$16 sps:$4 sm:$0xff]  }
 0x2d7   : > { %7169 = vmatpush2.bf16.msra.mxu0 %v9152_v11  ;;  %v9217_v11 = vld [vmem:[#allocation7 + $0xbc4] ss:$16 sps:$4 sm:$0xff]  }
 0x2d8   : > { %7220 = vmatprep.subr.bf16.mxu0 %v9160_v17  ;;  %v9220_v17 = vld [vmem:[#allocation7 + $0x9a4] ss:$16 sps:$4 sm:$0xff]  }
 0x2d9   : > { %7210 = vmatpush2.bf16.msra.mxu1 %v9155_v14  ;;  %v9215_v14 = vld [vmem:[#allocation7 + $0xbc0] ss:$16 sps:$4 sm:$0xff]  }
 0x2da   : > { %7261 = vmatprep.subr.bf16.mxu1 %v9163_v20  ;;  %v3822_v28 = vpop.f32.mrf.mxu0  ;;  %7171 = vmatmul.mubr.bf16.vlgmr.msra.gmra.mxu0 %v10151_v26  ;;  %v9218_v20 = vld [vmem:[#allocation7 + $0x9a0] ss:$16 sps:$4 sm:$0xff]  }
 0x2db   : > { %7221 = vmatpush1.bf16.msra.mxu0 %v9158_v23  ;;  %7252 = vmatprep.mubr.bf16.mxu0 %v10155_v27  ;;  %v9229_v23 = vld [vmem:[#allocation7 + $0xb84] ss:$16 sps:$4 sm:$0xff]  }
 0x2dc   : > { %v3863_v40 = vpop.f32.mrf.mxu1  ;;  %7212 = vmatmul.mubr.bf16.vlgmr.msra.gmra.mxu1 %v10153_v2  ;;  %v10164_v32 = vpop.f32.mrf.mxu0  ;;  %7222 = vmatprep.subr.bf16.mxu0 %v9166_v43  ;;  %v9227_v43 = vld [vmem:[#allocation7 + $0xb80] ss:$16 sps:$4 sm:$0xff]  }
 0x2dd   : > { %v10161_v31 = vadd.f32 %v3863_v40, %v3822_v28  ;;  %7262 = vmatpush1.bf16.msra.mxu1 %v9161_v63  ;;  %7293 = vmatprep.mubr.bf16.mxu1 %v10158_v29  ;;  %v9224_v63 = vld [vmem:[#allocation7 + $0x980] ss:$16 sps:$4 sm:$0xff]   ;;  %v9232_v28 = vld [vmem:[#allocation7 + $0x964] ss:$16 sps:$4 sm:$0xff]  }
 0x2de   : > { %v10167_v58 = vpop.f32.mrf.mxu1  ;;  %v3826_v37 = vpop.f32.mrf.mxu0  ;;  %7263 = vmatprep.subr.bf16.mxu1 %v9169_v13  ;;  %v9235_v13 = vld [vmem:[#allocation7 + $0xb64] ss:$16 sps:$4 sm:$0xff]   ;;  %v9230_v40 = vld [vmem:[#allocation7 + $0x960] ss:$16 sps:$4 sm:$0xff]  }
 0x2df   : > { %7223 = vmatpush1.bf16.msra.mxu0 %v9164_v30  ;;  %v9233_v30 = vld [vmem:[#allocation7 + $0xb60] ss:$16 sps:$4 sm:$0xff]  }
 0x2e0   : > { %v3867_v38 = vpop.f32.mrf.mxu1  ;;  %v3827_v59 = vpop.f32.mrf.mxu0  ;;  %7224 = vmatprep.subr.bf16.mxu0 %v9172_v35  ;;  %v9241_v35 = vld [vmem:[#allocation7 + $0xb44] ss:$16 sps:$4 sm:$0xff]   ;;  %v9239_v37 = vld [vmem:[#allocation7 + $0xb40] ss:$16 sps:$4 sm:$0xff]  }
 0x2e1   : > { %7264 = vmatpush1.bf16.msra.mxu1 %v9167_v34  ;;  %v9238_v34 = vld [vmem:[#allocation7 + $0x944] ss:$16 sps:$4 sm:$0xff]   ;;  %v9242_v59 = vld [vmem:[#allocation7 + $0x920] ss:$16 sps:$4 sm:$0xff]  }
 0x2e2   : > { %v3868_v19 = vpop.f32.mrf.mxu1  ;;  %7265 = vmatprep.subr.bf16.mxu1 %v9175_v3  ;;  %v9236_v3 = vld [vmem:[#allocation7 + $0x940] ss:$16 sps:$4 sm:$0xff]   ;;  %v9244_v38 = vld [vmem:[#allocation7 + $0x924] ss:$16 sps:$4 sm:$0xff]  }
 0x2e3   : > { %7225 = vmatpush1.bf16.msra.mxu0 %v9170_v39  ;;  %v9247_v39 = vld [vmem:[#allocation7 + $0xb24] ss:$16 sps:$4 sm:$0xff]  }
 0x2e4   : > { %7226 = vmatprep.subr.bf16.mxu0 %v9178_v41  ;;  %v9250_v41 = vld [vmem:[#allocation7 + $0x904] ss:$16 sps:$4 sm:$0xff]  }
 0x2e5   : > { %7266 = vmatpush1.bf16.msra.mxu1 %v9173_v16  ;;  %v9245_v16 = vld [vmem:[#allocation7 + $0xb20] ss:$16 sps:$4 sm:$0xff]   ;;  %v9253_v19 = vld [vmem:[#allocation7 + $0xb04] ss:$16 sps:$4 sm:$0xff]  }
 0x2e6   : > { %7267 = vmatprep.subr.bf16.mxu1 %v9181_v42  ;;  %v3866_v42 = vadd.f32 %v10167_v58, %v10164_v32  ;;  %v9257_v32 = vld [vmem:[#allocation7 + $0xee0] ss:$16 sps:$4 sm:$0xff]  }
 0x2e7   : > { %7227 = vmatpush1.bf16.msra.mxu0 %v9176_v44  ;;  %v9248_v44 = vld [vmem:[#allocation7 + $0x900] ss:$16 sps:$4 sm:$0xff]  }
 0x2e8   : > { %7228 = vmatprep.subr.bf16.mxu0 %v9184_v46  ;;  %v9251_v46 = vld [vmem:[#allocation7 + $0xb00] ss:$16 sps:$4 sm:$0xff]  }
 0x2e9   : > { %7268 = vmatpush1.bf16.msra.mxu1 %v9179_v45  ;;  %v3960_v45 = vmax.f32 %v10118_v25, 0.0  ;;  %v9262_v25 = vld [vmem:[#allocation7 + $0xcc4] ss:$16 sps:$4 sm:$0xff]  }
 0x2ea   : > { %7269 = vmatprep.subr.bf16.mxu1 %v9187_v47  ;;  %v9256_v47 = vld [vmem:[#allocation7 + $0xce4] ss:$16 sps:$4 sm:$0xff]  }
 0x2eb   : > { %7229 = vmatpush1.bf16.msra.mxu0 %v9182_v48  ;;  %v3962_v48 = vmax.f32 %v10138_v62, 0.0 }
 0x2ec   : > { %7230 = vmatprep.subr.bf16.mxu0 %v9190_v50  ;;  %v3965_v50 = vmax.f32 %v3866_v42, 0.0  ;;  %v9307_v42 = vld [vmem:[#allocation7 + $0xfe4] ss:$16 sps:$4 sm:$0xff]  }
 0x2ed   : > { %7270 = vmatpush1.bf16.msra.mxu1 %v9185_v49  ;;  %v9259_v49 = vld [vmem:[#allocation7 + $0xee4] ss:$16 sps:$4 sm:$0xff]   ;;  %v10175_v58 = vpack.c.bf16 %v3962_v48, %v3962_v48  ;;  %v9308_v48 = vld [vmem:[#allocation7 + $0xdc0] ss:$16 sps:$4 sm:$0xff]  }
 0x2ee   : > { %7271 = vmatprep.subr.bf16.mxu1 %v9193_v52  ;;  %v9254_v52 = vld [vmem:[#allocation7 + $0xce0] ss:$16 sps:$4 sm:$0xff]  }
 0x2ef   : > { %7231 = vmatpush1.bf16.msra.mxu0 %v9188_v54  ;;  %v10173_v54 = vpack.c.bf16 %v3960_v45, %v3960_v45  ;;  %v9305_v45 = vld [vmem:[#allocation7 + $0xfe0] ss:$16 sps:$4 sm:$0xff]  }
 0x2f0   : > { %7232 = vmatprep.subr.bf16.mxu0 %v9196_v15  ;;  %v10177_v15 = vpack.c.bf16 %v3965_v50, %v3965_v50  ;;  %v9316_v50 = vld [vmem:[#allocation7 + $0xda4] ss:$16 sps:$4 sm:$0xff]  }
 0x2f1   : > { %7272 = vmatpush1.bf16.msra.mxu1 %v9191_v56  ;;  %v9265_v56 = vld [vmem:[#allocation7 + $0xec4] ss:$16 sps:$4 sm:$0xff]  }
 0x2f2   : > { %7273 = vmatprep.subr.bf16.mxu1 %v9199_v60 }
 0x2f3   : > { %7233 = vmatpush1.bf16.msra.mxu0 %v9194_v24  ;;  %v9260_v24 = vld [vmem:[#allocation7 + $0xcc0] ss:$16 sps:$4 sm:$0xff]  }
 0x2f4   : > { %7234 = vmatprep.subr.bf16.mxu0 %v9202_v0  ;;  %v9263_v0 = vld [vmem:[#allocation7 + $0xec0] ss:$16 sps:$4 sm:$0xff]  }
 0x2f5   : > { %7274 = vmatpush1.bf16.msra.mxu1 %v9197_v61 }
 0x2f6   : > { %7275 = vmatprep.subr.bf16.mxu1 %v9205_v1  ;;  %v9268_v1 = vld [vmem:[#allocation7 + $0xca4] ss:$16 sps:$4 sm:$0xff]  }
 0x2f7   : > { %7235 = vmatpush1.bf16.msra.mxu0 %v9200_v4 }
 0x2f8   : > { %7236 = vmatprep.subr.bf16.mxu0 %v9208_v6 }
 0x2f9   : > { %7276 = vmatpush1.bf16.msra.mxu1 %v9203_v5  ;;  %v9271_v5 = vld [vmem:[#allocation7 + $0xea4] ss:$16 sps:$4 sm:$0xff]  }
 0x2fa   : > { %7277 = vmatprep.subr.bf16.mxu1 %v9211_v7 }
 0x2fb   : > { %7237 = vmatpush2.bf16.msra.mxu0 %v9206_v8 }
 0x2fc   : > { %7238 = vmatprep.subr.bf16.mxu0 %v9214_v10 }
 0x2fd   : > { %7278 = vmatpush2.bf16.msra.mxu1 %v9209_v9  ;;  %v9266_v9 = vld [vmem:[#allocation7 + $0xca0] ss:$16 sps:$4 sm:$0xff]  }
 0x2fe   : > { %7279 = vmatprep.subr.bf16.mxu1 %v9217_v11 }
 0x2ff   : > { %7239 = vmatpush2.bf16.msra.mxu0 %v9212_v12  ;;  %v9269_v12 = vld [vmem:[#allocation7 + $0xea0] ss:$16 sps:$4 sm:$0xff]  }
 0x300   : > { %7240 = vmatprep.subr.bf16.mxu0 %v9220_v17  ;;  %v9274_v17 = vld [vmem:[#allocation7 + $0xc84] ss:$16 sps:$4 sm:$0xff]  }
 0x301   : > { %7280 = vmatpush2.bf16.msra.mxu1 %v9215_v14 }
 0x302   : > { %7281 = vmatprep.subr.bf16.mxu1 %v9223_v18  ;;  %v9277_v18 = vld [vmem:[#allocation7 + $0xe84] ss:$16 sps:$4 sm:$0xff]  }
 0x303   : > { %7241 = vmatpush2.bf16.msra.mxu0 %v9218_v20 }
 0x304   : > { %7242 = vmatprep.subr.bf16.mxu0 %v9226_v22  ;;  %v9275_v22 = vld [vmem:[#allocation7 + $0xe80] ss:$16 sps:$4 sm:$0xff]  }
 0x305   : > { %7282 = vmatpush2.bf16.msra.mxu1 %v9221_v21  ;;  %v9272_v21 = vld [vmem:[#allocation7 + $0xc80] ss:$16 sps:$4 sm:$0xff]  }
 0x306   : > { %7283 = vmatprep.subr.bf16.mxu1 %v9229_v23  ;;  %v9280_v23 = vld [vmem:[#allocation7 + $0xc64] ss:$16 sps:$4 sm:$0xff]  }
 0x307   : > { %7243 = vmatpush2.bf16.msra.mxu0 %v9224_v63  ;;  %v9283_v63 = vld [vmem:[#allocation7 + $0xe64] ss:$16 sps:$4 sm:$0xff]  }
 0x308   : > { %7244 = vmatprep.subr.bf16.mxu0 %v9232_v28  ;;  %v9281_v28 = vld [vmem:[#allocation7 + $0xe60] ss:$16 sps:$4 sm:$0xff]  }
 0x309   : > { %7284 = vmatpush2.bf16.msra.mxu1 %v9227_v43  ;;  %v9278_v43 = vld [vmem:[#allocation7 + $0xc60] ss:$16 sps:$4 sm:$0xff]  }
 0x30a   : > { %7285 = vmatprep.subr.bf16.mxu1 %v9235_v13  ;;  %v9286_v13 = vld [vmem:[#allocation7 + $0xc44] ss:$16 sps:$4 sm:$0xff]  }
 0x30b   : > { %7245 = vmatpush2.bf16.msra.mxu0 %v9230_v40  ;;  %v9289_v40 = vld [vmem:[#allocation7 + $0xe44] ss:$16 sps:$4 sm:$0xff]  }
 0x30c   : > { %7246 = vmatprep.subr.bf16.mxu0 %v9238_v34  ;;  %v9287_v34 = vld [vmem:[#allocation7 + $0xe40] ss:$16 sps:$4 sm:$0xff]  }
 0x30d   : > { %7286 = vmatpush2.bf16.msra.mxu1 %v9233_v30  ;;  %v9284_v30 = vld [vmem:[#allocation7 + $0xc40] ss:$16 sps:$4 sm:$0xff]  }
 0x30e   : > { %7287 = vmatprep.subr.bf16.mxu1 %v9241_v35  ;;  %v9292_v35 = vld [vmem:[#allocation7 + $0xc24] ss:$16 sps:$4 sm:$0xff]  }
 0x30f   : > { %7247 = vmatpush2.bf16.msra.mxu0 %v9236_v3  ;;  %v9295_v3 = vld [vmem:[#allocation7 + $0xe24] ss:$16 sps:$4 sm:$0xff]  }
 0x310   : > { %7248 = vmatprep.subr.bf16.mxu0 %v9244_v38  ;;  %v9293_v38 = vld [vmem:[#allocation7 + $0xe20] ss:$16 sps:$4 sm:$0xff]  }
 0x311   : > { %7288 = vmatpush2.bf16.msra.mxu1 %v9239_v37  ;;  %v9290_v37 = vld [vmem:[#allocation7 + $0xc20] ss:$16 sps:$4 sm:$0xff]  }
 0x312   : > { %7289 = vmatprep.subr.bf16.mxu1 %v9247_v39  ;;  %v9298_v39 = vld [vmem:[#allocation7 + $0xc04] ss:$16 sps:$4 sm:$0xff]  }
 0x313   : > { %7249 = vmatpush2.bf16.msra.mxu0 %v9242_v59  ;;  %v9301_v59 = vld [vmem:[#allocation7 + $0xe04] ss:$16 sps:$4 sm:$0xff]  }
 0x314   : > { %7250 = vmatprep.subr.bf16.mxu0 %v9250_v41  ;;  %v9299_v41 = vld [vmem:[#allocation7 + $0xe00] ss:$16 sps:$4 sm:$0xff]  }
 0x315   : > { %7290 = vmatpush2.bf16.msra.mxu1 %v9245_v16  ;;  %v9296_v16 = vld [vmem:[#allocation7 + $0xc00] ss:$16 sps:$4 sm:$0xff]  }
 0x316   : > { %7291 = vmatprep.subr.bf16.mxu1 %v9253_v19  ;;  %v9304_v19 = vld [vmem:[#allocation7 + $0xde4] ss:$16 sps:$4 sm:$0xff]  }
 0x317   : > { %7251 = vmatpush2.bf16.msra.mxu0 %v9248_v44  ;;  %v9302_v44 = vld [vmem:[#allocation7 + $0xde0] ss:$16 sps:$4 sm:$0xff]  }
 0x318   : > { %7302 = vmatprep.subr.bf16.mxu0 %v9256_v47  ;;  %v9313_v47 = vld [vmem:[#allocation7 + $0xfc4] ss:$16 sps:$4 sm:$0xff]  }
 0x319   : > { %7292 = vmatpush2.bf16.msra.mxu1 %v9251_v46  ;;  %v9310_v46 = vld [vmem:[#allocation7 + $0xdc4] ss:$16 sps:$4 sm:$0xff]  }
 0x31a   : > { %7343 = vmatprep.subr.bf16.mxu1 %v9259_v49  ;;  %v10179_v60 = vpop.f32.mrf.mxu0  ;;  %7253 = vmatmul.mubr.bf16.vlgmr.msra.gmra.mxu0 %v10173_v54  ;;  %v9311_v49 = vld [vmem:[#allocation7 + $0xfc0] ss:$16 sps:$4 sm:$0xff]  }
 0x31b   : > { %7303 = vmatpush1.bf16.msra.mxu0 %v9254_v52  ;;  %7334 = vmatprep.mubr.bf16.mxu0 %v10177_v15  ;;  %v9319_v52 = vld [vmem:[#allocation7 + $0xfa4] ss:$16 sps:$4 sm:$0xff]  }
 0x31c   : > { %v10182_v62 = vpop.f32.mrf.mxu1  ;;  %7294 = vmatmul.mubr.bf16.vlgmr.msra.gmra.mxu1 %v10175_v58  ;;  %v3906_v61 = vpop.f32.mrf.mxu0  ;;  %7304 = vmatprep.subr.bf16.mxu0 %v9262_v25  ;;  %v9317_v25 = vld [vmem:[#allocation7 + $0xfa0] ss:$16 sps:$4 sm:$0xff]  }
 0x31d   : > { %7344 = vmatpush1.bf16.msra.mxu1 %v9257_v32  ;;  %v9314_v32 = vld [vmem:[#allocation7 + $0xda0] ss:$16 sps:$4 sm:$0xff]  }
 0x31e   : > { %v3947_v4 = vpop.f32.mrf.mxu1  ;;  %7345 = vmatprep.subr.bf16.mxu1 %v9265_v56  ;;  %v3908_v7 = vpop.f32.mrf.mxu0  ;;  %v9322_v56 = vld [vmem:[#allocation7 + $0xd84] ss:$16 sps:$4 sm:$0xff]  }
 0x31f   : > { %v3948_v6 = vadd.f32 %v3947_v4, %v3906_v61  ;;  %7305 = vmatpush1.bf16.msra.mxu0 %v9260_v24  ;;  %v9325_v24 = vld [vmem:[#allocation7 + $0xf84] ss:$16 sps:$4 sm:$0xff]   ;;  %v9320_v61 = vld [vmem:[#allocation7 + $0xd80] ss:$16 sps:$4 sm:$0xff]  }
 0x320   : > { %v3949_v8 = vpop.f32.mrf.mxu1  ;;  %v3909_v11 = vpop.f32.mrf.mxu0  ;;  %7306 = vmatprep.subr.bf16.mxu0 %v9268_v1  ;;  %v9328_v1 = vld [vmem:[#allocation7 + $0xd64] ss:$16 sps:$4 sm:$0xff]  }
 0x321   : > { %v3967_v10 = vmax.f32 %v3948_v6, 0.0  ;;  %7346 = vmatpush1.bf16.msra.mxu1 %v9263_v0  ;;  %v9323_v0 = vld [vmem:[#allocation7 + $0xf80] ss:$16 sps:$4 sm:$0xff]   ;;  %v9331_v4 = vld [vmem:[#allocation7 + $0xf64] ss:$16 sps:$4 sm:$0xff]  }
 0x322   : > { %v3950_v14 = vpop.f32.mrf.mxu1  ;;  %7347 = vmatprep.subr.bf16.mxu1 %v9271_v5  ;;  %v9326_v5 = vld [vmem:[#allocation7 + $0xd60] ss:$16 sps:$4 sm:$0xff]   ;;  %v9334_v7 = vld [vmem:[#allocation7 + $0xd44] ss:$16 sps:$4 sm:$0xff]  }
 0x323   : > { %v10186_v20 = vpack.c.bf16 %v3967_v10, %v3967_v10  ;;  %7307 = vmatpush1.bf16.msra.mxu0 %v9266_v9  ;;  %v9329_v6 = vld [vmem:[#allocation7 + $0xf60] ss:$16 sps:$4 sm:$0xff]   ;;  %v9337_v8 = vld [vmem:[#allocation7 + $0xf44] ss:$16 sps:$4 sm:$0xff]  }
 0x324   : > { %7308 = vmatprep.subr.bf16.mxu0 %v9274_v17  ;;  %v9332_v9 = vld [vmem:[#allocation7 + $0xd40] ss:$16 sps:$4 sm:$0xff]   ;;  %v9340_v11 = vld [vmem:[#allocation7 + $0xd24] ss:$16 sps:$4 sm:$0xff]  }
 0x325   : > { %7348 = vmatpush1.bf16.msra.mxu1 %v9269_v12  ;;  %7375 = vmatprep.mubr.bf16.mxu1 %v10186_v20  ;;  %v9335_v10 = vld [vmem:[#allocation7 + $0xf40] ss:$16 sps:$4 sm:$0xff]   ;;  %v9343_v12 = vld [vmem:[#allocation7 + $0xf24] ss:$16 sps:$4 sm:$0xff]  }
 0x326   : > { %7349 = vmatprep.subr.bf16.mxu1 %v9277_v18  ;;  %v9338_v14 = vld [vmem:[#allocation7 + $0xd20] ss:$16 sps:$4 sm:$0xff]   ;;  %v9346_v18 = vld [vmem:[#allocation7 + $0xd04] ss:$16 sps:$4 sm:$0xff]  }
 0x327   : > { %7309 = vmatpush1.bf16.msra.mxu0 %v9272_v21  ;;  %v9341_v17 = vld [vmem:[#allocation7 + $0xf20] ss:$16 sps:$4 sm:$0xff]   ;;  %v3946_v21 = vadd.f32 %v10182_v62, %v10179_v60  ;;  %v9353_v60 = vld [vmem:[#allocation7 + $0x2e8] ss:$16 sps:$4 sm:$0xff]  }
 0x328   : > { %7310 = vmatprep.subr.bf16.mxu0 %v9280_v23  ;;  %v9344_v23 = vld [vmem:[#allocation7 + $0xd00] ss:$16 sps:$4 sm:$0xff]  }
 0x329   : > { %7350 = vmatpush1.bf16.msra.mxu1 %v9275_v22  ;;  %v9349_v22 = vld [vmem:[#allocation7 + $0xf04] ss:$16 sps:$4 sm:$0xff]  }
 0x32a   : > { %7351 = vmatprep.subr.bf16.mxu1 %v9283_v63  ;;  %v3964_v63 = vmax.f32 %v10161_v31, 0.0  ;;  %v9361_v31 = vld [vmem:[#allocation7 + $0x2cc] ss:$16 sps:$4 sm:$0xff]  }
 0x32b   : > { %7311 = vmatpush1.bf16.msra.mxu0 %v9278_v43  ;;  %v9347_v43 = vld [vmem:[#allocation7 + $0xf00] ss:$16 sps:$4 sm:$0xff]  }
 0x32c   : > { %7312 = vmatprep.subr.bf16.mxu0 %v9286_v13  ;;  %v3966_v13 = vmax.f32 %v3946_v21, 0.0  ;;  %v9398_v21 = vld [vmem:[#allocation7 + $0x1e8] ss:$16 sps:$4 sm:$0xff]  }
 0x32d   : > { %7352 = vmatpush1.bf16.msra.mxu1 %v9281_v28  ;;  %v9352_v28 = vld [vmem:[#allocation7 + $0xec] ss:$16 sps:$4 sm:$0xff]  }
 0x32e   : > { %7353 = vmatprep.subr.bf16.mxu1 %v9289_v40  ;;  %v9355_v40 = vld [vmem:[#allocation7 + $0x2ec] ss:$16 sps:$4 sm:$0xff]   ;;  %v10194_v62 = vpack.c.bf16 %v3966_v13, %v3966_v13 }
 0x32f   : > { %7313 = vmatpush1.bf16.msra.mxu0 %v9284_v30  ;;  %v9350_v30 = vld [vmem:[#allocation7 + $0xe8] ss:$16 sps:$4 sm:$0xff]   ;;  %v9412_v13 = vld [vmem:[#allocation7 + $0x1ac] ss:$16 sps:$4 sm:$0xff]  }
 0x330   : > { %7314 = vmatprep.subr.bf16.mxu0 %v9292_v35  ;;  %v9358_v35 = vld [vmem:[#allocation7 + $0xcc] ss:$16 sps:$4 sm:$0xff]  }
 0x331   : > { %7354 = vmatpush1.bf16.msra.mxu1 %v9287_v34  ;;  %v10192_v34 = vpack.c.bf16 %v3964_v63, %v3964_v63  ;;  %v9409_v63 = vld [vmem:[#allocation7 + $0x3cc] ss:$16 sps:$4 sm:$0xff]  }
 0x332   : > { %7355 = vmatprep.subr.bf16.mxu1 %v9295_v3 }
 0x333   : > { %7315 = vmatpush1.bf16.msra.mxu0 %v9290_v37 }
 0x334   : > { %7316 = vmatprep.subr.bf16.mxu0 %v9298_v39 }
 0x335   : > { %7356 = vmatpush1.bf16.msra.mxu1 %v9293_v38  ;;  %v9356_v38 = vld [vmem:[#allocation7 + $0xc8] ss:$16 sps:$4 sm:$0xff]  }
 0x336   : > { %7357 = vmatprep.subr.bf16.mxu1 %v9301_v59 }
 0x337   : > { %7317 = vmatpush1.bf16.msra.mxu0 %v9296_v16  ;;  %v9359_v16 = vld [vmem:[#allocation7 + $0x2c8] ss:$16 sps:$4 sm:$0xff]  }
 0x338   : > { %7318 = vmatprep.subr.bf16.mxu0 %v9304_v19 }
 0x339   : > { %7358 = vmatpush1.bf16.msra.mxu1 %v9299_v41  ;;  %v9364_v41 = vld [vmem:[#allocation7 + $0xac] ss:$16 sps:$4 sm:$0xff]  }
 0x33a   : > { %7359 = vmatprep.subr.bf16.mxu1 %v9307_v42  ;;  %v9367_v42 = vld [vmem:[#allocation7 + $0x2ac] ss:$16 sps:$4 sm:$0xff]  }
 0x33b   : > { %7319 = vmatpush2.bf16.msra.mxu0 %v9302_v44 }
 0x33c   : > { %7320 = vmatprep.subr.bf16.mxu0 %v9310_v46 }
 0x33d   : > { %7360 = vmatpush2.bf16.msra.mxu1 %v9305_v45 }
 0x33e   : > { %7361 = vmatprep.subr.bf16.mxu1 %v9313_v47  ;;  %v9362_v47 = vld [vmem:[#allocation7 + $0xa8] ss:$16 sps:$4 sm:$0xff]  }
 0x33f   : > { %7321 = vmatpush2.bf16.msra.mxu0 %v9308_v48 }
 0x340   : > { %7322 = vmatprep.subr.bf16.mxu0 %v9316_v50 }
 0x341   : > { %7362 = vmatpush2.bf16.msra.mxu1 %v9311_v49  ;;  %v9370_v49 = vld [vmem:[#allocation7 + $0x8c] ss:$16 sps:$4 sm:$0xff]  }
 0x342   : > { %7363 = vmatprep.subr.bf16.mxu1 %v9319_v52  ;;  %v9373_v52 = vld [vmem:[#allocation7 + $0x28c] ss:$16 sps:$4 sm:$0xff]  }
 0x343   : > { %7323 = vmatpush2.bf16.msra.mxu0 %v9314_v32  ;;  %v9371_v32 = vld [vmem:[#allocation7 + $0x288] ss:$16 sps:$4 sm:$0xff]  }
 0x344   : > { %7324 = vmatprep.subr.bf16.mxu0 %v9322_v56  ;;  %v9379_v56 = vld [vmem:[#allocation7 + $0x26c] ss:$16 sps:$4 sm:$0xff]  }
 0x345   : > { %7364 = vmatpush2.bf16.msra.mxu1 %v9317_v25  ;;  %v9376_v25 = vld [vmem:[#allocation7 + $0x6c] ss:$16 sps:$4 sm:$0xff]  }
 0x346   : > { %7365 = vmatprep.subr.bf16.mxu1 %v9325_v24  ;;  %v9374_v24 = vld [vmem:[#allocation7 + $0x68] ss:$16 sps:$4 sm:$0xff]  }
 0x347   : > { %7325 = vmatpush2.bf16.msra.mxu0 %v9320_v61  ;;  %v9377_v61 = vld [vmem:[#allocation7 + $0x268] ss:$16 sps:$4 sm:$0xff]  }
 0x348   : > { %7326 = vmatprep.subr.bf16.mxu0 %v9328_v1  ;;  %v9385_v1 = vld [vmem:[#allocation7 + $0x24c] ss:$16 sps:$4 sm:$0xff]  }
 0x349   : > { %7366 = vmatpush2.bf16.msra.mxu1 %v9323_v0  ;;  %v9382_v0 = vld [vmem:[#allocation7 + $0x4c] ss:$16 sps:$4 sm:$0xff]  }
 0x34a   : > { %7367 = vmatprep.subr.bf16.mxu1 %v9331_v4  ;;  %v9380_v4 = vld [vmem:[#allocation7 + $0x48] ss:$16 sps:$4 sm:$0xff]  }
 0x34b   : > { %7327 = vmatpush2.bf16.msra.mxu0 %v9326_v5  ;;  %v9383_v5 = vld [vmem:[#allocation7 + $0x248] ss:$16 sps:$4 sm:$0xff]  }
 0x34c   : > { %7328 = vmatprep.subr.bf16.mxu0 %v9334_v7  ;;  %v9391_v7 = vld [vmem:[#allocation7 + $0x22c] ss:$16 sps:$4 sm:$0xff]  }
 0x34d   : > { %7368 = vmatpush2.bf16.msra.mxu1 %v9329_v6  ;;  %v9388_v6 = vld [vmem:[#allocation7 + $0x2c] ss:$16 sps:$4 sm:$0xff]  }
 0x34e   : > { %7369 = vmatprep.subr.bf16.mxu1 %v9337_v8  ;;  %v9386_v8 = vld [vmem:[#allocation7 + $0x28] ss:$16 sps:$4 sm:$0xff]  }
 0x34f   : > { %7329 = vmatpush2.bf16.msra.mxu0 %v9332_v9  ;;  %v9389_v9 = vld [vmem:[#allocation7 + $0x228] ss:$16 sps:$4 sm:$0xff]  }
 0x350   : > { %7330 = vmatprep.subr.bf16.mxu0 %v9340_v11  ;;  %v9397_v11 = vld [vmem:[#allocation7 + $0x20c] ss:$16 sps:$4 sm:$0xff]  }
 0x351   : > { %7370 = vmatpush2.bf16.msra.mxu1 %v9335_v10  ;;  %v9394_v10 = vld [vmem:[#allocation7 + $0xc] ss:$16 sps:$4 sm:$0xff]  }
 0x352   : > { %7371 = vmatprep.subr.bf16.mxu1 %v9343_v12  ;;  %v9392_v12 = vld [vmem:[#allocation7 + $0x8] ss:$16 sps:$4 sm:$0xff]  }
 0x353   : > { %7331 = vmatpush2.bf16.msra.mxu0 %v9338_v14  ;;  %v9395_v14 = vld [vmem:[#allocation7 + $0x208] ss:$16 sps:$4 sm:$0xff]  }
 0x354   : > { %7332 = vmatprep.subr.bf16.mxu0 %v9346_v18  ;;  %v9403_v18 = vld [vmem:[#allocation7 + $0x3ec] ss:$16 sps:$4 sm:$0xff]  }
 0x355   : > { %7372 = vmatpush2.bf16.msra.mxu1 %v9341_v17  ;;  %v9400_v17 = vld [vmem:[#allocation7 + $0x1ec] ss:$16 sps:$4 sm:$0xff]  }
 0x356   : > { %7373 = vmatprep.subr.bf16.mxu1 %v9349_v22  ;;  %v9401_v22 = vld [vmem:[#allocation7 + $0x3e8] ss:$16 sps:$4 sm:$0xff]  }
 0x357   : > { %7333 = vmatpush2.bf16.msra.mxu0 %v9344_v23  ;;  %v9406_v23 = vld [vmem:[#allocation7 + $0x1cc] ss:$16 sps:$4 sm:$0xff]  }
 0x358   : > { %7384 = vmatprep.subr.bf16.mxu0 %v9352_v28  ;;  %v9407_v28 = vld [vmem:[#allocation7 + $0x3c8] ss:$16 sps:$4 sm:$0xff]  }
 0x359   : > { %7374 = vmatpush2.bf16.msra.mxu1 %v9347_v43  ;;  %v9404_v43 = vld [vmem:[#allocation7 + $0x1c8] ss:$16 sps:$4 sm:$0xff]  }
 0x35a   : > { %7425 = vmatprep.subr.bf16.mxu1 %v9355_v40  ;;  %v7090_v3 = vpop.f32.mrf.mxu0  ;;  %7335 = vmatmul.mubr.bf16.vlgmr.msra.gmra.mxu0 %v10192_v34  ;;  %v9415_v40 = vld [vmem:[#allocation7 + $0x3ac] ss:$16 sps:$4 sm:$0xff]  }
 0x35b   : > { %7385 = vmatpush1.bf16.msra.mxu0 %v9350_v30  ;;  %7416 = vmatprep.mubr.bf16.mxu0 %v10112_v33  ;;  %v9365_v33 = vld [vmem:[#allocation7 + $0x2a8] ss:$16 sps:$4 sm:$0xff]  }
 0x35c   : > { %v7131_v37 = vpop.f32.mrf.mxu1  ;;  %7376 = vmatmul.mubr.bf16.vlgmr.msra.gmra.mxu1 %v10194_v62  ;;  %v7092_v59 = vpop.f32.mrf.mxu0  ;;  %7386 = vmatprep.subr.bf16.mxu0 %v9358_v35  ;;  %v9410_v30 = vld [vmem:[#allocation7 + $0x1a8] ss:$16 sps:$4 sm:$0xff]   ;;  %v9418_v35 = vld [vmem:[#allocation7 + $0x18c] ss:$16 sps:$4 sm:$0xff]  }
 0x35d   : > { %v10198_v39 = vadd.f32 %v7131_v37, %v7090_v3  ;;  %7426 = vmatpush1.bf16.msra.mxu1 %v9353_v60  ;;  %7457 = vmatprep.mubr.bf16.mxu1 %v10115_v36  ;;  %v9368_v36 = vld [vmem:[#allocation7 + $0x88] ss:$16 sps:$4 sm:$0xff]   ;;  %v9421_v3 = vld [vmem:[#allocation7 + $0x38c] ss:$16 sps:$4 sm:$0xff]  }
 0x35e   : > { %v7133_v19 = vpop.f32.mrf.mxu1  ;;  %v7094_v45 = vpop.f32.mrf.mxu0  ;;  %7427 = vmatprep.subr.bf16.mxu1 %v9361_v31  ;;  %v9413_v60 = vld [vmem:[#allocation7 + $0x3a8] ss:$16 sps:$4 sm:$0xff]  }
 0x35f   : > { %v10202_v44 = vadd.f32 %v7133_v19, %v7092_v59  ;;  %7387 = vmatpush1.bf16.msra.mxu0 %v9356_v38  ;;  %v9416_v31 = vld [vmem:[#allocation7 + $0x188] ss:$16 sps:$4 sm:$0xff]   ;;  %v9424_v38 = vld [vmem:[#allocation7 + $0x16c] ss:$16 sps:$4 sm:$0xff]  }
 0x360   : > { %v7135_v46 = vpop.f32.mrf.mxu1  ;;  %v7095_v48 = vpop.f32.mrf.mxu0  ;;  %7388 = vmatprep.subr.bf16.mxu0 %v9364_v41  ;;  %v9419_v37 = vld [vmem:[#allocation7 + $0x388] ss:$16 sps:$4 sm:$0xff]   ;;  %v9427_v59 = vld [vmem:[#allocation7 + $0x36c] ss:$16 sps:$4 sm:$0xff]  }
 0x361   : > { %7428 = vmatpush1.bf16.msra.mxu1 %v9359_v16  ;;  %v9422_v16 = vld [vmem:[#allocation7 + $0x168] ss:$16 sps:$4 sm:$0xff]   ;;  %v9430_v19 = vld [vmem:[#allocation7 + $0x14c] ss:$16 sps:$4 sm:$0xff]  }
 0x362   : > { %v7136_v50 = vpop.f32.mrf.mxu1  ;;  %7429 = vmatprep.subr.bf16.mxu1 %v9367_v42  ;;  %v9425_v41 = vld [vmem:[#allocation7 + $0x368] ss:$16 sps:$4 sm:$0xff]   ;;  %v9433_v42 = vld [vmem:[#allocation7 + $0x34c] ss:$16 sps:$4 sm:$0xff]  }
 0x363   : > { %7389 = vmatpush1.bf16.msra.mxu0 %v9362_v47  ;;  %v9428_v45 = vld [vmem:[#allocation7 + $0x148] ss:$16 sps:$4 sm:$0xff]   ;;  %v9436_v47 = vld [vmem:[#allocation7 + $0x12c] ss:$16 sps:$4 sm:$0xff]  }
 0x364   : > { %7390 = vmatprep.subr.bf16.mxu0 %v9370_v49  ;;  %v9431_v46 = vld [vmem:[#allocation7 + $0x348] ss:$16 sps:$4 sm:$0xff]   ;;  %v9439_v48 = vld [vmem:[#allocation7 + $0x32c] ss:$16 sps:$4 sm:$0xff]  }
 0x365   : > { %7430 = vmatpush1.bf16.msra.mxu1 %v9365_v33  ;;  %v9434_v33 = vld [vmem:[#allocation7 + $0x128] ss:$16 sps:$4 sm:$0xff]   ;;  %v9442_v50 = vld [vmem:[#allocation7 + $0x10c] ss:$16 sps:$4 sm:$0xff]  }
 0x366   : > { %7431 = vmatprep.subr.bf16.mxu1 %v9373_v52  ;;  %v9437_v49 = vld [vmem:[#allocation7 + $0x328] ss:$16 sps:$4 sm:$0xff]   ;;  %v9445_v52 = vld [vmem:[#allocation7 + $0x30c] ss:$16 sps:$4 sm:$0xff]  }
 0x367   : > { %7391 = vmatpush1.bf16.msra.mxu0 %v9368_v36  ;;  %v9440_v36 = vld [vmem:[#allocation7 + $0x108] ss:$16 sps:$4 sm:$0xff]  }
 0x368   : > { %7392 = vmatprep.subr.bf16.mxu0 %v9376_v25  ;;  %v9448_v25 = vld [vmem:[#allocation7 + $0x4ec] ss:$16 sps:$4 sm:$0xff]  }
 0x369   : > { %7432 = vmatpush1.bf16.msra.mxu1 %v9371_v32  ;;  %v9443_v32 = vld [vmem:[#allocation7 + $0x308] ss:$16 sps:$4 sm:$0xff]  }
 0x36a   : > { %7433 = vmatprep.subr.bf16.mxu1 %v9379_v56  ;;  %v9451_v56 = vld [vmem:[#allocation7 + $0x6ec] ss:$16 sps:$4 sm:$0xff]  }
 0x36b   : > { %7393 = vmatpush1.bf16.msra.mxu0 %v9374_v24  ;;  %v9446_v24 = vld [vmem:[#allocation7 + $0x4e8] ss:$16 sps:$4 sm:$0xff]  }
 0x36c   : > { %7394 = vmatprep.subr.bf16.mxu0 %v9382_v0  ;;  %v9454_v0 = vld [vmem:[#allocation7 + $0x4cc] ss:$16 sps:$4 sm:$0xff]  }
 0x36d   : > { %7434 = vmatpush1.bf16.msra.mxu1 %v9377_v61  ;;  %v9449_v61 = vld [vmem:[#allocation7 + $0x6e8] ss:$16 sps:$4 sm:$0xff]  }
 0x36e   : > { %7435 = vmatprep.subr.bf16.mxu1 %v9385_v1 }
 0x36f   : > { %7395 = vmatpush1.bf16.msra.mxu0 %v9380_v4  ;;  %v9457_v4 = vld [vmem:[#allocation7 + $0x6cc] ss:$16 sps:$4 sm:$0xff]  }
 0x370   : > { %7396 = vmatprep.subr.bf16.mxu0 %v9388_v6 }
 0x371   : > { %7436 = vmatpush1.bf16.msra.mxu1 %v9383_v5 }
 0x372   : > { %7437 = vmatprep.subr.bf16.mxu1 %v9391_v7  ;;  %v9452_v7 = vld [vmem:[#allocation7 + $0x4c8] ss:$16 sps:$4 sm:$0xff]  }
 0x373   : > { %7397 = vmatpush1.bf16.msra.mxu0 %v9386_v8 }
 0x374   : > { %7398 = vmatprep.subr.bf16.mxu0 %v9394_v10  ;;  %v9460_v10 = vld [vmem:[#allocation7 + $0x4ac] ss:$16 sps:$4 sm:$0xff]  }
 0x375   : > { %7438 = vmatpush1.bf16.msra.mxu1 %v9389_v9  ;;  %v9455_v9 = vld [vmem:[#allocation7 + $0x6c8] ss:$16 sps:$4 sm:$0xff]  }
 0x376   : > { %7439 = vmatprep.subr.bf16.mxu1 %v9397_v11 }
 0x377   : > { %7399 = vmatpush1.bf16.msra.mxu0 %v9392_v12 }
 0x378   : > { %7400 = vmatprep.subr.bf16.mxu0 %v9400_v17 }
 0x379   : > { %7440 = vmatpush1.bf16.msra.mxu1 %v9395_v14 }
 0x37a   : > { %7441 = vmatprep.subr.bf16.mxu1 %v9403_v18 }
 0x37b   : > { %7401 = vmatpush2.bf16.msra.mxu0 %v9398_v21  ;;  %v9461_v21 = vld [vmem:[#allocation7 + $0x6a8] ss:$16 sps:$4 sm:$0xff]  }
 0x37c   : > { %7402 = vmatprep.subr.bf16.mxu0 %v9406_v23 }
 0x37d   : > { %7442 = vmatpush2.bf16.msra.mxu1 %v9401_v22  ;;  %v9466_v22 = vld [vmem:[#allocation7 + $0x48c] ss:$16 sps:$4 sm:$0xff]  }
 0x37e   : > { %7443 = vmatprep.subr.bf16.mxu1 %v9409_v63  ;;  %v9467_v63 = vld [vmem:[#allocation7 + $0x688] ss:$16 sps:$4 sm:$0xff]  }
 0x37f   : > { %7403 = vmatpush2.bf16.msra.mxu0 %v9404_v43  ;;  %v9472_v43 = vld [vmem:[#allocation7 + $0x46c] ss:$16 sps:$4 sm:$0xff]  }
 0x380   : > { %7404 = vmatprep.subr.bf16.mxu0 %v9412_v13  ;;  %v9470_v13 = vld [vmem:[#allocation7 + $0x468] ss:$16 sps:$4 sm:$0xff]  }
 0x381   : > { %7444 = vmatpush2.bf16.msra.mxu1 %v9407_v28  ;;  %v9475_v28 = vld [vmem:[#allocation7 + $0x66c] ss:$16 sps:$4 sm:$0xff]  }
 0x382   : > { %7445 = vmatprep.subr.bf16.mxu1 %v9415_v40  ;;  %v9473_v40 = vld [vmem:[#allocation7 + $0x668] ss:$16 sps:$4 sm:$0xff]  }
 0x383   : > { %7405 = vmatpush2.bf16.msra.mxu0 %v9410_v30  ;;  %v9478_v30 = vld [vmem:[#allocation7 + $0x44c] ss:$16 sps:$4 sm:$0xff]  }
 0x384   : > { %7406 = vmatprep.subr.bf16.mxu0 %v9418_v35  ;;  %v9476_v35 = vld [vmem:[#allocation7 + $0x448] ss:$16 sps:$4 sm:$0xff]  }
 0x385   : > { %7446 = vmatpush2.bf16.msra.mxu1 %v9413_v60  ;;  %v9481_v60 = vld [vmem:[#allocation7 + $0x64c] ss:$16 sps:$4 sm:$0xff]  }
 0x386   : > { %7447 = vmatprep.subr.bf16.mxu1 %v9421_v3  ;;  %v9479_v3 = vld [vmem:[#allocation7 + $0x648] ss:$16 sps:$4 sm:$0xff]  }
 0x387   : > { %7407 = vmatpush2.bf16.msra.mxu0 %v9416_v31  ;;  %v9484_v31 = vld [vmem:[#allocation7 + $0x42c] ss:$16 sps:$4 sm:$0xff]  }
 0x388   : > { %7408 = vmatprep.subr.bf16.mxu0 %v9424_v38  ;;  %v9482_v38 = vld [vmem:[#allocation7 + $0x428] ss:$16 sps:$4 sm:$0xff]  }
 0x389   : > { %7448 = vmatpush2.bf16.msra.mxu1 %v9419_v37  ;;  %v9487_v37 = vld [vmem:[#allocation7 + $0x62c] ss:$16 sps:$4 sm:$0xff]  }
 0x38a   : > { %7449 = vmatprep.subr.bf16.mxu1 %v9427_v59  ;;  %v9485_v59 = vld [vmem:[#allocation7 + $0x628] ss:$16 sps:$4 sm:$0xff]  }
 0x38b   : > { %7409 = vmatpush2.bf16.msra.mxu0 %v9422_v16  ;;  %v9490_v16 = vld [vmem:[#allocation7 + $0x40c] ss:$16 sps:$4 sm:$0xff]  }
 0x38c   : > { %7410 = vmatprep.subr.bf16.mxu0 %v9430_v19  ;;  %v9488_v19 = vld [vmem:[#allocation7 + $0x408] ss:$16 sps:$4 sm:$0xff]  }
 0x38d   : > { %7450 = vmatpush2.bf16.msra.mxu1 %v9425_v41  ;;  %v9493_v41 = vld [vmem:[#allocation7 + $0x60c] ss:$16 sps:$4 sm:$0xff]  }
 0x38e   : > { %7451 = vmatprep.subr.bf16.mxu1 %v9433_v42  ;;  %v9491_v42 = vld [vmem:[#allocation7 + $0x608] ss:$16 sps:$4 sm:$0xff]  }
 0x38f   : > { %7411 = vmatpush2.bf16.msra.mxu0 %v9428_v45  ;;  %v9496_v45 = vld [vmem:[#allocation7 + $0x5ec] ss:$16 sps:$4 sm:$0xff]  }
 0x390   : > { %7412 = vmatprep.subr.bf16.mxu0 %v9436_v47  ;;  %v9494_v47 = vld [vmem:[#allocation7 + $0x5e8] ss:$16 sps:$4 sm:$0xff]  }
 0x391   : > { %7452 = vmatpush2.bf16.msra.mxu1 %v9431_v46  ;;  %v9499_v46 = vld [vmem:[#allocation7 + $0x7ec] ss:$16 sps:$4 sm:$0xff]  }
 0x392   : > { %7453 = vmatprep.subr.bf16.mxu1 %v9439_v48  ;;  %v9497_v48 = vld [vmem:[#allocation7 + $0x7e8] ss:$16 sps:$4 sm:$0xff]  }
 0x393   : > { %7413 = vmatpush2.bf16.msra.mxu0 %v9434_v33  ;;  %v9502_v33 = vld [vmem:[#allocation7 + $0x5cc] ss:$16 sps:$4 sm:$0xff]  }
 0x394   : > { %7414 = vmatprep.subr.bf16.mxu0 %v9442_v50  ;;  %v9500_v50 = vld [vmem:[#allocation7 + $0x5c8] ss:$16 sps:$4 sm:$0xff]  }
 0x395   : > { %7454 = vmatpush2.bf16.msra.mxu1 %v9437_v49  ;;  %v9505_v49 = vld [vmem:[#allocation7 + $0x7cc] ss:$16 sps:$4 sm:$0xff]  }
 0x396   : > { %7455 = vmatprep.subr.bf16.mxu1 %v9445_v52  ;;  %v9503_v52 = vld [vmem:[#allocation7 + $0x7c8] ss:$16 sps:$4 sm:$0xff]  }
 0x397   : > { %7415 = vmatpush2.bf16.msra.mxu0 %v9440_v36  ;;  %v9508_v36 = vld [vmem:[#allocation7 + $0x5ac] ss:$16 sps:$4 sm:$0xff]  }
 0x398   : > { %7466 = vmatprep.subr.bf16.mxu0 %v9448_v25  ;;  %v9506_v25 = vld [vmem:[#allocation7 + $0x5a8] ss:$16 sps:$4 sm:$0xff]  }
 0x399   : > { %7456 = vmatpush2.bf16.msra.mxu1 %v9443_v32  ;;  %v9511_v32 = vld [vmem:[#allocation7 + $0x7ac] ss:$16 sps:$4 sm:$0xff]  }
 0x39a   : > { %7507 = vmatprep.subr.bf16.mxu1 %v9451_v56  ;;  %v7172_v1 = vpop.f32.mrf.mxu0  ;;  %7417 = vmatmul.mubr.bf16.vlgmr.msra.gmra.mxu0 %v10128_v53  ;;  %v9509_v56 = vld [vmem:[#allocation7 + $0x7a8] ss:$16 sps:$4 sm:$0xff]  }
 0x39b   : > { %v7173_v5 = vadd.f32 %v7172_v1, %v10198_v39  ;;  %7467 = vmatpush1.bf16.msra.mxu0 %v9446_v24  ;;  %7498 = vmatprep.mubr.bf16.mxu0 %v10132_v57  ;;  %v9463_v39 = vld [vmem:[#allocation7 + $0x6ac] ss:$16 sps:$4 sm:$0xff]   ;;  %v9458_v57 = vld [vmem:[#allocation7 + $0x4a8] ss:$16 sps:$4 sm:$0xff]  }
 0x39c   : > { %v7213_v6 = vpop.f32.mrf.mxu1  ;;  %7458 = vmatmul.mubr.bf16.vlgmr.msra.gmra.mxu1 %v10130_v55  ;;  %v7174_v8 = vpop.f32.mrf.mxu0  ;;  %7468 = vmatprep.subr.bf16.mxu0 %v9454_v0  ;;  %v9514_v24 = vld [vmem:[#allocation7 + $0x58c] ss:$16 sps:$4 sm:$0xff]   ;;  %v9512_v0 = vld [vmem:[#allocation7 + $0x588] ss:$16 sps:$4 sm:$0xff]  }
 0x39d   : > { %7508 = vmatpush1.bf16.msra.mxu1 %v9449_v61  ;;  %v10208_v11 = vadd.f32 %v7213_v6, %v7173_v5  ;;  %7539 = vmatprep.mubr.bf16.mxu1 %v10135_v51  ;;  %v7175_v53 = vadd.f32 %v7174_v8, %v10202_v44  ;;  %v9469_v51 = vld [vmem:[#allocation7 + $0x68c] ss:$16 sps:$4 sm:$0xff]   ;;  %v9464_v44 = vld [vmem:[#allocation7 + $0x488] ss:$16 sps:$4 sm:$0xff]  }
 0x39e   : > { %v7215_v12 = vpop.f32.mrf.mxu1  ;;  %v7176_v14 = vpop.f32.mrf.mxu0  ;;  %7509 = vmatprep.subr.bf16.mxu1 %v9457_v4  ;;  %v9517_v61 = vld [vmem:[#allocation7 + $0x78c] ss:$16 sps:$4 sm:$0xff]   ;;  %v9515_v1 = vld [vmem:[#allocation7 + $0x788] ss:$16 sps:$4 sm:$0xff]  }
 0x39f   : > { %v10212_v55 = vadd.f32 %v7215_v12, %v7175_v53  ;;  %7469 = vmatpush1.bf16.msra.mxu0 %v9452_v7  ;;  %v9520_v4 = vld [vmem:[#allocation7 + $0x56c] ss:$16 sps:$4 sm:$0xff]   ;;  %v9518_v6 = vld [vmem:[#allocation7 + $0x568] ss:$16 sps:$4 sm:$0xff]  }
 0x3a0   : > { %v7217_v17 = vpop.f32.mrf.mxu1  ;;  %v7177_v18 = vpop.f32.mrf.mxu0  ;;  %7470 = vmatprep.subr.bf16.mxu0 %v9460_v10  ;;  %v9523_v5 = vld [vmem:[#allocation7 + $0x76c] ss:$16 sps:$4 sm:$0xff]   ;;  %v9521_v7 = vld [vmem:[#allocation7 + $0x768] ss:$16 sps:$4 sm:$0xff]  }
 0x3a1   : > { %7510 = vmatpush1.bf16.msra.mxu1 %v9455_v9  ;;  %v9526_v8 = vld [vmem:[#allocation7 + $0x54c] ss:$16 sps:$4 sm:$0xff]   ;;  %v9524_v10 = vld [vmem:[#allocation7 + $0x548] ss:$16 sps:$4 sm:$0xff]  }
 0x3a2   : > { %v7218_v23 = vpop.f32.mrf.mxu1  ;;  %7511 = vmatprep.subr.bf16.mxu1 %v9463_v39  ;;  %v9529_v9 = vld [vmem:[#allocation7 + $0x74c] ss:$16 sps:$4 sm:$0xff]   ;;  %v9527_v53 = vld [vmem:[#allocation7 + $0x748] ss:$16 sps:$4 sm:$0xff]  }
 0x3a3   : > { %7471 = vmatpush1.bf16.msra.mxu0 %v9458_v57  ;;  %v9532_v12 = vld [vmem:[#allocation7 + $0x52c] ss:$16 sps:$4 sm:$0xff]   ;;  %v9530_v14 = vld [vmem:[#allocation7 + $0x528] ss:$16 sps:$4 sm:$0xff]  }
 0x3a4   : > { %7472 = vmatprep.subr.bf16.mxu0 %v9466_v22  ;;  %v9535_v39 = vld [vmem:[#allocation7 + $0x72c] ss:$16 sps:$4 sm:$0xff]   ;;  %v9533_v17 = vld [vmem:[#allocation7 + $0x728] ss:$16 sps:$4 sm:$0xff]  }
 0x3a5   : > { %7512 = vmatpush1.bf16.msra.mxu1 %v9461_v21  ;;  %v9538_v57 = vld [vmem:[#allocation7 + $0x50c] ss:$16 sps:$4 sm:$0xff]   ;;  %v9536_v21 = vld [vmem:[#allocation7 + $0x508] ss:$16 sps:$4 sm:$0xff]  }
 0x3a6   : > { %7513 = vmatprep.subr.bf16.mxu1 %v9469_v51  ;;  %v9541_v18 = vld [vmem:[#allocation7 + $0x70c] ss:$16 sps:$4 sm:$0xff]   ;;  %v9539_v22 = vld [vmem:[#allocation7 + $0x708] ss:$16 sps:$4 sm:$0xff]  }
 0x3a7   : > { %7473 = vmatpush1.bf16.msra.mxu0 %v9464_v44  ;;  %v9544_v23 = vld [vmem:[#allocation7 + $0x8ec] ss:$16 sps:$4 sm:$0xff]   ;;  %v9542_v44 = vld [vmem:[#allocation7 + $0x8e8] ss:$16 sps:$4 sm:$0xff]  }
 0x3a8   : > { %7474 = vmatprep.subr.bf16.mxu0 %v9472_v43  ;;  %v9547_v51 = vld [vmem:[#allocation7 + $0xaec] ss:$16 sps:$4 sm:$0xff]  }
 0x3a9   : > { %7514 = vmatpush1.bf16.msra.mxu1 %v9467_v63  ;;  %v9545_v63 = vld [vmem:[#allocation7 + $0xae8] ss:$16 sps:$4 sm:$0xff]   ;;  %v9550_v43 = vld [vmem:[#allocation7 + $0x8cc] ss:$16 sps:$4 sm:$0xff]  }
 0x3aa   : > { %7515 = vmatprep.subr.bf16.mxu1 %v9475_v28 }
 0x3ab   : > { %7475 = vmatpush1.bf16.msra.mxu0 %v9470_v13  ;;  %v9553_v13 = vld [vmem:[#allocation7 + $0xacc] ss:$16 sps:$4 sm:$0xff]  }
 0x3ac   : > { %7476 = vmatprep.subr.bf16.mxu0 %v9478_v30 }
 0x3ad   : > { %7516 = vmatpush1.bf16.msra.mxu1 %v9473_v40 }
 0x3ae   : > { %7517 = vmatprep.subr.bf16.mxu1 %v9481_v60  ;;  %v9548_v60 = vld [vmem:[#allocation7 + $0x8c8] ss:$16 sps:$4 sm:$0xff]  }
 0x3af   : > { %7477 = vmatpush1.bf16.msra.mxu0 %v9476_v35 }
 0x3b0   : > { %7478 = vmatprep.subr.bf16.mxu0 %v9484_v31  ;;  %v9556_v31 = vld [vmem:[#allocation7 + $0x8ac] ss:$16 sps:$4 sm:$0xff]  }
 0x3b1   : > { %7518 = vmatpush1.bf16.msra.mxu1 %v9479_v3  ;;  %v9551_v3 = vld [vmem:[#allocation7 + $0xac8] ss:$16 sps:$4 sm:$0xff]  }
 0x3b2   : > { %7519 = vmatprep.subr.bf16.mxu1 %v9487_v37 }
 0x3b3   : > { %7479 = vmatpush1.bf16.msra.mxu0 %v9482_v38 }
 0x3b4   : > { %7480 = vmatprep.subr.bf16.mxu0 %v9490_v16 }
 0x3b5   : > { %7520 = vmatpush1.bf16.msra.mxu1 %v9485_v59 }
 0x3b6   : > { %7521 = vmatprep.subr.bf16.mxu1 %v9493_v41 }
 0x3b7   : > { %7481 = vmatpush1.bf16.msra.mxu0 %v9488_v19  ;;  %v9557_v19 = vld [vmem:[#allocation7 + $0xaa8] ss:$16 sps:$4 sm:$0xff]  }
 0x3b8   : > { %7482 = vmatprep.subr.bf16.mxu0 %v9496_v45 }
 0x3b9   : > { %7522 = vmatpush1.bf16.msra.mxu1 %v9491_v42  ;;  %v9562_v42 = vld [vmem:[#allocation7 + $0x88c] ss:$16 sps:$4 sm:$0xff]  }
 0x3ba   : > { %7523 = vmatprep.subr.bf16.mxu1 %v9499_v46  ;;  %v9563_v46 = vld [vmem:[#allocation7 + $0xa88] ss:$16 sps:$4 sm:$0xff]  }
 0x3bb   : > { %7483 = vmatpush2.bf16.msra.mxu0 %v9494_v47  ;;  %v9568_v47 = vld [vmem:[#allocation7 + $0x86c] ss:$16 sps:$4 sm:$0xff]  }
 0x3bc   : > { %7484 = vmatprep.subr.bf16.mxu0 %v9502_v33  ;;  %v9566_v33 = vld [vmem:[#allocation7 + $0x868] ss:$16 sps:$4 sm:$0xff]  }
 0x3bd   : > { %7524 = vmatpush2.bf16.msra.mxu1 %v9497_v48  ;;  %v9571_v48 = vld [vmem:[#allocation7 + $0xa6c] ss:$16 sps:$4 sm:$0xff]  }
 0x3be   : > { %7525 = vmatprep.subr.bf16.mxu1 %v9505_v49  ;;  %v9569_v49 = vld [vmem:[#allocation7 + $0xa68] ss:$16 sps:$4 sm:$0xff]  }
 0x3bf   : > { %7485 = vmatpush2.bf16.msra.mxu0 %v9500_v50  ;;  %v9574_v50 = vld [vmem:[#allocation7 + $0x84c] ss:$16 sps:$4 sm:$0xff]  }
 0x3c0   : > { %7486 = vmatprep.subr.bf16.mxu0 %v9508_v36  ;;  %v9572_v36 = vld [vmem:[#allocation7 + $0x848] ss:$16 sps:$4 sm:$0xff]  }
 0x3c1   : > { %7526 = vmatpush2.bf16.msra.mxu1 %v9503_v52  ;;  %v9577_v52 = vld [vmem:[#allocation7 + $0xa4c] ss:$16 sps:$4 sm:$0xff]  }
 0x3c2   : > { %7527 = vmatprep.subr.bf16.mxu1 %v9511_v32  ;;  %v9575_v32 = vld [vmem:[#allocation7 + $0xa48] ss:$16 sps:$4 sm:$0xff]  }
 0x3c3   : > { %7487 = vmatpush2.bf16.msra.mxu0 %v9506_v25  ;;  %v9580_v25 = vld [vmem:[#allocation7 + $0x82c] ss:$16 sps:$4 sm:$0xff]  }
 0x3c4   : > { %7488 = vmatprep.subr.bf16.mxu0 %v9514_v24  ;;  %v9578_v24 = vld [vmem:[#allocation7 + $0x828] ss:$16 sps:$4 sm:$0xff]  }
 0x3c5   : > { %7528 = vmatpush2.bf16.msra.mxu1 %v9509_v56  ;;  %v9583_v56 = vld [vmem:[#allocation7 + $0xa2c] ss:$16 sps:$4 sm:$0xff]  }
 0x3c6   : > { %7529 = vmatprep.subr.bf16.mxu1 %v9517_v61  ;;  %v9581_v61 = vld [vmem:[#allocation7 + $0xa28] ss:$16 sps:$4 sm:$0xff]  }
 0x3c7   : > { %7489 = vmatpush2.bf16.msra.mxu0 %v9512_v0  ;;  %v9586_v0 = vld [vmem:[#allocation7 + $0x80c] ss:$16 sps:$4 sm:$0xff]  }
 0x3c8   : > { %7490 = vmatprep.subr.bf16.mxu0 %v9520_v4  ;;  %v9584_v4 = vld [vmem:[#allocation7 + $0x808] ss:$16 sps:$4 sm:$0xff]  }
 0x3c9   : > { %7530 = vmatpush2.bf16.msra.mxu1 %v9515_v1  ;;  %v9589_v1 = vld [vmem:[#allocation7 + $0xa0c] ss:$16 sps:$4 sm:$0xff]  }
 0x3ca   : > { %7531 = vmatprep.subr.bf16.mxu1 %v9523_v5  ;;  %v9587_v5 = vld [vmem:[#allocation7 + $0xa08] ss:$16 sps:$4 sm:$0xff]  }
 0x3cb   : > { %7491 = vmatpush2.bf16.msra.mxu0 %v9518_v6  ;;  %v9592_v6 = vld [vmem:[#allocation7 + $0x9ec] ss:$16 sps:$4 sm:$0xff]  }
 0x3cc   : > { %7492 = vmatprep.subr.bf16.mxu0 %v9526_v8  ;;  %v9590_v8 = vld [vmem:[#allocation7 + $0x9e8] ss:$16 sps:$4 sm:$0xff]  }
 0x3cd   : > { %7532 = vmatpush2.bf16.msra.mxu1 %v9521_v7  ;;  %v9595_v7 = vld [vmem:[#allocation7 + $0xbec] ss:$16 sps:$4 sm:$0xff]  }
 0x3ce   : > { %7533 = vmatprep.subr.bf16.mxu1 %v9529_v9  ;;  %v9593_v9 = vld [vmem:[#allocation7 + $0xbe8] ss:$16 sps:$4 sm:$0xff]  }
 0x3cf   : > { %7493 = vmatpush2.bf16.msra.mxu0 %v9524_v10  ;;  %v9598_v10 = vld [vmem:[#allocation7 + $0x9cc] ss:$16 sps:$4 sm:$0xff]  }
 0x3d0   : > { %7494 = vmatprep.subr.bf16.mxu0 %v9532_v12  ;;  %v9596_v12 = vld [vmem:[#allocation7 + $0x9c8] ss:$16 sps:$4 sm:$0xff]  }
 0x3d1   : > { %7534 = vmatpush2.bf16.msra.mxu1 %v9527_v53  ;;  %v9601_v53 = vld [vmem:[#allocation7 + $0xbcc] ss:$16 sps:$4 sm:$0xff]  }
 0x3d2   : > { %7535 = vmatprep.subr.bf16.mxu1 %v9535_v39  ;;  %v9599_v39 = vld [vmem:[#allocation7 + $0xbc8] ss:$16 sps:$4 sm:$0xff]  }
 0x3d3   : > { %7495 = vmatpush2.bf16.msra.mxu0 %v9530_v14  ;;  %v9604_v14 = vld [vmem:[#allocation7 + $0x9ac] ss:$16 sps:$4 sm:$0xff]  }
 0x3d4   : > { %7496 = vmatprep.subr.bf16.mxu0 %v9538_v57  ;;  %v9602_v57 = vld [vmem:[#allocation7 + $0x9a8] ss:$16 sps:$4 sm:$0xff]  }
 0x3d5   : > { %7536 = vmatpush2.bf16.msra.mxu1 %v9533_v17  ;;  %v9607_v17 = vld [vmem:[#allocation7 + $0xbac] ss:$16 sps:$4 sm:$0xff]  }
 0x3d6   : > { %7537 = vmatprep.subr.bf16.mxu1 %v9541_v18  ;;  %v9605_v18 = vld [vmem:[#allocation7 + $0xba8] ss:$16 sps:$4 sm:$0xff]  }
 0x3d7   : > { %7497 = vmatpush2.bf16.msra.mxu0 %v9536_v21  ;;  %v9610_v21 = vld [vmem:[#allocation7 + $0x98c] ss:$16 sps:$4 sm:$0xff]  }
 0x3d8   : > { %7548 = vmatprep.subr.bf16.mxu0 %v9544_v23  ;;  %v9608_v23 = vld [vmem:[#allocation7 + $0x988] ss:$16 sps:$4 sm:$0xff]  }
 0x3d9   : > { %7538 = vmatpush2.bf16.msra.mxu1 %v9539_v22  ;;  %v9613_v22 = vld [vmem:[#allocation7 + $0xb8c] ss:$16 sps:$4 sm:$0xff]  }
 0x3da   : > { %7589 = vmatprep.subr.bf16.mxu1 %v9547_v51  ;;  %v7254_v28 = vpop.f32.mrf.mxu0  ;;  %7499 = vmatmul.mubr.bf16.vlgmr.msra.gmra.mxu0 %v10151_v26  ;;  %v9611_v51 = vld [vmem:[#allocation7 + $0xb88] ss:$16 sps:$4 sm:$0xff]  }
 0x3db   : > { %v7255_v40 = vadd.f32 %v7254_v28, %v10208_v11  ;;  %7549 = vmatpush1.bf16.msra.mxu0 %v9542_v44  ;;  %7580 = vmatprep.mubr.bf16.mxu0 %v10155_v27  ;;  %v9559_v11 = vld [vmem:[#allocation7 + $0xaac] ss:$16 sps:$4 sm:$0xff]   ;;  %v9554_v27 = vld [vmem:[#allocation7 + $0x8a8] ss:$16 sps:$4 sm:$0xff]  }
 0x3dc   : > { %v7295_v30 = vpop.f32.mrf.mxu1  ;;  %7540 = vmatmul.mubr.bf16.vlgmr.msra.gmra.mxu1 %v10153_v2  ;;  %v7256_v35 = vpop.f32.mrf.mxu0  ;;  %7550 = vmatprep.subr.bf16.mxu0 %v9550_v43  ;;  %v9616_v44 = vld [vmem:[#allocation7 + $0x96c] ss:$16 sps:$4 sm:$0xff]   ;;  %v9614_v43 = vld [vmem:[#allocation7 + $0x968] ss:$16 sps:$4 sm:$0xff]  }
 0x3dd   : > { %7590 = vmatpush1.bf16.msra.mxu1 %v9545_v63  ;;  %v10218_v37 = vadd.f32 %v7295_v30, %v7255_v40  ;;  %7621 = vmatprep.mubr.bf16.mxu1 %v10158_v29  ;;  %v7257_v26 = vadd.f32 %v7256_v35, %v10212_v55  ;;  %v9565_v29 = vld [vmem:[#allocation7 + $0xa8c] ss:$16 sps:$4 sm:$0xff]   ;;  %v9560_v55 = vld [vmem:[#allocation7 + $0x888] ss:$16 sps:$4 sm:$0xff]  }
 0x3de   : > { %v7297_v38 = vpop.f32.mrf.mxu1  ;;  %v7258_v59 = vpop.f32.mrf.mxu0  ;;  %7591 = vmatprep.subr.bf16.mxu1 %v9553_v13  ;;  %v9619_v63 = vld [vmem:[#allocation7 + $0xb6c] ss:$16 sps:$4 sm:$0xff]   ;;  %v9617_v28 = vld [vmem:[#allocation7 + $0xb68] ss:$16 sps:$4 sm:$0xff]  }
 0x3df   : > { %v10222_v2 = vadd.f32 %v7297_v38, %v7257_v26  ;;  %7551 = vmatpush1.bf16.msra.mxu0 %v9548_v60  ;;  %v9622_v13 = vld [vmem:[#allocation7 + $0x94c] ss:$16 sps:$4 sm:$0xff]   ;;  %v9620_v30 = vld [vmem:[#allocation7 + $0x948] ss:$16 sps:$4 sm:$0xff]  }
 0x3e0   : > { %v7299_v16 = vpop.f32.mrf.mxu1  ;;  %v7259_v41 = vpop.f32.mrf.mxu0  ;;  %7552 = vmatprep.subr.bf16.mxu0 %v9556_v31  ;;  %v9625_v40 = vld [vmem:[#allocation7 + $0xb4c] ss:$16 sps:$4 sm:$0xff]   ;;  %v9623_v60 = vld [vmem:[#allocation7 + $0xb48] ss:$16 sps:$4 sm:$0xff]  }
 0x3e1   : > { %7592 = vmatpush1.bf16.msra.mxu1 %v9551_v3  ;;  %v9628_v35 = vld [vmem:[#allocation7 + $0x92c] ss:$16 sps:$4 sm:$0xff]   ;;  %v9626_v31 = vld [vmem:[#allocation7 + $0x928] ss:$16 sps:$4 sm:$0xff]  }
 0x3e2   : > { %v7300_v45 = vpop.f32.mrf.mxu1  ;;  %7593 = vmatprep.subr.bf16.mxu1 %v9559_v11  ;;  %v9631_v3 = vld [vmem:[#allocation7 + $0xb2c] ss:$16 sps:$4 sm:$0xff]   ;;  %v9629_v26 = vld [vmem:[#allocation7 + $0xb28] ss:$16 sps:$4 sm:$0xff]  }
 0x3e3   : > { %7553 = vmatpush1.bf16.msra.mxu0 %v9554_v27  ;;  %v9634_v38 = vld [vmem:[#allocation7 + $0x90c] ss:$16 sps:$4 sm:$0xff]   ;;  %v9632_v59 = vld [vmem:[#allocation7 + $0x908] ss:$16 sps:$4 sm:$0xff]  }
 0x3e4   : > { %7554 = vmatprep.subr.bf16.mxu0 %v9562_v42  ;;  %v9637_v11 = vld [vmem:[#allocation7 + $0xb0c] ss:$16 sps:$4 sm:$0xff]   ;;  %v9635_v16 = vld [vmem:[#allocation7 + $0xb08] ss:$16 sps:$4 sm:$0xff]  }
 0x3e5   : > { %7594 = vmatpush1.bf16.msra.mxu1 %v9557_v19  ;;  %v9640_v27 = vld [vmem:[#allocation7 + $0xcec] ss:$16 sps:$4 sm:$0xff]   ;;  %v9638_v19 = vld [vmem:[#allocation7 + $0xce8] ss:$16 sps:$4 sm:$0xff]  }
 0x3e6   : > { %7595 = vmatprep.subr.bf16.mxu1 %v9565_v29  ;;  %v9643_v41 = vld [vmem:[#allocation7 + $0xeec] ss:$16 sps:$4 sm:$0xff]   ;;  %v9641_v42 = vld [vmem:[#allocation7 + $0xee8] ss:$16 sps:$4 sm:$0xff]  }
 0x3e7   : > { %7555 = vmatpush1.bf16.msra.mxu0 %v9560_v55  ;;  %v9646_v45 = vld [vmem:[#allocation7 + $0xccc] ss:$16 sps:$4 sm:$0xff]  }
 0x3e8   : > { %7556 = vmatprep.subr.bf16.mxu0 %v9568_v47  ;;  %v9649_v55 = vld [vmem:[#allocation7 + $0xecc] ss:$16 sps:$4 sm:$0xff]  }
 0x3e9   : > { %7596 = vmatpush1.bf16.msra.mxu1 %v9563_v46 }
 0x3ea   : > { %7597 = vmatprep.subr.bf16.mxu1 %v9571_v48  ;;  %v9644_v48 = vld [vmem:[#allocation7 + $0xcc8] ss:$16 sps:$4 sm:$0xff]  }
 0x3eb   : > { %7557 = vmatpush1.bf16.msra.mxu0 %v9566_v33 }
 0x3ec   : > { %7558 = vmatprep.subr.bf16.mxu0 %v9574_v50  ;;  %v9652_v50 = vld [vmem:[#allocation7 + $0xcac] ss:$16 sps:$4 sm:$0xff]  }
 0x3ed   : > { %7598 = vmatpush1.bf16.msra.mxu1 %v9569_v49  ;;  %v9647_v49 = vld [vmem:[#allocation7 + $0xec8] ss:$16 sps:$4 sm:$0xff]  }
 0x3ee   : > { %7599 = vmatprep.subr.bf16.mxu1 %v9577_v52 }
 0x3ef   : > { %7559 = vmatpush1.bf16.msra.mxu0 %v9572_v36 }
 0x3f0   : > { %7560 = vmatprep.subr.bf16.mxu0 %v9580_v25 }
 0x3f1   : > { %7600 = vmatpush1.bf16.msra.mxu1 %v9575_v32 }
 0x3f2   : > { %7601 = vmatprep.subr.bf16.mxu1 %v9583_v56 }
 0x3f3   : > { %7561 = vmatpush1.bf16.msra.mxu0 %v9578_v24  ;;  %v9653_v24 = vld [vmem:[#allocation7 + $0xea8] ss:$16 sps:$4 sm:$0xff]  }
 0x3f4   : > { %7562 = vmatprep.subr.bf16.mxu0 %v9586_v0 }
 0x3f5   : > { %7602 = vmatpush1.bf16.msra.mxu1 %v9581_v61  ;;  %v9658_v61 = vld [vmem:[#allocation7 + $0xc8c] ss:$16 sps:$4 sm:$0xff]  }
 0x3f6   : > { %7603 = vmatprep.subr.bf16.mxu1 %v9589_v1  ;;  %v9659_v1 = vld [vmem:[#allocation7 + $0xe88] ss:$16 sps:$4 sm:$0xff]  }
 0x3f7   : > { %7563 = vmatpush1.bf16.msra.mxu0 %v9584_v4  ;;  %v9664_v4 = vld [vmem:[#allocation7 + $0xc6c] ss:$16 sps:$4 sm:$0xff]  }
 0x3f8   : > { %7564 = vmatprep.subr.bf16.mxu0 %v9592_v6  ;;  %v9662_v6 = vld [vmem:[#allocation7 + $0xc68] ss:$16 sps:$4 sm:$0xff]  }
 0x3f9   : > { %7604 = vmatpush1.bf16.msra.mxu1 %v9587_v5  ;;  %v9667_v5 = vld [vmem:[#allocation7 + $0xe6c] ss:$16 sps:$4 sm:$0xff]  }
 0x3fa   : > { %7605 = vmatprep.subr.bf16.mxu1 %v9595_v7  ;;  %v9665_v7 = vld [vmem:[#allocation7 + $0xe68] ss:$16 sps:$4 sm:$0xff]  }
 0x3fb   : > { %7565 = vmatpush2.bf16.msra.mxu0 %v9590_v8  ;;  %v9670_v8 = vld [vmem:[#allocation7 + $0xc4c] ss:$16 sps:$4 sm:$0xff]  }
 0x3fc   : > { %7566 = vmatprep.subr.bf16.mxu0 %v9598_v10  ;;  %v9668_v10 = vld [vmem:[#allocation7 + $0xc48] ss:$16 sps:$4 sm:$0xff]  }
 0x3fd   : > { %7606 = vmatpush2.bf16.msra.mxu1 %v9593_v9  ;;  %v9673_v9 = vld [vmem:[#allocation7 + $0xe4c] ss:$16 sps:$4 sm:$0xff]  }
 0x3fe   : > { %7607 = vmatprep.subr.bf16.mxu1 %v9601_v53  ;;  %v9671_v53 = vld [vmem:[#allocation7 + $0xe48] ss:$16 sps:$4 sm:$0xff]  }
 0x3ff   : > { %7567 = vmatpush2.bf16.msra.mxu0 %v9596_v12  ;;  %v9676_v12 = vld [vmem:[#allocation7 + $0xc2c] ss:$16 sps:$4 sm:$0xff]  }
 0x400   : > { %7568 = vmatprep.subr.bf16.mxu0 %v9604_v14  ;;  %v9674_v14 = vld [vmem:[#allocation7 + $0xc28] ss:$16 sps:$4 sm:$0xff]  }
 0x401   : > { %7608 = vmatpush2.bf16.msra.mxu1 %v9599_v39  ;;  %v9679_v39 = vld [vmem:[#allocation7 + $0xe2c] ss:$16 sps:$4 sm:$0xff]  }
 0x402   : > { %7609 = vmatprep.subr.bf16.mxu1 %v9607_v17  ;;  %v9677_v17 = vld [vmem:[#allocation7 + $0xe28] ss:$16 sps:$4 sm:$0xff]  }
 0x403   : > { %7569 = vmatpush2.bf16.msra.mxu0 %v9602_v57  ;;  %v9682_v57 = vld [vmem:[#allocation7 + $0xc0c] ss:$16 sps:$4 sm:$0xff]  }
 0x404   : > { %7570 = vmatprep.subr.bf16.mxu0 %v9610_v21  ;;  %v9680_v21 = vld [vmem:[#allocation7 + $0xc08] ss:$16 sps:$4 sm:$0xff]  }
 0x405   : > { %7610 = vmatpush2.bf16.msra.mxu1 %v9605_v18  ;;  %v9685_v18 = vld [vmem:[#allocation7 + $0xe0c] ss:$16 sps:$4 sm:$0xff]  }
 0x406   : > { %7611 = vmatprep.subr.bf16.mxu1 %v9613_v22  ;;  %v9683_v22 = vld [vmem:[#allocation7 + $0xe08] ss:$16 sps:$4 sm:$0xff]  }
 0x407   : > { %7571 = vmatpush2.bf16.msra.mxu0 %v9608_v23  ;;  %v9688_v23 = vld [vmem:[#allocation7 + $0xdec] ss:$16 sps:$4 sm:$0xff]  }
 0x408   : > { %7572 = vmatprep.subr.bf16.mxu0 %v9616_v44  ;;  %v9686_v44 = vld [vmem:[#allocation7 + $0xde8] ss:$16 sps:$4 sm:$0xff]  }
 0x409   : > { %7612 = vmatpush2.bf16.msra.mxu1 %v9611_v51  ;;  %v9691_v51 = vld [vmem:[#allocation7 + $0xfec] ss:$16 sps:$4 sm:$0xff]  }
 0x40a   : > { %7613 = vmatprep.subr.bf16.mxu1 %v9619_v63  ;;  %v9689_v63 = vld [vmem:[#allocation7 + $0xfe8] ss:$16 sps:$4 sm:$0xff]  }
 0x40b   : > { %7573 = vmatpush2.bf16.msra.mxu0 %v9614_v43  ;;  %v9694_v43 = vld [vmem:[#allocation7 + $0xdcc] ss:$16 sps:$4 sm:$0xff]  }
 0x40c   : > { %7574 = vmatprep.subr.bf16.mxu0 %v9622_v13  ;;  %v9692_v13 = vld [vmem:[#allocation7 + $0xdc8] ss:$16 sps:$4 sm:$0xff]  }
 0x40d   : > { %7614 = vmatpush2.bf16.msra.mxu1 %v9617_v28  ;;  %v9697_v28 = vld [vmem:[#allocation7 + $0xfcc] ss:$16 sps:$4 sm:$0xff]  }
 0x40e   : > { %7615 = vmatprep.subr.bf16.mxu1 %v9625_v40  ;;  %v9695_v40 = vld [vmem:[#allocation7 + $0xfc8] ss:$16 sps:$4 sm:$0xff]  }
 0x40f   : > { %7575 = vmatpush2.bf16.msra.mxu0 %v9620_v30  ;;  %v9700_v30 = vld [vmem:[#allocation7 + $0xdac] ss:$16 sps:$4 sm:$0xff]  }
 0x410   : > { %7576 = vmatprep.subr.bf16.mxu0 %v9628_v35  ;;  %v9698_v35 = vld [vmem:[#allocation7 + $0xda8] ss:$16 sps:$4 sm:$0xff]  }
 0x411   : > { %7616 = vmatpush2.bf16.msra.mxu1 %v9623_v60  ;;  %v9703_v60 = vld [vmem:[#allocation7 + $0xfac] ss:$16 sps:$4 sm:$0xff]  }
 0x412   : > { %7617 = vmatprep.subr.bf16.mxu1 %v9631_v3  ;;  %v9701_v3 = vld [vmem:[#allocation7 + $0xfa8] ss:$16 sps:$4 sm:$0xff]  }
 0x413   : > { %7577 = vmatpush2.bf16.msra.mxu0 %v9626_v31  ;;  %v9706_v31 = vld [vmem:[#allocation7 + $0xd8c] ss:$16 sps:$4 sm:$0xff]  }
 0x414   : > { %7578 = vmatprep.subr.bf16.mxu0 %v9634_v38  ;;  %v9704_v38 = vld [vmem:[#allocation7 + $0xd88] ss:$16 sps:$4 sm:$0xff]  }
 0x415   : > { %7618 = vmatpush2.bf16.msra.mxu1 %v9629_v26  ;;  %v9709_v26 = vld [vmem:[#allocation7 + $0xf8c] ss:$16 sps:$4 sm:$0xff]  }
 0x416   : > { %7619 = vmatprep.subr.bf16.mxu1 %v9637_v11  ;;  %v9707_v11 = vld [vmem:[#allocation7 + $0xf88] ss:$16 sps:$4 sm:$0xff]  }
 0x417   : > { %7579 = vmatpush2.bf16.msra.mxu0 %v9632_v59  ;;  %v9712_v59 = vld [vmem:[#allocation7 + $0xd6c] ss:$16 sps:$4 sm:$0xff]  }
 0x418   : > { %7630 = vmatprep.subr.bf16.mxu0 %v9640_v27  ;;  %v9710_v27 = vld [vmem:[#allocation7 + $0xd68] ss:$16 sps:$4 sm:$0xff]  }
 0x419   : > { %7620 = vmatpush2.bf16.msra.mxu1 %v9635_v16  ;;  %v9715_v16 = vld [vmem:[#allocation7 + $0xf6c] ss:$16 sps:$4 sm:$0xff]  }
 0x41a   : > { %7671 = vmatprep.subr.bf16.mxu1 %v9643_v41  ;;  %v7336_v29 = vpop.f32.mrf.mxu0  ;;  %7581 = vmatmul.mubr.bf16.vlgmr.msra.gmra.mxu0 %v10173_v54  ;;  %v9713_v41 = vld [vmem:[#allocation7 + $0xf68] ss:$16 sps:$4 sm:$0xff]  }
 0x41b   : > { %v7337_v46 = vadd.f32 %v7336_v29, %v10218_v37  ;;  %7631 = vmatpush1.bf16.msra.mxu0 %v9638_v19  ;;  %7662 = vmatprep.mubr.bf16.mxu0 %v10177_v15  ;;  %v9655_v37 = vld [vmem:[#allocation7 + $0xeac] ss:$16 sps:$4 sm:$0xff]   ;;  %v9650_v15 = vld [vmem:[#allocation7 + $0xca8] ss:$16 sps:$4 sm:$0xff]  }
 0x41c   : > { %v7377_v47 = vpop.f32.mrf.mxu1  ;;  %7622 = vmatmul.mubr.bf16.vlgmr.msra.gmra.mxu1 %v10175_v58  ;;  %v7338_v33 = vpop.f32.mrf.mxu0  ;;  %7632 = vmatprep.subr.bf16.mxu0 %v9646_v45  ;;  %v9718_v19 = vld [vmem:[#allocation7 + $0xd4c] ss:$16 sps:$4 sm:$0xff]   ;;  %v9716_v45 = vld [vmem:[#allocation7 + $0xd48] ss:$16 sps:$4 sm:$0xff]  }
 0x41d   : > { %7672 = vmatpush1.bf16.msra.mxu1 %v9641_v42  ;;  %v10228_v52 = vadd.f32 %v7377_v47, %v7337_v46  ;;  %7703 = vmatprep.mubr.bf16.mxu1 %v10186_v20  ;;  %v7339_v54 = vadd.f32 %v7338_v33, %v10222_v2  ;;  %v9661_v20 = vld [vmem:[#allocation7 + $0xe8c] ss:$16 sps:$4 sm:$0xff]   ;;  %v9656_v2 = vld [vmem:[#allocation7 + $0xc88] ss:$16 sps:$4 sm:$0xff]  }
 0x41e   : > { %v7379_v36 = vpop.f32.mrf.mxu1  ;;  %v7340_v32 = vpop.f32.mrf.mxu0  ;;  %7673 = vmatprep.subr.bf16.mxu1 %v9649_v55  ;;  %v9721_v42 = vld [vmem:[#allocation7 + $0xf4c] ss:$16 sps:$4 sm:$0xff]   ;;  %v9719_v29 = vld [vmem:[#allocation7 + $0xf48] ss:$16 sps:$4 sm:$0xff]  }
 0x41f   : > { %v10232_v58 = vadd.f32 %v7379_v36, %v7339_v54  ;;  %7633 = vmatpush1.bf16.msra.mxu0 %v9644_v48  ;;  %v9724_v55 = vld [vmem:[#allocation7 + $0xd2c] ss:$16 sps:$4 sm:$0xff]   ;;  %v9722_v47 = vld [vmem:[#allocation7 + $0xd28] ss:$16 sps:$4 sm:$0xff]  }
 0x420   : > { %v7381_v25 = vpop.f32.mrf.mxu1  ;;  %v7341_v56 = vpop.f32.mrf.mxu0  ;;  %7634 = vmatprep.subr.bf16.mxu0 %v9652_v50  ;;  %v9727_v46 = vld [vmem:[#allocation7 + $0xf2c] ss:$16 sps:$4 sm:$0xff]   ;;  %v9725_v48 = vld [vmem:[#allocation7 + $0xf28] ss:$16 sps:$4 sm:$0xff]  }
 0x421   : > { %7674 = vmatpush1.bf16.msra.mxu1 %v9647_v49  ;;  %v9730_v33 = vld [vmem:[#allocation7 + $0xd0c] ss:$16 sps:$4 sm:$0xff]   ;;  %v9728_v50 = vld [vmem:[#allocation7 + $0xd08] ss:$16 sps:$4 sm:$0xff]  }
 0x422   : > { %v7382_v0 = vpop.f32.mrf.mxu1  ;;  %7675 = vmatprep.subr.bf16.mxu1 %v9655_v37  ;;  %v9733_v49 = vld [vmem:[#allocation7 + $0xf0c] ss:$16 sps:$4 sm:$0xff]   ;;  %v9731_v54 = vld [vmem:[#allocation7 + $0xf08] ss:$16 sps:$4 sm:$0xff]  }
 0x423   : > { %7635 = vmatpush1.bf16.msra.mxu0 %v9650_v15 }
 0x424   : > { %7636 = vmatprep.subr.bf16.mxu0 %v9658_v61 }
 0x425   : > { %7676 = vmatpush1.bf16.msra.mxu1 %v9653_v24 }
 0x426   : > { %7677 = vmatprep.subr.bf16.mxu1 %v9661_v20 }
 0x427   : > { %7637 = vmatpush1.bf16.msra.mxu0 %v9656_v2 }
 0x428   : > { %7638 = vmatprep.subr.bf16.mxu0 %v9664_v4 }
 0x429   : > { %7678 = vmatpush1.bf16.msra.mxu1 %v9659_v1 }
 0x42a   : > { %7679 = vmatprep.subr.bf16.mxu1 %v9667_v5 }
 0x42b   : > { %7639 = vmatpush1.bf16.msra.mxu0 %v9662_v6 }
 0x42c   : > { %7640 = vmatprep.subr.bf16.mxu0 %v9670_v8 }
 0x42d   : > { %7680 = vmatpush1.bf16.msra.mxu1 %v9665_v7 }
 0x42e   : > { %7681 = vmatprep.subr.bf16.mxu1 %v9673_v9 }
 0x42f   : > { %7641 = vmatpush1.bf16.msra.mxu0 %v9668_v10 }
 0x430   : > { %7642 = vmatprep.subr.bf16.mxu0 %v9676_v12 }
 0x431   : > { %7682 = vmatpush1.bf16.msra.mxu1 %v9671_v53 }
 0x432   : > { %7683 = vmatprep.subr.bf16.mxu1 %v9679_v39 }
 0x433   : > { %7643 = vmatpush1.bf16.msra.mxu0 %v9674_v14 }
 0x434   : > { %7644 = vmatprep.subr.bf16.mxu0 %v9682_v57 }
 0x435   : > { %7684 = vmatpush1.bf16.msra.mxu1 %v9677_v17 }
 0x436   : > { %7685 = vmatprep.subr.bf16.mxu1 %v9685_v18 }
 0x437   : > { %7645 = vmatpush1.bf16.msra.mxu0 %v9680_v21 }
 0x438   : > { %7646 = vmatprep.subr.bf16.mxu0 %v9688_v23 }
 0x439   : > { %7686 = vmatpush1.bf16.msra.mxu1 %v9683_v22 }
 0x43a   : > { %7687 = vmatprep.subr.bf16.mxu1 %v9691_v51 }
 0x43b   : > { %7647 = vmatpush2.bf16.msra.mxu0 %v9686_v44 }
 0x43c   : > { %7648 = vmatprep.subr.bf16.mxu0 %v9694_v43  ;;  %v9736_v43 = vld [vmem:[%s10042_s6 + $0x8] sm:$0xff] }
 0x43d   : > { %7688 = vmatpush2.bf16.msra.mxu1 %v9689_v63 }
 0x43e   : > { %7689 = vmatprep.subr.bf16.mxu1 %v9697_v28  ;;  %v7713_v28 = vadd.f32 %v9736_v43, %v10232_v58  ;;  %v9739_v58 = vld [vmem:[%s10042_s6 + $0x18] sm:$0xff] }
 0x43f   : > { %7649 = vmatpush2.bf16.msra.mxu0 %v9692_v13 }
 0x440   : > { %7650 = vmatprep.subr.bf16.mxu0 %v9700_v30 }
 0x441   : > { %7690 = vmatpush2.bf16.msra.mxu1 %v9695_v40 }
 0x442   : > { %7691 = vmatprep.subr.bf16.mxu1 %v9703_v60 }
 0x443   : > { %7651 = vmatpush2.bf16.msra.mxu0 %v9698_v35  ;;  %v9737_v35 = vld [vmem:[%s10042_s6] sm:$0xff] }
 0x444   : > { %7652 = vmatprep.subr.bf16.mxu0 %v9706_v31 }
 0x445   : > { %7692 = vmatpush2.bf16.msra.mxu1 %v9701_v3  ;;  %v7712_v3 = vadd.f32 %v9737_v35, %v10228_v52 }
 0x446   : > { %7693 = vmatprep.subr.bf16.mxu1 %v9709_v26 }
 0x447   : > { %7653 = vmatpush2.bf16.msra.mxu0 %v9704_v38 }
 0x448   : > { %7654 = vmatprep.subr.bf16.mxu0 %v9712_v59  ;;  %v9738_v59 = vld [vmem:[%s10042_s6 + $0x10] sm:$0xff] }
 0x449   : > { %7694 = vmatpush2.bf16.msra.mxu1 %v9707_v11 }
 0x44a   : > { %7695 = vmatprep.subr.bf16.mxu1 %v9715_v16 }
 0x44b   : > { %7655 = vmatpush2.bf16.msra.mxu0 %v9710_v27 }
 0x44c   : > { %7656 = vmatprep.subr.bf16.mxu0 %v9718_v19  ;;  %v7716_v19 = vadd.f32 %v7713_v28, %v7712_v3 }
 0x44d   : > { %7696 = vmatpush2.bf16.msra.mxu1 %v9713_v41 }
 0x44e   : > { %7697 = vmatprep.subr.bf16.mxu1 %v9721_v42 }
 0x44f   : > { %7657 = vmatpush2.bf16.msra.mxu0 %v9716_v45 }
 0x450   : > { %7658 = vmatprep.subr.bf16.mxu0 %v9724_v55 }
 0x451   : > { %7698 = vmatpush2.bf16.msra.mxu1 %v9719_v29 }
 0x452   : > { %7699 = vmatprep.subr.bf16.mxu1 %v9727_v46 }
 0x453   : > { %7659 = vmatpush2.bf16.msra.mxu0 %v9722_v47 }
 0x454   : > { %7660 = vmatprep.subr.bf16.mxu0 %v9730_v33 }
 0x455   : > { %7700 = vmatpush2.bf16.msra.mxu1 %v9725_v48 }
 0x456   : > { %7701 = vmatprep.subr.bf16.mxu1 %v9733_v49 }
 0x457   : > { %7661 = vmatpush2.bf16.msra.mxu0 %v9728_v50 }
 0x459   : > { %7702 = vmatpush2.bf16.msra.mxu1 %v9731_v54 }
 0x45a   : > { %v7418_v36 = vpop.f32.mrf.mxu0  ;;  %7663 = vmatmul.mubr.bf16.vlgmr.msra.gmra.mxu0 %v10192_v34 }
 0x45c   : > { %v7459_v37 = vpop.f32.mrf.mxu1  ;;  %7704 = vmatmul.mubr.bf16.vlgmr.msra.gmra.mxu1 %v10194_v62  ;;  %v7420_v25 = vpop.f32.mrf.mxu0 }
 0x45d   : > { %v7460_v32 = vadd.f32 %v7459_v37, %v7418_v36 }
 0x45e   : > { %v7461_v15 = vpop.f32.mrf.mxu1  ;;  %v7422_v24 = vpop.f32.mrf.mxu0 }
 0x45f   : > { %v7462_v56 = vadd.f32 %v7461_v15, %v7420_v25 }
 0x460   : > { %v7463_v61 = vpop.f32.mrf.mxu1  ;;  %v7423_v0 = vpop.f32.mrf.mxu0 }
 0x462   : > { %v7464_v20 = vpop.f32.mrf.mxu1 }
 0x49a   : > { %v7500_v2 = vpop.f32.mrf.mxu0 }
 0x49b   : > { %v7501_v1 = vadd.f32 %v7500_v2, %v7460_v32 }
 0x49c   : > { %v7541_v4 = vpop.f32.mrf.mxu1  ;;  %v7502_v5 = vpop.f32.mrf.mxu0 }
 0x49d   : > { %v7542_v6 = vadd.f32 %v7541_v4, %v7501_v1  ;;  %v7503_v7 = vadd.f32 %v7502_v5, %v7462_v56 }
 0x49e   : > { %v7543_v8 = vpop.f32.mrf.mxu1  ;;  %v7504_v9 = vpop.f32.mrf.mxu0 }
 0x49f   : > { %v7544_v34 = vadd.f32 %v7543_v8, %v7503_v7 }
 0x4a0   : > { %v7545_v10 = vpop.f32.mrf.mxu1  ;;  %v7505_v62 = vpop.f32.mrf.mxu0 }
 0x4a2   : > { %v7546_v53 = vpop.f32.mrf.mxu1 }
 0x4da   : > { %v7582_v12 = vpop.f32.mrf.mxu0 }
 0x4db   : > { %v7583_v23 = vadd.f32 %v7582_v12, %v7542_v6 }
 0x4dc   : > { %v7623_v39 = vpop.f32.mrf.mxu1  ;;  %v7584_v14 = vpop.f32.mrf.mxu0 }
 0x4dd   : > { %v7585_v51 = vadd.f32 %v7584_v14, %v7544_v34  ;;  %v7624_v44 = vadd.f32 %v7623_v39, %v7583_v23 }
 0x4de   : > { %v7625_v17 = vpop.f32.mrf.mxu1  ;;  %v7586_v57 = vpop.f32.mrf.mxu0 }
 0x4df   : > { %v7626_v13 = vadd.f32 %v7625_v17, %v7585_v51 }
 0x4e0   : > { %v7627_v18 = vpop.f32.mrf.mxu1  ;;  %v7587_v21 = vpop.f32.mrf.mxu0 }
 0x4e2   : > { %v7628_v22 = vpop.f32.mrf.mxu1 }
 0x51a   : > { %v7664_v63 = vpop.f32.mrf.mxu0 }
 0x51b   : > { %v7665_v40 = vadd.f32 %v7664_v63, %v7624_v44 }
 0x51c   : > { %v7705_v30 = vpop.f32.mrf.mxu1  ;;  %v7666_v60 = vpop.f32.mrf.mxu0 }
 0x51d   : > { %v7706_v31 = vadd.f32 %v7705_v30, %v7665_v40  ;;  %v7667_v26 = vadd.f32 %v7666_v60, %v7626_v13 }
 0x51e   : > { %v7707_v38 = vpop.f32.mrf.mxu1  ;;  %v7668_v11 = vpop.f32.mrf.mxu0 }
 0x51f   : > { %v7714_v16 = vadd.f32 %v9738_v59, %v7706_v31  ;;  %v7708_v27 = vadd.f32 %v7707_v38, %v7667_v26 }
 0x520   : > { %v7709_v41 = vpop.f32.mrf.mxu1  ;;  %v7669_v42 = vpop.f32.mrf.mxu0 }
 0x521   : > { %v7715_v29 = vadd.f32 %v9739_v58, %v7708_v27  ;;  %v7717_v55 = vadd.f32 %v7716_v19, %v7714_v16 }
 0x522   : > { %v7710_v45 = vpop.f32.mrf.mxu1 }
 0x523   : > { %v7718_v46 = vadd.f32 %v7717_v55, %v7715_v29 }
 0x525   : > { %7719 = vadd.xlane.f32.xlu0 %v7718_v46 }
 0x5ae   : > { %v7720_v47 = vpop.xlane.xlu0 %7719 }
 0x5af   : > { %v7722_v48 = vmul.f32 0.001953125, %v7720_v47 }
 0x5b1   : > { %v7723_v33 = vsub.f32 %v7712_v3, %v7722_v48  ;;  %v7724_v52 = vsub.f32 %v7713_v28, %v7722_v48  ;;  %v7725_v49 = vsub.f32 %v7714_v16, %v7722_v48  ;;  %v7726_v50 = vsub.f32 %v7715_v29, %v7722_v48 }
 0x5b3   : > { %v7727_v54 = vmul.f32 %v7723_v33, %v7723_v33  ;;  %v7728_v36 = vmul.f32 %v7724_v52, %v7724_v52  ;;  %v7729_v37 = vmul.f32 %v7725_v49, %v7725_v49  ;;  %v7730_v25 = vmul.f32 %v7726_v50, %v7726_v50 }
 0x5b5   : > { %v7731_v32 = vadd.f32 %v7728_v36, %v7727_v54 }
 0x5b7   : > { %v7732_v15 = vadd.f32 %v7731_v32, %v7729_v37 }
 0x5b9   : > { %v7733_v56 = vadd.f32 %v7732_v15, %v7730_v25 }
 0x5bb   : > { %7734 = vadd.xlane.f32.xlu0 %v7733_v56 }
 0x644   : > { %v7735_v24 = vpop.xlane.xlu0 %7734 }
 0x645   : > { %v7736_v61 = vmul.f32 0.001953125, %v7735_v24 }
 0x647   : > { %v7737_v0 = vadd.f32 1e-05, %v7736_v61 }
 0x649   : > { %9734 = vrsqrt.f32 %v7737_v0 }
 0x656   : > { %v9735_v20 = vpop.eup %9734 }
 0x657   : > { %v7739_v2 = vmul.f32 %v9735_v20, %v7723_v33  ;;  %v7740_v1 = vmul.f32 %v9735_v20, %v7724_v52  ;;  %v7741_v4 = vmul.f32 %v9735_v20, %v7725_v49  ;;  %v7742_v5 = vmul.f32 %v9735_v20, %v7726_v50 }
 0x659   : > { %7743 = vst [vmem:[%s215_s20] sm:$0xff] %v7739_v2  ;;  %7744 = vst [vmem:[%s215_s20 + $0x8] sm:$0xff] %v7740_v1 }
 0x65a   : > { %7745 = vst [vmem:[%s215_s20 + $0x10] sm:$0xff] %v7741_v4  ;;  %7746 = vst [vmem:[%s215_s20 + $0x18] sm:$0xff] %v7742_v5 }
 0x65b   : > { %9833 = shalt.err (!%p9830_p9)
}
 0x65c   : > { %s9834_s23 = scalar_lea.hbm %s10248_s4, 512  ;;  %s9838_s25 = scalar_lea.hbm %s10294_s3, 1024 }
 0x65d   : > { %p9835_p13 = scmp.ne.s32.totalorder %s10248_s4, %s9834_s23  ;;  %p9839_p4 = scmp.lt.s32.totalorder %s10248_s4, %s10294_s3 }
 0x65e   : > { %p9840_p8 = scmp.lt.s32.totalorder %s9838_s25, %s9834_s23 }
 0x65f   : > { %p9836_p5 = pnand %p9835_p13, %p10310_p0 }
 0x660   : > { %p9841_p7 = por %p9840_p8, %p9839_p4 }
 0x661   : > { %p9837_p10 = pneg %p9836_p5 }
 0x663   : > { %p9842_p11 = pnand %p9841_p7, %p9837_p10 }
 0x665   : > { %9845 = shalt.err (!%p9842_p11)
}
 0x666   : > { %8905 = dma.vmem_to_hbm [thread:$0]  (%p10310_p0), %s10250_s27, 512, %s10248_s4, %s7748_s16  }
 0x667 PF: > { %s7774_s5 = sand.u32 1, %s9876_s12   ;;  %p10311_p1 = scmp.ne.s32.totalorder %s10300_s19, 0 }
 0x668   : > { %p10312_p2 = scmp.ge.s32.totalorder %s9888_s15, 2  ;;  %s7775_s6 = scalar_lea.sflag [#allocation4], %s7774_s5 }
 0x66a   : > { %p8919_p6 = pnand %p10312_p2, %p10311_p1 }
 0x66c   : > { %p8920_p12 = pneg %p8919_p6 }
 0x66e   : > { %9871 = dma.done.wait (%p8920_p12), %s7775_s6, 512  }
 0x66f   : > { %9873 = vsyncadd (%p8920_p12), %s7775_s6, 4294966784  ;;  %p17_p3 = scmp.ge.s32.totalorder %s9990_s9, 4   ;;  %s10313_s12 = smov %s9880_s13 }
 0x670   : > { %s10314_s13 = smov %s9884_s14  ;;  %s10315_s14 = smov %s9999_s17 }
 0x671   : > { %s10316_s15 = smov %s9990_s9  ;;  %19 = sbr.rel (!%p17_p3) target bundleno = 6 (0x6), region = 85 }
 0x676   :  { %7780 = vsyncpa [#allocation3], 1 }
 0x677   :  { %7782 = vsyncpa [#allocation3 + $0x1], 1 }
 0x678   :  { %7783 = vsyncpa [#allocation6], 1 }
 0x679   :  { %7784 = vsyncpa [#allocation4], 1 }
 0x67a   :  { %7786 = vsyncpa [#allocation4 + $0x1], 1 }

// kernel: tpu_custom_call.1
= control target key start
LH: loop header
LB: loop body
LE: loop exit
PB: predicated region body
PF: predicated region fallthrough
CT: control target
= control target key end

     0   :  { %8 = vsyncpa [#allocation3], 0  ;;  %s10291_s0 = inlined_call_operand.hbm [shape: f32[16,512], index: 0, kind: input, shape index: {}]   ;;  %s10292_s1 = inlined_call_operand.hbm [shape: bf16[512,2048], index: 1, kind: input, shape index: {}]   ;;  %s10293_s2 = inlined_call_operand.hbm [shape: bf16[2048,512], index: 2, kind: input, shape index: {}]   ;;  %s10294_s3 = inlined_call_operand.hbm [shape: f32[16,512], index: 3, kind: output, shape index: {}]  }
   0x1   :  { %10 = vsyncpa [#allocation3 + $0x1], 0 }
   0x2   :  { %11 = vsyncpa [#allocation6], 0 }
   0x3   :  { %12 = vsyncpa [#allocation4], 0 }
   0x4   :  { %14 = vsyncpa [#allocation4 + $0x1], 0  ;;  %s9918_s12 = smov 0   ;;  %s9920_s13 = smov 0  }
   0x5   :  { %s9922_s14 = smov 0   ;;  %s9924_s15 = smov 0  }
   0x6 LB: > { %s9939_s16 = sadd.s32 4294967295, %s9888_s15   ;;  %s7851_s17 = sadd.s32 4294967294, %s9888_s15   ;;  %s9888_s15 = sphi %s9924_s15, %s10316_s15   ;;  %s9884_s14 = sphi %s9922_s14, %s10315_s14   ;;  %s9880_s13 = sphi %s9920_s13, %s10314_s13   ;;  %s9876_s12 = sphi %s9918_s12, %s10313_s12  }
   0x7   : > { %p40_p0 = scmp.ne.s32.totalorder %s9880_s13, %s9876_s12  ;;  %p10295_p1 = scmp.eq.s32.totalorder %s9939_s16, 0 }
   0x8   : > { %p112_p3 = scmp.eq.s32.totalorder %s7851_s17, 1  ;;  %p7852_p5 = scmp.ge.s32.totalorder %s9888_s15, 1 }
   0x9   : > { %p9948_p4 = por %p10295_p1, %p40_p0  ;;  %p119_p7 = scmp.lt.s32.totalorder %s9888_s15, 3 }
   0xa   : > { %p9953_p6 = por %p112_p3, %p40_p0  ;;  %s9890_s21 = smov [#allocation5]  }
   0xb   : > { %s10299_s18 = scalar_select %p9948_p4, 1, 0 }
   0xc   : > { %s10300_s19 = scalar_select %p9953_p6, 1, 0 }
   0xd   : > { %p9958_p8 = pnand %p7852_p5, %p119_p7  ;;  %s131_s22 = sshll.u32 %s9890_s21, 4  ;;  %s132_s22 = int_to_ptr.vmem [resolvable:$true] %s131_s22 }
   0xe   : > { %s9891_s24 = smov [#allocation7]   ;;  %s9751_s26 = scalar_lea.vmem %s132_s22, 65536 }
   0xf   : > { %s10301_s20 = scalar_select %p9958_p8, 1, 0 }
  0x10   : > { %p8907_p9 = pneg %p9958_p8  ;;  %s144_s25 = sshll.u32 %s9891_s24, 4  ;;  %s145_s25 = int_to_ptr.vmem [resolvable:$true] %s144_s25 }
  0x11   : > { %p9752_p13 = scmp.ne.s32.totalorder %s132_s22, %s9751_s26  ;;  %p9759_p5 = scmp.lt.s32.totalorder %s132_s22, %s132_s22 }
  0x12   : > { %p9967_p11 = pnand %p8907_p9, %p10295_p1  ;;  %p9760_p7 = scmp.lt.s32.totalorder %s9751_s26, %s9751_s26 }
  0x14   : > { %p9742_p12 = pneg %p9967_p11  ;;  %p9761_p10 = por %p9760_p7, %p9759_p5 }
  0x16   : > { %p9754_p0 = pnand %p9752_p13, %p9742_p12 }
  0x18   : > { %p9755_p3 = pneg %p9754_p0 }
  0x1a   : > { %p9762_p9 = pnand %p9761_p10, %p9755_p3 }
  0x1c   : > { %9765 = shalt.err (!%p9762_p9)
}
  0x1d   : > { %s9892_s27 = smov 1024   ;;  %s9893_s28 = smov 64  }
  0x1e   : > { %8910 = dma.hbm_to_vmem [thread:$0]  (!%p9967_p11), %s10292_s1, 65536, %s132_s22, [#allocation6], %s9892_s27, %s9892_s27, %s9893_s28  }
  0x1f   : > { %s9777_s4 = scalar_lea.vmem %s145_s25, 65536  ;;  %p9785_p2 = scmp.lt.s32.totalorder %s145_s25, %s145_s25 }
  0x20   : > { %p9778_p1 = scmp.ne.s32.totalorder %s145_s25, %s9777_s4  ;;  %p9786_p6 = scmp.lt.s32.totalorder %s9777_s4, %s9777_s4 }
  0x22   : > { %p9780_p13 = pnand %p9778_p1, %p9742_p12  ;;  %p9787_p5 = por %p9786_p6, %p9785_p2 }
  0x24   : > { %p9781_p0 = pneg %p9780_p13 }
  0x26   : > { %p9788_p10 = pnand %p9787_p5, %p9781_p0 }
  0x28   : > { %9791 = shalt.err (!%p9788_p10)
}
  0x29   : > { %s9894_s5 = smov 256   ;;  %s9895_s6 = smov 16  }
  0x2a   : > { %8913 = dma.hbm_to_vmem [thread:$0]  (!%p9967_p11), %s10293_s2, 65536, %s145_s25, [#allocation6], %s9894_s5, %s9894_s5, %s9895_s6  }
  0x2b   : > { %s9990_s9 = sadd.s32 1, %s9888_s15   ;;  %s27_s11 = sadd.s32 1, %s9884_s14 }
  0x2c   : > { %s24_s10 = ssub.s32 %s9888_s15, %s9990_s9  ;;  %p34_p2 = scmp.ne.s32.totalorder %s9884_s14, %s9880_s13 }
  0x2d   : > { %p25_p1 = scmp.eq.s32.totalorder %s24_s10, 0  ;;  %p35_p6 = scmp.eq.s32.totalorder %s9888_s15, 0 }
  0x2e   : > { %p10303_p3 = scmp.eq.s32.totalorder %s9939_s16, 1  ;;  %p8924_p9 = scmp.lt.s32.totalorder %s9888_s15, 2 }
  0x2f   : > { %s9999_s17 = scalar_select %p25_p1, %s9884_s14, %s27_s11  }
  0x30   : > { %p36_p12 = por %p35_p6, %p34_p2  ;;  %p10003_p7 = por %p10303_p3, %p34_p2 }
  0x31   : > { %s158_s22 = sand.u32 1, %s9884_s14   ;;  %s8893_s24 = sshll.u32 %s9888_s15, 9 }
  0x32   : > { %s10304_s21 = scalar_select %p10003_p7, 1, 0 }
  0x33   : > { %s7856_s23 = sshll.u32 %s158_s22, 5  ;;  %s10013_s27 = scalar_lea.hbm %s10291_s0, %s8893_s24 }
  0x34   : > { %s162_s28 = scalar_lea.vmem [#allocation2], %s7856_s23  ;;  %p10015_p11 = pnand %p8924_p9, %p36_p12 }
  0x35   : > { %s170_s29 = sshll.u32 %s162_s28, 4  ;;  %s159_s4 = scalar_lea.sflag [#allocation3], %s158_s22  ;;  %s171_s29 = int_to_ptr.vmem [resolvable:$true] %s170_s29 }
  0x36   : > { %s9792_s5 = scalar_lea.hbm %s10013_s27, 512  ;;  %p9794_p0 = pneg %p10015_p11 }
  0x37   : > { %p9793_p13 = scmp.ne.s32.totalorder %s10013_s27, %s9792_s5  ;;  %s9797_s8 = scalar_lea.hbm %s10291_s0, 1024 }
  0x38   : > { %p9798_p1 = scmp.lt.s32.totalorder %s10013_s27, %s10291_s0  ;;  %p9799_p2 = scmp.lt.s32.totalorder %s9797_s8, %s9792_s5 }
  0x39   : > { %p9795_p5 = pnand %p9794_p0, %p9793_p13 }
  0x3a   : > { %p9800_p6 = por %p9799_p2, %p9798_p1 }
  0x3b   : > { %p9796_p10 = pneg %p9795_p5 }
  0x3d   : > { %p9801_p12 = pnand %p9800_p6, %p9796_p10 }
  0x3f   : > { %9804 = shalt.err (!%p9801_p12)
}
  0x40   : > { %s9805_s23 = scalar_lea.vmem %s171_s29, 512  ;;  %s9896_s22 = smov [#allocation2]  }
  0x41   : > { %p9806_p3 = scmp.ne.s32.totalorder %s171_s29, %s9805_s23  ;;  %s9810_s24 = sshll.u32 %s9896_s22, 4  ;;  %s9811_s24 = int_to_ptr.vmem [resolvable:$false] %s9810_s24 }
  0x42   : > { %s9812_s25 = scalar_lea.vmem %s9811_s24, 1024  ;;  %p9813_p13 = scmp.lt.s32.totalorder %s171_s29, %s9811_s24 }
  0x43   : > { %p9808_p9 = pnand %p9806_p3, %p9794_p0  ;;  %p9814_p5 = scmp.lt.s32.totalorder %s9812_s25, %s9805_s23 }
  0x45   : > { %p9809_p7 = pneg %p9808_p9  ;;  %p9815_p4 = por %p9814_p5, %p9813_p13 }
  0x47   : > { %p9816_p8 = pnand %p9815_p4, %p9809_p7 }
  0x49   : > { %9819 = shalt.err (!%p9816_p8)
}
  0x4a   : > { %8917 = dma.hbm_to_vmem [thread:$0]  (!%p10015_p11), %s10013_s27, 512, %s171_s29, %s159_s4  }
  0x4b   : > { %p10306_p10 = scmp.ne.s32.totalorder %s10301_s20, 0 }
  0x4c   : > { %s10036_s26 = sand.u32 (!%p10306_p10), 1, %s9880_s13   ;;  %p10307_p4 = scmp.ne.s32.totalorder (!%p10306_p10), %s10299_s18, 0 }
  0x4d   : > { %179 = sbr.rel (%p10306_p10) target bundleno = 1639 (0x667), region = 32  ;;  %s7860_s28 = sshll.u32 (!%p10306_p10), %s10036_s26, 5 }
  0x4e   : > { %s182_s5 = scalar_lea.sflag (!%p10306_p10), [#allocation3], %s10036_s26  ;;  %s10042_s6 = scalar_lea.vmem (!%p10306_p10), [#allocation2], %s7860_s28 }
  0x52   : > { %9863 = dma.done.wait (%p10307_p4), %s182_s5, 512  }
  0x53   : > { %9865 = vsyncadd (%p10307_p4), %s182_s5, 4294966784  ;;  %p10308_p8 = scmp.eq.s32.totalorder %s9939_s16, 0 }
  0x55   : > { %9867 = dma.done.wait (%p10308_p8), [#allocation6], 131072   ;;  %p10309_p7 = pmov %p10308_p8 }
  0x56   : > { %v336_v0 = vld [vmem:[#allocation5 + $0x380] sm:$0xff]  ;;  %v217_v53 = vld [vmem:[%s10042_s6 + $0x8] sm:$0xff]  ;;  %v219_v54 = vld [vmem:[%s10042_s6 + $0x18] sm:$0xff]  ;;  %s8894_s18 = sshll.u32 %s9939_s16, 9  ;;  %s215_s20 = scalar_lea.vmem [#allocation8], %s7860_s28 }
  0x57   : > { %9869 = vsyncadd (%p10309_p7), [#allocation6], 4294836224  ;;  %v344_v1 = vld [vmem:[#allocation5 + $0x3c0] sm:$0xff]  ;;  %v10054_v58 = vpack.c.bf16 %v217_v53, %v217_v53  ;;  %v10056_v59 = vpack.c.bf16 %v219_v54, %v219_v54  ;;  %s7762_s27 = sshll.u32 %s215_s20, 4  ;;  %s10248_s4 = scalar_lea.hbm %s10294_s3, %s8894_s18  ;;  %s10250_s27 = int_to_ptr.vmem [resolvable:$true] %s7762_s27 }
  0x58   : > { %v592_v2 = vld [vmem:[#allocation5 + $0xb80] sm:$0xff]  ;;  %v7977_v3 = vcombine.high %v336_v0, %v344_v1  ;;  %v7976_v5 = vcombine.low %v336_v0, %v344_v1  ;;  %s7748_s16 = scalar_lea.sflag [#allocation4], %s10036_s26  ;;  %s9820_s7 = scalar_lea.vmem %s10250_s27, 512 }
  0x59   : > { %v600_v4 = vld [vmem:[#allocation5 + $0xbc0] sm:$0xff]  ;;  %3328 = vmatprep.mubr.bf16.mxu0 %v10054_v58  ;;  %3369 = vmatprep.mubr.bf16.mxu1 %v10056_v59  ;;  %p9821_p11 = scmp.ne.s32.totalorder %s10250_s27, %s9820_s7  ;;  %p10310_p0 = scmp.ne.s32.totalorder %s10304_s21, 0 }
  0x5a   : > { %v320_v6 = vld [vmem:[#allocation5 + $0x300] sm:$0xff]  ;;  %v8233_v8 = vcombine.high %v592_v2, %v600_v4  ;;  %v8232_v9 = vcombine.low %v592_v2, %v600_v4  ;;  %3296 = vmatprep.subr.bf16.mxu0 %v7977_v3  ;;  %s9897_s8 = smov [#allocation8]  }
  0x5b   : > { %v328_v7 = vld [vmem:[#allocation5 + $0x340] sm:$0xff]  ;;  %3297 = vmatpush1.bf16.msra.mxu0 %v7976_v5  ;;  %p9822_p1 = pnand %p9821_p11, %p10310_p0  ;;  %s9824_s10 = sshll.u32 %s9897_s8, 4  ;;  %s9825_s10 = int_to_ptr.vmem [resolvable:$false] %s9824_s10 }
  0x5c   : > { %v7961_v10 = vcombine.high %v320_v6, %v328_v7  ;;  %v576_v11 = vld [vmem:[#allocation5 + $0xb00] sm:$0xff]  ;;  %3337 = vmatprep.subr.bf16.mxu1 %v8233_v8  ;;  %v7960_v18 = vcombine.low %v320_v6, %v328_v7  ;;  %s9826_s11 = scalar_lea.vmem %s9825_s10, 1024  ;;  %p9827_p6 = scmp.lt.s32.totalorder %s10250_s27, %s9825_s10 }
  0x5d   : > { %v584_v12 = vld [vmem:[#allocation5 + $0xb40] sm:$0xff]  ;;  %3338 = vmatpush1.bf16.msra.mxu1 %v8232_v9  ;;  %p9823_p2 = pneg %p9822_p1  ;;  %p9828_p12 = scmp.lt.s32.totalorder %s9826_s11, %s9820_s7 }
  0x5e   : > { %v304_v13 = vld [vmem:[#allocation5 + $0x280] sm:$0xff]  ;;  %v8217_v14 = vcombine.high %v576_v11, %v584_v12  ;;  %3298 = vmatprep.subr.bf16.mxu0 %v7961_v10  ;;  %v8216_v19 = vcombine.low %v576_v11, %v584_v12 }
  0x5f   : > { %v312_v15 = vld [vmem:[#allocation5 + $0x2c0] sm:$0xff]  ;;  %3299 = vmatpush1.bf16.msra.mxu0 %v7960_v18  ;;  %p9829_p3 = por %p9828_p12, %p9827_p6 }
  0x60   : > { %v560_v16 = vld [vmem:[#allocation5 + $0xa80] sm:$0xff]  ;;  %v7945_v20 = vcombine.high %v304_v13, %v312_v15  ;;  %3339 = vmatprep.subr.bf16.mxu1 %v8217_v14  ;;  %v7944_v26 = vcombine.low %v304_v13, %v312_v15 }
  0x61   : > { %v568_v17 = vld [vmem:[#allocation5 + $0xac0] sm:$0xff]  ;;  %3340 = vmatpush1.bf16.msra.mxu1 %v8216_v19  ;;  %p9830_p9 = pnand %p9829_p3, %p9823_p2 }
  0x62   : > { %v8201_v21 = vcombine.high %v560_v16, %v568_v17  ;;  %v288_v22 = vld [vmem:[#allocation5 + $0x200] sm:$0xff]  ;;  %3300 = vmatprep.subr.bf16.mxu0 %v7945_v20  ;;  %v8200_v27 = vcombine.low %v560_v16, %v568_v17 }
  0x63   : > { %v296_v23 = vld [vmem:[#allocation5 + $0x240] sm:$0xff]  ;;  %3301 = vmatpush1.bf16.msra.mxu0 %v7944_v26 }
  0x64   : > { %v544_v24 = vld [vmem:[#allocation5 + $0xa00] sm:$0xff]  ;;  %v7929_v28 = vcombine.high %v288_v22, %v296_v23  ;;  %3341 = vmatprep.subr.bf16.mxu1 %v8201_v21  ;;  %v7928_v34 = vcombine.low %v288_v22, %v296_v23 }
  0x65   : > { %v552_v25 = vld [vmem:[#allocation5 + $0xa40] sm:$0xff]  ;;  %3342 = vmatpush1.bf16.msra.mxu1 %v8200_v27 }
  0x66   : > { %v8185_v29 = vcombine.high %v544_v24, %v552_v25  ;;  %v272_v30 = vld [vmem:[#allocation5 + $0x180] sm:$0xff]  ;;  %3302 = vmatprep.subr.bf16.mxu0 %v7929_v28  ;;  %v8184_v35 = vcombine.low %v544_v24, %v552_v25 }
  0x67   : > { %v280_v31 = vld [vmem:[#allocation5 + $0x1c0] sm:$0xff]  ;;  %3303 = vmatpush1.bf16.msra.mxu0 %v7928_v34 }
  0x68   : > { %v528_v32 = vld [vmem:[#allocation5 + $0x980] sm:$0xff]  ;;  %v7913_v36 = vcombine.high %v272_v30, %v280_v31  ;;  %3343 = vmatprep.subr.bf16.mxu1 %v8185_v29  ;;  %v7912_v42 = vcombine.low %v272_v30, %v280_v31 }
  0x69   : > { %v536_v33 = vld [vmem:[#allocation5 + $0x9c0] sm:$0xff]  ;;  %3344 = vmatpush1.bf16.msra.mxu1 %v8184_v35 }
  0x6a   : > { %v8169_v37 = vcombine.high %v528_v32, %v536_v33  ;;  %v256_v38 = vld [vmem:[#allocation5 + $0x100] sm:$0xff]  ;;  %3304 = vmatprep.subr.bf16.mxu0 %v7913_v36  ;;  %v8168_v43 = vcombine.low %v528_v32, %v536_v33 }
  0x6b   : > { %v264_v39 = vld [vmem:[#allocation5 + $0x140] sm:$0xff]  ;;  %3305 = vmatpush1.bf16.msra.mxu0 %v7912_v42 }
  0x6c   : > { %v512_v40 = vld [vmem:[#allocation5 + $0x900] sm:$0xff]  ;;  %v7897_v44 = vcombine.high %v256_v38, %v264_v39  ;;  %3345 = vmatprep.subr.bf16.mxu1 %v8169_v37  ;;  %v7896_v50 = vcombine.low %v256_v38, %v264_v39 }
  0x6d   : > { %v520_v41 = vld [vmem:[#allocation5 + $0x940] sm:$0xff]  ;;  %3346 = vmatpush1.bf16.msra.mxu1 %v8168_v43 }
  0x6e   : > { %v8153_v45 = vcombine.high %v512_v40, %v520_v41  ;;  %v240_v46 = vld [vmem:[#allocation5 + $0x80] sm:$0xff]  ;;  %3306 = vmatprep.subr.bf16.mxu0 %v7897_v44  ;;  %v8152_v51 = vcombine.low %v512_v40, %v520_v41 }
  0x6f   : > { %v248_v47 = vld [vmem:[#allocation5 + $0xc0] sm:$0xff]  ;;  %3307 = vmatpush1.bf16.msra.mxu0 %v7896_v50 }
  0x70   : > { %v496_v48 = vld [vmem:[#allocation5 + $0x880] sm:$0xff]  ;;  %v7881_v52 = vcombine.high %v240_v46, %v248_v47  ;;  %3347 = vmatprep.subr.bf16.mxu1 %v8153_v45  ;;  %v7880_v62 = vcombine.low %v240_v46, %v248_v47 }
  0x71   : > { %v504_v49 = vld [vmem:[#allocation5 + $0x8c0] sm:$0xff]  ;;  %3348 = vmatpush1.bf16.msra.mxu1 %v8152_v51 }
  0x72   : > { %v8137_v55 = vcombine.high %v496_v48, %v504_v49  ;;  %v224_v56 = vld [vmem:[#allocation5] sm:$0xff]  ;;  %3308 = vmatprep.subr.bf16.mxu0 %v7881_v52  ;;  %v8136_v63 = vcombine.low %v496_v48, %v504_v49 }
  0x73   : > { %v232_v57 = vld [vmem:[#allocation5 + $0x40] sm:$0xff]  ;;  %3309 = vmatpush1.bf16.msra.mxu0 %v7880_v62 }
  0x74   : > { %v480_v60 = vld [vmem:[#allocation5 + $0x800] sm:$0xff]  ;;  %v7865_v0 = vcombine.high %v224_v56, %v232_v57  ;;  %3349 = vmatprep.subr.bf16.mxu1 %v8137_v55  ;;  %v7864_v6 = vcombine.low %v224_v56, %v232_v57 }
  0x75   : > { %v488_v61 = vld [vmem:[#allocation5 + $0x840] sm:$0xff]  ;;  %3350 = vmatpush1.bf16.msra.mxu1 %v8136_v63 }
  0x76   : > { %v8121_v1 = vcombine.high %v480_v60, %v488_v61  ;;  %v464_v2 = vld [vmem:[#allocation5 + $0x780] sm:$0xff]  ;;  %3310 = vmatprep.subr.bf16.mxu0 %v7865_v0  ;;  %v8120_v7 = vcombine.low %v480_v60, %v488_v61 }
  0x77   : > { %v472_v3 = vld [vmem:[#allocation5 + $0x7c0] sm:$0xff]  ;;  %3311 = vmatpush1.bf16.msra.mxu0 %v7864_v6  ;;  %v593_v6 = vld [vmem:[#allocation5 + $0xb88] sm:$0xff] }
  0x78   : > { %v720_v4 = vld [vmem:[#allocation5 + $0xf80] sm:$0xff]  ;;  %v8105_v8 = vcombine.high %v464_v2, %v472_v3  ;;  %3351 = vmatprep.subr.bf16.mxu1 %v8121_v1  ;;  %v8104_v14 = vcombine.low %v464_v2, %v472_v3 }
  0x79   : > { %v728_v5 = vld [vmem:[#allocation5 + $0xfc0] sm:$0xff]  ;;  %3352 = vmatpush1.bf16.msra.mxu1 %v8120_v7  ;;  %v601_v7 = vld [vmem:[#allocation5 + $0xbc8] sm:$0xff] }
  0x7a   : > { %v8361_v9 = vcombine.high %v720_v4, %v728_v5  ;;  %v448_v10 = vld [vmem:[#allocation5 + $0x700] sm:$0xff]  ;;  %3312 = vmatprep.subr.bf16.mxu0 %v8105_v8  ;;  %v8360_v15 = vcombine.low %v720_v4, %v728_v5  ;;  %v337_v4 = vld [vmem:[#allocation5 + $0x388] sm:$0xff] }
  0x7b   : > { %v456_v11 = vld [vmem:[#allocation5 + $0x740] sm:$0xff]  ;;  %3313 = vmatpush2.bf16.msra.mxu0 %v8104_v14  ;;  %v345_v5 = vld [vmem:[#allocation5 + $0x3c8] sm:$0xff] }
  0x7c   : > { %v704_v12 = vld [vmem:[#allocation5 + $0xf00] sm:$0xff]  ;;  %v8089_v16 = vcombine.high %v448_v10, %v456_v11  ;;  %3353 = vmatprep.subr.bf16.mxu1 %v8361_v9  ;;  %v8088_v22 = vcombine.low %v448_v10, %v456_v11  ;;  %v218_v11 = vld [vmem:[%s10042_s6 + $0x10] sm:$0xff]  ;;  %v321_v14 = vld [vmem:[#allocation5 + $0x308] sm:$0xff] }
  0x7d   : > { %v712_v13 = vld [vmem:[#allocation5 + $0xf40] sm:$0xff]  ;;  %3354 = vmatpush2.bf16.msra.mxu1 %v8360_v15  ;;  %v329_v15 = vld [vmem:[#allocation5 + $0x348] sm:$0xff] }
  0x7e   : > { %v8345_v17 = vcombine.high %v704_v12, %v712_v13  ;;  %v432_v18 = vld [vmem:[#allocation5 + $0x680] sm:$0xff]  ;;  %3314 = vmatprep.subr.bf16.mxu0 %v8089_v16  ;;  %v8344_v23 = vcombine.low %v704_v12, %v712_v13  ;;  %v7979_v12 = vcombine.high %v337_v4, %v345_v5  ;;  %v8235_v13 = vcombine.high %v593_v6, %v601_v7 }
  0x7f   : > { %v440_v19 = vld [vmem:[#allocation5 + $0x6c0] sm:$0xff]  ;;  %3315 = vmatpush2.bf16.msra.mxu0 %v8088_v22  ;;  %v7963_v22 = vcombine.high %v321_v14, %v329_v15 }
  0x80   : > { %v688_v20 = vld [vmem:[#allocation5 + $0xe80] sm:$0xff]  ;;  %v8073_v24 = vcombine.high %v432_v18, %v440_v19  ;;  %3355 = vmatprep.subr.bf16.mxu1 %v8345_v17  ;;  %v8072_v30 = vcombine.low %v432_v18, %v440_v19  ;;  %v577_v17 = vld [vmem:[#allocation5 + $0xb08] sm:$0xff]  ;;  %v10064_v19 = vpack.c.bf16 %v218_v11, %v218_v11 }
  0x81   : > { %v696_v21 = vld [vmem:[#allocation5 + $0xec0] sm:$0xff]  ;;  %3356 = vmatpush2.bf16.msra.mxu1 %v8344_v23  ;;  %v585_v18 = vld [vmem:[#allocation5 + $0xb48] sm:$0xff] }
  0x82   : > { %v8329_v25 = vcombine.high %v688_v20, %v696_v21  ;;  %v416_v26 = vld [vmem:[#allocation5 + $0x600] sm:$0xff]  ;;  %3316 = vmatprep.subr.bf16.mxu0 %v8073_v24  ;;  %v8328_v31 = vcombine.low %v688_v20, %v696_v21  ;;  %v7978_v20 = vcombine.low %v337_v4, %v345_v5  ;;  %v8234_v21 = vcombine.low %v593_v6, %v601_v7  ;;  %v305_v23 = vld [vmem:[#allocation5 + $0x288] sm:$0xff] }
  0x83   : > { %v424_v27 = vld [vmem:[#allocation5 + $0x640] sm:$0xff]  ;;  %3317 = vmatpush2.bf16.msra.mxu0 %v8072_v30  ;;  %v313_v24 = vld [vmem:[#allocation5 + $0x2c8] sm:$0xff] }
  0x84   : > { %v672_v28 = vld [vmem:[#allocation5 + $0xe00] sm:$0xff]  ;;  %v8057_v32 = vcombine.high %v416_v26, %v424_v27  ;;  %3357 = vmatprep.subr.bf16.mxu1 %v8329_v25  ;;  %v8056_v38 = vcombine.low %v416_v26, %v424_v27  ;;  %v8219_v25 = vcombine.high %v577_v17, %v585_v18  ;;  %v561_v26 = vld [vmem:[#allocation5 + $0xa88] sm:$0xff]  ;;  %v7947_v30 = vcombine.high %v305_v23, %v313_v24 }
  0x85   : > { %v680_v29 = vld [vmem:[#allocation5 + $0xe40] sm:$0xff]  ;;  %3358 = vmatpush2.bf16.msra.mxu1 %v8328_v31  ;;  %v569_v27 = vld [vmem:[#allocation5 + $0xac8] sm:$0xff] }
  0x86   : > { %v8313_v33 = vcombine.high %v672_v28, %v680_v29  ;;  %v400_v34 = vld [vmem:[#allocation5 + $0x580] sm:$0xff]  ;;  %3318 = vmatprep.subr.bf16.mxu0 %v8057_v32  ;;  %v8312_v39 = vcombine.low %v672_v28, %v680_v29  ;;  %v7962_v28 = vcombine.low %v321_v14, %v329_v15  ;;  %v8218_v29 = vcombine.low %v577_v17, %v585_v18  ;;  %v289_v31 = vld [vmem:[#allocation5 + $0x208] sm:$0xff] }
  0x87   : > { %v408_v35 = vld [vmem:[#allocation5 + $0x5c0] sm:$0xff]  ;;  %3319 = vmatpush2.bf16.msra.mxu0 %v8056_v38  ;;  %v297_v32 = vld [vmem:[#allocation5 + $0x248] sm:$0xff] }
  0x88   : > { %v656_v36 = vld [vmem:[#allocation5 + $0xd80] sm:$0xff]  ;;  %v8041_v40 = vcombine.high %v400_v34, %v408_v35  ;;  %3359 = vmatprep.subr.bf16.mxu1 %v8313_v33  ;;  %v8040_v46 = vcombine.low %v400_v34, %v408_v35  ;;  %v545_v33 = vld [vmem:[#allocation5 + $0xa08] sm:$0xff]  ;;  %v8203_v34 = vcombine.high %v561_v26, %v569_v27  ;;  %v7931_v38 = vcombine.high %v289_v31, %v297_v32 }
  0x89   : > { %v664_v37 = vld [vmem:[#allocation5 + $0xdc0] sm:$0xff]  ;;  %3360 = vmatpush2.bf16.msra.mxu1 %v8312_v39  ;;  %v553_v35 = vld [vmem:[#allocation5 + $0xa48] sm:$0xff] }
  0x8a   : > { %v8297_v41 = vcombine.high %v656_v36, %v664_v37  ;;  %v384_v42 = vld [vmem:[#allocation5 + $0x500] sm:$0xff]  ;;  %3320 = vmatprep.subr.bf16.mxu0 %v8041_v40  ;;  %v8296_v47 = vcombine.low %v656_v36, %v664_v37  ;;  %v7946_v36 = vcombine.low %v305_v23, %v313_v24  ;;  %v8202_v37 = vcombine.low %v561_v26, %v569_v27  ;;  %v273_v39 = vld [vmem:[#allocation5 + $0x188] sm:$0xff] }
  0x8b   : > { %v392_v43 = vld [vmem:[#allocation5 + $0x540] sm:$0xff]  ;;  %3321 = vmatpush2.bf16.msra.mxu0 %v8040_v46  ;;  %v281_v40 = vld [vmem:[#allocation5 + $0x1c8] sm:$0xff] }
  0x8c   : > { %v640_v44 = vld [vmem:[#allocation5 + $0xd00] sm:$0xff]  ;;  %v8025_v48 = vcombine.high %v384_v42, %v392_v43  ;;  %3361 = vmatprep.subr.bf16.mxu1 %v8297_v41  ;;  %v8024_v54 = vcombine.low %v384_v42, %v392_v43  ;;  %v529_v41 = vld [vmem:[#allocation5 + $0x988] sm:$0xff]  ;;  %v8187_v42 = vcombine.high %v545_v33, %v553_v35  ;;  %v7915_v46 = vcombine.high %v273_v39, %v281_v40 }
  0x8d   : > { %v648_v45 = vld [vmem:[#allocation5 + $0xd40] sm:$0xff]  ;;  %3362 = vmatpush2.bf16.msra.mxu1 %v8296_v47  ;;  %v537_v43 = vld [vmem:[#allocation5 + $0x9c8] sm:$0xff] }
  0x8e   : > { %v8281_v49 = vcombine.high %v640_v44, %v648_v45  ;;  %v368_v50 = vld [vmem:[#allocation5 + $0x480] sm:$0xff]  ;;  %3322 = vmatprep.subr.bf16.mxu0 %v8025_v48  ;;  %v8280_v55 = vcombine.low %v640_v44, %v648_v45  ;;  %v7930_v44 = vcombine.low %v289_v31, %v297_v32  ;;  %v8186_v45 = vcombine.low %v545_v33, %v553_v35  ;;  %v257_v47 = vld [vmem:[#allocation5 + $0x108] sm:$0xff] }
  0x8f   : > { %v376_v51 = vld [vmem:[#allocation5 + $0x4c0] sm:$0xff]  ;;  %3323 = vmatpush2.bf16.msra.mxu0 %v8024_v54  ;;  %v265_v48 = vld [vmem:[#allocation5 + $0x148] sm:$0xff] }
  0x90   : > { %v624_v52 = vld [vmem:[#allocation5 + $0xc80] sm:$0xff]  ;;  %v8009_v56 = vcombine.high %v368_v50, %v376_v51  ;;  %3363 = vmatprep.subr.bf16.mxu1 %v8281_v49  ;;  %v8008_v0 = vcombine.low %v368_v50, %v376_v51  ;;  %v513_v49 = vld [vmem:[#allocation5 + $0x908] sm:$0xff]  ;;  %v8171_v50 = vcombine.high %v529_v41, %v537_v43  ;;  %v7899_v54 = vcombine.high %v257_v47, %v265_v48 }
  0x91   : > { %v632_v53 = vld [vmem:[#allocation5 + $0xcc0] sm:$0xff]  ;;  %3364 = vmatpush2.bf16.msra.mxu1 %v8280_v55  ;;  %v521_v51 = vld [vmem:[#allocation5 + $0x948] sm:$0xff] }
  0x92   : > { %v8265_v57 = vcombine.high %v624_v52, %v632_v53  ;;  %v352_v60 = vld [vmem:[#allocation5 + $0x400] sm:$0xff]  ;;  %3324 = vmatprep.subr.bf16.mxu0 %v8009_v56  ;;  %v8264_v1 = vcombine.low %v624_v52, %v632_v53  ;;  %v7914_v52 = vcombine.low %v273_v39, %v281_v40  ;;  %v8170_v53 = vcombine.low %v529_v41, %v537_v43  ;;  %v241_v55 = vld [vmem:[#allocation5 + $0x88] sm:$0xff] }
  0x93   : > { %v360_v61 = vld [vmem:[#allocation5 + $0x440] sm:$0xff]  ;;  %3325 = vmatpush2.bf16.msra.mxu0 %v8008_v0  ;;  %v249_v56 = vld [vmem:[#allocation5 + $0xc8] sm:$0xff] }
  0x94   : > { %v608_v62 = vld [vmem:[#allocation5 + $0xc00] sm:$0xff]  ;;  %v7993_v2 = vcombine.high %v352_v60, %v360_v61  ;;  %3365 = vmatprep.subr.bf16.mxu1 %v8265_v57  ;;  %v7992_v8 = vcombine.low %v352_v60, %v360_v61  ;;  %v497_v57 = vld [vmem:[#allocation5 + $0x888] sm:$0xff]  ;;  %v8155_v60 = vcombine.high %v513_v49, %v521_v51  ;;  %v7883_v0 = vcombine.high %v241_v55, %v249_v56 }
  0x95   : > { %v616_v63 = vld [vmem:[#allocation5 + $0xc40] sm:$0xff]  ;;  %3366 = vmatpush2.bf16.msra.mxu1 %v8264_v1  ;;  %v505_v61 = vld [vmem:[#allocation5 + $0x8c8] sm:$0xff]  ;;  %v7882_v6 = vcombine.low %v241_v55, %v249_v56 }
  0x96   : > { %v8249_v3 = vcombine.high %v608_v62, %v616_v63  ;;  %v216_v9 = vld [vmem:[%s10042_s6] sm:$0xff]  ;;  %3326 = vmatprep.subr.bf16.mxu0 %v7993_v2  ;;  %v8248_v10 = vcombine.low %v608_v62, %v616_v63  ;;  %v7898_v62 = vcombine.low %v257_v47, %v265_v48  ;;  %v8154_v63 = vcombine.low %v513_v49, %v521_v51  ;;  %v225_v1 = vld [vmem:[#allocation5 + $0x8] sm:$0xff] }
  0x97   : > { %v10062_v16 = vpack.c.bf16 %v216_v9, %v216_v9  ;;  %3327 = vmatpush2.bf16.msra.mxu0 %v7992_v8  ;;  %v233_v2 = vld [vmem:[#allocation5 + $0x48] sm:$0xff]  ;;  %v8139_v4 = vcombine.high %v497_v57, %v505_v61  ;;  %v8138_v7 = vcombine.low %v497_v57, %v505_v61 }
  0x98   : > { %3367 = vmatprep.subr.bf16.mxu1 %v8249_v3  ;;  %3378 = vmatprep.subr.bf16.mxu0 %v7979_v12  ;;  %v481_v3 = vld [vmem:[#allocation5 + $0x808] sm:$0xff]  ;;  %v7867_v8 = vcombine.high %v225_v1, %v233_v2  ;;  %v7866_v14 = vcombine.low %v225_v1, %v233_v2 }
  0x99   : > { %3368 = vmatpush2.bf16.msra.mxu1 %v8248_v10  ;;  %v489_v5 = vld [vmem:[#allocation5 + $0x848] sm:$0xff] }
  0x9a   : > { %3419 = vmatprep.subr.bf16.mxu1 %v8235_v13  ;;  %3329 = vmatmul.mubr.bf16.vlgmr.msra.gmra.mxu0 %v10062_v16  ;;  %v465_v9 = vld [vmem:[#allocation5 + $0x788] sm:$0xff]  ;;  %v8123_v12 = vcombine.high %v481_v3, %v489_v5  ;;  %v8122_v15 = vcombine.low %v481_v3, %v489_v5 }
  0x9b   : > { %3379 = vmatpush1.bf16.msra.mxu0 %v7978_v20  ;;  %3410 = vmatprep.mubr.bf16.mxu0 %v10054_v58  ;;  %v473_v10 = vld [vmem:[#allocation5 + $0x7c8] sm:$0xff] }
  0x9c   : > { %3370 = vmatmul.mubr.bf16.vlgmr.msra.gmra.mxu1 %v10064_v19  ;;  %3380 = vmatprep.subr.bf16.mxu0 %v7963_v22  ;;  %v721_v11 = vld [vmem:[#allocation5 + $0xf88] sm:$0xff]  ;;  %v8107_v17 = vcombine.high %v465_v9, %v473_v10  ;;  %v8106_v24 = vcombine.low %v465_v9, %v473_v10 }
  0x9d   : > { %3420 = vmatpush1.bf16.msra.mxu1 %v8234_v21  ;;  %3451 = vmatprep.mubr.bf16.mxu1 %v10056_v59  ;;  %v729_v13 = vld [vmem:[#allocation5 + $0xfc8] sm:$0xff] }
  0x9e   : > { %3421 = vmatprep.subr.bf16.mxu1 %v8219_v25  ;;  %v449_v18 = vld [vmem:[#allocation5 + $0x708] sm:$0xff]  ;;  %v8363_v22 = vcombine.high %v721_v11, %v729_v13  ;;  %v8362_v25 = vcombine.low %v721_v11, %v729_v13  ;;  %v338_v13 = vld [vmem:[#allocation5 + $0x390] sm:$0xff] }
  0x9f   : > { %3381 = vmatpush1.bf16.msra.mxu0 %v7962_v28  ;;  %v457_v20 = vld [vmem:[#allocation5 + $0x748] sm:$0xff] }
  0xa0   : > { %3382 = vmatprep.subr.bf16.mxu0 %v7947_v30  ;;  %v705_v21 = vld [vmem:[#allocation5 + $0xf08] sm:$0xff]  ;;  %v8091_v26 = vcombine.high %v449_v18, %v457_v20  ;;  %v8090_v32 = vcombine.low %v449_v18, %v457_v20  ;;  %v602_v18 = vld [vmem:[#allocation5 + $0xbd0] sm:$0xff] }
  0xa1   : > { %3422 = vmatpush1.bf16.msra.mxu1 %v8218_v29  ;;  %v713_v23 = vld [vmem:[#allocation5 + $0xf48] sm:$0xff] }
  0xa2   : > { %3423 = vmatprep.subr.bf16.mxu1 %v8203_v34  ;;  %v433_v27 = vld [vmem:[#allocation5 + $0x688] sm:$0xff]  ;;  %v8347_v30 = vcombine.high %v705_v21, %v713_v23  ;;  %v8346_v33 = vcombine.low %v705_v21, %v713_v23  ;;  %v322_v23 = vld [vmem:[#allocation5 + $0x310] sm:$0xff] }
  0xa3   : > { %3383 = vmatpush1.bf16.msra.mxu0 %v7946_v36  ;;  %v441_v28 = vld [vmem:[#allocation5 + $0x6c8] sm:$0xff] }
  0xa4   : > { %3384 = vmatprep.subr.bf16.mxu0 %v7931_v38  ;;  %v689_v29 = vld [vmem:[#allocation5 + $0xe88] sm:$0xff]  ;;  %v8075_v34 = vcombine.high %v433_v27, %v441_v28  ;;  %v8074_v40 = vcombine.low %v433_v27, %v441_v28  ;;  %v586_v27 = vld [vmem:[#allocation5 + $0xb50] sm:$0xff] }
  0xa5   : > { %3424 = vmatpush1.bf16.msra.mxu1 %v8202_v37  ;;  %v697_v31 = vld [vmem:[#allocation5 + $0xec8] sm:$0xff] }
  0xa6   : > { %3425 = vmatprep.subr.bf16.mxu1 %v8187_v42  ;;  %v417_v35 = vld [vmem:[#allocation5 + $0x608] sm:$0xff]  ;;  %v8331_v38 = vcombine.high %v689_v29, %v697_v31  ;;  %v8330_v41 = vcombine.low %v689_v29, %v697_v31  ;;  %v306_v31 = vld [vmem:[#allocation5 + $0x290] sm:$0xff] }
  0xa7   : > { %3385 = vmatpush1.bf16.msra.mxu0 %v7930_v44  ;;  %v425_v36 = vld [vmem:[#allocation5 + $0x648] sm:$0xff] }
  0xa8   : > { %3386 = vmatprep.subr.bf16.mxu0 %v7915_v46  ;;  %v673_v37 = vld [vmem:[#allocation5 + $0xe08] sm:$0xff]  ;;  %v8059_v42 = vcombine.high %v417_v35, %v425_v36  ;;  %v8058_v48 = vcombine.low %v417_v35, %v425_v36  ;;  %v570_v35 = vld [vmem:[#allocation5 + $0xad0] sm:$0xff] }
  0xa9   : > { %3426 = vmatpush1.bf16.msra.mxu1 %v8186_v45  ;;  %v681_v39 = vld [vmem:[#allocation5 + $0xe48] sm:$0xff] }
  0xaa   : > { %3427 = vmatprep.subr.bf16.mxu1 %v8171_v50  ;;  %v401_v43 = vld [vmem:[#allocation5 + $0x588] sm:$0xff]  ;;  %v8315_v46 = vcombine.high %v673_v37, %v681_v39  ;;  %v8314_v49 = vcombine.low %v673_v37, %v681_v39  ;;  %v290_v39 = vld [vmem:[#allocation5 + $0x210] sm:$0xff] }
  0xab   : > { %3387 = vmatpush1.bf16.msra.mxu0 %v7914_v52  ;;  %v409_v44 = vld [vmem:[#allocation5 + $0x5c8] sm:$0xff] }
  0xac   : > { %3388 = vmatprep.subr.bf16.mxu0 %v7899_v54  ;;  %v657_v45 = vld [vmem:[#allocation5 + $0xd88] sm:$0xff]  ;;  %v8043_v50 = vcombine.high %v401_v43, %v409_v44  ;;  %v8042_v56 = vcombine.low %v401_v43, %v409_v44  ;;  %v554_v43 = vld [vmem:[#allocation5 + $0xa50] sm:$0xff] }
  0xad   : > { %3428 = vmatpush1.bf16.msra.mxu1 %v8170_v53  ;;  %v665_v47 = vld [vmem:[#allocation5 + $0xdc8] sm:$0xff] }
  0xae   : > { %3429 = vmatprep.subr.bf16.mxu1 %v8155_v60  ;;  %v385_v51 = vld [vmem:[#allocation5 + $0x508] sm:$0xff]  ;;  %v8299_v54 = vcombine.high %v657_v45, %v665_v47  ;;  %v8298_v57 = vcombine.low %v657_v45, %v665_v47  ;;  %v274_v47 = vld [vmem:[#allocation5 + $0x190] sm:$0xff] }
  0xaf   : > { %3389 = vmatpush1.bf16.msra.mxu0 %v7898_v62  ;;  %v393_v52 = vld [vmem:[#allocation5 + $0x548] sm:$0xff] }
  0xb0   : > { %3390 = vmatprep.subr.bf16.mxu0 %v7883_v0  ;;  %v641_v53 = vld [vmem:[#allocation5 + $0xd08] sm:$0xff]  ;;  %v8027_v60 = vcombine.high %v385_v51, %v393_v52  ;;  %v8026_v2 = vcombine.low %v385_v51, %v393_v52  ;;  %v538_v51 = vld [vmem:[#allocation5 + $0x9d0] sm:$0xff] }
  0xb1   : > { %3430 = vmatpush1.bf16.msra.mxu1 %v8154_v63  ;;  %v649_v55 = vld [vmem:[#allocation5 + $0xd48] sm:$0xff] }
  0xb2   : > { %3431 = vmatprep.subr.bf16.mxu1 %v8139_v4  ;;  %v369_v61 = vld [vmem:[#allocation5 + $0x488] sm:$0xff]  ;;  %v8283_v0 = vcombine.high %v641_v53, %v649_v55  ;;  %v8282_v3 = vcombine.low %v641_v53, %v649_v55  ;;  %v258_v55 = vld [vmem:[#allocation5 + $0x110] sm:$0xff] }
  0xb3   : > { %3391 = vmatpush1.bf16.msra.mxu0 %v7882_v6  ;;  %v377_v62 = vld [vmem:[#allocation5 + $0x4c8] sm:$0xff] }
  0xb4   : > { %3392 = vmatprep.subr.bf16.mxu0 %v7867_v8  ;;  %v625_v63 = vld [vmem:[#allocation5 + $0xc88] sm:$0xff]  ;;  %v8011_v4 = vcombine.high %v369_v61, %v377_v62  ;;  %v8010_v10 = vcombine.low %v369_v61, %v377_v62  ;;  %v522_v61 = vld [vmem:[#allocation5 + $0x950] sm:$0xff] }
  0xb5   : > { %3432 = vmatpush1.bf16.msra.mxu1 %v8138_v7  ;;  %v633_v1 = vld [vmem:[#allocation5 + $0xcc8] sm:$0xff] }
  0xb6   : > { %3433 = vmatprep.subr.bf16.mxu1 %v8123_v12  ;;  %v353_v5 = vld [vmem:[#allocation5 + $0x408] sm:$0xff]  ;;  %v8267_v8 = vcombine.high %v625_v63, %v633_v1  ;;  %v8266_v11 = vcombine.low %v625_v63, %v633_v1  ;;  %v242_v1 = vld [vmem:[#allocation5 + $0x90] sm:$0xff] }
  0xb7   : > { %3393 = vmatpush1.bf16.msra.mxu0 %v7866_v14  ;;  %v361_v6 = vld [vmem:[#allocation5 + $0x448] sm:$0xff]  ;;  %v346_v14 = vld [vmem:[#allocation5 + $0x3d0] sm:$0xff] }
  0xb8   : > { %3394 = vmatprep.subr.bf16.mxu0 %v8107_v17  ;;  %v609_v7 = vld [vmem:[#allocation5 + $0xc08] sm:$0xff]  ;;  %v7995_v12 = vcombine.high %v353_v5, %v361_v6  ;;  %v7994_v20 = vcombine.low %v353_v5, %v361_v6  ;;  %v7980_v28 = vcombine.low %v338_v13, %v346_v14  ;;  %v506_v5 = vld [vmem:[#allocation5 + $0x8d0] sm:$0xff] }
  0xb9   : > { %3434 = vmatpush1.bf16.msra.mxu1 %v8122_v15  ;;  %v617_v9 = vld [vmem:[#allocation5 + $0xc48] sm:$0xff]  ;;  %v594_v15 = vld [vmem:[#allocation5 + $0xb90] sm:$0xff] }
  0xba   : > { %3435 = vmatprep.subr.bf16.mxu1 %v8363_v22  ;;  %v8251_v17 = vcombine.high %v609_v7, %v617_v9  ;;  %v8250_v21 = vcombine.low %v609_v7, %v617_v9  ;;  %v7981_v22 = vcombine.high %v338_v13, %v346_v14  ;;  %v8236_v29 = vcombine.low %v594_v15, %v602_v18  ;;  %v226_v9 = vld [vmem:[#allocation5 + $0x10] sm:$0xff] }
  0xbb   : > { %3395 = vmatpush2.bf16.msra.mxu0 %v8106_v24  ;;  %v330_v24 = vld [vmem:[#allocation5 + $0x350] sm:$0xff] }
  0xbc   : > { %3396 = vmatprep.subr.bf16.mxu0 %v8091_v26  ;;  %v8237_v26 = vcombine.high %v594_v15, %v602_v18  ;;  %v7964_v36 = vcombine.low %v322_v23, %v330_v24  ;;  %v490_v13 = vld [vmem:[#allocation5 + $0x850] sm:$0xff] }
  0xbd   : > { %3436 = vmatpush2.bf16.msra.mxu1 %v8362_v25  ;;  %v578_v25 = vld [vmem:[#allocation5 + $0xb10] sm:$0xff] }
  0xbe   : > { %3437 = vmatprep.subr.bf16.mxu1 %v8347_v30  ;;  %v7965_v30 = vcombine.high %v322_v23, %v330_v24  ;;  %v8220_v37 = vcombine.low %v578_v25, %v586_v27  ;;  %v466_v18 = vld [vmem:[#allocation5 + $0x790] sm:$0xff] }
  0xbf   : > { %3397 = vmatpush2.bf16.msra.mxu0 %v8090_v32  ;;  %v314_v32 = vld [vmem:[#allocation5 + $0x2d0] sm:$0xff] }
  0xc0   : > { %3398 = vmatprep.subr.bf16.mxu0 %v8075_v34  ;;  %v8221_v34 = vcombine.high %v578_v25, %v586_v27  ;;  %v7948_v44 = vcombine.low %v306_v31, %v314_v32  ;;  %v730_v23 = vld [vmem:[#allocation5 + $0xfd0] sm:$0xff] }
  0xc1   : > { %3438 = vmatpush2.bf16.msra.mxu1 %v8346_v33  ;;  %v562_v33 = vld [vmem:[#allocation5 + $0xa90] sm:$0xff] }
  0xc2   : > { %3439 = vmatprep.subr.bf16.mxu1 %v8331_v38  ;;  %v7949_v38 = vcombine.high %v306_v31, %v314_v32  ;;  %v8204_v45 = vcombine.low %v562_v33, %v570_v35  ;;  %v450_v27 = vld [vmem:[#allocation5 + $0x710] sm:$0xff] }
  0xc3   : > { %3399 = vmatpush2.bf16.msra.mxu0 %v8074_v40  ;;  %v298_v40 = vld [vmem:[#allocation5 + $0x250] sm:$0xff] }
  0xc4   : > { %3400 = vmatprep.subr.bf16.mxu0 %v8059_v42  ;;  %v8205_v42 = vcombine.high %v562_v33, %v570_v35  ;;  %v7932_v52 = vcombine.low %v290_v39, %v298_v40  ;;  %v714_v31 = vld [vmem:[#allocation5 + $0xf50] sm:$0xff] }
  0xc5   : > { %3440 = vmatpush2.bf16.msra.mxu1 %v8330_v41  ;;  %v546_v41 = vld [vmem:[#allocation5 + $0xa10] sm:$0xff] }
  0xc6   : > { %3441 = vmatprep.subr.bf16.mxu1 %v8315_v46  ;;  %v7933_v46 = vcombine.high %v290_v39, %v298_v40  ;;  %v8188_v53 = vcombine.low %v546_v41, %v554_v43  ;;  %v434_v35 = vld [vmem:[#allocation5 + $0x690] sm:$0xff] }
  0xc7   : > { %3401 = vmatpush2.bf16.msra.mxu0 %v8058_v48  ;;  %v282_v48 = vld [vmem:[#allocation5 + $0x1d0] sm:$0xff] }
  0xc8   : > { %3402 = vmatprep.subr.bf16.mxu0 %v8043_v50  ;;  %v8189_v50 = vcombine.high %v546_v41, %v554_v43  ;;  %v7916_v62 = vcombine.low %v274_v47, %v282_v48  ;;  %v698_v39 = vld [vmem:[#allocation5 + $0xed0] sm:$0xff] }
  0xc9   : > { %3442 = vmatpush2.bf16.msra.mxu1 %v8314_v49  ;;  %v530_v49 = vld [vmem:[#allocation5 + $0x990] sm:$0xff] }
  0xca   : > { %3443 = vmatprep.subr.bf16.mxu1 %v8299_v54  ;;  %v7917_v54 = vcombine.high %v274_v47, %v282_v48  ;;  %v8172_v63 = vcombine.low %v530_v49, %v538_v51  ;;  %v418_v43 = vld [vmem:[#allocation5 + $0x610] sm:$0xff] }
  0xcb   : > { %3403 = vmatpush2.bf16.msra.mxu0 %v8042_v56  ;;  %v266_v56 = vld [vmem:[#allocation5 + $0x150] sm:$0xff] }
  0xcc   : > { %3404 = vmatprep.subr.bf16.mxu0 %v8027_v60  ;;  %v8173_v60 = vcombine.high %v530_v49, %v538_v51  ;;  %v7900_v6 = vcombine.low %v258_v55, %v266_v56  ;;  %v682_v47 = vld [vmem:[#allocation5 + $0xe50] sm:$0xff] }
  0xcd   : > { %3444 = vmatpush2.bf16.msra.mxu1 %v8298_v57  ;;  %v514_v57 = vld [vmem:[#allocation5 + $0x910] sm:$0xff] }
  0xce   : > { %3445 = vmatprep.subr.bf16.mxu1 %v8283_v0  ;;  %v7901_v0 = vcombine.high %v258_v55, %v266_v56  ;;  %v8156_v7 = vcombine.low %v514_v57, %v522_v61  ;;  %v402_v51 = vld [vmem:[#allocation5 + $0x590] sm:$0xff] }
  0xcf   : > { %3405 = vmatpush2.bf16.msra.mxu0 %v8026_v2  ;;  %v250_v2 = vld [vmem:[#allocation5 + $0xd0] sm:$0xff] }
  0xd0   : > { %3406 = vmatprep.subr.bf16.mxu0 %v8011_v4  ;;  %v8157_v4 = vcombine.high %v514_v57, %v522_v61  ;;  %v7884_v14 = vcombine.low %v242_v1, %v250_v2  ;;  %v666_v55 = vld [vmem:[#allocation5 + $0xdd0] sm:$0xff] }
  0xd1   : > { %3446 = vmatpush2.bf16.msra.mxu1 %v8282_v3  ;;  %v498_v3 = vld [vmem:[#allocation5 + $0x890] sm:$0xff] }
  0xd2   : > { %3447 = vmatprep.subr.bf16.mxu1 %v8267_v8  ;;  %v7885_v8 = vcombine.high %v242_v1, %v250_v2  ;;  %v8140_v15 = vcombine.low %v498_v3, %v506_v5  ;;  %v386_v61 = vld [vmem:[#allocation5 + $0x510] sm:$0xff] }
  0xd3   : > { %3407 = vmatpush2.bf16.msra.mxu0 %v8010_v10  ;;  %v234_v10 = vld [vmem:[#allocation5 + $0x50] sm:$0xff] }
  0xd4   : > { %3408 = vmatprep.subr.bf16.mxu0 %v7995_v12  ;;  %v8141_v12 = vcombine.high %v498_v3, %v506_v5  ;;  %v7868_v24 = vcombine.low %v226_v9, %v234_v10  ;;  %v650_v1 = vld [vmem:[#allocation5 + $0xd50] sm:$0xff] }
  0xd5   : > { %3448 = vmatpush2.bf16.msra.mxu1 %v8266_v11  ;;  %v482_v11 = vld [vmem:[#allocation5 + $0x810] sm:$0xff] }
  0xd6   : > { %3449 = vmatprep.subr.bf16.mxu1 %v8251_v17  ;;  %v7869_v17 = vcombine.high %v226_v9, %v234_v10  ;;  %v8124_v25 = vcombine.low %v482_v11, %v490_v13  ;;  %v370_v5 = vld [vmem:[#allocation5 + $0x490] sm:$0xff] }
  0xd7   : > { %3409 = vmatpush2.bf16.msra.mxu0 %v7994_v20  ;;  %v474_v20 = vld [vmem:[#allocation5 + $0x7d0] sm:$0xff] }
  0xd8   : > { %3460 = vmatprep.subr.bf16.mxu0 %v7981_v22  ;;  %v8125_v22 = vcombine.high %v482_v11, %v490_v13  ;;  %v8108_v32 = vcombine.low %v466_v18, %v474_v20  ;;  %v634_v9 = vld [vmem:[#allocation5 + $0xcd0] sm:$0xff] }
  0xd9   : > { %3450 = vmatpush2.bf16.msra.mxu1 %v8250_v21  ;;  %v722_v21 = vld [vmem:[#allocation5 + $0xf90] sm:$0xff] }
  0xda   : > { %3501 = vmatprep.subr.bf16.mxu1 %v8237_v26  ;;  %3411 = vmatmul.mubr.bf16.vlgmr.msra.gmra.mxu0 %v10062_v16  ;;  %v8109_v26 = vcombine.high %v466_v18, %v474_v20  ;;  %v8364_v33 = vcombine.low %v722_v21, %v730_v23  ;;  %v354_v13 = vld [vmem:[#allocation5 + $0x410] sm:$0xff] }
  0xdb   : > { %3461 = vmatpush1.bf16.msra.mxu0 %v7980_v28  ;;  %3492 = vmatprep.mubr.bf16.mxu0 %v10054_v58  ;;  %v458_v28 = vld [vmem:[#allocation5 + $0x750] sm:$0xff] }
  0xdc   : > { %3452 = vmatmul.mubr.bf16.vlgmr.msra.gmra.mxu1 %v10064_v19  ;;  %3462 = vmatprep.subr.bf16.mxu0 %v7965_v30  ;;  %v8365_v30 = vcombine.high %v722_v21, %v730_v23  ;;  %v8092_v40 = vcombine.low %v450_v27, %v458_v28  ;;  %v618_v18 = vld [vmem:[#allocation5 + $0xc50] sm:$0xff]  ;;  %v339_v23 = vld [vmem:[#allocation5 + $0x398] sm:$0xff] }
  0xdd   : > { %3502 = vmatpush1.bf16.msra.mxu1 %v8236_v29  ;;  %3533 = vmatprep.mubr.bf16.mxu1 %v10056_v59  ;;  %v706_v29 = vld [vmem:[#allocation5 + $0xf10] sm:$0xff] }
  0xde   : > { %3503 = vmatprep.subr.bf16.mxu1 %v8221_v34  ;;  %v8093_v34 = vcombine.high %v450_v27, %v458_v28  ;;  %v8348_v41 = vcombine.low %v706_v29, %v714_v31  ;;  %v603_v27 = vld [vmem:[#allocation5 + $0xbd8] sm:$0xff] }
  0xdf   : > { %3463 = vmatpush1.bf16.msra.mxu0 %v7964_v36  ;;  %v442_v36 = vld [vmem:[#allocation5 + $0x6d0] sm:$0xff] }
  0xe0   : > { %3464 = vmatprep.subr.bf16.mxu0 %v7949_v38  ;;  %v8349_v38 = vcombine.high %v706_v29, %v714_v31  ;;  %v8076_v48 = vcombine.low %v434_v35, %v442_v36  ;;  %v323_v31 = vld [vmem:[#allocation5 + $0x318] sm:$0xff] }
  0xe1   : > { %3504 = vmatpush1.bf16.msra.mxu1 %v8220_v37  ;;  %v690_v37 = vld [vmem:[#allocation5 + $0xe90] sm:$0xff] }
  0xe2   : > { %3505 = vmatprep.subr.bf16.mxu1 %v8205_v42  ;;  %v8077_v42 = vcombine.high %v434_v35, %v442_v36  ;;  %v8332_v49 = vcombine.low %v690_v37, %v698_v39  ;;  %v587_v35 = vld [vmem:[#allocation5 + $0xb58] sm:$0xff] }
  0xe3   : > { %3465 = vmatpush1.bf16.msra.mxu0 %v7948_v44  ;;  %v426_v44 = vld [vmem:[#allocation5 + $0x650] sm:$0xff] }
  0xe4   : > { %3466 = vmatprep.subr.bf16.mxu0 %v7933_v46  ;;  %v8333_v46 = vcombine.high %v690_v37, %v698_v39  ;;  %v8060_v56 = vcombine.low %v418_v43, %v426_v44  ;;  %v307_v39 = vld [vmem:[#allocation5 + $0x298] sm:$0xff] }
  0xe5   : > { %3506 = vmatpush1.bf16.msra.mxu1 %v8204_v45  ;;  %v674_v45 = vld [vmem:[#allocation5 + $0xe10] sm:$0xff] }
  0xe6   : > { %3507 = vmatprep.subr.bf16.mxu1 %v8189_v50  ;;  %v8061_v50 = vcombine.high %v418_v43, %v426_v44  ;;  %v8316_v57 = vcombine.low %v674_v45, %v682_v47  ;;  %v571_v43 = vld [vmem:[#allocation5 + $0xad8] sm:$0xff] }
  0xe7   : > { %3467 = vmatpush1.bf16.msra.mxu0 %v7932_v52  ;;  %v410_v52 = vld [vmem:[#allocation5 + $0x5d0] sm:$0xff] }
  0xe8   : > { %3468 = vmatprep.subr.bf16.mxu0 %v7917_v54  ;;  %v8317_v54 = vcombine.high %v674_v45, %v682_v47  ;;  %v8044_v2 = vcombine.low %v402_v51, %v410_v52  ;;  %v291_v47 = vld [vmem:[#allocation5 + $0x218] sm:$0xff] }
  0xe9   : > { %3508 = vmatpush1.bf16.msra.mxu1 %v8188_v53  ;;  %v658_v53 = vld [vmem:[#allocation5 + $0xd90] sm:$0xff] }
  0xea   : > { %3509 = vmatprep.subr.bf16.mxu1 %v8173_v60  ;;  %v8045_v60 = vcombine.high %v402_v51, %v410_v52  ;;  %v8300_v3 = vcombine.low %v658_v53, %v666_v55  ;;  %v555_v51 = vld [vmem:[#allocation5 + $0xa58] sm:$0xff] }
  0xeb   : > { %3469 = vmatpush1.bf16.msra.mxu0 %v7916_v62  ;;  %v394_v62 = vld [vmem:[#allocation5 + $0x550] sm:$0xff] }
  0xec   : > { %3470 = vmatprep.subr.bf16.mxu0 %v7901_v0  ;;  %v8301_v0 = vcombine.high %v658_v53, %v666_v55  ;;  %v8028_v10 = vcombine.low %v386_v61, %v394_v62  ;;  %v275_v55 = vld [vmem:[#allocation5 + $0x198] sm:$0xff] }
  0xed   : > { %3510 = vmatpush1.bf16.msra.mxu1 %v8172_v63  ;;  %v642_v63 = vld [vmem:[#allocation5 + $0xd10] sm:$0xff] }
  0xee   : > { %3511 = vmatprep.subr.bf16.mxu1 %v8157_v4  ;;  %v8029_v4 = vcombine.high %v386_v61, %v394_v62  ;;  %v8284_v11 = vcombine.low %v642_v63, %v650_v1  ;;  %v539_v61 = vld [vmem:[#allocation5 + $0x9d8] sm:$0xff] }
  0xef   : > { %3471 = vmatpush1.bf16.msra.mxu0 %v7900_v6  ;;  %v378_v6 = vld [vmem:[#allocation5 + $0x4d0] sm:$0xff] }
  0xf0   : > { %3472 = vmatprep.subr.bf16.mxu0 %v7885_v8  ;;  %v8285_v8 = vcombine.high %v642_v63, %v650_v1  ;;  %v8012_v20 = vcombine.low %v370_v5, %v378_v6  ;;  %v259_v1 = vld [vmem:[#allocation5 + $0x118] sm:$0xff] }
  0xf1   : > { %3512 = vmatpush1.bf16.msra.mxu1 %v8156_v7  ;;  %v626_v7 = vld [vmem:[#allocation5 + $0xc90] sm:$0xff] }
  0xf2   : > { %3513 = vmatprep.subr.bf16.mxu1 %v8141_v12  ;;  %v8013_v12 = vcombine.high %v370_v5, %v378_v6  ;;  %v8268_v21 = vcombine.low %v626_v7, %v634_v9  ;;  %v523_v5 = vld [vmem:[#allocation5 + $0x958] sm:$0xff] }
  0xf3   : > { %3473 = vmatpush1.bf16.msra.mxu0 %v7884_v14  ;;  %v362_v14 = vld [vmem:[#allocation5 + $0x450] sm:$0xff] }
  0xf4   : > { %3474 = vmatprep.subr.bf16.mxu0 %v7869_v17  ;;  %v8269_v17 = vcombine.high %v626_v7, %v634_v9  ;;  %v7996_v28 = vcombine.low %v354_v13, %v362_v14  ;;  %v243_v9 = vld [vmem:[#allocation5 + $0x98] sm:$0xff] }
  0xf5   : > { %3514 = vmatpush1.bf16.msra.mxu1 %v8140_v15  ;;  %v610_v15 = vld [vmem:[#allocation5 + $0xc10] sm:$0xff] }
  0xf6   : > { %3515 = vmatprep.subr.bf16.mxu1 %v8125_v22  ;;  %v7997_v22 = vcombine.high %v354_v13, %v362_v14  ;;  %v8252_v29 = vcombine.low %v610_v15, %v618_v18  ;;  %v507_v13 = vld [vmem:[#allocation5 + $0x8d8] sm:$0xff] }
  0xf7   : > { %3475 = vmatpush1.bf16.msra.mxu0 %v7868_v24  ;;  %v347_v24 = vld [vmem:[#allocation5 + $0x3d8] sm:$0xff] }
  0xf8   : > { %3476 = vmatprep.subr.bf16.mxu0 %v8109_v26  ;;  %v8253_v26 = vcombine.high %v610_v15, %v618_v18  ;;  %v7982_v36 = vcombine.low %v339_v23, %v347_v24  ;;  %v227_v18 = vld [vmem:[#allocation5 + $0x18] sm:$0xff] }
  0xf9   : > { %3516 = vmatpush1.bf16.msra.mxu1 %v8124_v25  ;;  %v595_v25 = vld [vmem:[#allocation5 + $0xb98] sm:$0xff] }
  0xfa   : > { %3517 = vmatprep.subr.bf16.mxu1 %v8365_v30  ;;  %v7983_v30 = vcombine.high %v339_v23, %v347_v24  ;;  %v8238_v37 = vcombine.low %v595_v25, %v603_v27  ;;  %v491_v23 = vld [vmem:[#allocation5 + $0x858] sm:$0xff] }
  0xfb   : > { %3477 = vmatpush2.bf16.msra.mxu0 %v8108_v32  ;;  %v331_v32 = vld [vmem:[#allocation5 + $0x358] sm:$0xff] }
  0xfc   : > { %3478 = vmatprep.subr.bf16.mxu0 %v8093_v34  ;;  %v8239_v34 = vcombine.high %v595_v25, %v603_v27  ;;  %v7966_v44 = vcombine.low %v323_v31, %v331_v32  ;;  %v467_v27 = vld [vmem:[#allocation5 + $0x798] sm:$0xff] }
  0xfd   : > { %3518 = vmatpush2.bf16.msra.mxu1 %v8364_v33  ;;  %v579_v33 = vld [vmem:[#allocation5 + $0xb18] sm:$0xff] }
  0xfe   : > { %3519 = vmatprep.subr.bf16.mxu1 %v8349_v38  ;;  %v7967_v38 = vcombine.high %v323_v31, %v331_v32  ;;  %v8222_v45 = vcombine.low %v579_v33, %v587_v35  ;;  %v731_v31 = vld [vmem:[#allocation5 + $0xfd8] sm:$0xff] }
  0xff   : > { %3479 = vmatpush2.bf16.msra.mxu0 %v8092_v40  ;;  %v315_v40 = vld [vmem:[#allocation5 + $0x2d8] sm:$0xff] }
 0x100   : > { %3480 = vmatprep.subr.bf16.mxu0 %v8077_v42  ;;  %v8223_v42 = vcombine.high %v579_v33, %v587_v35  ;;  %v7950_v52 = vcombine.low %v307_v39, %v315_v40  ;;  %v451_v35 = vld [vmem:[#allocation5 + $0x718] sm:$0xff] }
 0x101   : > { %3520 = vmatpush2.bf16.msra.mxu1 %v8348_v41  ;;  %v563_v41 = vld [vmem:[#allocation5 + $0xa98] sm:$0xff] }
 0x102   : > { %3521 = vmatprep.subr.bf16.mxu1 %v8333_v46  ;;  %v7951_v46 = vcombine.high %v307_v39, %v315_v40  ;;  %v8206_v53 = vcombine.low %v563_v41, %v571_v43  ;;  %v715_v39 = vld [vmem:[#allocation5 + $0xf58] sm:$0xff] }
 0x103   : > { %3481 = vmatpush2.bf16.msra.mxu0 %v8076_v48  ;;  %v299_v48 = vld [vmem:[#allocation5 + $0x258] sm:$0xff] }
 0x104   : > { %3482 = vmatprep.subr.bf16.mxu0 %v8061_v50  ;;  %v8207_v50 = vcombine.high %v563_v41, %v571_v43  ;;  %v7934_v62 = vcombine.low %v291_v47, %v299_v48  ;;  %v435_v43 = vld [vmem:[#allocation5 + $0x698] sm:$0xff] }
 0x105   : > { %3522 = vmatpush2.bf16.msra.mxu1 %v8332_v49  ;;  %v547_v49 = vld [vmem:[#allocation5 + $0xa18] sm:$0xff] }
 0x106   : > { %3523 = vmatprep.subr.bf16.mxu1 %v8317_v54  ;;  %v7935_v54 = vcombine.high %v291_v47, %v299_v48  ;;  %v8190_v63 = vcombine.low %v547_v49, %v555_v51  ;;  %v699_v47 = vld [vmem:[#allocation5 + $0xed8] sm:$0xff] }
 0x107   : > { %3483 = vmatpush2.bf16.msra.mxu0 %v8060_v56  ;;  %v283_v56 = vld [vmem:[#allocation5 + $0x1d8] sm:$0xff] }
 0x108   : > { %3484 = vmatprep.subr.bf16.mxu0 %v8045_v60  ;;  %v8191_v60 = vcombine.high %v547_v49, %v555_v51  ;;  %v7918_v6 = vcombine.low %v275_v55, %v283_v56  ;;  %v419_v51 = vld [vmem:[#allocation5 + $0x618] sm:$0xff] }
 0x109   : > { %3524 = vmatpush2.bf16.msra.mxu1 %v8316_v57  ;;  %v531_v57 = vld [vmem:[#allocation5 + $0x998] sm:$0xff] }
 0x10a   : > { %3525 = vmatprep.subr.bf16.mxu1 %v8301_v0  ;;  %v7919_v0 = vcombine.high %v275_v55, %v283_v56  ;;  %v8174_v7 = vcombine.low %v531_v57, %v539_v61  ;;  %v683_v55 = vld [vmem:[#allocation5 + $0xe58] sm:$0xff] }
 0x10b   : > { %3485 = vmatpush2.bf16.msra.mxu0 %v8044_v2  ;;  %v267_v2 = vld [vmem:[#allocation5 + $0x158] sm:$0xff] }
 0x10c   : > { %3486 = vmatprep.subr.bf16.mxu0 %v8029_v4  ;;  %v8175_v4 = vcombine.high %v531_v57, %v539_v61  ;;  %v7902_v14 = vcombine.low %v259_v1, %v267_v2  ;;  %v403_v61 = vld [vmem:[#allocation5 + $0x598] sm:$0xff] }
 0x10d   : > { %3526 = vmatpush2.bf16.msra.mxu1 %v8300_v3  ;;  %v515_v3 = vld [vmem:[#allocation5 + $0x918] sm:$0xff] }
 0x10e   : > { %3527 = vmatprep.subr.bf16.mxu1 %v8285_v8  ;;  %v7903_v8 = vcombine.high %v259_v1, %v267_v2  ;;  %v8158_v15 = vcombine.low %v515_v3, %v523_v5  ;;  %v667_v1 = vld [vmem:[#allocation5 + $0xdd8] sm:$0xff] }
 0x10f   : > { %3487 = vmatpush2.bf16.msra.mxu0 %v8028_v10  ;;  %v251_v10 = vld [vmem:[#allocation5 + $0xd8] sm:$0xff] }
 0x110   : > { %3488 = vmatprep.subr.bf16.mxu0 %v8013_v12  ;;  %v8159_v12 = vcombine.high %v515_v3, %v523_v5  ;;  %v7886_v24 = vcombine.low %v243_v9, %v251_v10  ;;  %v387_v5 = vld [vmem:[#allocation5 + $0x518] sm:$0xff] }
 0x111   : > { %3528 = vmatpush2.bf16.msra.mxu1 %v8284_v11  ;;  %v499_v11 = vld [vmem:[#allocation5 + $0x898] sm:$0xff] }
 0x112   : > { %3529 = vmatprep.subr.bf16.mxu1 %v8269_v17  ;;  %v7887_v17 = vcombine.high %v243_v9, %v251_v10  ;;  %v8142_v25 = vcombine.low %v499_v11, %v507_v13  ;;  %v651_v9 = vld [vmem:[#allocation5 + $0xd58] sm:$0xff] }
 0x113   : > { %3489 = vmatpush2.bf16.msra.mxu0 %v8012_v20  ;;  %v235_v20 = vld [vmem:[#allocation5 + $0x58] sm:$0xff] }
 0x114   : > { %3490 = vmatprep.subr.bf16.mxu0 %v7997_v22  ;;  %v8143_v22 = vcombine.high %v499_v11, %v507_v13  ;;  %v7870_v32 = vcombine.low %v227_v18, %v235_v20  ;;  %v371_v13 = vld [vmem:[#allocation5 + $0x498] sm:$0xff] }
 0x115   : > { %3530 = vmatpush2.bf16.msra.mxu1 %v8268_v21  ;;  %v483_v21 = vld [vmem:[#allocation5 + $0x818] sm:$0xff] }
 0x116   : > { %3531 = vmatprep.subr.bf16.mxu1 %v8253_v26  ;;  %v7871_v26 = vcombine.high %v227_v18, %v235_v20  ;;  %v8126_v33 = vcombine.low %v483_v21, %v491_v23  ;;  %v635_v18 = vld [vmem:[#allocation5 + $0xcd8] sm:$0xff] }
 0x117   : > { %3491 = vmatpush2.bf16.msra.mxu0 %v7996_v28  ;;  %v475_v28 = vld [vmem:[#allocation5 + $0x7d8] sm:$0xff] }
 0x118   : > { %3542 = vmatprep.subr.bf16.mxu0 %v7983_v30  ;;  %v8127_v30 = vcombine.high %v483_v21, %v491_v23  ;;  %v8110_v40 = vcombine.low %v467_v27, %v475_v28  ;;  %v355_v23 = vld [vmem:[#allocation5 + $0x418] sm:$0xff] }
 0x119   : > { %3532 = vmatpush2.bf16.msra.mxu1 %v8252_v29  ;;  %v723_v29 = vld [vmem:[#allocation5 + $0xf98] sm:$0xff] }
 0x11a   : > { %3583 = vmatprep.subr.bf16.mxu1 %v8239_v34  ;;  %3493 = vmatmul.mubr.bf16.vlgmr.msra.gmra.mxu0 %v10062_v16  ;;  %v8111_v34 = vcombine.high %v467_v27, %v475_v28  ;;  %v8366_v41 = vcombine.low %v723_v29, %v731_v31  ;;  %v619_v27 = vld [vmem:[#allocation5 + $0xc58] sm:$0xff] }
 0x11b   : > { %3543 = vmatpush1.bf16.msra.mxu0 %v7982_v36  ;;  %3574 = vmatprep.mubr.bf16.mxu0 %v10054_v58  ;;  %v459_v36 = vld [vmem:[#allocation5 + $0x758] sm:$0xff] }
 0x11c   : > { %3534 = vmatmul.mubr.bf16.vlgmr.msra.gmra.mxu1 %v10064_v19  ;;  %3544 = vmatprep.subr.bf16.mxu0 %v7967_v38  ;;  %v8367_v38 = vcombine.high %v723_v29, %v731_v31  ;;  %v8094_v48 = vcombine.low %v451_v35, %v459_v36  ;;  %v340_v31 = vld [vmem:[#allocation5 + $0x3a0] sm:$0xff] }
 0x11d   : > { %3584 = vmatpush1.bf16.msra.mxu1 %v8238_v37  ;;  %3615 = vmatprep.mubr.bf16.mxu1 %v10056_v59  ;;  %v707_v37 = vld [vmem:[#allocation5 + $0xf18] sm:$0xff] }
 0x11e   : > { %3585 = vmatprep.subr.bf16.mxu1 %v8223_v42  ;;  %v8095_v42 = vcombine.high %v451_v35, %v459_v36  ;;  %v8350_v49 = vcombine.low %v707_v37, %v715_v39  ;;  %v604_v35 = vld [vmem:[#allocation5 + $0xbe0] sm:$0xff] }
 0x11f   : > { %3545 = vmatpush1.bf16.msra.mxu0 %v7966_v44  ;;  %v443_v44 = vld [vmem:[#allocation5 + $0x6d8] sm:$0xff] }
 0x120   : > { %3546 = vmatprep.subr.bf16.mxu0 %v7951_v46  ;;  %v8351_v46 = vcombine.high %v707_v37, %v715_v39  ;;  %v8078_v56 = vcombine.low %v435_v43, %v443_v44  ;;  %v324_v39 = vld [vmem:[#allocation5 + $0x320] sm:$0xff] }
 0x121   : > { %3586 = vmatpush1.bf16.msra.mxu1 %v8222_v45  ;;  %v691_v45 = vld [vmem:[#allocation5 + $0xe98] sm:$0xff] }
 0x122   : > { %3587 = vmatprep.subr.bf16.mxu1 %v8207_v50  ;;  %v8079_v50 = vcombine.high %v435_v43, %v443_v44  ;;  %v8334_v57 = vcombine.low %v691_v45, %v699_v47  ;;  %v588_v43 = vld [vmem:[#allocation5 + $0xb60] sm:$0xff] }
 0x123   : > { %3547 = vmatpush1.bf16.msra.mxu0 %v7950_v52  ;;  %v427_v52 = vld [vmem:[#allocation5 + $0x658] sm:$0xff] }
 0x124   : > { %3548 = vmatprep.subr.bf16.mxu0 %v7935_v54  ;;  %v8335_v54 = vcombine.high %v691_v45, %v699_v47  ;;  %v8062_v2 = vcombine.low %v419_v51, %v427_v52  ;;  %v308_v47 = vld [vmem:[#allocation5 + $0x2a0] sm:$0xff] }
 0x125   : > { %3588 = vmatpush1.bf16.msra.mxu1 %v8206_v53  ;;  %v675_v53 = vld [vmem:[#allocation5 + $0xe18] sm:$0xff] }
 0x126   : > { %3589 = vmatprep.subr.bf16.mxu1 %v8191_v60  ;;  %v8063_v60 = vcombine.high %v419_v51, %v427_v52  ;;  %v8318_v3 = vcombine.low %v675_v53, %v683_v55  ;;  %v572_v51 = vld [vmem:[#allocation5 + $0xae0] sm:$0xff] }
 0x127   : > { %3549 = vmatpush1.bf16.msra.mxu0 %v7934_v62  ;;  %v411_v62 = vld [vmem:[#allocation5 + $0x5d8] sm:$0xff] }
 0x128   : > { %3550 = vmatprep.subr.bf16.mxu0 %v7919_v0  ;;  %v8319_v0 = vcombine.high %v675_v53, %v683_v55  ;;  %v8046_v10 = vcombine.low %v403_v61, %v411_v62 }
 0x129   : > { %3590 = vmatpush1.bf16.msra.mxu1 %v8190_v63  ;;  %v659_v63 = vld [vmem:[#allocation5 + $0xd98] sm:$0xff] }
 0x12a   : > { %3591 = vmatprep.subr.bf16.mxu1 %v8175_v4  ;;  %v8047_v4 = vcombine.high %v403_v61, %v411_v62  ;;  %v8302_v11 = vcombine.low %v659_v63, %v667_v1  ;;  %v292_v61 = vld [vmem:[#allocation5 + $0x220] sm:$0xff] }
 0x12b   : > { %3551 = vmatpush1.bf16.msra.mxu0 %v7918_v6  ;;  %v395_v6 = vld [vmem:[#allocation5 + $0x558] sm:$0xff]  ;;  %v300_v62 = vld [vmem:[#allocation5 + $0x260] sm:$0xff] }
 0x12c   : > { %3552 = vmatprep.subr.bf16.mxu0 %v7903_v8  ;;  %v8303_v8 = vcombine.high %v659_v63, %v667_v1  ;;  %v8030_v20 = vcombine.low %v387_v5, %v395_v6  ;;  %v548_v63 = vld [vmem:[#allocation5 + $0xa20] sm:$0xff] }
 0x12d   : > { %3592 = vmatpush1.bf16.msra.mxu1 %v8174_v7  ;;  %v643_v7 = vld [vmem:[#allocation5 + $0xd18] sm:$0xff] }
 0x12e   : > { %3593 = vmatprep.subr.bf16.mxu1 %v8159_v12  ;;  %v8031_v12 = vcombine.high %v387_v5, %v395_v6  ;;  %v8286_v21 = vcombine.low %v643_v7, %v651_v9 }
 0x12f   : > { %3553 = vmatpush1.bf16.msra.mxu0 %v7902_v14  ;;  %v379_v14 = vld [vmem:[#allocation5 + $0x4d8] sm:$0xff] }
 0x130   : > { %3554 = vmatprep.subr.bf16.mxu0 %v7887_v17  ;;  %v8287_v17 = vcombine.high %v643_v7, %v651_v9  ;;  %v8014_v28 = vcombine.low %v371_v13, %v379_v14  ;;  %v7937_v9 = vcombine.high %v292_v61, %v300_v62 }
 0x131   : > { %3594 = vmatpush1.bf16.msra.mxu1 %v8158_v15  ;;  %v627_v15 = vld [vmem:[#allocation5 + $0xc98] sm:$0xff] }
 0x132   : > { %3595 = vmatprep.subr.bf16.mxu1 %v8143_v22  ;;  %v8015_v22 = vcombine.high %v371_v13, %v379_v14  ;;  %v8270_v29 = vcombine.low %v627_v15, %v635_v18 }
 0x133   : > { %3555 = vmatpush1.bf16.msra.mxu0 %v7886_v24  ;;  %v363_v24 = vld [vmem:[#allocation5 + $0x458] sm:$0xff] }
 0x134   : > { %3556 = vmatprep.subr.bf16.mxu0 %v7871_v26  ;;  %v8271_v26 = vcombine.high %v627_v15, %v635_v18  ;;  %v7998_v36 = vcombine.low %v355_v23, %v363_v24  ;;  %v540_v15 = vld [vmem:[#allocation5 + $0x9e0] sm:$0xff] }
 0x135   : > { %3596 = vmatpush1.bf16.msra.mxu1 %v8142_v25  ;;  %v611_v25 = vld [vmem:[#allocation5 + $0xc18] sm:$0xff] }
 0x136   : > { %3597 = vmatprep.subr.bf16.mxu1 %v8127_v30  ;;  %v7999_v30 = vcombine.high %v355_v23, %v363_v24  ;;  %v8254_v37 = vcombine.low %v611_v25, %v619_v27  ;;  %v516_v23 = vld [vmem:[#allocation5 + $0x920] sm:$0xff] }
 0x137   : > { %3557 = vmatpush1.bf16.msra.mxu0 %v7870_v32  ;;  %v348_v32 = vld [vmem:[#allocation5 + $0x3e0] sm:$0xff] }
 0x138   : > { %3558 = vmatprep.subr.bf16.mxu0 %v8111_v34  ;;  %v8255_v34 = vcombine.high %v611_v25, %v619_v27  ;;  %v7984_v44 = vcombine.low %v340_v31, %v348_v32  ;;  %v524_v25 = vld [vmem:[#allocation5 + $0x960] sm:$0xff] }
 0x139   : > { %3598 = vmatpush1.bf16.msra.mxu1 %v8126_v33  ;;  %v596_v33 = vld [vmem:[#allocation5 + $0xba0] sm:$0xff] }
 0x13a   : > { %3599 = vmatprep.subr.bf16.mxu1 %v8367_v38  ;;  %v7985_v38 = vcombine.high %v340_v31, %v348_v32  ;;  %v8240_v45 = vcombine.low %v596_v33, %v604_v35  ;;  %v500_v31 = vld [vmem:[#allocation5 + $0x8a0] sm:$0xff]  ;;  %v8161_v32 = vcombine.high %v516_v23, %v524_v25 }
 0x13b   : > { %3559 = vmatpush2.bf16.msra.mxu0 %v8110_v40  ;;  %v332_v40 = vld [vmem:[#allocation5 + $0x360] sm:$0xff] }
 0x13c   : > { %3560 = vmatprep.subr.bf16.mxu0 %v8095_v42  ;;  %v8241_v42 = vcombine.high %v596_v33, %v604_v35  ;;  %v508_v33 = vld [vmem:[#allocation5 + $0x8e0] sm:$0xff]  ;;  %v8160_v35 = vcombine.low %v516_v23, %v524_v25 }
 0x13d   : > { %3600 = vmatpush2.bf16.msra.mxu1 %v8366_v41  ;;  %v580_v41 = vld [vmem:[#allocation5 + $0xb20] sm:$0xff] }
 0x13e   : > { %3601 = vmatprep.subr.bf16.mxu1 %v8351_v46  ;;  %v7969_v46 = vcombine.high %v324_v39, %v332_v40  ;;  %v668_v23 = vld [vmem:[#allocation5 + $0xde0] sm:$0xff] }
 0x13f   : > { %3561 = vmatpush2.bf16.msra.mxu0 %v8094_v48  ;;  %v316_v48 = vld [vmem:[#allocation5 + $0x2e0] sm:$0xff] }
 0x140   : > { %3562 = vmatprep.subr.bf16.mxu0 %v8079_v50  ;;  %v8225_v50 = vcombine.high %v580_v41, %v588_v43  ;;  %v7952_v6 = vcombine.low %v308_v47, %v316_v48 }
 0x141   : > { %3602 = vmatpush2.bf16.msra.mxu1 %v8350_v49  ;;  %v564_v49 = vld [vmem:[#allocation5 + $0xaa0] sm:$0xff] }
 0x142   : > { %3603 = vmatprep.subr.bf16.mxu1 %v8335_v54  ;;  %v7968_v54 = vcombine.low %v324_v39, %v332_v40  ;;  %v8209_v1 = vcombine.high %v564_v49, %v572_v51  ;;  %v484_v39 = vld [vmem:[#allocation5 + $0x820] sm:$0xff]  ;;  %v8145_v40 = vcombine.high %v500_v31, %v508_v33 }
 0x143   : > { %3563 = vmatpush2.bf16.msra.mxu0 %v8078_v56 }
 0x144   : > { %3564 = vmatprep.subr.bf16.mxu0 %v8063_v60  ;;  %v7953_v60 = vcombine.high %v308_v47, %v316_v48  ;;  %v724_v47 = vld [vmem:[#allocation5 + $0xfa0] sm:$0xff] }
 0x145   : > { %3604 = vmatpush2.bf16.msra.mxu1 %v8334_v57  ;;  %v8224_v57 = vcombine.low %v580_v41, %v588_v43  ;;  %v492_v41 = vld [vmem:[#allocation5 + $0x860] sm:$0xff]  ;;  %v8144_v43 = vcombine.low %v500_v31, %v508_v33 }
 0x146   : > { %3605 = vmatprep.subr.bf16.mxu1 %v8319_v0  ;;  %v8129_v48 = vcombine.high %v484_v39, %v492_v41  ;;  %v652_v31 = vld [vmem:[#allocation5 + $0xd60] sm:$0xff] }
 0x147   : > { %3565 = vmatpush2.bf16.msra.mxu0 %v8062_v2  ;;  %v556_v2 = vld [vmem:[#allocation5 + $0xa60] sm:$0xff] }
 0x148   : > { %3566 = vmatprep.subr.bf16.mxu0 %v8047_v4  ;;  %v8193_v14 = vcombine.high %v548_v63, %v556_v2  ;;  %v8192_v18 = vcombine.low %v548_v63, %v556_v2  ;;  %v692_v2 = vld [vmem:[#allocation5 + $0xea0] sm:$0xff] }
 0x149   : > { %3606 = vmatpush2.bf16.msra.mxu1 %v8318_v3 }
 0x14a   : > { %3607 = vmatprep.subr.bf16.mxu1 %v8303_v8  ;;  %v8208_v8 = vcombine.low %v564_v49, %v572_v51  ;;  %v732_v49 = vld [vmem:[#allocation5 + $0xfe0] sm:$0xff]  ;;  %v8128_v51 = vcombine.low %v484_v39, %v492_v41 }
 0x14b   : > { %3567 = vmatpush2.bf16.msra.mxu0 %v8046_v10  ;;  %v276_v10 = vld [vmem:[#allocation5 + $0x1a0] sm:$0xff] }
 0x14c   : > { %3568 = vmatprep.subr.bf16.mxu0 %v8031_v12  ;;  %v532_v12 = vld [vmem:[#allocation5 + $0x9a0] sm:$0xff] }
 0x14d   : > { %3608 = vmatpush2.bf16.msra.mxu1 %v8302_v11  ;;  %v284_v11 = vld [vmem:[#allocation5 + $0x1e0] sm:$0xff]  ;;  %v8177_v24 = vcombine.high %v532_v12, %v540_v15  ;;  %v8176_v27 = vcombine.low %v532_v12, %v540_v15 }
 0x14e   : > { %3609 = vmatprep.subr.bf16.mxu1 %v8287_v17  ;;  %v7936_v17 = vcombine.low %v292_v61, %v300_v62  ;;  %v8368_v62 = vcombine.low %v724_v47, %v732_v49  ;;  %v636_v39 = vld [vmem:[#allocation5 + $0xce0] sm:$0xff] }
 0x14f   : > { %3569 = vmatpush2.bf16.msra.mxu0 %v8030_v20  ;;  %v7921_v20 = vcombine.high %v276_v10, %v284_v11 }
 0x150   : > { %3570 = vmatprep.subr.bf16.mxu0 %v8015_v22  ;;  %v268_v22 = vld [vmem:[#allocation5 + $0x160] sm:$0xff] }
 0x151   : > { %3610 = vmatpush2.bf16.msra.mxu1 %v8286_v21  ;;  %v260_v21 = vld [vmem:[#allocation5 + $0x120] sm:$0xff] }
 0x152   : > { %3611 = vmatprep.subr.bf16.mxu1 %v8271_v26  ;;  %v7920_v26 = vcombine.low %v276_v10, %v284_v11  ;;  %v428_v10 = vld [vmem:[#allocation5 + $0x660] sm:$0xff] }
 0x153   : > { %3571 = vmatpush2.bf16.msra.mxu0 %v8014_v28  ;;  %v7905_v28 = vcombine.high %v260_v21, %v268_v22  ;;  %v676_v11 = vld [vmem:[#allocation5 + $0xe20] sm:$0xff] }
 0x154   : > { %3572 = vmatprep.subr.bf16.mxu0 %v7999_v30  ;;  %v252_v30 = vld [vmem:[#allocation5 + $0xe0] sm:$0xff] }
 0x155   : > { %3612 = vmatpush2.bf16.msra.mxu1 %v8270_v29  ;;  %v244_v29 = vld [vmem:[#allocation5 + $0xa0] sm:$0xff] }
 0x156   : > { %3613 = vmatprep.subr.bf16.mxu1 %v8255_v34  ;;  %v7904_v34 = vcombine.low %v260_v21, %v268_v22  ;;  %v660_v21 = vld [vmem:[#allocation5 + $0xda0] sm:$0xff] }
 0x157   : > { %3573 = vmatpush2.bf16.msra.mxu0 %v7998_v36  ;;  %v7889_v36 = vcombine.high %v244_v29, %v252_v30  ;;  %v8304_v33 = vcombine.low %v660_v21, %v668_v23 }
 0x158   : > { %3624 = vmatprep.subr.bf16.mxu0 %v7985_v38  ;;  %v236_v38 = vld [vmem:[#allocation5 + $0x60] sm:$0xff] }
 0x159   : > { %3614 = vmatpush2.bf16.msra.mxu1 %v8254_v37  ;;  %v228_v37 = vld [vmem:[#allocation5 + $0x20] sm:$0xff] }
 0x15a   : > { %3665 = vmatprep.subr.bf16.mxu1 %v8241_v42  ;;  %v3330_v52 = vpop.f32.mrf.mxu0  ;;  %3575 = vmatmul.mubr.bf16.vlgmr.msra.gmra.mxu0 %v10062_v16  ;;  %v7888_v42 = vcombine.low %v244_v29, %v252_v30  ;;  %v644_v29 = vld [vmem:[#allocation5 + $0xd20] sm:$0xff]  ;;  %v8305_v30 = vcombine.high %v660_v21, %v668_v23  ;;  %v293_v23 = vld [vmem:[#allocation5 + $0x228] sm:$0xff] }
 0x15b   : > { %3625 = vmatpush1.bf16.msra.mxu0 %v7984_v44  ;;  %3656 = vmatprep.mubr.bf16.mxu0 %v10054_v58  ;;  %v7873_v44 = vcombine.high %v228_v37, %v236_v38  ;;  %v8288_v41 = vcombine.low %v644_v29, %v652_v31 }
 0x15c   : > { %v3371_v53 = vpop.f32.mrf.mxu1  ;;  %3616 = vmatmul.mubr.bf16.vlgmr.msra.gmra.mxu1 %v10064_v19  ;;  %v3332_v56 = vpop.f32.mrf.mxu0  ;;  %3626 = vmatprep.subr.bf16.mxu0 %v7969_v46  ;;  %v476_v46 = vld [vmem:[#allocation5 + $0x7e0] sm:$0xff] }
 0x15d   : > { %v10080_v55 = vadd.f32 %v3371_v53, %v3330_v52  ;;  %3666 = vmatpush1.bf16.msra.mxu1 %v8240_v45  ;;  %3697 = vmatprep.mubr.bf16.mxu1 %v10056_v59  ;;  %v468_v45 = vld [vmem:[#allocation5 + $0x7a0] sm:$0xff] }
 0x15e   : > { %v3373_v0 = vpop.f32.mrf.mxu1  ;;  %3667 = vmatprep.subr.bf16.mxu1 %v8225_v50  ;;  %v3334_v4 = vpop.f32.mrf.mxu0  ;;  %v7872_v50 = vcombine.low %v228_v37, %v236_v38  ;;  %v8113_v52 = vcombine.high %v468_v45, %v476_v46  ;;  %v452_v53 = vld [vmem:[#allocation5 + $0x720] sm:$0xff]  ;;  %v8112_v61 = vcombine.low %v468_v45, %v476_v46  ;;  %v8289_v38 = vcombine.high %v644_v29, %v652_v31 }
 0x15f   : > { %v10083_v3 = vadd.f32 %v3373_v0, %v3332_v56  ;;  %3627 = vmatpush1.bf16.msra.mxu0 %v7968_v54  ;;  %v460_v54 = vld [vmem:[#allocation5 + $0x760] sm:$0xff] }
 0x160   : > { %v3375_v5 = vpop.f32.mrf.mxu1  ;;  %v3335_v7 = vpop.f32.mrf.mxu0  ;;  %3628 = vmatprep.subr.bf16.mxu0 %v7953_v60  ;;  %v708_v56 = vld [vmem:[#allocation5 + $0xf20] sm:$0xff]  ;;  %v8097_v63 = vcombine.high %v452_v53, %v460_v54 }
 0x161   : > { %3668 = vmatpush1.bf16.msra.mxu1 %v8224_v57  ;;  %v8369_v57 = vcombine.high %v724_v47, %v732_v49  ;;  %v716_v60 = vld [vmem:[#allocation5 + $0xf60] sm:$0xff] }
 0x162   : > { %v3376_v13 = vpop.f32.mrf.mxu1  ;;  %3669 = vmatprep.subr.bf16.mxu1 %v8209_v1  ;;  %v436_v0 = vld [vmem:[#allocation5 + $0x6a0] sm:$0xff]  ;;  %v8353_v4 = vcombine.high %v708_v56, %v716_v60  ;;  %v8352_v7 = vcombine.low %v708_v56, %v716_v60  ;;  %v605_v56 = vld [vmem:[#allocation5 + $0xbe8] sm:$0xff] }
 0x163   : > { %3629 = vmatpush1.bf16.msra.mxu0 %v7952_v6  ;;  %v444_v1 = vld [vmem:[#allocation5 + $0x6e0] sm:$0xff]  ;;  %v8096_v6 = vcombine.low %v452_v53, %v460_v54  ;;  %v597_v53 = vld [vmem:[#allocation5 + $0xba8] sm:$0xff] }
 0x164   : > { %3630 = vmatprep.subr.bf16.mxu0 %v7937_v9  ;;  %v700_v5 = vld [vmem:[#allocation5 + $0xee0] sm:$0xff] }
 0x165   : > { %3670 = vmatpush1.bf16.msra.mxu1 %v8208_v8  ;;  %v8081_v8 = vcombine.high %v436_v0, %v444_v1  ;;  %v420_v9 = vld [vmem:[#allocation5 + $0x620] sm:$0xff]  ;;  %v8337_v12 = vcombine.high %v692_v2, %v700_v5  ;;  %v8336_v15 = vcombine.low %v692_v2, %v700_v5  ;;  %v589_v2 = vld [vmem:[#allocation5 + $0xb68] sm:$0xff]  ;;  %v8242_v5 = vcombine.low %v597_v53, %v605_v56 }
 0x166   : > { %3671 = vmatprep.subr.bf16.mxu1 %v8193_v14  ;;  %v684_v13 = vld [vmem:[#allocation5 + $0xe60] sm:$0xff]  ;;  %v8080_v14 = vcombine.low %v436_v0, %v444_v1  ;;  %v581_v0 = vld [vmem:[#allocation5 + $0xb28] sm:$0xff]  ;;  %v8243_v1 = vcombine.high %v597_v53, %v605_v56 }
 0x167   : > { %3631 = vmatpush1.bf16.msra.mxu0 %v7936_v17  ;;  %v8065_v17 = vcombine.high %v420_v9, %v428_v10  ;;  %v8321_v22 = vcombine.high %v676_v11, %v684_v13  ;;  %v8320_v25 = vcombine.low %v676_v11, %v684_v13  ;;  %v628_v37 = vld [vmem:[#allocation5 + $0xca0] sm:$0xff]  ;;  %v565_v11 = vld [vmem:[#allocation5 + $0xaa8] sm:$0xff] }
 0x168   : > { %3632 = vmatprep.subr.bf16.mxu0 %v7921_v20  ;;  %v412_v20 = vld [vmem:[#allocation5 + $0x5e0] sm:$0xff]  ;;  %v8273_v46 = vcombine.high %v628_v37, %v636_v39  ;;  %v8272_v49 = vcombine.low %v628_v37, %v636_v39  ;;  %v285_v37 = vld [vmem:[#allocation5 + $0x1e8] sm:$0xff] }
 0x169   : > { %3672 = vmatpush1.bf16.msra.mxu1 %v8192_v18  ;;  %v404_v18 = vld [vmem:[#allocation5 + $0x5a0] sm:$0xff]  ;;  %v541_v39 = vld [vmem:[#allocation5 + $0x9e8] sm:$0xff] }
 0x16a   : > { %3673 = vmatprep.subr.bf16.mxu1 %v8177_v24  ;;  %v8064_v24 = vcombine.low %v420_v9, %v428_v10  ;;  %v612_v45 = vld [vmem:[#allocation5 + $0xc20] sm:$0xff]  ;;  %v317_v9 = vld [vmem:[#allocation5 + $0x2e8] sm:$0xff] }
 0x16b   : > { %3633 = vmatpush1.bf16.msra.mxu0 %v7920_v26  ;;  %v8049_v26 = vcombine.high %v404_v18, %v412_v20  ;;  %v620_v47 = vld [vmem:[#allocation5 + $0xc60] sm:$0xff]  ;;  %v253_v53 = vld [vmem:[#allocation5 + $0xe8] sm:$0xff] }
 0x16c   : > { %3634 = vmatprep.subr.bf16.mxu0 %v7905_v28  ;;  %v396_v28 = vld [vmem:[#allocation5 + $0x560] sm:$0xff]  ;;  %v8257_v54 = vcombine.high %v612_v45, %v620_v47  ;;  %v8256_v60 = vcombine.low %v612_v45, %v620_v47  ;;  %v269_v45 = vld [vmem:[#allocation5 + $0x168] sm:$0xff] }
 0x16d   : > { %3674 = vmatpush1.bf16.msra.mxu1 %v8176_v27  ;;  %v388_v27 = vld [vmem:[#allocation5 + $0x520] sm:$0xff]  ;;  %v525_v47 = vld [vmem:[#allocation5 + $0x968] sm:$0xff] }
 0x16e   : > { %3675 = vmatprep.subr.bf16.mxu1 %v8161_v32  ;;  %v8048_v32 = vcombine.low %v404_v18, %v412_v20  ;;  %v8226_v18 = vcombine.low %v581_v0, %v589_v2  ;;  %v509_v56 = vld [vmem:[#allocation5 + $0x8e8] sm:$0xff] }
 0x16f   : > { %3635 = vmatpush1.bf16.msra.mxu0 %v7904_v34  ;;  %v8033_v34 = vcombine.high %v388_v27, %v396_v28 }
 0x170   : > { %3636 = vmatprep.subr.bf16.mxu0 %v7889_v36  ;;  %v380_v36 = vld [vmem:[#allocation5 + $0x4e0] sm:$0xff] }
 0x171   : > { %3676 = vmatpush1.bf16.msra.mxu1 %v8160_v35  ;;  %v372_v35 = vld [vmem:[#allocation5 + $0x4a0] sm:$0xff] }
 0x172   : > { %3677 = vmatprep.subr.bf16.mxu1 %v8145_v40  ;;  %v8032_v40 = vcombine.low %v388_v27, %v396_v28  ;;  %v549_v27 = vld [vmem:[#allocation5 + $0xa28] sm:$0xff] }
 0x173   : > { %3637 = vmatpush1.bf16.msra.mxu0 %v7888_v42  ;;  %v8017_v42 = vcombine.high %v372_v35, %v380_v36  ;;  %v557_v28 = vld [vmem:[#allocation5 + $0xa68] sm:$0xff] }
 0x174   : > { %3638 = vmatprep.subr.bf16.mxu0 %v7873_v44  ;;  %v364_v44 = vld [vmem:[#allocation5 + $0x460] sm:$0xff] }
 0x175   : > { %3678 = vmatpush1.bf16.msra.mxu1 %v8144_v43  ;;  %v356_v43 = vld [vmem:[#allocation5 + $0x420] sm:$0xff] }
 0x176   : > { %3679 = vmatprep.subr.bf16.mxu1 %v8129_v48  ;;  %v8016_v48 = vcombine.low %v372_v35, %v380_v36  ;;  %v8195_v35 = vcombine.high %v549_v27, %v557_v28  ;;  %v277_v36 = vld [vmem:[#allocation5 + $0x1a8] sm:$0xff] }
 0x177   : > { %3639 = vmatpush1.bf16.msra.mxu0 %v7872_v50  ;;  %v8001_v50 = vcombine.high %v356_v43, %v364_v44 }
 0x178   : > { %3640 = vmatprep.subr.bf16.mxu0 %v8113_v52  ;;  %v349_v52 = vld [vmem:[#allocation5 + $0x3e8] sm:$0xff] }
 0x179   : > { %3680 = vmatpush1.bf16.msra.mxu1 %v8128_v51  ;;  %v341_v51 = vld [vmem:[#allocation5 + $0x3a8] sm:$0xff] }
 0x17a   : > { %3681 = vmatprep.subr.bf16.mxu1 %v8369_v57  ;;  %v8000_v57 = vcombine.low %v356_v43, %v364_v44  ;;  %v261_v44 = vld [vmem:[#allocation5 + $0x128] sm:$0xff] }
 0x17b   : > { %3641 = vmatpush2.bf16.msra.mxu0 %v8112_v61  ;;  %v7987_v61 = vcombine.high %v341_v51, %v349_v52 }
 0x17c   : > { %3642 = vmatprep.subr.bf16.mxu0 %v8097_v63  ;;  %v333_v63 = vld [vmem:[#allocation5 + $0x368] sm:$0xff] }
 0x17d   : > { %3682 = vmatpush2.bf16.msra.mxu1 %v8368_v62  ;;  %v325_v62 = vld [vmem:[#allocation5 + $0x328] sm:$0xff] }
 0x17e   : > { %3683 = vmatprep.subr.bf16.mxu1 %v8353_v4  ;;  %v7986_v4 = vcombine.low %v341_v51, %v349_v52  ;;  %v245_v52 = vld [vmem:[#allocation5 + $0xa8] sm:$0xff] }
 0x17f   : > { %3643 = vmatpush2.bf16.msra.mxu0 %v8096_v6  ;;  %v7971_v6 = vcombine.high %v325_v62, %v333_v63 }
 0x180   : > { %3644 = vmatprep.subr.bf16.mxu0 %v8081_v8  ;;  %v309_v8 = vld [vmem:[#allocation5 + $0x2a8] sm:$0xff] }
 0x181   : > { %3684 = vmatpush2.bf16.msra.mxu1 %v8352_v7  ;;  %v8227_v7 = vcombine.high %v581_v0, %v589_v2  ;;  %v7955_v20 = vcombine.high %v309_v8, %v317_v9  ;;  %v237_v0 = vld [vmem:[#allocation5 + $0x68] sm:$0xff] }
 0x182   : > { %3685 = vmatprep.subr.bf16.mxu1 %v8337_v12  ;;  %v573_v12 = vld [vmem:[#allocation5 + $0xae8] sm:$0xff] }
 0x183   : > { %3645 = vmatpush2.bf16.msra.mxu0 %v8080_v14  ;;  %v7970_v14 = vcombine.low %v325_v62, %v333_v63  ;;  %v229_v63 = vld [vmem:[#allocation5 + $0x28] sm:$0xff] }
 0x184   : > { %3646 = vmatprep.subr.bf16.mxu0 %v8065_v17  ;;  %v493_v2 = vld [vmem:[#allocation5 + $0x868] sm:$0xff] }
 0x185   : > { %3686 = vmatpush2.bf16.msra.mxu1 %v8336_v15 }
 0x186   : > { %3687 = vmatprep.subr.bf16.mxu1 %v8321_v22  ;;  %v8211_v22 = vcombine.high %v565_v11, %v573_v12 }
 0x187   : > { %3647 = vmatpush2.bf16.msra.mxu0 %v8064_v24  ;;  %v301_v24 = vld [vmem:[#allocation5 + $0x268] sm:$0xff] }
 0x188   : > { %3648 = vmatprep.subr.bf16.mxu0 %v8049_v26 }
 0x189   : > { %3688 = vmatpush2.bf16.msra.mxu1 %v8320_v25 }
 0x18a   : > { %3689 = vmatprep.subr.bf16.mxu1 %v8305_v30  ;;  %v7954_v30 = vcombine.low %v309_v8, %v317_v9  ;;  %v469_v8 = vld [vmem:[#allocation5 + $0x7a8] sm:$0xff] }
 0x18b   : > { %3649 = vmatpush2.bf16.msra.mxu0 %v8048_v32  ;;  %v8210_v32 = vcombine.low %v565_v11, %v573_v12  ;;  %v477_v9 = vld [vmem:[#allocation5 + $0x7e8] sm:$0xff]  ;;  %v7874_v12 = vcombine.low %v229_v63, %v237_v0 }
 0x18c   : > { %3650 = vmatprep.subr.bf16.mxu0 %v8033_v34  ;;  %v733_v11 = vld [vmem:[#allocation5 + $0xfe8] sm:$0xff] }
 0x18d   : > { %3690 = vmatpush2.bf16.msra.mxu1 %v8304_v33  ;;  %v7939_v33 = vcombine.high %v293_v23, %v301_v24 }
 0x18e   : > { %3691 = vmatprep.subr.bf16.mxu1 %v8289_v38  ;;  %v533_v38 = vld [vmem:[#allocation5 + $0x9a8] sm:$0xff] }
 0x18f   : > { %3651 = vmatpush2.bf16.msra.mxu0 %v8032_v40  ;;  %v7938_v40 = vcombine.low %v293_v23, %v301_v24  ;;  %v8179_v43 = vcombine.high %v533_v38, %v541_v39  ;;  %v8114_v23 = vcombine.low %v469_v8, %v477_v9 }
 0x190   : > { %3652 = vmatprep.subr.bf16.mxu0 %v8017_v42  ;;  %v7923_v42 = vcombine.high %v277_v36, %v285_v37 }
 0x191   : > { %3692 = vmatpush2.bf16.msra.mxu1 %v8288_v41  ;;  %v8194_v41 = vcombine.low %v549_v27, %v557_v28  ;;  %v437_v28 = vld [vmem:[#allocation5 + $0x6a8] sm:$0xff] }
 0x192   : > { %3693 = vmatprep.subr.bf16.mxu1 %v8273_v46  ;;  %v517_v46 = vld [vmem:[#allocation5 + $0x928] sm:$0xff] }
 0x193   : > { %3653 = vmatpush2.bf16.msra.mxu0 %v8016_v48  ;;  %v7922_v48 = vcombine.low %v277_v36, %v285_v37  ;;  %v8163_v51 = vcombine.high %v517_v46, %v525_v47  ;;  %v421_v36 = vld [vmem:[#allocation5 + $0x628] sm:$0xff] }
 0x194   : > { %3654 = vmatprep.subr.bf16.mxu0 %v8001_v50  ;;  %v7907_v50 = vcombine.high %v261_v44, %v269_v45  ;;  %v429_v37 = vld [vmem:[#allocation5 + $0x668] sm:$0xff] }
 0x195   : > { %3694 = vmatpush2.bf16.msra.mxu1 %v8272_v49  ;;  %v8178_v49 = vcombine.low %v533_v38, %v541_v39  ;;  %v677_v38 = vld [vmem:[#allocation5 + $0xe28] sm:$0xff] }
 0x196   : > { %3695 = vmatprep.subr.bf16.mxu1 %v8257_v54  ;;  %v501_v54 = vld [vmem:[#allocation5 + $0x8a8] sm:$0xff] }
 0x197   : > { %3655 = vmatpush2.bf16.msra.mxu0 %v8000_v57  ;;  %v7906_v57 = vcombine.low %v261_v44, %v269_v45  ;;  %v8147_v62 = vcombine.high %v501_v54, %v509_v56  ;;  %v685_v39 = vld [vmem:[#allocation5 + $0xe68] sm:$0xff] }
 0x198   : > { %3706 = vmatprep.subr.bf16.mxu0 %v7987_v61  ;;  %v7891_v61 = vcombine.high %v245_v52, %v253_v53  ;;  %v405_v44 = vld [vmem:[#allocation5 + $0x5a8] sm:$0xff] }
 0x199   : > { %3696 = vmatpush2.bf16.msra.mxu1 %v8256_v60  ;;  %v8162_v60 = vcombine.low %v517_v46, %v525_v47  ;;  %v413_v45 = vld [vmem:[#allocation5 + $0x5e8] sm:$0xff] }
 0x19a   : > { %3747 = vmatprep.subr.bf16.mxu1 %v8243_v1  ;;  %v3412_v10 = vpop.f32.mrf.mxu0  ;;  %3657 = vmatmul.mubr.bf16.vlgmr.msra.gmra.mxu0 %v10062_v16  ;;  %v485_v1 = vld [vmem:[#allocation5 + $0x828] sm:$0xff] }
 0x19b   : > { %3707 = vmatpush1.bf16.msra.mxu0 %v7986_v4  ;;  %3738 = vmatprep.mubr.bf16.mxu0 %v10054_v58  ;;  %v7890_v4 = vcombine.low %v245_v52, %v253_v53  ;;  %v661_v46 = vld [vmem:[#allocation5 + $0xda8] sm:$0xff] }
 0x19c   : > { %v3453_v13 = vpop.f32.mrf.mxu1  ;;  %3698 = vmatmul.mubr.bf16.vlgmr.msra.gmra.mxu1 %v10064_v19  ;;  %v3414_v17 = vpop.f32.mrf.mxu0  ;;  %3708 = vmatprep.subr.bf16.mxu0 %v7971_v6  ;;  %v7875_v6 = vcombine.high %v229_v63, %v237_v0  ;;  %v669_v47 = vld [vmem:[#allocation5 + $0xde8] sm:$0xff] }
 0x19d   : > { %v10088_v15 = vadd.f32 %v3453_v13, %v3412_v10  ;;  %3748 = vmatpush1.bf16.msra.mxu1 %v8242_v5  ;;  %3779 = vmatprep.mubr.bf16.mxu1 %v10056_v59  ;;  %v8146_v5 = vcombine.low %v501_v54, %v509_v56  ;;  %v725_v10 = vld [vmem:[#allocation5 + $0xfa8] sm:$0xff]  ;;  %v8130_v13 = vcombine.low %v485_v1, %v493_v2 }
 0x19e   : > { %v3455_v21 = vpop.f32.mrf.mxu1  ;;  %3749 = vmatprep.subr.bf16.mxu1 %v8227_v7  ;;  %v3416_v26 = vpop.f32.mrf.mxu0  ;;  %v8131_v7 = vcombine.high %v485_v1, %v493_v2  ;;  %v8370_v24 = vcombine.low %v725_v10, %v733_v11  ;;  %v389_v52 = vld [vmem:[#allocation5 + $0x528] sm:$0xff] }
 0x19f   : > { %v10091_v25 = vadd.f32 %v3455_v21, %v3414_v17  ;;  %3709 = vmatpush1.bf16.msra.mxu0 %v7970_v14  ;;  %v8115_v14 = vcombine.high %v469_v8, %v477_v9  ;;  %v8371_v17 = vcombine.high %v725_v10, %v733_v11  ;;  %v709_v21 = vld [vmem:[#allocation5 + $0xf28] sm:$0xff] }
 0x1a0   : > { %v3457_v29 = vpop.f32.mrf.mxu1  ;;  %v3417_v31 = vpop.f32.mrf.mxu0  ;;  %3710 = vmatprep.subr.bf16.mxu0 %v7955_v20  ;;  %v461_v20 = vld [vmem:[#allocation5 + $0x768] sm:$0xff] }
 0x1a1   : > { %3750 = vmatpush1.bf16.msra.mxu1 %v8226_v18  ;;  %v453_v18 = vld [vmem:[#allocation5 + $0x728] sm:$0xff] }
 0x1a2   : > { %v3458_v34 = vpop.f32.mrf.mxu1  ;;  %3751 = vmatprep.subr.bf16.mxu1 %v8211_v22  ;;  %v717_v22 = vld [vmem:[#allocation5 + $0xf68] sm:$0xff]  ;;  %v8099_v26 = vcombine.high %v453_v18, %v461_v20 }
 0x1a3   : > { %3711 = vmatpush1.bf16.msra.mxu0 %v7954_v30  ;;  %v8355_v27 = vcombine.high %v709_v21, %v717_v22  ;;  %v445_v29 = vld [vmem:[#allocation5 + $0x6e8] sm:$0xff] }
 0x1a4   : > { %3712 = vmatprep.subr.bf16.mxu0 %v7939_v33  ;;  %v693_v30 = vld [vmem:[#allocation5 + $0xea8] sm:$0xff]  ;;  %v8354_v33 = vcombine.low %v709_v21, %v717_v22  ;;  %v8083_v34 = vcombine.high %v437_v28, %v445_v29  ;;  %v598_v21 = vld [vmem:[#allocation5 + $0xbb0] sm:$0xff] }
 0x1a5   : > { %3752 = vmatpush1.bf16.msra.mxu1 %v8210_v32  ;;  %v701_v31 = vld [vmem:[#allocation5 + $0xee8] sm:$0xff]  ;;  %v8098_v32 = vcombine.low %v453_v18, %v461_v20  ;;  %v342_v18 = vld [vmem:[#allocation5 + $0x3b0] sm:$0xff] }
 0x1a6   : > { %3753 = vmatprep.subr.bf16.mxu1 %v8195_v35  ;;  %v8339_v35 = vcombine.high %v693_v30, %v701_v31  ;;  %v397_v53 = vld [vmem:[#allocation5 + $0x568] sm:$0xff]  ;;  %v350_v20 = vld [vmem:[#allocation5 + $0x3f0] sm:$0xff] }
 0x1a7   : > { %3713 = vmatpush1.bf16.msra.mxu0 %v7938_v40  ;;  %v8082_v40 = vcombine.low %v437_v28, %v445_v29  ;;  %v645_v54 = vld [vmem:[#allocation5 + $0xd28] sm:$0xff]  ;;  %v606_v22 = vld [vmem:[#allocation5 + $0xbf0] sm:$0xff] }
 0x1a8   : > { %3714 = vmatprep.subr.bf16.mxu0 %v7923_v42  ;;  %v8067_v42 = vcombine.high %v421_v36, %v429_v37  ;;  %v653_v56 = vld [vmem:[#allocation5 + $0xd68] sm:$0xff]  ;;  %v326_v28 = vld [vmem:[#allocation5 + $0x330] sm:$0xff] }
 0x1a9   : > { %3754 = vmatpush1.bf16.msra.mxu1 %v8194_v41  ;;  %v8338_v41 = vcombine.low %v693_v30, %v701_v31  ;;  %v373_v63 = vld [vmem:[#allocation5 + $0x4a8] sm:$0xff]  ;;  %v334_v29 = vld [vmem:[#allocation5 + $0x370] sm:$0xff] }
 0x1aa   : > { %3755 = vmatprep.subr.bf16.mxu1 %v8179_v43  ;;  %v8323_v43 = vcombine.high %v677_v38, %v685_v39  ;;  %v381_v0 = vld [vmem:[#allocation5 + $0x4e8] sm:$0xff]  ;;  %v582_v30 = vld [vmem:[#allocation5 + $0xb30] sm:$0xff] }
 0x1ab   : > { %3715 = vmatpush1.bf16.msra.mxu0 %v7922_v48  ;;  %v8066_v48 = vcombine.low %v421_v36, %v429_v37  ;;  %v629_v1 = vld [vmem:[#allocation5 + $0xca8] sm:$0xff]  ;;  %v590_v31 = vld [vmem:[#allocation5 + $0xb70] sm:$0xff] }
 0x1ac   : > { %3716 = vmatprep.subr.bf16.mxu0 %v7907_v50  ;;  %v8051_v50 = vcombine.high %v405_v44, %v413_v45  ;;  %v637_v2 = vld [vmem:[#allocation5 + $0xce8] sm:$0xff]  ;;  %v310_v36 = vld [vmem:[#allocation5 + $0x2b0] sm:$0xff] }
 0x1ad   : > { %3756 = vmatpush1.bf16.msra.mxu1 %v8178_v49  ;;  %v8322_v49 = vcombine.low %v677_v38, %v685_v39  ;;  %v357_v8 = vld [vmem:[#allocation5 + $0x428] sm:$0xff]  ;;  %v318_v37 = vld [vmem:[#allocation5 + $0x2f0] sm:$0xff] }
 0x1ae   : > { %3757 = vmatprep.subr.bf16.mxu1 %v8163_v51  ;;  %v8307_v51 = vcombine.high %v661_v46, %v669_v47  ;;  %v365_v9 = vld [vmem:[#allocation5 + $0x468] sm:$0xff]  ;;  %v566_v39 = vld [vmem:[#allocation5 + $0xab0] sm:$0xff] }
 0x1af   : > { %3717 = vmatpush1.bf16.msra.mxu0 %v7906_v57  ;;  %v8050_v57 = vcombine.low %v405_v44, %v413_v45  ;;  %v613_v10 = vld [vmem:[#allocation5 + $0xc28] sm:$0xff]  ;;  %v8228_v45 = vcombine.low %v582_v30, %v590_v31 }
 0x1b0   : > { %3718 = vmatprep.subr.bf16.mxu0 %v7891_v61  ;;  %v8035_v61 = vcombine.high %v389_v52, %v397_v53  ;;  %v621_v11 = vld [vmem:[#allocation5 + $0xc68] sm:$0xff] }
 0x1b1   : > { %3758 = vmatpush1.bf16.msra.mxu1 %v8162_v60  ;;  %v8306_v60 = vcombine.low %v661_v46, %v669_v47  ;;  %v7957_v46 = vcombine.high %v310_v36, %v318_v37 }
 0x1b2   : > { %3759 = vmatprep.subr.bf16.mxu1 %v8147_v62  ;;  %v8291_v62 = vcombine.high %v645_v54, %v653_v56 }
 0x1b3   : > { %3719 = vmatpush1.bf16.msra.mxu0 %v7890_v4  ;;  %v8034_v4 = vcombine.low %v389_v52, %v397_v53  ;;  %v550_v53 = vld [vmem:[#allocation5 + $0xa30] sm:$0xff] }
 0x1b4   : > { %3720 = vmatprep.subr.bf16.mxu0 %v7875_v6  ;;  %v8019_v6 = vcombine.high %v373_v63, %v381_v0 }
 0x1b5   : > { %3760 = vmatpush1.bf16.msra.mxu1 %v8146_v5  ;;  %v8290_v5 = vcombine.low %v645_v54, %v653_v56  ;;  %v558_v54 = vld [vmem:[#allocation5 + $0xa70] sm:$0xff] }
 0x1b6   : > { %3761 = vmatprep.subr.bf16.mxu1 %v8131_v7  ;;  %v8275_v7 = vcombine.high %v629_v1, %v637_v2 }
 0x1b7   : > { %3721 = vmatpush1.bf16.msra.mxu0 %v7874_v12  ;;  %v8018_v12 = vcombine.low %v373_v63, %v381_v0  ;;  %v8197_v0 = vcombine.high %v550_v53, %v558_v54 }
 0x1b8   : > { %3722 = vmatprep.subr.bf16.mxu0 %v8115_v14  ;;  %v8003_v14 = vcombine.high %v357_v8, %v365_v9 }
 0x1b9   : > { %3762 = vmatpush1.bf16.msra.mxu1 %v8130_v13  ;;  %v8274_v13 = vcombine.low %v629_v1, %v637_v2  ;;  %v278_v1 = vld [vmem:[#allocation5 + $0x1b0] sm:$0xff] }
 0x1ba   : > { %3763 = vmatprep.subr.bf16.mxu1 %v8371_v17  ;;  %v8259_v17 = vcombine.high %v613_v10, %v621_v11  ;;  %v286_v2 = vld [vmem:[#allocation5 + $0x1f0] sm:$0xff] }
 0x1bb   : > { %3723 = vmatpush2.bf16.msra.mxu0 %v8114_v23  ;;  %v8002_v23 = vcombine.low %v357_v8, %v365_v9  ;;  %v7925_v8 = vcombine.high %v278_v1, %v286_v2 }
 0x1bc   : > { %3724 = vmatprep.subr.bf16.mxu0 %v8099_v26  ;;  %v7989_v26 = vcombine.high %v342_v18, %v350_v20 }
 0x1bd   : > { %3764 = vmatpush2.bf16.msra.mxu1 %v8370_v24  ;;  %v8258_v24 = vcombine.low %v613_v10, %v621_v11  ;;  %v262_v10 = vld [vmem:[#allocation5 + $0x130] sm:$0xff] }
 0x1be   : > { %3765 = vmatprep.subr.bf16.mxu1 %v8355_v27  ;;  %v8245_v27 = vcombine.high %v598_v21, %v606_v22  ;;  %v270_v11 = vld [vmem:[#allocation5 + $0x170] sm:$0xff] }
 0x1bf   : > { %3725 = vmatpush2.bf16.msra.mxu0 %v8098_v32  ;;  %v7988_v32 = vcombine.low %v342_v18, %v350_v20  ;;  %v7909_v18 = vcombine.high %v262_v10, %v270_v11 }
 0x1c0   : > { %3726 = vmatprep.subr.bf16.mxu0 %v8083_v34  ;;  %v7973_v34 = vcombine.high %v326_v28, %v334_v29 }
 0x1c1   : > { %3766 = vmatpush2.bf16.msra.mxu1 %v8354_v33  ;;  %v8244_v33 = vcombine.low %v598_v21, %v606_v22  ;;  %v246_v21 = vld [vmem:[#allocation5 + $0xb0] sm:$0xff] }
 0x1c2   : > { %3767 = vmatprep.subr.bf16.mxu1 %v8339_v35  ;;  %v8229_v35 = vcombine.high %v582_v30, %v590_v31  ;;  %v254_v22 = vld [vmem:[#allocation5 + $0xf0] sm:$0xff] }
 0x1c3   : > { %3727 = vmatpush2.bf16.msra.mxu0 %v8082_v40  ;;  %v574_v40 = vld [vmem:[#allocation5 + $0xaf0] sm:$0xff] }
 0x1c4   : > { %3728 = vmatprep.subr.bf16.mxu0 %v8067_v42  ;;  %v7972_v42 = vcombine.low %v326_v28, %v334_v29  ;;  %v7893_v28 = vcombine.high %v246_v21, %v254_v22  ;;  %v230_v30 = vld [vmem:[#allocation5 + $0x30] sm:$0xff] }
 0x1c5   : > { %3768 = vmatpush2.bf16.msra.mxu1 %v8338_v41  ;;  %v238_v31 = vld [vmem:[#allocation5 + $0x70] sm:$0xff] }
 0x1c6   : > { %3769 = vmatprep.subr.bf16.mxu1 %v8323_v43 }
 0x1c7   : > { %3729 = vmatpush2.bf16.msra.mxu0 %v8066_v48  ;;  %v8213_v48 = vcombine.high %v566_v39, %v574_v40 }
 0x1c8   : > { %3730 = vmatprep.subr.bf16.mxu0 %v8051_v50  ;;  %v302_v50 = vld [vmem:[#allocation5 + $0x270] sm:$0xff] }
 0x1c9   : > { %3770 = vmatpush2.bf16.msra.mxu1 %v8322_v49  ;;  %v294_v49 = vld [vmem:[#allocation5 + $0x230] sm:$0xff] }
 0x1ca   : > { %3771 = vmatprep.subr.bf16.mxu1 %v8307_v51 }
 0x1cb   : > { %3731 = vmatpush2.bf16.msra.mxu0 %v8050_v57  ;;  %v7956_v57 = vcombine.low %v310_v36, %v318_v37  ;;  %v7877_v36 = vcombine.high %v230_v30, %v238_v31 }
 0x1cc   : > { %3732 = vmatprep.subr.bf16.mxu0 %v8035_v61  ;;  %v8212_v61 = vcombine.low %v566_v39, %v574_v40  ;;  %v478_v39 = vld [vmem:[#allocation5 + $0x7f0] sm:$0xff] }
 0x1cd   : > { %3772 = vmatpush2.bf16.msra.mxu1 %v8306_v60  ;;  %v726_v40 = vld [vmem:[#allocation5 + $0xfb0] sm:$0xff] }
 0x1ce   : > { %3773 = vmatprep.subr.bf16.mxu1 %v8291_v62  ;;  %v7941_v62 = vcombine.high %v294_v49, %v302_v50 }
 0x1cf   : > { %3733 = vmatpush2.bf16.msra.mxu0 %v8034_v4  ;;  %v534_v4 = vld [vmem:[#allocation5 + $0x9b0] sm:$0xff] }
 0x1d0   : > { %3734 = vmatprep.subr.bf16.mxu0 %v8019_v6  ;;  %v7940_v6 = vcombine.low %v294_v49, %v302_v50  ;;  %v710_v49 = vld [vmem:[#allocation5 + $0xf30] sm:$0xff] }
 0x1d1   : > { %3774 = vmatpush2.bf16.msra.mxu1 %v8290_v5  ;;  %v542_v5 = vld [vmem:[#allocation5 + $0x9f0] sm:$0xff] }
 0x1d2   : > { %3775 = vmatprep.subr.bf16.mxu1 %v8275_v7  ;;  %v8196_v7 = vcombine.low %v550_v53, %v558_v54  ;;  %v8181_v9 = vcombine.high %v534_v4, %v542_v5  ;;  %v718_v50 = vld [vmem:[#allocation5 + $0xf70] sm:$0xff] }
 0x1d3   : > { %3735 = vmatpush2.bf16.msra.mxu0 %v8018_v12  ;;  %v518_v12 = vld [vmem:[#allocation5 + $0x930] sm:$0xff] }
 0x1d4   : > { %3736 = vmatprep.subr.bf16.mxu0 %v8003_v14  ;;  %v7924_v14 = vcombine.low %v278_v1, %v286_v2 }
 0x1d5   : > { %3776 = vmatpush2.bf16.msra.mxu1 %v8274_v13  ;;  %v526_v13 = vld [vmem:[#allocation5 + $0x970] sm:$0xff] }
 0x1d6   : > { %3777 = vmatprep.subr.bf16.mxu1 %v8259_v17  ;;  %v8180_v17 = vcombine.low %v534_v4, %v542_v5  ;;  %v8165_v20 = vcombine.high %v518_v12, %v526_v13  ;;  %v422_v4 = vld [vmem:[#allocation5 + $0x630] sm:$0xff] }
 0x1d7   : > { %3737 = vmatpush2.bf16.msra.mxu0 %v8002_v23  ;;  %v502_v23 = vld [vmem:[#allocation5 + $0x8b0] sm:$0xff] }
 0x1d8   : > { %3788 = vmatprep.subr.bf16.mxu0 %v7989_v26  ;;  %v7908_v26 = vcombine.low %v262_v10, %v270_v11  ;;  %v430_v5 = vld [vmem:[#allocation5 + $0x670] sm:$0xff] }
 0x1d9   : > { %3778 = vmatpush2.bf16.msra.mxu1 %v8258_v24  ;;  %v510_v24 = vld [vmem:[#allocation5 + $0x8f0] sm:$0xff]  ;;  %v8069_v10 = vcombine.high %v422_v4, %v430_v5 }
 0x1da   : > { %3829 = vmatprep.subr.bf16.mxu1 %v8245_v27  ;;  %v3494_v38 = vpop.f32.mrf.mxu0  ;;  %3739 = vmatmul.mubr.bf16.vlgmr.msra.gmra.mxu0 %v10062_v16  ;;  %v8164_v27 = vcombine.low %v518_v12, %v526_v13  ;;  %v8149_v29 = vcombine.high %v502_v23, %v510_v24  ;;  %v406_v12 = vld [vmem:[#allocation5 + $0x5b0] sm:$0xff] }
 0x1db   : > { %3789 = vmatpush1.bf16.msra.mxu0 %v7988_v32  ;;  %3820 = vmatprep.mubr.bf16.mxu0 %v10054_v58  ;;  %v486_v32 = vld [vmem:[#allocation5 + $0x830] sm:$0xff] }
 0x1dc   : > { %v3535_v41 = vpop.f32.mrf.mxu1  ;;  %3780 = vmatmul.mubr.bf16.vlgmr.msra.gmra.mxu1 %v10064_v19  ;;  %v3496_v44 = vpop.f32.mrf.mxu0  ;;  %3790 = vmatprep.subr.bf16.mxu0 %v7973_v34  ;;  %v7892_v34 = vcombine.low %v246_v21, %v254_v22  ;;  %v414_v13 = vld [vmem:[#allocation5 + $0x5f0] sm:$0xff] }
 0x1dd   : > { %v10096_v43 = vadd.f32 %v3535_v41, %v3494_v38  ;;  %3830 = vmatpush1.bf16.msra.mxu1 %v8244_v33  ;;  %3861 = vmatprep.mubr.bf16.mxu1 %v10056_v59  ;;  %v494_v33 = vld [vmem:[#allocation5 + $0x870] sm:$0xff]  ;;  %v8053_v21 = vcombine.high %v406_v12, %v414_v13 }
 0x1de   : > { %v3537_v47 = vpop.f32.mrf.mxu1  ;;  %3831 = vmatprep.subr.bf16.mxu1 %v8229_v35  ;;  %v3498_v52 = vpop.f32.mrf.mxu0  ;;  %v8148_v35 = vcombine.low %v502_v23, %v510_v24  ;;  %v8133_v37 = vcombine.high %v486_v32, %v494_v33  ;;  %v470_v38 = vld [vmem:[#allocation5 + $0x7b0] sm:$0xff] }
 0x1df   : > { %v10099_v51 = vadd.f32 %v3537_v47, %v3496_v44  ;;  %3791 = vmatpush1.bf16.msra.mxu0 %v7972_v42  ;;  %v734_v41 = vld [vmem:[#allocation5 + $0xff0] sm:$0xff]  ;;  %v7876_v42 = vcombine.low %v230_v30, %v238_v31  ;;  %v8132_v44 = vcombine.low %v486_v32, %v494_v33  ;;  %v8116_v52 = vcombine.low %v470_v38, %v478_v39 }
 0x1e0   : > { %v3539_v56 = vpop.f32.mrf.mxu1  ;;  %v3499_v60 = vpop.f32.mrf.mxu0  ;;  %3792 = vmatprep.subr.bf16.mxu0 %v7957_v46  ;;  %v8373_v46 = vcombine.high %v726_v40, %v734_v41  ;;  %v454_v47 = vld [vmem:[#allocation5 + $0x730] sm:$0xff]  ;;  %v8372_v53 = vcombine.low %v726_v40, %v734_v41 }
 0x1e1   : > { %3832 = vmatpush1.bf16.msra.mxu1 %v8228_v45  ;;  %v8117_v45 = vcombine.high %v470_v38, %v478_v39  ;;  %v8357_v56 = vcombine.high %v710_v49, %v718_v50  ;;  %v446_v60 = vld [vmem:[#allocation5 + $0x6f0] sm:$0xff] }
 0x1e2   : > { %v3540_v63 = vpop.f32.mrf.mxu1  ;;  %3833 = vmatprep.subr.bf16.mxu1 %v8213_v48  ;;  %v462_v48 = vld [vmem:[#allocation5 + $0x770] sm:$0xff] }
 0x1e3   : > { %3793 = vmatpush1.bf16.msra.mxu0 %v7956_v57  ;;  %v8101_v54 = vcombine.high %v454_v47, %v462_v48  ;;  %v438_v57 = vld [vmem:[#allocation5 + $0x6b0] sm:$0xff]  ;;  %v8100_v63 = vcombine.low %v454_v47, %v462_v48 }
 0x1e4   : > { %3794 = vmatprep.subr.bf16.mxu0 %v7941_v62  ;;  %v702_v62 = vld [vmem:[#allocation5 + $0xef0] sm:$0xff]  ;;  %v8085_v1 = vcombine.high %v438_v57, %v446_v60 }
 0x1e5   : > { %3834 = vmatpush1.bf16.msra.mxu1 %v8212_v61  ;;  %v694_v61 = vld [vmem:[#allocation5 + $0xeb0] sm:$0xff] }
 0x1e6   : > { %3835 = vmatprep.subr.bf16.mxu1 %v8197_v0  ;;  %v8356_v0 = vcombine.low %v710_v49, %v718_v50  ;;  %v8341_v2 = vcombine.high %v694_v61, %v702_v62  ;;  %v390_v23 = vld [vmem:[#allocation5 + $0x530] sm:$0xff]  ;;  %v343_v49 = vld [vmem:[#allocation5 + $0x3b8] sm:$0xff] }
 0x1e7   : > { %3795 = vmatpush1.bf16.msra.mxu0 %v7940_v6  ;;  %v678_v6 = vld [vmem:[#allocation5 + $0xe30] sm:$0xff]  ;;  %v351_v50 = vld [vmem:[#allocation5 + $0x3f8] sm:$0xff] }
 0x1e8   : > { %3796 = vmatprep.subr.bf16.mxu0 %v7925_v8  ;;  %v8084_v8 = vcombine.low %v438_v57, %v446_v60  ;;  %v398_v24 = vld [vmem:[#allocation5 + $0x570] sm:$0xff]  ;;  %v7991_v57 = vcombine.high %v343_v49, %v351_v50 }
 0x1e9   : > { %3836 = vmatpush1.bf16.msra.mxu1 %v8196_v7  ;;  %v686_v7 = vld [vmem:[#allocation5 + $0xe70] sm:$0xff]  ;;  %v8037_v30 = vcombine.high %v390_v23, %v398_v24 }
 0x1ea   : > { %3837 = vmatprep.subr.bf16.mxu1 %v8181_v9  ;;  %v8340_v9 = vcombine.low %v694_v61, %v702_v62  ;;  %v8325_v11 = vcombine.high %v678_v6, %v686_v7  ;;  %v374_v32 = vld [vmem:[#allocation5 + $0x4b0] sm:$0xff]  ;;  %v327_v61 = vld [vmem:[#allocation5 + $0x338] sm:$0xff] }
 0x1eb   : > { %3797 = vmatpush1.bf16.msra.mxu0 %v7924_v14  ;;  %v662_v14 = vld [vmem:[#allocation5 + $0xdb0] sm:$0xff]  ;;  %v335_v62 = vld [vmem:[#allocation5 + $0x378] sm:$0xff] }
 0x1ec   : > { %3798 = vmatprep.subr.bf16.mxu0 %v7909_v18  ;;  %v8068_v18 = vcombine.low %v422_v4, %v430_v5  ;;  %v382_v33 = vld [vmem:[#allocation5 + $0x4f0] sm:$0xff]  ;;  %v7975_v4 = vcombine.high %v327_v61, %v335_v62 }
 0x1ed   : > { %3838 = vmatpush1.bf16.msra.mxu1 %v8180_v17  ;;  %v670_v17 = vld [vmem:[#allocation5 + $0xdf0] sm:$0xff]  ;;  %v8021_v38 = vcombine.high %v374_v32, %v382_v33 }
 0x1ee   : > { %3839 = vmatprep.subr.bf16.mxu1 %v8165_v20  ;;  %v8324_v20 = vcombine.low %v678_v6, %v686_v7  ;;  %v8309_v22 = vcombine.high %v662_v14, %v670_v17  ;;  %v358_v40 = vld [vmem:[#allocation5 + $0x430] sm:$0xff]  ;;  %v311_v6 = vld [vmem:[#allocation5 + $0x2b8] sm:$0xff] }
 0x1ef   : > { %3799 = vmatpush1.bf16.msra.mxu0 %v7908_v26  ;;  %v646_v26 = vld [vmem:[#allocation5 + $0xd30] sm:$0xff]  ;;  %v319_v7 = vld [vmem:[#allocation5 + $0x2f8] sm:$0xff] }
 0x1f0   : > { %3800 = vmatprep.subr.bf16.mxu0 %v7893_v28  ;;  %v8052_v28 = vcombine.low %v406_v12, %v414_v13  ;;  %v366_v41 = vld [vmem:[#allocation5 + $0x470] sm:$0xff]  ;;  %v7974_v12 = vcombine.low %v327_v61, %v335_v62 }
 0x1f1   : > { %3840 = vmatpush1.bf16.msra.mxu1 %v8164_v27  ;;  %v654_v27 = vld [vmem:[#allocation5 + $0xd70] sm:$0xff]  ;;  %v8005_v47 = vcombine.high %v358_v40, %v366_v41 }
 0x1f2   : > { %3841 = vmatprep.subr.bf16.mxu1 %v8149_v29  ;;  %v8308_v29 = vcombine.low %v662_v14, %v670_v17  ;;  %v8293_v31 = vcombine.high %v646_v26, %v654_v27 }
 0x1f3   : > { %3801 = vmatpush1.bf16.msra.mxu0 %v7892_v34  ;;  %v630_v34 = vld [vmem:[#allocation5 + $0xcb0] sm:$0xff] }
 0x1f4   : > { %3802 = vmatprep.subr.bf16.mxu0 %v7877_v36  ;;  %v8036_v36 = vcombine.low %v390_v23, %v398_v24  ;;  %v303_v23 = vld [vmem:[#allocation5 + $0x278] sm:$0xff] }
 0x1f5   : > { %3842 = vmatpush1.bf16.msra.mxu1 %v8148_v35  ;;  %v638_v35 = vld [vmem:[#allocation5 + $0xcf0] sm:$0xff] }
 0x1f6   : > { %3843 = vmatprep.subr.bf16.mxu1 %v8133_v37  ;;  %v8292_v37 = vcombine.low %v646_v26, %v654_v27  ;;  %v8277_v39 = vcombine.high %v630_v34, %v638_v35  ;;  %v551_v27 = vld [vmem:[#allocation5 + $0xa38] sm:$0xff] }
 0x1f7   : > { %3803 = vmatpush1.bf16.msra.mxu0 %v7876_v42  ;;  %v614_v42 = vld [vmem:[#allocation5 + $0xc30] sm:$0xff] }
 0x1f8   : > { %3804 = vmatprep.subr.bf16.mxu0 %v8117_v45  ;;  %v8020_v45 = vcombine.low %v374_v32, %v382_v33 }
 0x1f9   : > { %3844 = vmatpush1.bf16.msra.mxu1 %v8132_v44  ;;  %v622_v44 = vld [vmem:[#allocation5 + $0xc70] sm:$0xff] }
 0x1fa   : > { %3845 = vmatprep.subr.bf16.mxu1 %v8373_v46  ;;  %v8276_v46 = vcombine.low %v630_v34, %v638_v35  ;;  %v8261_v48 = vcombine.high %v614_v42, %v622_v44 }
 0x1fb   : > { %3805 = vmatpush2.bf16.msra.mxu0 %v8116_v52  ;;  %v599_v52 = vld [vmem:[#allocation5 + $0xbb8] sm:$0xff] }
 0x1fc   : > { %3806 = vmatprep.subr.bf16.mxu0 %v8101_v54  ;;  %v8004_v54 = vcombine.low %v358_v40, %v366_v41 }
 0x1fd   : > { %3846 = vmatpush2.bf16.msra.mxu1 %v8372_v53  ;;  %v607_v53 = vld [vmem:[#allocation5 + $0xbf8] sm:$0xff] }
 0x1fe   : > { %3847 = vmatprep.subr.bf16.mxu1 %v8357_v56  ;;  %v8260_v56 = vcombine.low %v614_v42, %v622_v44  ;;  %v8247_v60 = vcombine.high %v599_v52, %v607_v53  ;;  %v263_v42 = vld [vmem:[#allocation5 + $0x138] sm:$0xff] }
 0x1ff   : > { %3807 = vmatpush2.bf16.msra.mxu0 %v8100_v63  ;;  %v583_v63 = vld [vmem:[#allocation5 + $0xb38] sm:$0xff] }
 0x200   : > { %3808 = vmatprep.subr.bf16.mxu0 %v8085_v1  ;;  %v7990_v1 = vcombine.low %v343_v49, %v351_v50  ;;  %v271_v44 = vld [vmem:[#allocation5 + $0x178] sm:$0xff] }
 0x201   : > { %3848 = vmatpush2.bf16.msra.mxu1 %v8356_v0  ;;  %v591_v0 = vld [vmem:[#allocation5 + $0xb78] sm:$0xff]  ;;  %v7911_v49 = vcombine.high %v263_v42, %v271_v44 }
 0x202   : > { %3849 = vmatprep.subr.bf16.mxu1 %v8341_v2  ;;  %v8246_v2 = vcombine.low %v599_v52, %v607_v53  ;;  %v8231_v5 = vcombine.high %v583_v63, %v591_v0  ;;  %v8230_v17 = vcombine.low %v583_v63, %v591_v0  ;;  %v247_v52 = vld [vmem:[#allocation5 + $0xb8] sm:$0xff] }
 0x203   : > { %3809 = vmatpush2.bf16.msra.mxu0 %v8084_v8  ;;  %v255_v53 = vld [vmem:[#allocation5 + $0xf8] sm:$0xff] }
 0x204   : > { %3810 = vmatprep.subr.bf16.mxu0 %v8069_v10  ;;  %v575_v10 = vld [vmem:[#allocation5 + $0xaf8] sm:$0xff]  ;;  %v7895_v61 = vcombine.high %v247_v52, %v255_v53 }
 0x205   : > { %3850 = vmatpush2.bf16.msra.mxu1 %v8340_v9  ;;  %v567_v9 = vld [vmem:[#allocation5 + $0xab8] sm:$0xff] }
 0x206   : > { %3851 = vmatprep.subr.bf16.mxu1 %v8325_v11  ;;  %v8214_v32 = vcombine.low %v567_v9, %v575_v10  ;;  %v231_v63 = vld [vmem:[#allocation5 + $0x38] sm:$0xff] }
 0x207   : > { %3811 = vmatpush2.bf16.msra.mxu0 %v8068_v18  ;;  %v7959_v18 = vcombine.high %v311_v6, %v319_v7  ;;  %v239_v0 = vld [vmem:[#allocation5 + $0x78] sm:$0xff] }
 0x208   : > { %3812 = vmatprep.subr.bf16.mxu0 %v8053_v21  ;;  %v8215_v21 = vcombine.high %v567_v9, %v575_v10  ;;  %v479_v9 = vld [vmem:[#allocation5 + $0x7f8] sm:$0xff] }
 0x209   : > { %3852 = vmatpush2.bf16.msra.mxu1 %v8324_v20  ;;  %v727_v10 = vld [vmem:[#allocation5 + $0xfb8] sm:$0xff] }
 0x20a   : > { %3853 = vmatprep.subr.bf16.mxu1 %v8309_v22  ;;  %v295_v22 = vld [vmem:[#allocation5 + $0x238] sm:$0xff] }
 0x20b   : > { %3813 = vmatpush2.bf16.msra.mxu0 %v8052_v28  ;;  %v559_v28 = vld [vmem:[#allocation5 + $0xa78] sm:$0xff]  ;;  %v7943_v33 = vcombine.high %v295_v22, %v303_v23 }
 0x20c   : > { %3814 = vmatprep.subr.bf16.mxu0 %v8037_v30  ;;  %v7958_v30 = vcombine.low %v311_v6, %v319_v7  ;;  %v8199_v35 = vcombine.high %v551_v27, %v559_v28  ;;  %v7879_v6 = vcombine.high %v231_v63, %v239_v0 }
 0x20d   : > { %3854 = vmatpush2.bf16.msra.mxu1 %v8308_v29 }
 0x20e   : > { %3855 = vmatprep.subr.bf16.mxu1 %v8293_v31 }
 0x20f   : > { %3815 = vmatpush2.bf16.msra.mxu0 %v8036_v36  ;;  %v279_v36 = vld [vmem:[#allocation5 + $0x1b8] sm:$0xff] }
 0x210   : > { %3816 = vmatprep.subr.bf16.mxu0 %v8021_v38  ;;  %v543_v38 = vld [vmem:[#allocation5 + $0x9f8] sm:$0xff] }
 0x211   : > { %3856 = vmatpush2.bf16.msra.mxu1 %v8292_v37  ;;  %v535_v37 = vld [vmem:[#allocation5 + $0x9b8] sm:$0xff] }
 0x212   : > { %3857 = vmatprep.subr.bf16.mxu1 %v8277_v39  ;;  %v7942_v39 = vcombine.low %v295_v22, %v303_v23  ;;  %v8183_v41 = vcombine.high %v535_v37, %v543_v38  ;;  %v711_v22 = vld [vmem:[#allocation5 + $0xf38] sm:$0xff] }
 0x213   : > { %3817 = vmatpush2.bf16.msra.mxu0 %v8020_v45  ;;  %v519_v45 = vld [vmem:[#allocation5 + $0x938] sm:$0xff] }
 0x214   : > { %3818 = vmatprep.subr.bf16.mxu0 %v8005_v47  ;;  %v719_v23 = vld [vmem:[#allocation5 + $0xf78] sm:$0xff] }
 0x215   : > { %3858 = vmatpush2.bf16.msra.mxu1 %v8276_v46  ;;  %v527_v46 = vld [vmem:[#allocation5 + $0x978] sm:$0xff] }
 0x216   : > { %3859 = vmatprep.subr.bf16.mxu1 %v8261_v48  ;;  %v8182_v48 = vcombine.low %v535_v37, %v543_v38  ;;  %v8167_v50 = vcombine.high %v519_v45, %v527_v46  ;;  %v423_v37 = vld [vmem:[#allocation5 + $0x638] sm:$0xff] }
 0x217   : > { %3819 = vmatpush2.bf16.msra.mxu0 %v8004_v54  ;;  %v503_v54 = vld [vmem:[#allocation5 + $0x8b8] sm:$0xff] }
 0x218   : > { %3870 = vmatprep.subr.bf16.mxu0 %v7991_v57  ;;  %v7910_v57 = vcombine.low %v263_v42, %v271_v44  ;;  %v431_v38 = vld [vmem:[#allocation5 + $0x678] sm:$0xff] }
 0x219   : > { %3860 = vmatpush2.bf16.msra.mxu1 %v8260_v56  ;;  %v511_v56 = vld [vmem:[#allocation5 + $0x8f8] sm:$0xff]  ;;  %v8071_v42 = vcombine.high %v423_v37, %v431_v38 }
 0x21a   : > { %3911 = vmatprep.subr.bf16.mxu1 %v8247_v60  ;;  %v3576_v8 = vpop.f32.mrf.mxu0  ;;  %3821 = vmatmul.mubr.bf16.vlgmr.msra.gmra.mxu0 %v10062_v16  ;;  %v8166_v60 = vcombine.low %v519_v45, %v527_v46  ;;  %v8151_v62 = vcombine.high %v503_v54, %v511_v56  ;;  %v407_v45 = vld [vmem:[#allocation5 + $0x5b8] sm:$0xff] }
 0x21b   : > { %3871 = vmatpush1.bf16.msra.mxu0 %v7990_v1  ;;  %3902 = vmatprep.mubr.bf16.mxu0 %v10054_v58  ;;  %v287_v58 = vld [vmem:[#allocation5 + $0x1f8] sm:$0xff] }
 0x21c   : > { %v3617_v11 = vpop.f32.mrf.mxu1  ;;  %3862 = vmatmul.mubr.bf16.vlgmr.msra.gmra.mxu1 %v10064_v19  ;;  %v3578_v14 = vpop.f32.mrf.mxu0  ;;  %3872 = vmatprep.subr.bf16.mxu0 %v7975_v4  ;;  %v7927_v40 = vcombine.high %v279_v36, %v287_v58  ;;  %v7926_v47 = vcombine.low %v279_v36, %v287_v58  ;;  %v487_v1 = vld [vmem:[#allocation5 + $0x838] sm:$0xff]  ;;  %v7894_v4 = vcombine.low %v247_v52, %v255_v53 }
 0x21d   : > { %v10104_v13 = vadd.f32 %v3617_v11, %v3576_v8  ;;  %3912 = vmatpush1.bf16.msra.mxu1 %v8246_v2  ;;  %3943 = vmatprep.mubr.bf16.mxu1 %v10056_v59  ;;  %v8198_v59 = vcombine.low %v551_v27, %v559_v28  ;;  %v495_v2 = vld [vmem:[#allocation5 + $0x878] sm:$0xff] }
 0x21e   : > { %v3619_v20 = vpop.f32.mrf.mxu1  ;;  %3913 = vmatprep.subr.bf16.mxu1 %v8231_v5  ;;  %v3580_v26 = vpop.f32.mrf.mxu0  ;;  %v8150_v5 = vcombine.low %v503_v54, %v511_v56  ;;  %v8135_v7 = vcombine.high %v487_v1, %v495_v2  ;;  %v471_v8 = vld [vmem:[#allocation5 + $0x7b8] sm:$0xff] }
 0x21f   : > { %v10107_v24 = vadd.f32 %v3619_v20, %v3578_v14  ;;  %3873 = vmatpush1.bf16.msra.mxu0 %v7974_v12  ;;  %v735_v11 = vld [vmem:[#allocation5 + $0xff8] sm:$0xff]  ;;  %v7878_v12 = vcombine.low %v231_v63, %v239_v0  ;;  %v8134_v14 = vcombine.low %v487_v1, %v495_v2  ;;  %v8118_v26 = vcombine.low %v471_v8, %v479_v9 }
 0x220   : > { %v3621_v29 = vpop.f32.mrf.mxu1  ;;  %v3581_v31 = vpop.f32.mrf.mxu0  ;;  %3874 = vmatprep.subr.bf16.mxu0 %v7959_v18  ;;  %v8375_v18 = vcombine.high %v727_v10, %v735_v11  ;;  %v455_v20 = vld [vmem:[#allocation5 + $0x738] sm:$0xff]  ;;  %v8374_v27 = vcombine.low %v727_v10, %v735_v11 }
 0x221   : > { %3914 = vmatpush1.bf16.msra.mxu1 %v8230_v17  ;;  %v8119_v17 = vcombine.high %v471_v8, %v479_v9  ;;  %v8359_v29 = vcombine.high %v711_v22, %v719_v23  ;;  %v447_v31 = vld [vmem:[#allocation5 + $0x6f8] sm:$0xff] }
 0x222   : > { %v3622_v34 = vpop.f32.mrf.mxu1  ;;  %3915 = vmatprep.subr.bf16.mxu1 %v8215_v21  ;;  %v463_v21 = vld [vmem:[#allocation5 + $0x778] sm:$0xff] }
 0x223   : > { %3875 = vmatpush1.bf16.msra.mxu0 %v7958_v30  ;;  %v8103_v28 = vcombine.high %v455_v20, %v463_v21  ;;  %v439_v30 = vld [vmem:[#allocation5 + $0x6b8] sm:$0xff]  ;;  %v8102_v34 = vcombine.low %v455_v20, %v463_v21 }
 0x224   : > { %3876 = vmatprep.subr.bf16.mxu0 %v7943_v33  ;;  %v703_v33 = vld [vmem:[#allocation5 + $0xef8] sm:$0xff]  ;;  %v8087_v36 = vcombine.high %v439_v30, %v447_v31 }
 0x225   : > { %3916 = vmatpush1.bf16.msra.mxu1 %v8214_v32  ;;  %v695_v32 = vld [vmem:[#allocation5 + $0xeb8] sm:$0xff] }
 0x226   : > { %3917 = vmatprep.subr.bf16.mxu1 %v8199_v35  ;;  %v8358_v35 = vcombine.low %v711_v22, %v719_v23  ;;  %v8343_v58 = vcombine.high %v695_v32, %v703_v33  ;;  %v415_v46 = vld [vmem:[#allocation5 + $0x5f8] sm:$0xff] }
 0x227   : > { %3877 = vmatpush1.bf16.msra.mxu0 %v7942_v39  ;;  %v679_v39 = vld [vmem:[#allocation5 + $0xe38] sm:$0xff]  ;;  %v8055_v52 = vcombine.high %v407_v45, %v415_v46 }
 0x228   : > { %3878 = vmatprep.subr.bf16.mxu0 %v7927_v40  ;;  %v8086_v40 = vcombine.low %v439_v30, %v447_v31  ;;  %v391_v54 = vld [vmem:[#allocation5 + $0x538] sm:$0xff]  ;;  %v8966_v30 = vld [vmem:[#allocation7 + $0xe0] ss:$16 sps:$4 sm:$0xff]  }
 0x229   : > { %3918 = vmatpush1.bf16.msra.mxu1 %v8198_v59  ;;  %v687_v59 = vld [vmem:[#allocation5 + $0xe78] sm:$0xff]  ;;  %v8969_v31 = vld [vmem:[#allocation7 + $0x2e0] ss:$16 sps:$4 sm:$0xff]  }
 0x22a   : > { %3919 = vmatprep.subr.bf16.mxu1 %v8183_v41  ;;  %v8342_v41 = vcombine.low %v695_v32, %v703_v33  ;;  %v8327_v44 = vcombine.high %v679_v39, %v687_v59  ;;  %v399_v56 = vld [vmem:[#allocation5 + $0x578] sm:$0xff]  ;;  %v8974_v32 = vld [vmem:[#allocation7 + $0xc4] ss:$16 sps:$4 sm:$0xff]  }
 0x22b   : > { %3879 = vmatpush1.bf16.msra.mxu0 %v7926_v47  ;;  %v663_v47 = vld [vmem:[#allocation5 + $0xdb8] sm:$0xff]  ;;  %v8039_v63 = vcombine.high %v391_v54, %v399_v56 }
 0x22c   : > { %3880 = vmatprep.subr.bf16.mxu0 %v7911_v49  ;;  %v8070_v49 = vcombine.low %v423_v37, %v431_v38  ;;  %v375_v1 = vld [vmem:[#allocation5 + $0x4b8] sm:$0xff]  ;;  %v8975_v38 = vld [vmem:[#allocation7 + $0x2c0] ss:$16 sps:$4 sm:$0xff]  }
 0x22d   : > { %3920 = vmatpush1.bf16.msra.mxu1 %v8182_v48  ;;  %v671_v48 = vld [vmem:[#allocation5 + $0xdf8] sm:$0xff] }
 0x22e   : > { %3921 = vmatprep.subr.bf16.mxu1 %v8167_v50  ;;  %v8326_v50 = vcombine.low %v679_v39, %v687_v59  ;;  %v8311_v53 = vcombine.high %v663_v47, %v671_v48  ;;  %v383_v2 = vld [vmem:[#allocation5 + $0x4f8] sm:$0xff]  ;;  %v8980_v39 = vld [vmem:[#allocation7 + $0xa4] ss:$16 sps:$4 sm:$0xff]  }
 0x22f   : > { %3881 = vmatpush1.bf16.msra.mxu0 %v7910_v57  ;;  %v647_v57 = vld [vmem:[#allocation5 + $0xd38] sm:$0xff]  ;;  %v8023_v8 = vcombine.high %v375_v1, %v383_v2 }
 0x230   : > { %3882 = vmatprep.subr.bf16.mxu0 %v7895_v61  ;;  %v8054_v61 = vcombine.low %v407_v45, %v415_v46  ;;  %v359_v10 = vld [vmem:[#allocation5 + $0x438] sm:$0xff]  ;;  %v8981_v45 = vld [vmem:[#allocation7 + $0x2a0] ss:$16 sps:$4 sm:$0xff]   ;;  %v8986_v46 = vld [vmem:[#allocation7 + $0x84] ss:$16 sps:$4 sm:$0xff]  }
 0x231   : > { %3922 = vmatpush1.bf16.msra.mxu1 %v8166_v60  ;;  %v655_v60 = vld [vmem:[#allocation5 + $0xd78] sm:$0xff] }
 0x232   : > { %3923 = vmatprep.subr.bf16.mxu1 %v8151_v62  ;;  %v8310_v62 = vcombine.low %v663_v47, %v671_v48  ;;  %v8295_v0 = vcombine.high %v647_v57, %v655_v60  ;;  %v367_v11 = vld [vmem:[#allocation5 + $0x478] sm:$0xff]  ;;  %v8989_v48 = vld [vmem:[#allocation7 + $0x284] ss:$16 sps:$4 sm:$0xff]  }
 0x233   : > { %3883 = vmatpush1.bf16.msra.mxu0 %v7894_v4  ;;  %v631_v4 = vld [vmem:[#allocation5 + $0xcb8] sm:$0xff]  ;;  %v8007_v20 = vcombine.high %v359_v10, %v367_v11  ;;  %v8006_v22 = vcombine.low %v359_v10, %v367_v11  ;;  %v9014_v10 = vld [vmem:[#allocation7 + $0x1e0] ss:$16 sps:$4 sm:$0xff]  }
 0x234   : > { %3884 = vmatprep.subr.bf16.mxu0 %v7879_v6  ;;  %v8038_v6 = vcombine.low %v391_v54, %v399_v56  ;;  %v8990_v54 = vld [vmem:[#allocation7 + $0x60] ss:$16 sps:$4 sm:$0xff]  }
 0x235   : > { %3924 = vmatpush1.bf16.msra.mxu1 %v8150_v5  ;;  %v639_v5 = vld [vmem:[#allocation5 + $0xcf8] sm:$0xff]  ;;  %v8993_v56 = vld [vmem:[#allocation7 + $0x260] ss:$16 sps:$4 sm:$0xff]  }
 0x236   : > { %3925 = vmatprep.subr.bf16.mxu1 %v8135_v7  ;;  %v8294_v7 = vcombine.low %v647_v57, %v655_v60  ;;  %v8279_v9 = vcombine.high %v631_v4, %v639_v5  ;;  %v8998_v57 = vld [vmem:[#allocation7 + $0x44] ss:$16 sps:$4 sm:$0xff]   ;;  %v9017_v11 = vld [vmem:[#allocation7 + $0x3e0] ss:$16 sps:$4 sm:$0xff]  }
 0x237   : > { %3885 = vmatpush1.bf16.msra.mxu0 %v7878_v12  ;;  %v615_v12 = vld [vmem:[#allocation5 + $0xc38] sm:$0xff]  ;;  %v9001_v60 = vld [vmem:[#allocation7 + $0x244] ss:$16 sps:$4 sm:$0xff]  }
 0x238   : > { %3886 = vmatprep.subr.bf16.mxu0 %v8119_v17  ;;  %v8022_v17 = vcombine.low %v375_v1, %v383_v2  ;;  %v9002_v1 = vld [vmem:[#allocation7 + $0x20] ss:$16 sps:$4 sm:$0xff]  }
 0x239   : > { %3926 = vmatpush1.bf16.msra.mxu1 %v8134_v14  ;;  %v623_v14 = vld [vmem:[#allocation5 + $0xc78] sm:$0xff]  ;;  %v9005_v2 = vld [vmem:[#allocation7 + $0x220] ss:$16 sps:$4 sm:$0xff]  }
 0x23a   : > { %3927 = vmatprep.subr.bf16.mxu1 %v8375_v18  ;;  %v8278_v18 = vcombine.low %v631_v4, %v639_v5  ;;  %v8263_v21 = vcombine.high %v615_v12, %v623_v14  ;;  %v8262_v23 = vcombine.low %v615_v12, %v623_v14  ;;  %v9010_v4 = vld [vmem:[#allocation7 + $0x4] ss:$16 sps:$4 sm:$0xff]  }
 0x23b   : > { %3887 = vmatpush2.bf16.msra.mxu0 %v8118_v26  ;;  %v8968_v26 = vld [vmem:[#allocation7 + $0xe4] ss:$16 sps:$4 sm:$0xff]  }
 0x23c   : > { %3888 = vmatprep.subr.bf16.mxu0 %v8103_v28  ;;  %v3953_v28 = vmax.f32 %v10083_v3, 0.0  ;;  %v8972_v3 = vld [vmem:[#allocation7 + $0xc0] ss:$16 sps:$4 sm:$0xff]   ;;  %v9013_v5 = vld [vmem:[#allocation7 + $0x204] ss:$16 sps:$4 sm:$0xff]  }
 0x23d   : > { %3928 = vmatpush2.bf16.msra.mxu1 %v8374_v27  ;;  %v8971_v27 = vld [vmem:[#allocation7 + $0x2e4] ss:$16 sps:$4 sm:$0xff]  }
 0x23e   : > { %3929 = vmatprep.subr.bf16.mxu1 %v8359_v29  ;;  %v3955_v29 = vmax.f32 %v10091_v25, 0.0  ;;  %v10112_v33 = vpack.c.bf16 %v3953_v28, %v3953_v28  ;;  %v9022_v12 = vld [vmem:[#allocation7 + $0x1c4] ss:$16 sps:$4 sm:$0xff]   ;;  %v9032_v28 = vld [vmem:[#allocation7 + $0x180] ss:$16 sps:$4 sm:$0xff]  }
 0x23f   : > { %3889 = vmatpush2.bf16.msra.mxu0 %v8102_v34  ;;  %v9025_v14 = vld [vmem:[#allocation7 + $0x3c4] ss:$16 sps:$4 sm:$0xff]  }
 0x240   : > { %3890 = vmatprep.subr.bf16.mxu0 %v8087_v36  ;;  %v10115_v36 = vpack.c.bf16 %v3955_v29, %v3955_v29  ;;  %v9035_v29 = vld [vmem:[#allocation7 + $0x380] ss:$16 sps:$4 sm:$0xff]  }
 0x241   : > { %3930 = vmatpush2.bf16.msra.mxu1 %v8358_v35  ;;  %v8977_v35 = vld [vmem:[#allocation7 + $0x2c4] ss:$16 sps:$4 sm:$0xff]  }
 0x242   : > { %3931 = vmatprep.subr.bf16.mxu1 %v8343_v58 }
 0x243   : > { %3891 = vmatpush2.bf16.msra.mxu0 %v8086_v40 }
 0x244   : > { %3892 = vmatprep.subr.bf16.mxu0 %v8071_v42  ;;  %v8978_v42 = vld [vmem:[#allocation7 + $0xa0] ss:$16 sps:$4 sm:$0xff]  }
 0x245   : > { %3932 = vmatpush2.bf16.msra.mxu1 %v8342_v41 }
 0x246   : > { %3933 = vmatprep.subr.bf16.mxu1 %v8327_v44 }
 0x247   : > { %3893 = vmatpush2.bf16.msra.mxu0 %v8070_v49  ;;  %v8984_v49 = vld [vmem:[#allocation7 + $0x80] ss:$16 sps:$4 sm:$0xff]  }
 0x248   : > { %3894 = vmatprep.subr.bf16.mxu0 %v8055_v52  ;;  %v8992_v52 = vld [vmem:[#allocation7 + $0x64] ss:$16 sps:$4 sm:$0xff]  }
 0x249   : > { %3934 = vmatpush2.bf16.msra.mxu1 %v8326_v50  ;;  %v8987_v50 = vld [vmem:[#allocation7 + $0x280] ss:$16 sps:$4 sm:$0xff]  }
 0x24a   : > { %3935 = vmatprep.subr.bf16.mxu1 %v8311_v53  ;;  %v8995_v53 = vld [vmem:[#allocation7 + $0x264] ss:$16 sps:$4 sm:$0xff]  }
 0x24b   : > { %3895 = vmatpush2.bf16.msra.mxu0 %v8054_v61  ;;  %v8996_v61 = vld [vmem:[#allocation7 + $0x40] ss:$16 sps:$4 sm:$0xff]  }
 0x24c   : > { %3896 = vmatprep.subr.bf16.mxu0 %v8039_v63  ;;  %v9004_v63 = vld [vmem:[#allocation7 + $0x24] ss:$16 sps:$4 sm:$0xff]  }
 0x24d   : > { %3936 = vmatpush2.bf16.msra.mxu1 %v8310_v62  ;;  %v8999_v62 = vld [vmem:[#allocation7 + $0x240] ss:$16 sps:$4 sm:$0xff]  }
 0x24e   : > { %3937 = vmatprep.subr.bf16.mxu1 %v8295_v0  ;;  %v9007_v0 = vld [vmem:[#allocation7 + $0x224] ss:$16 sps:$4 sm:$0xff]  }
 0x24f   : > { %3897 = vmatpush2.bf16.msra.mxu0 %v8038_v6  ;;  %v9008_v6 = vld [vmem:[#allocation7] ss:$16 sps:$4 sm:$0xff]  }
 0x250   : > { %3898 = vmatprep.subr.bf16.mxu0 %v8023_v8  ;;  %v9016_v8 = vld [vmem:[#allocation7 + $0x1e4] ss:$16 sps:$4 sm:$0xff]  }
 0x251   : > { %3938 = vmatpush2.bf16.msra.mxu1 %v8294_v7  ;;  %v9011_v7 = vld [vmem:[#allocation7 + $0x200] ss:$16 sps:$4 sm:$0xff]  }
 0x252   : > { %3939 = vmatprep.subr.bf16.mxu1 %v8279_v9  ;;  %v9019_v9 = vld [vmem:[#allocation7 + $0x3e4] ss:$16 sps:$4 sm:$0xff]  }
 0x253   : > { %3899 = vmatpush2.bf16.msra.mxu0 %v8022_v17  ;;  %v9020_v17 = vld [vmem:[#allocation7 + $0x1c0] ss:$16 sps:$4 sm:$0xff]  }
 0x254   : > { %3900 = vmatprep.subr.bf16.mxu0 %v8007_v20  ;;  %v9028_v20 = vld [vmem:[#allocation7 + $0x1a4] ss:$16 sps:$4 sm:$0xff]  }
 0x255   : > { %3940 = vmatpush2.bf16.msra.mxu1 %v8278_v18  ;;  %v9023_v18 = vld [vmem:[#allocation7 + $0x3c0] ss:$16 sps:$4 sm:$0xff]  }
 0x256   : > { %3941 = vmatprep.subr.bf16.mxu1 %v8263_v21  ;;  %v9031_v21 = vld [vmem:[#allocation7 + $0x3a4] ss:$16 sps:$4 sm:$0xff]  }
 0x257   : > { %3901 = vmatpush2.bf16.msra.mxu0 %v8006_v22  ;;  %v9026_v22 = vld [vmem:[#allocation7 + $0x1a0] ss:$16 sps:$4 sm:$0xff]  }
 0x258   : > { %7056 = vmatprep.subr.bf16.mxu0 %v8968_v26  ;;  %v9034_v26 = vld [vmem:[#allocation7 + $0x184] ss:$16 sps:$4 sm:$0xff]  }
 0x259   : > { %3942 = vmatpush2.bf16.msra.mxu1 %v8262_v23  ;;  %v9029_v23 = vld [vmem:[#allocation7 + $0x3a0] ss:$16 sps:$4 sm:$0xff]  }
 0x25a   : > { %7097 = vmatprep.subr.bf16.mxu1 %v8971_v27  ;;  %v3658_v34 = vpop.f32.mrf.mxu0  ;;  %3903 = vmatmul.mubr.bf16.vlgmr.msra.gmra.mxu0 %v10062_v16  ;;  %v8983_v16 = vld [vmem:[#allocation7 + $0x2a4] ss:$16 sps:$4 sm:$0xff]  }
 0x25b   : > { %7057 = vmatpush1.bf16.msra.mxu0 %v8966_v30  ;;  %7088 = vmatprep.mubr.bf16.mxu0 %v10112_v33  ;;  %v9037_v27 = vld [vmem:[#allocation7 + $0x384] ss:$16 sps:$4 sm:$0xff]  }
 0x25c   : > { %v3699_v58 = vpop.f32.mrf.mxu1  ;;  %3944 = vmatmul.mubr.bf16.vlgmr.msra.gmra.mxu1 %v10064_v19  ;;  %v3660_v37 = vpop.f32.mrf.mxu0  ;;  %7058 = vmatprep.subr.bf16.mxu0 %v8974_v32  ;;  %v9040_v30 = vld [vmem:[#allocation7 + $0x164] ss:$16 sps:$4 sm:$0xff]   ;;  %v9038_v32 = vld [vmem:[#allocation7 + $0x160] ss:$16 sps:$4 sm:$0xff]  }
 0x25d   : > { %v10118_v25 = vadd.f32 %v3699_v58, %v3658_v34  ;;  %7098 = vmatpush1.bf16.msra.mxu1 %v8969_v31  ;;  %7129 = vmatprep.mubr.bf16.mxu1 %v10115_v36  ;;  %v9043_v31 = vld [vmem:[#allocation7 + $0x364] ss:$16 sps:$4 sm:$0xff]   ;;  %v9041_v34 = vld [vmem:[#allocation7 + $0x360] ss:$16 sps:$4 sm:$0xff]  }
 0x25e   : > { %v3701_v59 = vpop.f32.mrf.mxu1  ;;  %v3662_v41 = vpop.f32.mrf.mxu0  ;;  %7099 = vmatprep.subr.bf16.mxu1 %v8977_v35  ;;  %v9046_v35 = vld [vmem:[#allocation7 + $0x144] ss:$16 sps:$4 sm:$0xff]  }
 0x25f   : > { %v10122_v40 = vadd.f32 %v3701_v59, %v3660_v37  ;;  %7059 = vmatpush1.bf16.msra.mxu0 %v8972_v3  ;;  %v9049_v58 = vld [vmem:[#allocation7 + $0x344] ss:$16 sps:$4 sm:$0xff]   ;;  %v9044_v3 = vld [vmem:[#allocation7 + $0x140] ss:$16 sps:$4 sm:$0xff]  }
 0x260   : > { %v3703_v19 = vpop.f32.mrf.mxu1  ;;  %v3663_v44 = vpop.f32.mrf.mxu0  ;;  %7060 = vmatprep.subr.bf16.mxu0 %v8980_v39  ;;  %v9047_v37 = vld [vmem:[#allocation7 + $0x340] ss:$16 sps:$4 sm:$0xff]   ;;  %v9055_v39 = vld [vmem:[#allocation7 + $0x324] ss:$16 sps:$4 sm:$0xff]  }
 0x261   : > { %7100 = vmatpush1.bf16.msra.mxu1 %v8975_v38  ;;  %v9052_v38 = vld [vmem:[#allocation7 + $0x124] ss:$16 sps:$4 sm:$0xff]   ;;  %v9050_v59 = vld [vmem:[#allocation7 + $0x120] ss:$16 sps:$4 sm:$0xff]   ;;  %v3952_v44 = vmax.f32 %v10080_v55, 0.0 }
 0x262   : > { %v3704_v47 = vpop.f32.mrf.mxu1  ;;  %7101 = vmatprep.subr.bf16.mxu1 %v8983_v16  ;;  %v9053_v16 = vld [vmem:[#allocation7 + $0x320] ss:$16 sps:$4 sm:$0xff]   ;;  %v9058_v41 = vld [vmem:[#allocation7 + $0x104] ss:$16 sps:$4 sm:$0xff]  }
 0x263   : > { %7061 = vmatpush1.bf16.msra.mxu0 %v8978_v42  ;;  %v9061_v19 = vld [vmem:[#allocation7 + $0x304] ss:$16 sps:$4 sm:$0xff]   ;;  %v9056_v42 = vld [vmem:[#allocation7 + $0x100] ss:$16 sps:$4 sm:$0xff]   ;;  %v3954_v47 = vmax.f32 %v10088_v15, 0.0 }
 0x264   : > { %7062 = vmatprep.subr.bf16.mxu0 %v8986_v46  ;;  %v9064_v46 = vld [vmem:[#allocation7 + $0x4e4] ss:$16 sps:$4 sm:$0xff]  }
 0x265   : > { %7102 = vmatpush1.bf16.msra.mxu1 %v8981_v45  ;;  %v9059_v45 = vld [vmem:[#allocation7 + $0x300] ss:$16 sps:$4 sm:$0xff]   ;;  %v10130_v55 = vpack.c.bf16 %v3954_v47, %v3954_v47 }
 0x266   : > { %7103 = vmatprep.subr.bf16.mxu1 %v8989_v48  ;;  %v9067_v48 = vld [vmem:[#allocation7 + $0x6e4] ss:$16 sps:$4 sm:$0xff]   ;;  %v9125_v47 = vld [vmem:[#allocation7 + $0x7a0] ss:$16 sps:$4 sm:$0xff]  }
 0x267   : > { %7063 = vmatpush1.bf16.msra.mxu0 %v8984_v49  ;;  %v3957_v49 = vmax.f32 %v10099_v51, 0.0 }
 0x268   : > { %7064 = vmatprep.subr.bf16.mxu0 %v8992_v52  ;;  %v9062_v52 = vld [vmem:[#allocation7 + $0x4e0] ss:$16 sps:$4 sm:$0xff]  }
 0x269   : > { %7104 = vmatpush1.bf16.msra.mxu1 %v8987_v50  ;;  %v3959_v50 = vmax.f32 %v10107_v24, 0.0 }
 0x26a   : > { %7105 = vmatprep.subr.bf16.mxu1 %v8995_v53  ;;  %v10128_v53 = vpack.c.bf16 %v3952_v44, %v3952_v44  ;;  %v9124_v44 = vld [vmem:[#allocation7 + $0x5a4] ss:$16 sps:$4 sm:$0xff]  }
 0x26b   : > { %7065 = vmatpush1.bf16.msra.mxu0 %v8990_v54  ;;  %v9065_v54 = vld [vmem:[#allocation7 + $0x6e0] ss:$16 sps:$4 sm:$0xff]   ;;  %v10135_v51 = vpack.c.bf16 %v3959_v50, %v3959_v50 }
 0x26c   : > { %7066 = vmatprep.subr.bf16.mxu0 %v8998_v57  ;;  %v10132_v57 = vpack.c.bf16 %v3957_v49, %v3957_v49  ;;  %v9133_v49 = vld [vmem:[#allocation7 + $0x784] ss:$16 sps:$4 sm:$0xff]   ;;  %v9128_v50 = vld [vmem:[#allocation7 + $0x580] ss:$16 sps:$4 sm:$0xff]  }
 0x26d   : > { %7106 = vmatpush1.bf16.msra.mxu1 %v8993_v56  ;;  %v9070_v56 = vld [vmem:[#allocation7 + $0x4c4] ss:$16 sps:$4 sm:$0xff]  }
 0x26e   : > { %7107 = vmatprep.subr.bf16.mxu1 %v9001_v60  ;;  %v9073_v60 = vld [vmem:[#allocation7 + $0x6c4] ss:$16 sps:$4 sm:$0xff]  }
 0x26f   : > { %7067 = vmatpush1.bf16.msra.mxu0 %v8996_v61  ;;  %v9068_v61 = vld [vmem:[#allocation7 + $0x4c0] ss:$16 sps:$4 sm:$0xff]  }
 0x270   : > { %7068 = vmatprep.subr.bf16.mxu0 %v9004_v63 }
 0x271   : > { %7108 = vmatpush1.bf16.msra.mxu1 %v8999_v62 }
 0x272   : > { %7109 = vmatprep.subr.bf16.mxu1 %v9007_v0  ;;  %v9071_v0 = vld [vmem:[#allocation7 + $0x6c0] ss:$16 sps:$4 sm:$0xff]  }
 0x273   : > { %7069 = vmatpush1.bf16.msra.mxu0 %v9002_v1  ;;  %v9076_v1 = vld [vmem:[#allocation7 + $0x4a4] ss:$16 sps:$4 sm:$0xff]  }
 0x274   : > { %7070 = vmatprep.subr.bf16.mxu0 %v9010_v4  ;;  %v9079_v4 = vld [vmem:[#allocation7 + $0x6a4] ss:$16 sps:$4 sm:$0xff]  }
 0x275   : > { %7110 = vmatpush1.bf16.msra.mxu1 %v9005_v2 }
 0x276   : > { %7111 = vmatprep.subr.bf16.mxu1 %v9013_v5 }
 0x277   : > { %7071 = vmatpush1.bf16.msra.mxu0 %v9008_v6 }
 0x278   : > { %7072 = vmatprep.subr.bf16.mxu0 %v9016_v8 }
 0x279   : > { %7112 = vmatpush1.bf16.msra.mxu1 %v9011_v7  ;;  %v9074_v7 = vld [vmem:[#allocation7 + $0x4a0] ss:$16 sps:$4 sm:$0xff]  }
 0x27a   : > { %7113 = vmatprep.subr.bf16.mxu1 %v9019_v9  ;;  %v9077_v9 = vld [vmem:[#allocation7 + $0x6a0] ss:$16 sps:$4 sm:$0xff]  }
 0x27b   : > { %7073 = vmatpush2.bf16.msra.mxu0 %v9014_v10  ;;  %v9082_v10 = vld [vmem:[#allocation7 + $0x484] ss:$16 sps:$4 sm:$0xff]  }
 0x27c   : > { %7074 = vmatprep.subr.bf16.mxu0 %v9022_v12  ;;  %v9085_v12 = vld [vmem:[#allocation7 + $0x684] ss:$16 sps:$4 sm:$0xff]  }
 0x27d   : > { %7114 = vmatpush2.bf16.msra.mxu1 %v9017_v11 }
 0x27e   : > { %7115 = vmatprep.subr.bf16.mxu1 %v9025_v14  ;;  %v9080_v14 = vld [vmem:[#allocation7 + $0x480] ss:$16 sps:$4 sm:$0xff]  }
 0x27f   : > { %7075 = vmatpush2.bf16.msra.mxu0 %v9020_v17  ;;  %v9083_v17 = vld [vmem:[#allocation7 + $0x680] ss:$16 sps:$4 sm:$0xff]  }
 0x280   : > { %7076 = vmatprep.subr.bf16.mxu0 %v9028_v20  ;;  %v9091_v20 = vld [vmem:[#allocation7 + $0x664] ss:$16 sps:$4 sm:$0xff]  }
 0x281   : > { %7116 = vmatpush2.bf16.msra.mxu1 %v9023_v18  ;;  %v9088_v18 = vld [vmem:[#allocation7 + $0x464] ss:$16 sps:$4 sm:$0xff]  }
 0x282   : > { %7117 = vmatprep.subr.bf16.mxu1 %v9031_v21  ;;  %v9086_v21 = vld [vmem:[#allocation7 + $0x460] ss:$16 sps:$4 sm:$0xff]  }
 0x283   : > { %7077 = vmatpush2.bf16.msra.mxu0 %v9026_v22  ;;  %v9089_v22 = vld [vmem:[#allocation7 + $0x660] ss:$16 sps:$4 sm:$0xff]  }
 0x284   : > { %7078 = vmatprep.subr.bf16.mxu0 %v9034_v26  ;;  %v9097_v26 = vld [vmem:[#allocation7 + $0x644] ss:$16 sps:$4 sm:$0xff]  }
 0x285   : > { %7118 = vmatpush2.bf16.msra.mxu1 %v9029_v23  ;;  %v9094_v23 = vld [vmem:[#allocation7 + $0x444] ss:$16 sps:$4 sm:$0xff]  }
 0x286   : > { %7119 = vmatprep.subr.bf16.mxu1 %v9037_v27  ;;  %v9092_v27 = vld [vmem:[#allocation7 + $0x440] ss:$16 sps:$4 sm:$0xff]  }
 0x287   : > { %7079 = vmatpush2.bf16.msra.mxu0 %v9032_v28  ;;  %v9095_v28 = vld [vmem:[#allocation7 + $0x640] ss:$16 sps:$4 sm:$0xff]  }
 0x288   : > { %7080 = vmatprep.subr.bf16.mxu0 %v9040_v30  ;;  %v9103_v30 = vld [vmem:[#allocation7 + $0x624] ss:$16 sps:$4 sm:$0xff]  }
 0x289   : > { %7120 = vmatpush2.bf16.msra.mxu1 %v9035_v29  ;;  %v9100_v29 = vld [vmem:[#allocation7 + $0x424] ss:$16 sps:$4 sm:$0xff]  }
 0x28a   : > { %7121 = vmatprep.subr.bf16.mxu1 %v9043_v31  ;;  %v9098_v31 = vld [vmem:[#allocation7 + $0x420] ss:$16 sps:$4 sm:$0xff]  }
 0x28b   : > { %7081 = vmatpush2.bf16.msra.mxu0 %v9038_v32  ;;  %v9101_v32 = vld [vmem:[#allocation7 + $0x620] ss:$16 sps:$4 sm:$0xff]  }
 0x28c   : > { %7082 = vmatprep.subr.bf16.mxu0 %v9046_v35  ;;  %v9109_v35 = vld [vmem:[#allocation7 + $0x604] ss:$16 sps:$4 sm:$0xff]  }
 0x28d   : > { %7122 = vmatpush2.bf16.msra.mxu1 %v9041_v34  ;;  %v9106_v34 = vld [vmem:[#allocation7 + $0x404] ss:$16 sps:$4 sm:$0xff]  }
 0x28e   : > { %7123 = vmatprep.subr.bf16.mxu1 %v9049_v58  ;;  %v9104_v58 = vld [vmem:[#allocation7 + $0x400] ss:$16 sps:$4 sm:$0xff]  }
 0x28f   : > { %7083 = vmatpush2.bf16.msra.mxu0 %v9044_v3  ;;  %v9107_v3 = vld [vmem:[#allocation7 + $0x600] ss:$16 sps:$4 sm:$0xff]  }
 0x290   : > { %7084 = vmatprep.subr.bf16.mxu0 %v9052_v38  ;;  %v9115_v38 = vld [vmem:[#allocation7 + $0x7e4] ss:$16 sps:$4 sm:$0xff]  }
 0x291   : > { %7124 = vmatpush2.bf16.msra.mxu1 %v9047_v37  ;;  %v9112_v37 = vld [vmem:[#allocation7 + $0x5e4] ss:$16 sps:$4 sm:$0xff]  }
 0x292   : > { %7125 = vmatprep.subr.bf16.mxu1 %v9055_v39  ;;  %v9110_v39 = vld [vmem:[#allocation7 + $0x5e0] ss:$16 sps:$4 sm:$0xff]  }
 0x293   : > { %7085 = vmatpush2.bf16.msra.mxu0 %v9050_v59  ;;  %v9113_v59 = vld [vmem:[#allocation7 + $0x7e0] ss:$16 sps:$4 sm:$0xff]  }
 0x294   : > { %7086 = vmatprep.subr.bf16.mxu0 %v9058_v41  ;;  %v9121_v41 = vld [vmem:[#allocation7 + $0x7c4] ss:$16 sps:$4 sm:$0xff]  }
 0x295   : > { %7126 = vmatpush2.bf16.msra.mxu1 %v9053_v16  ;;  %v9118_v16 = vld [vmem:[#allocation7 + $0x5c4] ss:$16 sps:$4 sm:$0xff]  }
 0x296   : > { %7127 = vmatprep.subr.bf16.mxu1 %v9061_v19  ;;  %v9116_v19 = vld [vmem:[#allocation7 + $0x5c0] ss:$16 sps:$4 sm:$0xff]  }
 0x297   : > { %7087 = vmatpush2.bf16.msra.mxu0 %v9056_v42  ;;  %v9119_v42 = vld [vmem:[#allocation7 + $0x7c0] ss:$16 sps:$4 sm:$0xff]  }
 0x298   : > { %7138 = vmatprep.subr.bf16.mxu0 %v9064_v46  ;;  %v9122_v46 = vld [vmem:[#allocation7 + $0x5a0] ss:$16 sps:$4 sm:$0xff]  }
 0x299   : > { %7128 = vmatpush2.bf16.msra.mxu1 %v9059_v45  ;;  %v9127_v45 = vld [vmem:[#allocation7 + $0x7a4] ss:$16 sps:$4 sm:$0xff]  }
 0x29a   : > { %7179 = vmatprep.subr.bf16.mxu1 %v9067_v48  ;;  %v3740_v15 = vpop.f32.mrf.mxu0  ;;  %7089 = vmatmul.mubr.bf16.vlgmr.msra.gmra.mxu0 %v10128_v53  ;;  %v9130_v48 = vld [vmem:[#allocation7 + $0x584] ss:$16 sps:$4 sm:$0xff]  }
 0x29b   : > { %7139 = vmatpush1.bf16.msra.mxu0 %v9062_v52  ;;  %7170 = vmatprep.mubr.bf16.mxu0 %v10132_v57  ;;  %v9131_v52 = vld [vmem:[#allocation7 + $0x780] ss:$16 sps:$4 sm:$0xff]  }
 0x29c   : > { %v3781_v24 = vpop.f32.mrf.mxu1  ;;  %7130 = vmatmul.mubr.bf16.vlgmr.msra.gmra.mxu1 %v10130_v55  ;;  %v10141_v63 = vpop.f32.mrf.mxu0  ;;  %7140 = vmatprep.subr.bf16.mxu0 %v9070_v56  ;;  %v9139_v56 = vld [vmem:[#allocation7 + $0x764] ss:$16 sps:$4 sm:$0xff]  }
 0x29d   : > { %v10138_v62 = vadd.f32 %v3781_v24, %v3740_v15  ;;  %7180 = vmatpush1.bf16.msra.mxu1 %v9065_v54  ;;  %7211 = vmatprep.mubr.bf16.mxu1 %v10135_v51  ;;  %v9136_v54 = vld [vmem:[#allocation7 + $0x564] ss:$16 sps:$4 sm:$0xff]   ;;  %v9134_v15 = vld [vmem:[#allocation7 + $0x560] ss:$16 sps:$4 sm:$0xff]  }
 0x29e   : > { %v10144_v2 = vpop.f32.mrf.mxu1  ;;  %v3744_v5 = vpop.f32.mrf.mxu0  ;;  %7181 = vmatprep.subr.bf16.mxu1 %v9073_v60  ;;  %v9137_v60 = vld [vmem:[#allocation7 + $0x760] ss:$16 sps:$4 sm:$0xff]   ;;  %v9142_v24 = vld [vmem:[#allocation7 + $0x544] ss:$16 sps:$4 sm:$0xff]  }
 0x29f   : > { %7141 = vmatpush1.bf16.msra.mxu0 %v9068_v61  ;;  %v9145_v61 = vld [vmem:[#allocation7 + $0x744] ss:$16 sps:$4 sm:$0xff]  }
 0x2a0   : > { %v3785_v6 = vpop.f32.mrf.mxu1  ;;  %v3745_v8 = vpop.f32.mrf.mxu0  ;;  %7142 = vmatprep.subr.bf16.mxu0 %v9076_v1  ;;  %v9143_v1 = vld [vmem:[#allocation7 + $0x740] ss:$16 sps:$4 sm:$0xff]   ;;  %v9151_v5 = vld [vmem:[#allocation7 + $0x724] ss:$16 sps:$4 sm:$0xff]  }
 0x2a1   : > { %7182 = vmatpush1.bf16.msra.mxu1 %v9071_v0  ;;  %v9140_v0 = vld [vmem:[#allocation7 + $0x540] ss:$16 sps:$4 sm:$0xff]   ;;  %v9154_v8 = vld [vmem:[#allocation7 + $0x504] ss:$16 sps:$4 sm:$0xff]  }
 0x2a2   : > { %v3786_v11 = vpop.f32.mrf.mxu1  ;;  %7183 = vmatprep.subr.bf16.mxu1 %v9079_v4  ;;  %v9148_v4 = vld [vmem:[#allocation7 + $0x524] ss:$16 sps:$4 sm:$0xff]   ;;  %v9146_v6 = vld [vmem:[#allocation7 + $0x520] ss:$16 sps:$4 sm:$0xff]  }
 0x2a3   : > { %7143 = vmatpush1.bf16.msra.mxu0 %v9074_v7  ;;  %v9149_v7 = vld [vmem:[#allocation7 + $0x720] ss:$16 sps:$4 sm:$0xff]  }
 0x2a4   : > { %7144 = vmatprep.subr.bf16.mxu0 %v9082_v10  ;;  %v3784_v10 = vadd.f32 %v10144_v2, %v10141_v63  ;;  %v9152_v11 = vld [vmem:[#allocation7 + $0x500] ss:$16 sps:$4 sm:$0xff]  }
 0x2a5   : > { %7184 = vmatpush1.bf16.msra.mxu1 %v9077_v9  ;;  %v9157_v9 = vld [vmem:[#allocation7 + $0x704] ss:$16 sps:$4 sm:$0xff]   ;;  %v9161_v63 = vld [vmem:[#allocation7 + $0xae0] ss:$16 sps:$4 sm:$0xff]  }
 0x2a6   : > { %7185 = vmatprep.subr.bf16.mxu1 %v9085_v12  ;;  %v3956_v12 = vmax.f32 %v10096_v43, 0.0  ;;  %v9166_v43 = vld [vmem:[#allocation7 + $0x8c4] ss:$16 sps:$4 sm:$0xff]  }
 0x2a7   : > { %7145 = vmatpush1.bf16.msra.mxu0 %v9080_v14  ;;  %v9155_v14 = vld [vmem:[#allocation7 + $0x700] ss:$16 sps:$4 sm:$0xff]  }
 0x2a8   : > { %7146 = vmatprep.subr.bf16.mxu0 %v9088_v18  ;;  %v3958_v18 = vmax.f32 %v10104_v13, 0.0  ;;  %v9169_v13 = vld [vmem:[#allocation7 + $0xac4] ss:$16 sps:$4 sm:$0xff]  }
 0x2a9   : > { %7186 = vmatpush1.bf16.msra.mxu1 %v9083_v17  ;;  %v9160_v17 = vld [vmem:[#allocation7 + $0x8e4] ss:$16 sps:$4 sm:$0xff]  }
 0x2aa   : > { %7187 = vmatprep.subr.bf16.mxu1 %v9091_v20  ;;  %v9163_v20 = vld [vmem:[#allocation7 + $0xae4] ss:$16 sps:$4 sm:$0xff]   ;;  %v10153_v2 = vpack.c.bf16 %v3958_v18, %v3958_v18 }
 0x2ab   : > { %7147 = vmatpush1.bf16.msra.mxu0 %v9086_v21  ;;  %v3961_v21 = vmax.f32 %v10122_v40, 0.0  ;;  %v9223_v18 = vld [vmem:[#allocation7 + $0xba4] ss:$16 sps:$4 sm:$0xff]  }
 0x2ac   : > { %7148 = vmatprep.subr.bf16.mxu0 %v9094_v23  ;;  %v9158_v23 = vld [vmem:[#allocation7 + $0x8e0] ss:$16 sps:$4 sm:$0xff]  }
 0x2ad   : > { %7188 = vmatpush1.bf16.msra.mxu1 %v9089_v22  ;;  %v3963_v22 = vmax.f32 %v3784_v10, 0.0  ;;  %v9214_v10 = vld [vmem:[#allocation7 + $0x9c4] ss:$16 sps:$4 sm:$0xff]  }
 0x2ae   : > { %7189 = vmatprep.subr.bf16.mxu1 %v9097_v26  ;;  %v10151_v26 = vpack.c.bf16 %v3956_v12, %v3956_v12  ;;  %v9212_v12 = vld [vmem:[#allocation7 + $0x9c0] ss:$16 sps:$4 sm:$0xff]  }
 0x2af   : > { %7149 = vmatpush1.bf16.msra.mxu0 %v9092_v27  ;;  %v10155_v27 = vpack.c.bf16 %v3961_v21, %v3961_v21  ;;  %v9221_v21 = vld [vmem:[#allocation7 + $0xba0] ss:$16 sps:$4 sm:$0xff]  }
 0x2b0   : > { %7150 = vmatprep.subr.bf16.mxu0 %v9100_v29  ;;  %v10158_v29 = vpack.c.bf16 %v3963_v22, %v3963_v22  ;;  %v9226_v22 = vld [vmem:[#allocation7 + $0x984] ss:$16 sps:$4 sm:$0xff]  }
 0x2b1   : > { %7190 = vmatpush1.bf16.msra.mxu1 %v9095_v28 }
 0x2b2   : > { %7191 = vmatprep.subr.bf16.mxu1 %v9103_v30  ;;  %v9164_v30 = vld [vmem:[#allocation7 + $0x8c0] ss:$16 sps:$4 sm:$0xff]  }
 0x2b3   : > { %7151 = vmatpush1.bf16.msra.mxu0 %v9098_v31 }
 0x2b4   : > { %7152 = vmatprep.subr.bf16.mxu0 %v9106_v34  ;;  %v9167_v34 = vld [vmem:[#allocation7 + $0xac0] ss:$16 sps:$4 sm:$0xff]  }
 0x2b5   : > { %7192 = vmatpush1.bf16.msra.mxu1 %v9101_v32 }
 0x2b6   : > { %7193 = vmatprep.subr.bf16.mxu1 %v9109_v35  ;;  %v9172_v35 = vld [vmem:[#allocation7 + $0x8a4] ss:$16 sps:$4 sm:$0xff]  }
 0x2b7   : > { %7153 = vmatpush1.bf16.msra.mxu0 %v9104_v58 }
 0x2b8   : > { %7154 = vmatprep.subr.bf16.mxu0 %v9112_v37 }
 0x2b9   : > { %7194 = vmatpush1.bf16.msra.mxu1 %v9107_v3  ;;  %v9175_v3 = vld [vmem:[#allocation7 + $0xaa4] ss:$16 sps:$4 sm:$0xff]  }
 0x2ba   : > { %7195 = vmatprep.subr.bf16.mxu1 %v9115_v38 }
 0x2bb   : > { %7155 = vmatpush2.bf16.msra.mxu0 %v9110_v39  ;;  %v9170_v39 = vld [vmem:[#allocation7 + $0x8a0] ss:$16 sps:$4 sm:$0xff]  }
 0x2bc   : > { %7156 = vmatprep.subr.bf16.mxu0 %v9118_v16  ;;  %v9173_v16 = vld [vmem:[#allocation7 + $0xaa0] ss:$16 sps:$4 sm:$0xff]  }
 0x2bd   : > { %7196 = vmatpush2.bf16.msra.mxu1 %v9113_v59 }
 0x2be   : > { %7197 = vmatprep.subr.bf16.mxu1 %v9121_v41  ;;  %v9178_v41 = vld [vmem:[#allocation7 + $0x884] ss:$16 sps:$4 sm:$0xff]  }
 0x2bf   : > { %7157 = vmatpush2.bf16.msra.mxu0 %v9116_v19 }
 0x2c0   : > { %7158 = vmatprep.subr.bf16.mxu0 %v9124_v44  ;;  %v9176_v44 = vld [vmem:[#allocation7 + $0x880] ss:$16 sps:$4 sm:$0xff]  }
 0x2c1   : > { %7198 = vmatpush2.bf16.msra.mxu1 %v9119_v42  ;;  %v9181_v42 = vld [vmem:[#allocation7 + $0xa84] ss:$16 sps:$4 sm:$0xff]  }
 0x2c2   : > { %7199 = vmatprep.subr.bf16.mxu1 %v9127_v45  ;;  %v9179_v45 = vld [vmem:[#allocation7 + $0xa80] ss:$16 sps:$4 sm:$0xff]  }
 0x2c3   : > { %7159 = vmatpush2.bf16.msra.mxu0 %v9122_v46  ;;  %v9184_v46 = vld [vmem:[#allocation7 + $0x864] ss:$16 sps:$4 sm:$0xff]  }
 0x2c4   : > { %7160 = vmatprep.subr.bf16.mxu0 %v9130_v48  ;;  %v9182_v48 = vld [vmem:[#allocation7 + $0x860] ss:$16 sps:$4 sm:$0xff]  }
 0x2c5   : > { %7200 = vmatpush2.bf16.msra.mxu1 %v9125_v47  ;;  %v9187_v47 = vld [vmem:[#allocation7 + $0xa64] ss:$16 sps:$4 sm:$0xff]  }
 0x2c6   : > { %7201 = vmatprep.subr.bf16.mxu1 %v9133_v49  ;;  %v9185_v49 = vld [vmem:[#allocation7 + $0xa60] ss:$16 sps:$4 sm:$0xff]  }
 0x2c7   : > { %7161 = vmatpush2.bf16.msra.mxu0 %v9128_v50  ;;  %v9190_v50 = vld [vmem:[#allocation7 + $0x844] ss:$16 sps:$4 sm:$0xff]  }
 0x2c8   : > { %7162 = vmatprep.subr.bf16.mxu0 %v9136_v54  ;;  %v9188_v54 = vld [vmem:[#allocation7 + $0x840] ss:$16 sps:$4 sm:$0xff]  }
 0x2c9   : > { %7202 = vmatpush2.bf16.msra.mxu1 %v9131_v52  ;;  %v9193_v52 = vld [vmem:[#allocation7 + $0xa44] ss:$16 sps:$4 sm:$0xff]  }
 0x2ca   : > { %7203 = vmatprep.subr.bf16.mxu1 %v9139_v56  ;;  %v9191_v56 = vld [vmem:[#allocation7 + $0xa40] ss:$16 sps:$4 sm:$0xff]  }
 0x2cb   : > { %7163 = vmatpush2.bf16.msra.mxu0 %v9134_v15  ;;  %v9196_v15 = vld [vmem:[#allocation7 + $0x824] ss:$16 sps:$4 sm:$0xff]  }
 0x2cc   : > { %7164 = vmatprep.subr.bf16.mxu0 %v9142_v24  ;;  %v9194_v24 = vld [vmem:[#allocation7 + $0x820] ss:$16 sps:$4 sm:$0xff]  }
 0x2cd   : > { %7204 = vmatpush2.bf16.msra.mxu1 %v9137_v60  ;;  %v9199_v60 = vld [vmem:[#allocation7 + $0xa24] ss:$16 sps:$4 sm:$0xff]  }
 0x2ce   : > { %7205 = vmatprep.subr.bf16.mxu1 %v9145_v61  ;;  %v9197_v61 = vld [vmem:[#allocation7 + $0xa20] ss:$16 sps:$4 sm:$0xff]  }
 0x2cf   : > { %7165 = vmatpush2.bf16.msra.mxu0 %v9140_v0  ;;  %v9202_v0 = vld [vmem:[#allocation7 + $0x804] ss:$16 sps:$4 sm:$0xff]  }
 0x2d0   : > { %7166 = vmatprep.subr.bf16.mxu0 %v9148_v4  ;;  %v9200_v4 = vld [vmem:[#allocation7 + $0x800] ss:$16 sps:$4 sm:$0xff]  }
 0x2d1   : > { %7206 = vmatpush2.bf16.msra.mxu1 %v9143_v1  ;;  %v9205_v1 = vld [vmem:[#allocation7 + $0xa04] ss:$16 sps:$4 sm:$0xff]  }
 0x2d2   : > { %7207 = vmatprep.subr.bf16.mxu1 %v9151_v5  ;;  %v9203_v5 = vld [vmem:[#allocation7 + $0xa00] ss:$16 sps:$4 sm:$0xff]  }
 0x2d3   : > { %7167 = vmatpush2.bf16.msra.mxu0 %v9146_v6  ;;  %v9208_v6 = vld [vmem:[#allocation7 + $0x9e4] ss:$16 sps:$4 sm:$0xff]  }
 0x2d4   : > { %7168 = vmatprep.subr.bf16.mxu0 %v9154_v8  ;;  %v9206_v8 = vld [vmem:[#allocation7 + $0x9e0] ss:$16 sps:$4 sm:$0xff]  }
 0x2d5   : > { %7208 = vmatpush2.bf16.msra.mxu1 %v9149_v7  ;;  %v9211_v7 = vld [vmem:[#allocation7 + $0xbe4] ss:$16 sps:$4 sm:$0xff]  }
 0x2d6   : > { %7209 = vmatprep.subr.bf16.mxu1 %v9157_v9  ;;  %v9209_v9 = vld [vmem:[#allocation7 + $0xbe0] ss:$16 sps:$4 sm:$0xff]  }
 0x2d7   : > { %7169 = vmatpush2.bf16.msra.mxu0 %v9152_v11  ;;  %v9217_v11 = vld [vmem:[#allocation7 + $0xbc4] ss:$16 sps:$4 sm:$0xff]  }
 0x2d8   : > { %7220 = vmatprep.subr.bf16.mxu0 %v9160_v17  ;;  %v9220_v17 = vld [vmem:[#allocation7 + $0x9a4] ss:$16 sps:$4 sm:$0xff]  }
 0x2d9   : > { %7210 = vmatpush2.bf16.msra.mxu1 %v9155_v14  ;;  %v9215_v14 = vld [vmem:[#allocation7 + $0xbc0] ss:$16 sps:$4 sm:$0xff]  }
 0x2da   : > { %7261 = vmatprep.subr.bf16.mxu1 %v9163_v20  ;;  %v3822_v28 = vpop.f32.mrf.mxu0  ;;  %7171 = vmatmul.mubr.bf16.vlgmr.msra.gmra.mxu0 %v10151_v26  ;;  %v9218_v20 = vld [vmem:[#allocation7 + $0x9a0] ss:$16 sps:$4 sm:$0xff]  }
 0x2db   : > { %7221 = vmatpush1.bf16.msra.mxu0 %v9158_v23  ;;  %7252 = vmatprep.mubr.bf16.mxu0 %v10155_v27  ;;  %v9229_v23 = vld [vmem:[#allocation7 + $0xb84] ss:$16 sps:$4 sm:$0xff]  }
 0x2dc   : > { %v3863_v40 = vpop.f32.mrf.mxu1  ;;  %7212 = vmatmul.mubr.bf16.vlgmr.msra.gmra.mxu1 %v10153_v2  ;;  %v10164_v32 = vpop.f32.mrf.mxu0  ;;  %7222 = vmatprep.subr.bf16.mxu0 %v9166_v43  ;;  %v9227_v43 = vld [vmem:[#allocation7 + $0xb80] ss:$16 sps:$4 sm:$0xff]  }
 0x2dd   : > { %v10161_v31 = vadd.f32 %v3863_v40, %v3822_v28  ;;  %7262 = vmatpush1.bf16.msra.mxu1 %v9161_v63  ;;  %7293 = vmatprep.mubr.bf16.mxu1 %v10158_v29  ;;  %v9224_v63 = vld [vmem:[#allocation7 + $0x980] ss:$16 sps:$4 sm:$0xff]   ;;  %v9232_v28 = vld [vmem:[#allocation7 + $0x964] ss:$16 sps:$4 sm:$0xff]  }
 0x2de   : > { %v10167_v58 = vpop.f32.mrf.mxu1  ;;  %v3826_v37 = vpop.f32.mrf.mxu0  ;;  %7263 = vmatprep.subr.bf16.mxu1 %v9169_v13  ;;  %v9235_v13 = vld [vmem:[#allocation7 + $0xb64] ss:$16 sps:$4 sm:$0xff]   ;;  %v9230_v40 = vld [vmem:[#allocation7 + $0x960] ss:$16 sps:$4 sm:$0xff]  }
 0x2df   : > { %7223 = vmatpush1.bf16.msra.mxu0 %v9164_v30  ;;  %v9233_v30 = vld [vmem:[#allocation7 + $0xb60] ss:$16 sps:$4 sm:$0xff]  }
 0x2e0   : > { %v3867_v38 = vpop.f32.mrf.mxu1  ;;  %v3827_v59 = vpop.f32.mrf.mxu0  ;;  %7224 = vmatprep.subr.bf16.mxu0 %v9172_v35  ;;  %v9241_v35 = vld [vmem:[#allocation7 + $0xb44] ss:$16 sps:$4 sm:$0xff]   ;;  %v9239_v37 = vld [vmem:[#allocation7 + $0xb40] ss:$16 sps:$4 sm:$0xff]  }
 0x2e1   : > { %7264 = vmatpush1.bf16.msra.mxu1 %v9167_v34  ;;  %v9238_v34 = vld [vmem:[#allocation7 + $0x944] ss:$16 sps:$4 sm:$0xff]   ;;  %v9242_v59 = vld [vmem:[#allocation7 + $0x920] ss:$16 sps:$4 sm:$0xff]  }
 0x2e2   : > { %v3868_v19 = vpop.f32.mrf.mxu1  ;;  %7265 = vmatprep.subr.bf16.mxu1 %v9175_v3  ;;  %v9236_v3 = vld [vmem:[#allocation7 + $0x940] ss:$16 sps:$4 sm:$0xff]   ;;  %v9244_v38 = vld [vmem:[#allocation7 + $0x924] ss:$16 sps:$4 sm:$0xff]  }
 0x2e3   : > { %7225 = vmatpush1.bf16.msra.mxu0 %v9170_v39  ;;  %v9247_v39 = vld [vmem:[#allocation7 + $0xb24] ss:$16 sps:$4 sm:$0xff]  }
 0x2e4   : > { %7226 = vmatprep.subr.bf16.mxu0 %v9178_v41  ;;  %v9250_v41 = vld [vmem:[#allocation7 + $0x904] ss:$16 sps:$4 sm:$0xff]  }
 0x2e5   : > { %7266 = vmatpush1.bf16.msra.mxu1 %v9173_v16  ;;  %v9245_v16 = vld [vmem:[#allocation7 + $0xb20] ss:$16 sps:$4 sm:$0xff]   ;;  %v9253_v19 = vld [vmem:[#allocation7 + $0xb04] ss:$16 sps:$4 sm:$0xff]  }
 0x2e6   : > { %7267 = vmatprep.subr.bf16.mxu1 %v9181_v42  ;;  %v3866_v42 = vadd.f32 %v10167_v58, %v10164_v32  ;;  %v9257_v32 = vld [vmem:[#allocation7 + $0xee0] ss:$16 sps:$4 sm:$0xff]  }
 0x2e7   : > { %7227 = vmatpush1.bf16.msra.mxu0 %v9176_v44  ;;  %v9248_v44 = vld [vmem:[#allocation7 + $0x900] ss:$16 sps:$4 sm:$0xff]  }
 0x2e8   : > { %7228 = vmatprep.subr.bf16.mxu0 %v9184_v46  ;;  %v9251_v46 = vld [vmem:[#allocation7 + $0xb00] ss:$16 sps:$4 sm:$0xff]  }
 0x2e9   : > { %7268 = vmatpush1.bf16.msra.mxu1 %v9179_v45  ;;  %v3960_v45 = vmax.f32 %v10118_v25, 0.0  ;;  %v9262_v25 = vld [vmem:[#allocation7 + $0xcc4] ss:$16 sps:$4 sm:$0xff]  }
 0x2ea   : > { %7269 = vmatprep.subr.bf16.mxu1 %v9187_v47  ;;  %v9256_v47 = vld [vmem:[#allocation7 + $0xce4] ss:$16 sps:$4 sm:$0xff]  }
 0x2eb   : > { %7229 = vmatpush1.bf16.msra.mxu0 %v9182_v48  ;;  %v3962_v48 = vmax.f32 %v10138_v62, 0.0 }
 0x2ec   : > { %7230 = vmatprep.subr.bf16.mxu0 %v9190_v50  ;;  %v3965_v50 = vmax.f32 %v3866_v42, 0.0  ;;  %v9307_v42 = vld [vmem:[#allocation7 + $0xfe4] ss:$16 sps:$4 sm:$0xff]  }
 0x2ed   : > { %7270 = vmatpush1.bf16.msra.mxu1 %v9185_v49  ;;  %v9259_v49 = vld [vmem:[#allocation7 + $0xee4] ss:$16 sps:$4 sm:$0xff]   ;;  %v10175_v58 = vpack.c.bf16 %v3962_v48, %v3962_v48  ;;  %v9308_v48 = vld [vmem:[#allocation7 + $0xdc0] ss:$16 sps:$4 sm:$0xff]  }
 0x2ee   : > { %7271 = vmatprep.subr.bf16.mxu1 %v9193_v52  ;;  %v9254_v52 = vld [vmem:[#allocation7 + $0xce0] ss:$16 sps:$4 sm:$0xff]  }
 0x2ef   : > { %7231 = vmatpush1.bf16.msra.mxu0 %v9188_v54  ;;  %v10173_v54 = vpack.c.bf16 %v3960_v45, %v3960_v45  ;;  %v9305_v45 = vld [vmem:[#allocation7 + $0xfe0] ss:$16 sps:$4 sm:$0xff]  }
 0x2f0   : > { %7232 = vmatprep.subr.bf16.mxu0 %v9196_v15  ;;  %v10177_v15 = vpack.c.bf16 %v3965_v50, %v3965_v50  ;;  %v9316_v50 = vld [vmem:[#allocation7 + $0xda4] ss:$16 sps:$4 sm:$0xff]  }
 0x2f1   : > { %7272 = vmatpush1.bf16.msra.mxu1 %v9191_v56  ;;  %v9265_v56 = vld [vmem:[#allocation7 + $0xec4] ss:$16 sps:$4 sm:$0xff]  }
 0x2f2   : > { %7273 = vmatprep.subr.bf16.mxu1 %v9199_v60 }
 0x2f3   : > { %7233 = vmatpush1.bf16.msra.mxu0 %v9194_v24  ;;  %v9260_v24 = vld [vmem:[#allocation7 + $0xcc0] ss:$16 sps:$4 sm:$0xff]  }
 0x2f4   : > { %7234 = vmatprep.subr.bf16.mxu0 %v9202_v0  ;;  %v9263_v0 = vld [vmem:[#allocation7 + $0xec0] ss:$16 sps:$4 sm:$0xff]  }
 0x2f5   : > { %7274 = vmatpush1.bf16.msra.mxu1 %v9197_v61 }
 0x2f6   : > { %7275 = vmatprep.subr.bf16.mxu1 %v9205_v1  ;;  %v9268_v1 = vld [vmem:[#allocation7 + $0xca4] ss:$16 sps:$4 sm:$0xff]  }
 0x2f7   : > { %7235 = vmatpush1.bf16.msra.mxu0 %v9200_v4 }
 0x2f8   : > { %7236 = vmatprep.subr.bf16.mxu0 %v9208_v6 }
 0x2f9   : > { %7276 = vmatpush1.bf16.msra.mxu1 %v9203_v5  ;;  %v9271_v5 = vld [vmem:[#allocation7 + $0xea4] ss:$16 sps:$4 sm:$0xff]  }
 0x2fa   : > { %7277 = vmatprep.subr.bf16.mxu1 %v9211_v7 }
 0x2fb   : > { %7237 = vmatpush2.bf16.msra.mxu0 %v9206_v8 }
 0x2fc   : > { %7238 = vmatprep.subr.bf16.mxu0 %v9214_v10 }
 0x2fd   : > { %7278 = vmatpush2.bf16.msra.mxu1 %v9209_v9  ;;  %v9266_v9 = vld [vmem:[#allocation7 + $0xca0] ss:$16 sps:$4 sm:$0xff]  }
 0x2fe   : > { %7279 = vmatprep.subr.bf16.mxu1 %v9217_v11 }
 0x2ff   : > { %7239 = vmatpush2.bf16.msra.mxu0 %v9212_v12  ;;  %v9269_v12 = vld [vmem:[#allocation7 + $0xea0] ss:$16 sps:$4 sm:$0xff]  }
 0x300   : > { %7240 = vmatprep.subr.bf16.mxu0 %v9220_v17  ;;  %v9274_v17 = vld [vmem:[#allocation7 + $0xc84] ss:$16 sps:$4 sm:$0xff]  }
 0x301   : > { %7280 = vmatpush2.bf16.msra.mxu1 %v9215_v14 }
 0x302   : > { %7281 = vmatprep.subr.bf16.mxu1 %v9223_v18  ;;  %v9277_v18 = vld [vmem:[#allocation7 + $0xe84] ss:$16 sps:$4 sm:$0xff]  }
 0x303   : > { %7241 = vmatpush2.bf16.msra.mxu0 %v9218_v20 }
 0x304   : > { %7242 = vmatprep.subr.bf16.mxu0 %v9226_v22  ;;  %v9275_v22 = vld [vmem:[#allocation7 + $0xe80] ss:$16 sps:$4 sm:$0xff]  }
 0x305   : > { %7282 = vmatpush2.bf16.msra.mxu1 %v9221_v21  ;;  %v9272_v21 = vld [vmem:[#allocation7 + $0xc80] ss:$16 sps:$4 sm:$0xff]  }
 0x306   : > { %7283 = vmatprep.subr.bf16.mxu1 %v9229_v23  ;;  %v9280_v23 = vld [vmem:[#allocation7 + $0xc64] ss:$16 sps:$4 sm:$0xff]  }
 0x307   : > { %7243 = vmatpush2.bf16.msra.mxu0 %v9224_v63  ;;  %v9283_v63 = vld [vmem:[#allocation7 + $0xe64] ss:$16 sps:$4 sm:$0xff]  }
 0x308   : > { %7244 = vmatprep.subr.bf16.mxu0 %v9232_v28  ;;  %v9281_v28 = vld [vmem:[#allocation7 + $0xe60] ss:$16 sps:$4 sm:$0xff]  }
 0x309   : > { %7284 = vmatpush2.bf16.msra.mxu1 %v9227_v43  ;;  %v9278_v43 = vld [vmem:[#allocation7 + $0xc60] ss:$16 sps:$4 sm:$0xff]  }
 0x30a   : > { %7285 = vmatprep.subr.bf16.mxu1 %v9235_v13  ;;  %v9286_v13 = vld [vmem:[#allocation7 + $0xc44] ss:$16 sps:$4 sm:$0xff]  }
 0x30b   : > { %7245 = vmatpush2.bf16.msra.mxu0 %v9230_v40  ;;  %v9289_v40 = vld [vmem:[#allocation7 + $0xe44] ss:$16 sps:$4 sm:$0xff]  }
 0x30c   : > { %7246 = vmatprep.subr.bf16.mxu0 %v9238_v34  ;;  %v9287_v34 = vld [vmem:[#allocation7 + $0xe40] ss:$16 sps:$4 sm:$0xff]  }
 0x30d   : > { %7286 = vmatpush2.bf16.msra.mxu1 %v9233_v30  ;;  %v9284_v30 = vld [vmem:[#allocation7 + $0xc40] ss:$16 sps:$4 sm:$0xff]  }
 0x30e   : > { %7287 = vmatprep.subr.bf16.mxu1 %v9241_v35  ;;  %v9292_v35 = vld [vmem:[#allocation7 + $0xc24] ss:$16 sps:$4 sm:$0xff]  }
 0x30f   : > { %7247 = vmatpush2.bf16.msra.mxu0 %v9236_v3  ;;  %v9295_v3 = vld [vmem:[#allocation7 + $0xe24] ss:$16 sps:$4 sm:$0xff]  }
 0x310   : > { %7248 = vmatprep.subr.bf16.mxu0 %v9244_v38  ;;  %v9293_v38 = vld [vmem:[#allocation7 + $0xe20] ss:$16 sps:$4 sm:$0xff]  }
 0x311   : > { %7288 = vmatpush2.bf16.msra.mxu1 %v9239_v37  ;;  %v9290_v37 = vld [vmem:[#allocation7 + $0xc20] ss:$16 sps:$4 sm:$0xff]  }
 0x312   : > { %7289 = vmatprep.subr.bf16.mxu1 %v9247_v39  ;;  %v9298_v39 = vld [vmem:[#allocation7 + $0xc04] ss:$16 sps:$4 sm:$0xff]  }
 0x313   : > { %7249 = vmatpush2.bf16.msra.mxu0 %v9242_v59  ;;  %v9301_v59 = vld [vmem:[#allocation7 + $0xe04] ss:$16 sps:$4 sm:$0xff]  }
 0x314   : > { %7250 = vmatprep.subr.bf16.mxu0 %v9250_v41  ;;  %v9299_v41 = vld [vmem:[#allocation7 + $0xe00] ss:$16 sps:$4 sm:$0xff]  }
 0x315   : > { %7290 = vmatpush2.bf16.msra.mxu1 %v9245_v16  ;;  %v9296_v16 = vld [vmem:[#allocation7 + $0xc00] ss:$16 sps:$4 sm:$0xff]  }
 0x316   : > { %7291 = vmatprep.subr.bf16.mxu1 %v9253_v19  ;;  %v9304_v19 = vld [vmem:[#allocation7 + $0xde4] ss:$16 sps:$4 sm:$0xff]  }
 0x317   : > { %7251 = vmatpush2.bf16.msra.mxu0 %v9248_v44  ;;  %v9302_v44 = vld [vmem:[#allocation7 + $0xde0] ss:$16 sps:$4 sm:$0xff]  }
 0x318   : > { %7302 = vmatprep.subr.bf16.mxu0 %v9256_v47  ;;  %v9313_v47 = vld [vmem:[#allocation7 + $0xfc4] ss:$16 sps:$4 sm:$0xff]  }
 0x319   : > { %7292 = vmatpush2.bf16.msra.mxu1 %v9251_v46  ;;  %v9310_v46 = vld [vmem:[#allocation7 + $0xdc4] ss:$16 sps:$4 sm:$0xff]  }
 0x31a   : > { %7343 = vmatprep.subr.bf16.mxu1 %v9259_v49  ;;  %v10179_v60 = vpop.f32.mrf.mxu0  ;;  %7253 = vmatmul.mubr.bf16.vlgmr.msra.gmra.mxu0 %v10173_v54  ;;  %v9311_v49 = vld [vmem:[#allocation7 + $0xfc0] ss:$16 sps:$4 sm:$0xff]  }
 0x31b   : > { %7303 = vmatpush1.bf16.msra.mxu0 %v9254_v52  ;;  %7334 = vmatprep.mubr.bf16.mxu0 %v10177_v15  ;;  %v9319_v52 = vld [vmem:[#allocation7 + $0xfa4] ss:$16 sps:$4 sm:$0xff]  }
 0x31c   : > { %v10182_v62 = vpop.f32.mrf.mxu1  ;;  %7294 = vmatmul.mubr.bf16.vlgmr.msra.gmra.mxu1 %v10175_v58  ;;  %v3906_v61 = vpop.f32.mrf.mxu0  ;;  %7304 = vmatprep.subr.bf16.mxu0 %v9262_v25  ;;  %v9317_v25 = vld [vmem:[#allocation7 + $0xfa0] ss:$16 sps:$4 sm:$0xff]  }
 0x31d   : > { %7344 = vmatpush1.bf16.msra.mxu1 %v9257_v32  ;;  %v9314_v32 = vld [vmem:[#allocation7 + $0xda0] ss:$16 sps:$4 sm:$0xff]  }
 0x31e   : > { %v3947_v4 = vpop.f32.mrf.mxu1  ;;  %7345 = vmatprep.subr.bf16.mxu1 %v9265_v56  ;;  %v3908_v7 = vpop.f32.mrf.mxu0  ;;  %v9322_v56 = vld [vmem:[#allocation7 + $0xd84] ss:$16 sps:$4 sm:$0xff]  }
 0x31f   : > { %v3948_v6 = vadd.f32 %v3947_v4, %v3906_v61  ;;  %7305 = vmatpush1.bf16.msra.mxu0 %v9260_v24  ;;  %v9325_v24 = vld [vmem:[#allocation7 + $0xf84] ss:$16 sps:$4 sm:$0xff]   ;;  %v9320_v61 = vld [vmem:[#allocation7 + $0xd80] ss:$16 sps:$4 sm:$0xff]  }
 0x320   : > { %v3949_v8 = vpop.f32.mrf.mxu1  ;;  %v3909_v11 = vpop.f32.mrf.mxu0  ;;  %7306 = vmatprep.subr.bf16.mxu0 %v9268_v1  ;;  %v9328_v1 = vld [vmem:[#allocation7 + $0xd64] ss:$16 sps:$4 sm:$0xff]  }
 0x321   : > { %v3967_v10 = vmax.f32 %v3948_v6, 0.0  ;;  %7346 = vmatpush1.bf16.msra.mxu1 %v9263_v0  ;;  %v9323_v0 = vld [vmem:[#allocation7 + $0xf80] ss:$16 sps:$4 sm:$0xff]   ;;  %v9331_v4 = vld [vmem:[#allocation7 + $0xf64] ss:$16 sps:$4 sm:$0xff]  }
 0x322   : > { %v3950_v14 = vpop.f32.mrf.mxu1  ;;  %7347 = vmatprep.subr.bf16.mxu1 %v9271_v5  ;;  %v9326_v5 = vld [vmem:[#allocation7 + $0xd60] ss:$16 sps:$4 sm:$0xff]   ;;  %v9334_v7 = vld [vmem:[#allocation7 + $0xd44] ss:$16 sps:$4 sm:$0xff]  }
 0x323   : > { %v10186_v20 = vpack.c.bf16 %v3967_v10, %v3967_v10  ;;  %7307 = vmatpush1.bf16.msra.mxu0 %v9266_v9  ;;  %v9329_v6 = vld [vmem:[#allocation7 + $0xf60] ss:$16 sps:$4 sm:$0xff]   ;;  %v9337_v8 = vld [vmem:[#allocation7 + $0xf44] ss:$16 sps:$4 sm:$0xff]  }
 0x324   : > { %7308 = vmatprep.subr.bf16.mxu0 %v9274_v17  ;;  %v9332_v9 = vld [vmem:[#allocation7 + $0xd40] ss:$16 sps:$4 sm:$0xff]   ;;  %v9340_v11 = vld [vmem:[#allocation7 + $0xd24] ss:$16 sps:$4 sm:$0xff]  }
 0x325   : > { %7348 = vmatpush1.bf16.msra.mxu1 %v9269_v12  ;;  %7375 = vmatprep.mubr.bf16.mxu1 %v10186_v20  ;;  %v9335_v10 = vld [vmem:[#allocation7 + $0xf40] ss:$16 sps:$4 sm:$0xff]   ;;  %v9343_v12 = vld [vmem:[#allocation7 + $0xf24] ss:$16 sps:$4 sm:$0xff]  }
 0x326   : > { %7349 = vmatprep.subr.bf16.mxu1 %v9277_v18  ;;  %v9338_v14 = vld [vmem:[#allocation7 + $0xd20] ss:$16 sps:$4 sm:$0xff]   ;;  %v9346_v18 = vld [vmem:[#allocation7 + $0xd04] ss:$16 sps:$4 sm:$0xff]  }
 0x327   : > { %7309 = vmatpush1.bf16.msra.mxu0 %v9272_v21  ;;  %v9341_v17 = vld [vmem:[#allocation7 + $0xf20] ss:$16 sps:$4 sm:$0xff]   ;;  %v3946_v21 = vadd.f32 %v10182_v62, %v10179_v60  ;;  %v9353_v60 = vld [vmem:[#allocation7 + $0x2e8] ss:$16 sps:$4 sm:$0xff]  }
 0x328   : > { %7310 = vmatprep.subr.bf16.mxu0 %v9280_v23  ;;  %v9344_v23 = vld [vmem:[#allocation7 + $0xd00] ss:$16 sps:$4 sm:$0xff]  }
 0x329   : > { %7350 = vmatpush1.bf16.msra.mxu1 %v9275_v22  ;;  %v9349_v22 = vld [vmem:[#allocation7 + $0xf04] ss:$16 sps:$4 sm:$0xff]  }
 0x32a   : > { %7351 = vmatprep.subr.bf16.mxu1 %v9283_v63  ;;  %v3964_v63 = vmax.f32 %v10161_v31, 0.0  ;;  %v9361_v31 = vld [vmem:[#allocation7 + $0x2cc] ss:$16 sps:$4 sm:$0xff]  }
 0x32b   : > { %7311 = vmatpush1.bf16.msra.mxu0 %v9278_v43  ;;  %v9347_v43 = vld [vmem:[#allocation7 + $0xf00] ss:$16 sps:$4 sm:$0xff]  }
 0x32c   : > { %7312 = vmatprep.subr.bf16.mxu0 %v9286_v13  ;;  %v3966_v13 = vmax.f32 %v3946_v21, 0.0  ;;  %v9398_v21 = vld [vmem:[#allocation7 + $0x1e8] ss:$16 sps:$4 sm:$0xff]  }
 0x32d   : > { %7352 = vmatpush1.bf16.msra.mxu1 %v9281_v28  ;;  %v9352_v28 = vld [vmem:[#allocation7 + $0xec] ss:$16 sps:$4 sm:$0xff]  }
 0x32e   : > { %7353 = vmatprep.subr.bf16.mxu1 %v9289_v40  ;;  %v9355_v40 = vld [vmem:[#allocation7 + $0x2ec] ss:$16 sps:$4 sm:$0xff]   ;;  %v10194_v62 = vpack.c.bf16 %v3966_v13, %v3966_v13 }
 0x32f   : > { %7313 = vmatpush1.bf16.msra.mxu0 %v9284_v30  ;;  %v9350_v30 = vld [vmem:[#allocation7 + $0xe8] ss:$16 sps:$4 sm:$0xff]   ;;  %v9412_v13 = vld [vmem:[#allocation7 + $0x1ac] ss:$16 sps:$4 sm:$0xff]  }
 0x330   : > { %7314 = vmatprep.subr.bf16.mxu0 %v9292_v35  ;;  %v9358_v35 = vld [vmem:[#allocation7 + $0xcc] ss:$16 sps:$4 sm:$0xff]  }
 0x331   : > { %7354 = vmatpush1.bf16.msra.mxu1 %v9287_v34  ;;  %v10192_v34 = vpack.c.bf16 %v3964_v63, %v3964_v63  ;;  %v9409_v63 = vld [vmem:[#allocation7 + $0x3cc] ss:$16 sps:$4 sm:$0xff]  }
 0x332   : > { %7355 = vmatprep.subr.bf16.mxu1 %v9295_v3 }
 0x333   : > { %7315 = vmatpush1.bf16.msra.mxu0 %v9290_v37 }
 0x334   : > { %7316 = vmatprep.subr.bf16.mxu0 %v9298_v39 }
 0x335   : > { %7356 = vmatpush1.bf16.msra.mxu1 %v9293_v38  ;;  %v9356_v38 = vld [vmem:[#allocation7 + $0xc8] ss:$16 sps:$4 sm:$0xff]  }
 0x336   : > { %7357 = vmatprep.subr.bf16.mxu1 %v9301_v59 }
 0x337   : > { %7317 = vmatpush1.bf16.msra.mxu0 %v9296_v16  ;;  %v9359_v16 = vld [vmem:[#allocation7 + $0x2c8] ss:$16 sps:$4 sm:$0xff]  }
 0x338   : > { %7318 = vmatprep.subr.bf16.mxu0 %v9304_v19 }
 0x339   : > { %7358 = vmatpush1.bf16.msra.mxu1 %v9299_v41  ;;  %v9364_v41 = vld [vmem:[#allocation7 + $0xac] ss:$16 sps:$4 sm:$0xff]  }
 0x33a   : > { %7359 = vmatprep.subr.bf16.mxu1 %v9307_v42  ;;  %v9367_v42 = vld [vmem:[#allocation7 + $0x2ac] ss:$16 sps:$4 sm:$0xff]  }
 0x33b   : > { %7319 = vmatpush2.bf16.msra.mxu0 %v9302_v44 }
 0x33c   : > { %7320 = vmatprep.subr.bf16.mxu0 %v9310_v46 }
 0x33d   : > { %7360 = vmatpush2.bf16.msra.mxu1 %v9305_v45 }
 0x33e   : > { %7361 = vmatprep.subr.bf16.mxu1 %v9313_v47  ;;  %v9362_v47 = vld [vmem:[#allocation7 + $0xa8] ss:$16 sps:$4 sm:$0xff]  }
 0x33f   : > { %7321 = vmatpush2.bf16.msra.mxu0 %v9308_v48 }
 0x340   : > { %7322 = vmatprep.subr.bf16.mxu0 %v9316_v50 }
 0x341   : > { %7362 = vmatpush2.bf16.msra.mxu1 %v9311_v49  ;;  %v9370_v49 = vld [vmem:[#allocation7 + $0x8c] ss:$16 sps:$4 sm:$0xff]  }
 0x342   : > { %7363 = vmatprep.subr.bf16.mxu1 %v9319_v52  ;;  %v9373_v52 = vld [vmem:[#allocation7 + $0x28c] ss:$16 sps:$4 sm:$0xff]  }
 0x343   : > { %7323 = vmatpush2.bf16.msra.mxu0 %v9314_v32  ;;  %v9371_v32 = vld [vmem:[#allocation7 + $0x288] ss:$16 sps:$4 sm:$0xff]  }
 0x344   : > { %7324 = vmatprep.subr.bf16.mxu0 %v9322_v56  ;;  %v9379_v56 = vld [vmem:[#allocation7 + $0x26c] ss:$16 sps:$4 sm:$0xff]  }
 0x345   : > { %7364 = vmatpush2.bf16.msra.mxu1 %v9317_v25  ;;  %v9376_v25 = vld [vmem:[#allocation7 + $0x6c] ss:$16 sps:$4 sm:$0xff]  }
 0x346   : > { %7365 = vmatprep.subr.bf16.mxu1 %v9325_v24  ;;  %v9374_v24 = vld [vmem:[#allocation7 + $0x68] ss:$16 sps:$4 sm:$0xff]  }
 0x347   : > { %7325 = vmatpush2.bf16.msra.mxu0 %v9320_v61  ;;  %v9377_v61 = vld [vmem:[#allocation7 + $0x268] ss:$16 sps:$4 sm:$0xff]  }
 0x348   : > { %7326 = vmatprep.subr.bf16.mxu0 %v9328_v1  ;;  %v9385_v1 = vld [vmem:[#allocation7 + $0x24c] ss:$16 sps:$4 sm:$0xff]  }
 0x349   : > { %7366 = vmatpush2.bf16.msra.mxu1 %v9323_v0  ;;  %v9382_v0 = vld [vmem:[#allocation7 + $0x4c] ss:$16 sps:$4 sm:$0xff]  }
 0x34a   : > { %7367 = vmatprep.subr.bf16.mxu1 %v9331_v4  ;;  %v9380_v4 = vld [vmem:[#allocation7 + $0x48] ss:$16 sps:$4 sm:$0xff]  }
 0x34b   : > { %7327 = vmatpush2.bf16.msra.mxu0 %v9326_v5  ;;  %v9383_v5 = vld [vmem:[#allocation7 + $0x248] ss:$16 sps:$4 sm:$0xff]  }
 0x34c   : > { %7328 = vmatprep.subr.bf16.mxu0 %v9334_v7  ;;  %v9391_v7 = vld [vmem:[#allocation7 + $0x22c] ss:$16 sps:$4 sm:$0xff]  }
 0x34d   : > { %7368 = vmatpush2.bf16.msra.mxu1 %v9329_v6  ;;  %v9388_v6 = vld [vmem:[#allocation7 + $0x2c] ss:$16 sps:$4 sm:$0xff]  }
 0x34e   : > { %7369 = vmatprep.subr.bf16.mxu1 %v9337_v8  ;;  %v9386_v8 = vld [vmem:[#allocation7 + $0x28] ss:$16 sps:$4 sm:$0xff]  }
 0x34f   : > { %7329 = vmatpush2.bf16.msra.mxu0 %v9332_v9  ;;  %v9389_v9 = vld [vmem:[#allocation7 + $0x228] ss:$16 sps:$4 sm:$0xff]  }
 0x350   : > { %7330 = vmatprep.subr.bf16.mxu0 %v9340_v11  ;;  %v9397_v11 = vld [vmem:[#allocation7 + $0x20c] ss:$16 sps:$4 sm:$0xff]  }
 0x351   : > { %7370 = vmatpush2.bf16.msra.mxu1 %v9335_v10  ;;  %v9394_v10 = vld [vmem:[#allocation7 + $0xc] ss:$16 sps:$4 sm:$0xff]  }
 0x352   : > { %7371 = vmatprep.subr.bf16.mxu1 %v9343_v12  ;;  %v9392_v12 = vld [vmem:[#allocation7 + $0x8] ss:$16 sps:$4 sm:$0xff]  }
 0x353   : > { %7331 = vmatpush2.bf16.msra.mxu0 %v9338_v14  ;;  %v9395_v14 = vld [vmem:[#allocation7 + $0x208] ss:$16 sps:$4 sm:$0xff]  }
 0x354   : > { %7332 = vmatprep.subr.bf16.mxu0 %v9346_v18  ;;  %v9403_v18 = vld [vmem:[#allocation7 + $0x3ec] ss:$16 sps:$4 sm:$0xff]  }
 0x355   : > { %7372 = vmatpush2.bf16.msra.mxu1 %v9341_v17  ;;  %v9400_v17 = vld [vmem:[#allocation7 + $0x1ec] ss:$16 sps:$4 sm:$0xff]  }
 0x356   : > { %7373 = vmatprep.subr.bf16.mxu1 %v9349_v22  ;;  %v9401_v22 = vld [vmem:[#allocation7 + $0x3e8] ss:$16 sps:$4 sm:$0xff]  }
 0x357   : > { %7333 = vmatpush2.bf16.msra.mxu0 %v9344_v23  ;;  %v9406_v23 = vld [vmem:[#allocation7 + $0x1cc] ss:$16 sps:$4 sm:$0xff]  }
 0x358   : > { %7384 = vmatprep.subr.bf16.mxu0 %v9352_v28  ;;  %v9407_v28 = vld [vmem:[#allocation7 + $0x3c8] ss:$16 sps:$4 sm:$0xff]  }
 0x359   : > { %7374 = vmatpush2.bf16.msra.mxu1 %v9347_v43  ;;  %v9404_v43 = vld [vmem:[#allocation7 + $0x1c8] ss:$16 sps:$4 sm:$0xff]  }
 0x35a   : > { %7425 = vmatprep.subr.bf16.mxu1 %v9355_v40  ;;  %v7090_v3 = vpop.f32.mrf.mxu0  ;;  %7335 = vmatmul.mubr.bf16.vlgmr.msra.gmra.mxu0 %v10192_v34  ;;  %v9415_v40 = vld [vmem:[#allocation7 + $0x3ac] ss:$16 sps:$4 sm:$0xff]  }
 0x35b   : > { %7385 = vmatpush1.bf16.msra.mxu0 %v9350_v30  ;;  %7416 = vmatprep.mubr.bf16.mxu0 %v10112_v33  ;;  %v9365_v33 = vld [vmem:[#allocation7 + $0x2a8] ss:$16 sps:$4 sm:$0xff]  }
 0x35c   : > { %v7131_v37 = vpop.f32.mrf.mxu1  ;;  %7376 = vmatmul.mubr.bf16.vlgmr.msra.gmra.mxu1 %v10194_v62  ;;  %v7092_v59 = vpop.f32.mrf.mxu0  ;;  %7386 = vmatprep.subr.bf16.mxu0 %v9358_v35  ;;  %v9410_v30 = vld [vmem:[#allocation7 + $0x1a8] ss:$16 sps:$4 sm:$0xff]   ;;  %v9418_v35 = vld [vmem:[#allocation7 + $0x18c] ss:$16 sps:$4 sm:$0xff]  }
 0x35d   : > { %v10198_v39 = vadd.f32 %v7131_v37, %v7090_v3  ;;  %7426 = vmatpush1.bf16.msra.mxu1 %v9353_v60  ;;  %7457 = vmatprep.mubr.bf16.mxu1 %v10115_v36  ;;  %v9368_v36 = vld [vmem:[#allocation7 + $0x88] ss:$16 sps:$4 sm:$0xff]   ;;  %v9421_v3 = vld [vmem:[#allocation7 + $0x38c] ss:$16 sps:$4 sm:$0xff]  }
 0x35e   : > { %v7133_v19 = vpop.f32.mrf.mxu1  ;;  %v7094_v45 = vpop.f32.mrf.mxu0  ;;  %7427 = vmatprep.subr.bf16.mxu1 %v9361_v31  ;;  %v9413_v60 = vld [vmem:[#allocation7 + $0x3a8] ss:$16 sps:$4 sm:$0xff]  }
 0x35f   : > { %v10202_v44 = vadd.f32 %v7133_v19, %v7092_v59  ;;  %7387 = vmatpush1.bf16.msra.mxu0 %v9356_v38  ;;  %v9416_v31 = vld [vmem:[#allocation7 + $0x188] ss:$16 sps:$4 sm:$0xff]   ;;  %v9424_v38 = vld [vmem:[#allocation7 + $0x16c] ss:$16 sps:$4 sm:$0xff]  }
 0x360   : > { %v7135_v46 = vpop.f32.mrf.mxu1  ;;  %v7095_v48 = vpop.f32.mrf.mxu0  ;;  %7388 = vmatprep.subr.bf16.mxu0 %v9364_v41  ;;  %v9419_v37 = vld [vmem:[#allocation7 + $0x388] ss:$16 sps:$4 sm:$0xff]   ;;  %v9427_v59 = vld [vmem:[#allocation7 + $0x36c] ss:$16 sps:$4 sm:$0xff]  }
 0x361   : > { %7428 = vmatpush1.bf16.msra.mxu1 %v9359_v16  ;;  %v9422_v16 = vld [vmem:[#allocation7 + $0x168] ss:$16 sps:$4 sm:$0xff]   ;;  %v9430_v19 = vld [vmem:[#allocation7 + $0x14c] ss:$16 sps:$4 sm:$0xff]  }
 0x362   : > { %v7136_v50 = vpop.f32.mrf.mxu1  ;;  %7429 = vmatprep.subr.bf16.mxu1 %v9367_v42  ;;  %v9425_v41 = vld [vmem:[#allocation7 + $0x368] ss:$16 sps:$4 sm:$0xff]   ;;  %v9433_v42 = vld [vmem:[#allocation7 + $0x34c] ss:$16 sps:$4 sm:$0xff]  }
 0x363   : > { %7389 = vmatpush1.bf16.msra.mxu0 %v9362_v47  ;;  %v9428_v45 = vld [vmem:[#allocation7 + $0x148] ss:$16 sps:$4 sm:$0xff]   ;;  %v9436_v47 = vld [vmem:[#allocation7 + $0x12c] ss:$16 sps:$4 sm:$0xff]  }
 0x364   : > { %7390 = vmatprep.subr.bf16.mxu0 %v9370_v49  ;;  %v9431_v46 = vld [vmem:[#allocation7 + $0x348] ss:$16 sps:$4 sm:$0xff]   ;;  %v9439_v48 = vld [vmem:[#allocation7 + $0x32c] ss:$16 sps:$4 sm:$0xff]  }
 0x365   : > { %7430 = vmatpush1.bf16.msra.mxu1 %v9365_v33  ;;  %v9434_v33 = vld [vmem:[#allocation7 + $0x128] ss:$16 sps:$4 sm:$0xff]   ;;  %v9442_v50 = vld [vmem:[#allocation7 + $0x10c] ss:$16 sps:$4 sm:$0xff]  }
 0x366   : > { %7431 = vmatprep.subr.bf16.mxu1 %v9373_v52  ;;  %v9437_v49 = vld [vmem:[#allocation7 + $0x328] ss:$16 sps:$4 sm:$0xff]   ;;  %v9445_v52 = vld [vmem:[#allocation7 + $0x30c] ss:$16 sps:$4 sm:$0xff]  }
 0x367   : > { %7391 = vmatpush1.bf16.msra.mxu0 %v9368_v36  ;;  %v9440_v36 = vld [vmem:[#allocation7 + $0x108] ss:$16 sps:$4 sm:$0xff]  }
 0x368   : > { %7392 = vmatprep.subr.bf16.mxu0 %v9376_v25  ;;  %v9448_v25 = vld [vmem:[#allocation7 + $0x4ec] ss:$16 sps:$4 sm:$0xff]  }
 0x369   : > { %7432 = vmatpush1.bf16.msra.mxu1 %v9371_v32  ;;  %v9443_v32 = vld [vmem:[#allocation7 + $0x308] ss:$16 sps:$4 sm:$0xff]  }
 0x36a   : > { %7433 = vmatprep.subr.bf16.mxu1 %v9379_v56  ;;  %v9451_v56 = vld [vmem:[#allocation7 + $0x6ec] ss:$16 sps:$4 sm:$0xff]  }
 0x36b   : > { %7393 = vmatpush1.bf16.msra.mxu0 %v9374_v24  ;;  %v9446_v24 = vld [vmem:[#allocation7 + $0x4e8] ss:$16 sps:$4 sm:$0xff]  }
 0x36c   : > { %7394 = vmatprep.subr.bf16.mxu0 %v9382_v0  ;;  %v9454_v0 = vld [vmem:[#allocation7 + $0x4cc] ss:$16 sps:$4 sm:$0xff]  }
 0x36d   : > { %7434 = vmatpush1.bf16.msra.mxu1 %v9377_v61  ;;  %v9449_v61 = vld [vmem:[#allocation7 + $0x6e8] ss:$16 sps:$4 sm:$0xff]  }
 0x36e   : > { %7435 = vmatprep.subr.bf16.mxu1 %v9385_v1 }
 0x36f   : > { %7395 = vmatpush1.bf16.msra.mxu0 %v9380_v4  ;;  %v9457_v4 = vld [vmem:[#allocation7 + $0x6cc] ss:$16 sps:$4 sm:$0xff]  }
 0x370   : > { %7396 = vmatprep.subr.bf16.mxu0 %v9388_v6 }
 0x371   : > { %7436 = vmatpush1.bf16.msra.mxu1 %v9383_v5 }
 0x372   : > { %7437 = vmatprep.subr.bf16.mxu1 %v9391_v7  ;;  %v9452_v7 = vld [vmem:[#allocation7 + $0x4c8] ss:$16 sps:$4 sm:$0xff]  }
 0x373   : > { %7397 = vmatpush1.bf16.msra.mxu0 %v9386_v8 }
 0x374   : > { %7398 = vmatprep.subr.bf16.mxu0 %v9394_v10  ;;  %v9460_v10 = vld [vmem:[#allocation7 + $0x4ac] ss:$16 sps:$4 sm:$0xff]  }
 0x375   : > { %7438 = vmatpush1.bf16.msra.mxu1 %v9389_v9  ;;  %v9455_v9 = vld [vmem:[#allocation7 + $0x6c8] ss:$16 sps:$4 sm:$0xff]  }
 0x376   : > { %7439 = vmatprep.subr.bf16.mxu1 %v9397_v11 }
 0x377   : > { %7399 = vmatpush1.bf16.msra.mxu0 %v9392_v12 }
 0x378   : > { %7400 = vmatprep.subr.bf16.mxu0 %v9400_v17 }
 0x379   : > { %7440 = vmatpush1.bf16.msra.mxu1 %v9395_v14 }
 0x37a   : > { %7441 = vmatprep.subr.bf16.mxu1 %v9403_v18 }
 0x37b   : > { %7401 = vmatpush2.bf16.msra.mxu0 %v9398_v21  ;;  %v9461_v21 = vld [vmem:[#allocation7 + $0x6a8] ss:$16 sps:$4 sm:$0xff]  }
 0x37c   : > { %7402 = vmatprep.subr.bf16.mxu0 %v9406_v23 }
 0x37d   : > { %7442 = vmatpush2.bf16.msra.mxu1 %v9401_v22  ;;  %v9466_v22 = vld [vmem:[#allocation7 + $0x48c] ss:$16 sps:$4 sm:$0xff]  }
 0x37e   : > { %7443 = vmatprep.subr.bf16.mxu1 %v9409_v63  ;;  %v9467_v63 = vld [vmem:[#allocation7 + $0x688] ss:$16 sps:$4 sm:$0xff]  }
 0x37f   : > { %7403 = vmatpush2.bf16.msra.mxu0 %v9404_v43  ;;  %v9472_v43 = vld [vmem:[#allocation7 + $0x46c] ss:$16 sps:$4 sm:$0xff]  }
 0x380   : > { %7404 = vmatprep.subr.bf16.mxu0 %v9412_v13  ;;  %v9470_v13 = vld [vmem:[#allocation7 + $0x468] ss:$16 sps:$4 sm:$0xff]  }
 0x381   : > { %7444 = vmatpush2.bf16.msra.mxu1 %v9407_v28  ;;  %v9475_v28 = vld [vmem:[#allocation7 + $0x66c] ss:$16 sps:$4 sm:$0xff]  }
 0x382   : > { %7445 = vmatprep.subr.bf16.mxu1 %v9415_v40  ;;  %v9473_v40 = vld [vmem:[#allocation7 + $0x668] ss:$16 sps:$4 sm:$0xff]  }
 0x383   : > { %7405 = vmatpush2.bf16.msra.mxu0 %v9410_v30  ;;  %v9478_v30 = vld [vmem:[#allocation7 + $0x44c] ss:$16 sps:$4 sm:$0xff]  }
 0x384   : > { %7406 = vmatprep.subr.bf16.mxu0 %v9418_v35  ;;  %v9476_v35 = vld [vmem:[#allocation7 + $0x448] ss:$16 sps:$4 sm:$0xff]  }
 0x385   : > { %7446 = vmatpush2.bf16.msra.mxu1 %v9413_v60  ;;  %v9481_v60 = vld [vmem:[#allocation7 + $0x64c] ss:$16 sps:$4 sm:$0xff]  }
 0x386   : > { %7447 = vmatprep.subr.bf16.mxu1 %v9421_v3  ;;  %v9479_v3 = vld [vmem:[#allocation7 + $0x648] ss:$16 sps:$4 sm:$0xff]  }
 0x387   : > { %7407 = vmatpush2.bf16.msra.mxu0 %v9416_v31  ;;  %v9484_v31 = vld [vmem:[#allocation7 + $0x42c] ss:$16 sps:$4 sm:$0xff]  }
 0x388   : > { %7408 = vmatprep.subr.bf16.mxu0 %v9424_v38  ;;  %v9482_v38 = vld [vmem:[#allocation7 + $0x428] ss:$16 sps:$4 sm:$0xff]  }
 0x389   : > { %7448 = vmatpush2.bf16.msra.mxu1 %v9419_v37  ;;  %v9487_v37 = vld [vmem:[#allocation7 + $0x62c] ss:$16 sps:$4 sm:$0xff]  }
 0x38a   : > { %7449 = vmatprep.subr.bf16.mxu1 %v9427_v59  ;;  %v9485_v59 = vld [vmem:[#allocation7 + $0x628] ss:$16 sps:$4 sm:$0xff]  }
 0x38b   : > { %7409 = vmatpush2.bf16.msra.mxu0 %v9422_v16  ;;  %v9490_v16 = vld [vmem:[#allocation7 + $0x40c] ss:$16 sps:$4 sm:$0xff]  }
 0x38c   : > { %7410 = vmatprep.subr.bf16.mxu0 %v9430_v19  ;;  %v9488_v19 = vld [vmem:[#allocation7 + $0x408] ss:$16 sps:$4 sm:$0xff]  }
 0x38d   : > { %7450 = vmatpush2.bf16.msra.mxu1 %v9425_v41  ;;  %v9493_v41 = vld [vmem:[#allocation7 + $0x60c] ss:$16 sps:$4 sm:$0xff]  }
 0x38e   : > { %7451 = vmatprep.subr.bf16.mxu1 %v9433_v42  ;;  %v9491_v42 = vld [vmem:[#allocation7 + $0x608] ss:$16 sps:$4 sm:$0xff]  }
 0x38f   : > { %7411 = vmatpush2.bf16.msra.mxu0 %v9428_v45  ;;  %v9496_v45 = vld [vmem:[#allocation7 + $0x5ec] ss:$16 sps:$4 sm:$0xff]  }
 0x390   : > { %7412 = vmatprep.subr.bf16.mxu0 %v9436_v47  ;;  %v9494_v47 = vld [vmem:[#allocation7 + $0x5e8] ss:$16 sps:$4 sm:$0xff]  }
 0x391   : > { %7452 = vmatpush2.bf16.msra.mxu1 %v9431_v46  ;;  %v9499_v46 = vld [vmem:[#allocation7 + $0x7ec] ss:$16 sps:$4 sm:$0xff]  }
 0x392   : > { %7453 = vmatprep.subr.bf16.mxu1 %v9439_v48  ;;  %v9497_v48 = vld [vmem:[#allocation7 + $0x7e8] ss:$16 sps:$4 sm:$0xff]  }
 0x393   : > { %7413 = vmatpush2.bf16.msra.mxu0 %v9434_v33  ;;  %v9502_v33 = vld [vmem:[#allocation7 + $0x5cc] ss:$16 sps:$4 sm:$0xff]  }
 0x394   : > { %7414 = vmatprep.subr.bf16.mxu0 %v9442_v50  ;;  %v9500_v50 = vld [vmem:[#allocation7 + $0x5c8] ss:$16 sps:$4 sm:$0xff]  }
 0x395   : > { %7454 = vmatpush2.bf16.msra.mxu1 %v9437_v49  ;;  %v9505_v49 = vld [vmem:[#allocation7 + $0x7cc] ss:$16 sps:$4 sm:$0xff]  }
 0x396   : > { %7455 = vmatprep.subr.bf16.mxu1 %v9445_v52  ;;  %v9503_v52 = vld [vmem:[#allocation7 + $0x7c8] ss:$16 sps:$4 sm:$0xff]  }
 0x397   : > { %7415 = vmatpush2.bf16.msra.mxu0 %v9440_v36  ;;  %v9508_v36 = vld [vmem:[#allocation7 + $0x5ac] ss:$16 sps:$4 sm:$0xff]  }
 0x398   : > { %7466 = vmatprep.subr.bf16.mxu0 %v9448_v25  ;;  %v9506_v25 = vld [vmem:[#allocation7 + $0x5a8] ss:$16 sps:$4 sm:$0xff]  }
 0x399   : > { %7456 = vmatpush2.bf16.msra.mxu1 %v9443_v32  ;;  %v9511_v32 = vld [vmem:[#allocation7 + $0x7ac] ss:$16 sps:$4 sm:$0xff]  }
 0x39a   : > { %7507 = vmatprep.subr.bf16.mxu1 %v9451_v56  ;;  %v7172_v1 = vpop.f32.mrf.mxu0  ;;  %7417 = vmatmul.mubr.bf16.vlgmr.msra.gmra.mxu0 %v10128_v53  ;;  %v9509_v56 = vld [vmem:[#allocation7 + $0x7a8] ss:$16 sps:$4 sm:$0xff]  }
 0x39b   : > { %v7173_v5 = vadd.f32 %v7172_v1, %v10198_v39  ;;  %7467 = vmatpush1.bf16.msra.mxu0 %v9446_v24  ;;  %7498 = vmatprep.mubr.bf16.mxu0 %v10132_v57  ;;  %v9463_v39 = vld [vmem:[#allocation7 + $0x6ac] ss:$16 sps:$4 sm:$0xff]   ;;  %v9458_v57 = vld [vmem:[#allocation7 + $0x4a8] ss:$16 sps:$4 sm:$0xff]  }
 0x39c   : > { %v7213_v6 = vpop.f32.mrf.mxu1  ;;  %7458 = vmatmul.mubr.bf16.vlgmr.msra.gmra.mxu1 %v10130_v55  ;;  %v7174_v8 = vpop.f32.mrf.mxu0  ;;  %7468 = vmatprep.subr.bf16.mxu0 %v9454_v0  ;;  %v9514_v24 = vld [vmem:[#allocation7 + $0x58c] ss:$16 sps:$4 sm:$0xff]   ;;  %v9512_v0 = vld [vmem:[#allocation7 + $0x588] ss:$16 sps:$4 sm:$0xff]  }
 0x39d   : > { %7508 = vmatpush1.bf16.msra.mxu1 %v9449_v61  ;;  %v10208_v11 = vadd.f32 %v7213_v6, %v7173_v5  ;;  %7539 = vmatprep.mubr.bf16.mxu1 %v10135_v51  ;;  %v7175_v53 = vadd.f32 %v7174_v8, %v10202_v44  ;;  %v9469_v51 = vld [vmem:[#allocation7 + $0x68c] ss:$16 sps:$4 sm:$0xff]   ;;  %v9464_v44 = vld [vmem:[#allocation7 + $0x488] ss:$16 sps:$4 sm:$0xff]  }
 0x39e   : > { %v7215_v12 = vpop.f32.mrf.mxu1  ;;  %v7176_v14 = vpop.f32.mrf.mxu0  ;;  %7509 = vmatprep.subr.bf16.mxu1 %v9457_v4  ;;  %v9517_v61 = vld [vmem:[#allocation7 + $0x78c] ss:$16 sps:$4 sm:$0xff]   ;;  %v9515_v1 = vld [vmem:[#allocation7 + $0x788] ss:$16 sps:$4 sm:$0xff]  }
 0x39f   : > { %v10212_v55 = vadd.f32 %v7215_v12, %v7175_v53  ;;  %7469 = vmatpush1.bf16.msra.mxu0 %v9452_v7  ;;  %v9520_v4 = vld [vmem:[#allocation7 + $0x56c] ss:$16 sps:$4 sm:$0xff]   ;;  %v9518_v6 = vld [vmem:[#allocation7 + $0x568] ss:$16 sps:$4 sm:$0xff]  }
 0x3a0   : > { %v7217_v17 = vpop.f32.mrf.mxu1  ;;  %v7177_v18 = vpop.f32.mrf.mxu0  ;;  %7470 = vmatprep.subr.bf16.mxu0 %v9460_v10  ;;  %v9523_v5 = vld [vmem:[#allocation7 + $0x76c] ss:$16 sps:$4 sm:$0xff]   ;;  %v9521_v7 = vld [vmem:[#allocation7 + $0x768] ss:$16 sps:$4 sm:$0xff]  }
 0x3a1   : > { %7510 = vmatpush1.bf16.msra.mxu1 %v9455_v9  ;;  %v9526_v8 = vld [vmem:[#allocation7 + $0x54c] ss:$16 sps:$4 sm:$0xff]   ;;  %v9524_v10 = vld [vmem:[#allocation7 + $0x548] ss:$16 sps:$4 sm:$0xff]  }
 0x3a2   : > { %v7218_v23 = vpop.f32.mrf.mxu1  ;;  %7511 = vmatprep.subr.bf16.mxu1 %v9463_v39  ;;  %v9529_v9 = vld [vmem:[#allocation7 + $0x74c] ss:$16 sps:$4 sm:$0xff]   ;;  %v9527_v53 = vld [vmem:[#allocation7 + $0x748] ss:$16 sps:$4 sm:$0xff]  }
 0x3a3   : > { %7471 = vmatpush1.bf16.msra.mxu0 %v9458_v57  ;;  %v9532_v12 = vld [vmem:[#allocation7 + $0x52c] ss:$16 sps:$4 sm:$0xff]   ;;  %v9530_v14 = vld [vmem:[#allocation7 + $0x528] ss:$16 sps:$4 sm:$0xff]  }
 0x3a4   : > { %7472 = vmatprep.subr.bf16.mxu0 %v9466_v22  ;;  %v9535_v39 = vld [vmem:[#allocation7 + $0x72c] ss:$16 sps:$4 sm:$0xff]   ;;  %v9533_v17 = vld [vmem:[#allocation7 + $0x728] ss:$16 sps:$4 sm:$0xff]  }
 0x3a5   : > { %7512 = vmatpush1.bf16.msra.mxu1 %v9461_v21  ;;  %v9538_v57 = vld [vmem:[#allocation7 + $0x50c] ss:$16 sps:$4 sm:$0xff]   ;;  %v9536_v21 = vld [vmem:[#allocation7 + $0x508] ss:$16 sps:$4 sm:$0xff]  }
 0x3a6   : > { %7513 = vmatprep.subr.bf16.mxu1 %v9469_v51  ;;  %v9541_v18 = vld [vmem:[#allocation7 + $0x70c] ss:$16 sps:$4 sm:$0xff]   ;;  %v9539_v22 = vld [vmem:[#allocation7 + $0x708] ss:$16 sps:$4 sm:$0xff]  }
 0x3a7   : > { %7473 = vmatpush1.bf16.msra.mxu0 %v9464_v44  ;;  %v9544_v23 = vld [vmem:[#allocation7 + $0x8ec] ss:$16 sps:$4 sm:$0xff]   ;;  %v9542_v44 = vld [vmem:[#allocation7 + $0x8e8] ss:$16 sps:$4 sm:$0xff]  }
 0x3a8   : > { %7474 = vmatprep.subr.bf16.mxu0 %v9472_v43  ;;  %v9547_v51 = vld [vmem:[#allocation7 + $0xaec] ss:$16 sps:$4 sm:$0xff]  }
 0x3a9   : > { %7514 = vmatpush1.bf16.msra.mxu1 %v9467_v63  ;;  %v9545_v63 = vld [vmem:[#allocation7 + $0xae8] ss:$16 sps:$4 sm:$0xff]   ;;  %v9550_v43 = vld [vmem:[#allocation7 + $0x8cc] ss:$16 sps:$4 sm:$0xff]  }
 0x3aa   : > { %7515 = vmatprep.subr.bf16.mxu1 %v9475_v28 }
 0x3ab   : > { %7475 = vmatpush1.bf16.msra.mxu0 %v9470_v13  ;;  %v9553_v13 = vld [vmem:[#allocation7 + $0xacc] ss:$16 sps:$4 sm:$0xff]  }
 0x3ac   : > { %7476 = vmatprep.subr.bf16.mxu0 %v9478_v30 }
 0x3ad   : > { %7516 = vmatpush1.bf16.msra.mxu1 %v9473_v40 }
 0x3ae   : > { %7517 = vmatprep.subr.bf16.mxu1 %v9481_v60  ;;  %v9548_v60 = vld [vmem:[#allocation7 + $0x8c8] ss:$16 sps:$4 sm:$0xff]  }
 0x3af   : > { %7477 = vmatpush1.bf16.msra.mxu0 %v9476_v35 }
 0x3b0   : > { %7478 = vmatprep.subr.bf16.mxu0 %v9484_v31  ;;  %v9556_v31 = vld [vmem:[#allocation7 + $0x8ac] ss:$16 sps:$4 sm:$0xff]  }
 0x3b1   : > { %7518 = vmatpush1.bf16.msra.mxu1 %v9479_v3  ;;  %v9551_v3 = vld [vmem:[#allocation7 + $0xac8] ss:$16 sps:$4 sm:$0xff]  }
 0x3b2   : > { %7519 = vmatprep.subr.bf16.mxu1 %v9487_v37 }
 0x3b3   : > { %7479 = vmatpush1.bf16.msra.mxu0 %v9482_v38 }
 0x3b4   : > { %7480 = vmatprep.subr.bf16.mxu0 %v9490_v16 }
 0x3b5   : > { %7520 = vmatpush1.bf16.msra.mxu1 %v9485_v59 }
 0x3b6   : > { %7521 = vmatprep.subr.bf16.mxu1 %v9493_v41 }
 0x3b7   : > { %7481 = vmatpush1.bf16.msra.mxu0 %v9488_v19  ;;  %v9557_v19 = vld [vmem:[#allocation7 + $0xaa8] ss:$16 sps:$4 sm:$0xff]  }
 0x3b8   : > { %7482 = vmatprep.subr.bf16.mxu0 %v9496_v45 }
 0x3b9   : > { %7522 = vmatpush1.bf16.msra.mxu1 %v9491_v42  ;;  %v9562_v42 = vld [vmem:[#allocation7 + $0x88c] ss:$16 sps:$4 sm:$0xff]  }
 0x3ba   : > { %7523 = vmatprep.subr.bf16.mxu1 %v9499_v46  ;;  %v9563_v46 = vld [vmem:[#allocation7 + $0xa88] ss:$16 sps:$4 sm:$0xff]  }
 0x3bb   : > { %7483 = vmatpush2.bf16.msra.mxu0 %v9494_v47  ;;  %v9568_v47 = vld [vmem:[#allocation7 + $0x86c] ss:$16 sps:$4 sm:$0xff]  }
 0x3bc   : > { %7484 = vmatprep.subr.bf16.mxu0 %v9502_v33  ;;  %v9566_v33 = vld [vmem:[#allocation7 + $0x868] ss:$16 sps:$4 sm:$0xff]  }
 0x3bd   : > { %7524 = vmatpush2.bf16.msra.mxu1 %v9497_v48  ;;  %v9571_v48 = vld [vmem:[#allocation7 + $0xa6c] ss:$16 sps:$4 sm:$0xff]  }
 0x3be   : > { %7525 = vmatprep.subr.bf16.mxu1 %v9505_v49  ;;  %v9569_v49 = vld [vmem:[#allocation7 + $0xa68] ss:$16 sps:$4 sm:$0xff]  }
 0x3bf   : > { %7485 = vmatpush2.bf16.msra.mxu0 %v9500_v50  ;;  %v9574_v50 = vld [vmem:[#allocation7 + $0x84c] ss:$16 sps:$4 sm:$0xff]  }
 0x3c0   : > { %7486 = vmatprep.subr.bf16.mxu0 %v9508_v36  ;;  %v9572_v36 = vld [vmem:[#allocation7 + $0x848] ss:$16 sps:$4 sm:$0xff]  }
 0x3c1   : > { %7526 = vmatpush2.bf16.msra.mxu1 %v9503_v52  ;;  %v9577_v52 = vld [vmem:[#allocation7 + $0xa4c] ss:$16 sps:$4 sm:$0xff]  }
 0x3c2   : > { %7527 = vmatprep.subr.bf16.mxu1 %v9511_v32  ;;  %v9575_v32 = vld [vmem:[#allocation7 + $0xa48] ss:$16 sps:$4 sm:$0xff]  }
 0x3c3   : > { %7487 = vmatpush2.bf16.msra.mxu0 %v9506_v25  ;;  %v9580_v25 = vld [vmem:[#allocation7 + $0x82c] ss:$16 sps:$4 sm:$0xff]  }
 0x3c4   : > { %7488 = vmatprep.subr.bf16.mxu0 %v9514_v24  ;;  %v9578_v24 = vld [vmem:[#allocation7 + $0x828] ss:$16 sps:$4 sm:$0xff]  }
 0x3c5   : > { %7528 = vmatpush2.bf16.msra.mxu1 %v9509_v56  ;;  %v9583_v56 = vld [vmem:[#allocation7 + $0xa2c] ss:$16 sps:$4 sm:$0xff]  }
 0x3c6   : > { %7529 = vmatprep.subr.bf16.mxu1 %v9517_v61  ;;  %v9581_v61 = vld [vmem:[#allocation7 + $0xa28] ss:$16 sps:$4 sm:$0xff]  }
 0x3c7   : > { %7489 = vmatpush2.bf16.msra.mxu0 %v9512_v0  ;;  %v9586_v0 = vld [vmem:[#allocation7 + $0x80c] ss:$16 sps:$4 sm:$0xff]  }
 0x3c8   : > { %7490 = vmatprep.subr.bf16.mxu0 %v9520_v4  ;;  %v9584_v4 = vld [vmem:[#allocation7 + $0x808] ss:$16 sps:$4 sm:$0xff]  }
 0x3c9   : > { %7530 = vmatpush2.bf16.msra.mxu1 %v9515_v1  ;;  %v9589_v1 = vld [vmem:[#allocation7 + $0xa0c] ss:$16 sps:$4 sm:$0xff]  }
 0x3ca   : > { %7531 = vmatprep.subr.bf16.mxu1 %v9523_v5  ;;  %v9587_v5 = vld [vmem:[#allocation7 + $0xa08] ss:$16 sps:$4 sm:$0xff]  }
 0x3cb   : > { %7491 = vmatpush2.bf16.msra.mxu0 %v9518_v6  ;;  %v9592_v6 = vld [vmem:[#allocation7 + $0x9ec] ss:$16 sps:$4 sm:$0xff]  }
 0x3cc   : > { %7492 = vmatprep.subr.bf16.mxu0 %v9526_v8  ;;  %v9590_v8 = vld [vmem:[#allocation7 + $0x9e8] ss:$16 sps:$4 sm:$0xff]  }
 0x3cd   : > { %7532 = vmatpush2.bf16.msra.mxu1 %v9521_v7  ;;  %v9595_v7 = vld [vmem:[#allocation7 + $0xbec] ss:$16 sps:$4 sm:$0xff]  }
 0x3ce   : > { %7533 = vmatprep.subr.bf16.mxu1 %v9529_v9  ;;  %v9593_v9 = vld [vmem:[#allocation7 + $0xbe8] ss:$16 sps:$4 sm:$0xff]  }
 0x3cf   : > { %7493 = vmatpush2.bf16.msra.mxu0 %v9524_v10  ;;  %v9598_v10 = vld [vmem:[#allocation7 + $0x9cc] ss:$16 sps:$4 sm:$0xff]  }
 0x3d0   : > { %7494 = vmatprep.subr.bf16.mxu0 %v9532_v12  ;;  %v9596_v12 = vld [vmem:[#allocation7 + $0x9c8] ss:$16 sps:$4 sm:$0xff]  }
 0x3d1   : > { %7534 = vmatpush2.bf16.msra.mxu1 %v9527_v53  ;;  %v9601_v53 = vld [vmem:[#allocation7 + $0xbcc] ss:$16 sps:$4 sm:$0xff]  }
 0x3d2   : > { %7535 = vmatprep.subr.bf16.mxu1 %v9535_v39  ;;  %v9599_v39 = vld [vmem:[#allocation7 + $0xbc8] ss:$16 sps:$4 sm:$0xff]  }
 0x3d3   : > { %7495 = vmatpush2.bf16.msra.mxu0 %v9530_v14  ;;  %v9604_v14 = vld [vmem:[#allocation7 + $0x9ac] ss:$16 sps:$4 sm:$0xff]  }
 0x3d4   : > { %7496 = vmatprep.subr.bf16.mxu0 %v9538_v57  ;;  %v9602_v57 = vld [vmem:[#allocation7 + $0x9a8] ss:$16 sps:$4 sm:$0xff]  }
 0x3d5   : > { %7536 = vmatpush2.bf16.msra.mxu1 %v9533_v17  ;;  %v9607_v17 = vld [vmem:[#allocation7 + $0xbac] ss:$16 sps:$4 sm:$0xff]  }
 0x3d6   : > { %7537 = vmatprep.subr.bf16.mxu1 %v9541_v18  ;;  %v9605_v18 = vld [vmem:[#allocation7 + $0xba8] ss:$16 sps:$4 sm:$0xff]  }
 0x3d7   : > { %7497 = vmatpush2.bf16.msra.mxu0 %v9536_v21  ;;  %v9610_v21 = vld [vmem:[#allocation7 + $0x98c] ss:$16 sps:$4 sm:$0xff]  }
 0x3d8   : > { %7548 = vmatprep.subr.bf16.mxu0 %v9544_v23  ;;  %v9608_v23 = vld [vmem:[#allocation7 + $0x988] ss:$16 sps:$4 sm:$0xff]  }
 0x3d9   : > { %7538 = vmatpush2.bf16.msra.mxu1 %v9539_v22  ;;  %v9613_v22 = vld [vmem:[#allocation7 + $0xb8c] ss:$16 sps:$4 sm:$0xff]  }
 0x3da   : > { %7589 = vmatprep.subr.bf16.mxu1 %v9547_v51  ;;  %v7254_v28 = vpop.f32.mrf.mxu0  ;;  %7499 = vmatmul.mubr.bf16.vlgmr.msra.gmra.mxu0 %v10151_v26  ;;  %v9611_v51 = vld [vmem:[#allocation7 + $0xb88] ss:$16 sps:$4 sm:$0xff]  }
 0x3db   : > { %v7255_v40 = vadd.f32 %v7254_v28, %v10208_v11  ;;  %7549 = vmatpush1.bf16.msra.mxu0 %v9542_v44  ;;  %7580 = vmatprep.mubr.bf16.mxu0 %v10155_v27  ;;  %v9559_v11 = vld [vmem:[#allocation7 + $0xaac] ss:$16 sps:$4 sm:$0xff]   ;;  %v9554_v27 = vld [vmem:[#allocation7 + $0x8a8] ss:$16 sps:$4 sm:$0xff]  }
 0x3dc   : > { %v7295_v30 = vpop.f32.mrf.mxu1  ;;  %7540 = vmatmul.mubr.bf16.vlgmr.msra.gmra.mxu1 %v10153_v2  ;;  %v7256_v35 = vpop.f32.mrf.mxu0  ;;  %7550 = vmatprep.subr.bf16.mxu0 %v9550_v43  ;;  %v9616_v44 = vld [vmem:[#allocation7 + $0x96c] ss:$16 sps:$4 sm:$0xff]   ;;  %v9614_v43 = vld [vmem:[#allocation7 + $0x968] ss:$16 sps:$4 sm:$0xff]  }
 0x3dd   : > { %7590 = vmatpush1.bf16.msra.mxu1 %v9545_v63  ;;  %v10218_v37 = vadd.f32 %v7295_v30, %v7255_v40  ;;  %7621 = vmatprep.mubr.bf16.mxu1 %v10158_v29  ;;  %v7257_v26 = vadd.f32 %v7256_v35, %v10212_v55  ;;  %v9565_v29 = vld [vmem:[#allocation7 + $0xa8c] ss:$16 sps:$4 sm:$0xff]   ;;  %v9560_v55 = vld [vmem:[#allocation7 + $0x888] ss:$16 sps:$4 sm:$0xff]  }
 0x3de   : > { %v7297_v38 = vpop.f32.mrf.mxu1  ;;  %v7258_v59 = vpop.f32.mrf.mxu0  ;;  %7591 = vmatprep.subr.bf16.mxu1 %v9553_v13  ;;  %v9619_v63 = vld [vmem:[#allocation7 + $0xb6c] ss:$16 sps:$4 sm:$0xff]   ;;  %v9617_v28 = vld [vmem:[#allocation7 + $0xb68] ss:$16 sps:$4 sm:$0xff]  }
 0x3df   : > { %v10222_v2 = vadd.f32 %v7297_v38, %v7257_v26  ;;  %7551 = vmatpush1.bf16.msra.mxu0 %v9548_v60  ;;  %v9622_v13 = vld [vmem:[#allocation7 + $0x94c] ss:$16 sps:$4 sm:$0xff]   ;;  %v9620_v30 = vld [vmem:[#allocation7 + $0x948] ss:$16 sps:$4 sm:$0xff]  }
 0x3e0   : > { %v7299_v16 = vpop.f32.mrf.mxu1  ;;  %v7259_v41 = vpop.f32.mrf.mxu0  ;;  %7552 = vmatprep.subr.bf16.mxu0 %v9556_v31  ;;  %v9625_v40 = vld [vmem:[#allocation7 + $0xb4c] ss:$16 sps:$4 sm:$0xff]   ;;  %v9623_v60 = vld [vmem:[#allocation7 + $0xb48] ss:$16 sps:$4 sm:$0xff]  }
 0x3e1   : > { %7592 = vmatpush1.bf16.msra.mxu1 %v9551_v3  ;;  %v9628_v35 = vld [vmem:[#allocation7 + $0x92c] ss:$16 sps:$4 sm:$0xff]   ;;  %v9626_v31 = vld [vmem:[#allocation7 + $0x928] ss:$16 sps:$4 sm:$0xff]  }
 0x3e2   : > { %v7300_v45 = vpop.f32.mrf.mxu1  ;;  %7593 = vmatprep.subr.bf16.mxu1 %v9559_v11  ;;  %v9631_v3 = vld [vmem:[#allocation7 + $0xb2c] ss:$16 sps:$4 sm:$0xff]   ;;  %v9629_v26 = vld [vmem:[#allocation7 + $0xb28] ss:$16 sps:$4 sm:$0xff]  }
 0x3e3   : > { %7553 = vmatpush1.bf16.msra.mxu0 %v9554_v27  ;;  %v9634_v38 = vld [vmem:[#allocation7 + $0x90c] ss:$16 sps:$4 sm:$0xff]   ;;  %v9632_v59 = vld [vmem:[#allocation7 + $0x908] ss:$16 sps:$4 sm:$0xff]  }
 0x3e4   : > { %7554 = vmatprep.subr.bf16.mxu0 %v9562_v42  ;;  %v9637_v11 = vld [vmem:[#allocation7 + $0xb0c] ss:$16 sps:$4 sm:$0xff]   ;;  %v9635_v16 = vld [vmem:[#allocation7 + $0xb08] ss:$16 sps:$4 sm:$0xff]  }
 0x3e5   : > { %7594 = vmatpush1.bf16.msra.mxu1 %v9557_v19  ;;  %v9640_v27 = vld [vmem:[#allocation7 + $0xcec] ss:$16 sps:$4 sm:$0xff]   ;;  %v9638_v19 = vld [vmem:[#allocation7 + $0xce8] ss:$16 sps:$4 sm:$0xff]  }
 0x3e6   : > { %7595 = vmatprep.subr.bf16.mxu1 %v9565_v29  ;;  %v9643_v41 = vld [vmem:[#allocation7 + $0xeec] ss:$16 sps:$4 sm:$0xff]   ;;  %v9641_v42 = vld [vmem:[#allocation7 + $0xee8] ss:$16 sps:$4 sm:$0xff]  }
 0x3e7   : > { %7555 = vmatpush1.bf16.msra.mxu0 %v9560_v55  ;;  %v9646_v45 = vld [vmem:[#allocation7 + $0xccc] ss:$16 sps:$4 sm:$0xff]  }
 0x3e8   : > { %7556 = vmatprep.subr.bf16.mxu0 %v9568_v47  ;;  %v9649_v55 = vld [vmem:[#allocation7 + $0xecc] ss:$16 sps:$4 sm:$0xff]  }
 0x3e9   : > { %7596 = vmatpush1.bf16.msra.mxu1 %v9563_v46 }
 0x3ea   : > { %7597 = vmatprep.subr.bf16.mxu1 %v9571_v48  ;;  %v9644_v48 = vld [vmem:[#allocation7 + $0xcc8] ss:$16 sps:$4 sm:$0xff]  }
 0x3eb   : > { %7557 = vmatpush1.bf16.msra.mxu0 %v9566_v33 }
 0x3ec   : > { %7558 = vmatprep.subr.bf16.mxu0 %v9574_v50  ;;  %v9652_v50 = vld [vmem:[#allocation7 + $0xcac] ss:$16 sps:$4 sm:$0xff]  }
 0x3ed   : > { %7598 = vmatpush1.bf16.msra.mxu1 %v9569_v49  ;;  %v9647_v49 = vld [vmem:[#allocation7 + $0xec8] ss:$16 sps:$4 sm:$0xff]  }
 0x3ee   : > { %7599 = vmatprep.subr.bf16.mxu1 %v9577_v52 }
 0x3ef   : > { %7559 = vmatpush1.bf16.msra.mxu0 %v9572_v36 }
 0x3f0   : > { %7560 = vmatprep.subr.bf16.mxu0 %v9580_v25 }
 0x3f1   : > { %7600 = vmatpush1.bf16.msra.mxu1 %v9575_v32 }
 0x3f2   : > { %7601 = vmatprep.subr.bf16.mxu1 %v9583_v56 }
 0x3f3   : > { %7561 = vmatpush1.bf16.msra.mxu0 %v9578_v24  ;;  %v9653_v24 = vld [vmem:[#allocation7 + $0xea8] ss:$16 sps:$4 sm:$0xff]  }
 0x3f4   : > { %7562 = vmatprep.subr.bf16.mxu0 %v9586_v0 }
 0x3f5   : > { %7602 = vmatpush1.bf16.msra.mxu1 %v9581_v61  ;;  %v9658_v61 = vld [vmem:[#allocation7 + $0xc8c] ss:$16 sps:$4 sm:$0xff]  }
 0x3f6   : > { %7603 = vmatprep.subr.bf16.mxu1 %v9589_v1  ;;  %v9659_v1 = vld [vmem:[#allocation7 + $0xe88] ss:$16 sps:$4 sm:$0xff]  }
 0x3f7   : > { %7563 = vmatpush1.bf16.msra.mxu0 %v9584_v4  ;;  %v9664_v4 = vld [vmem:[#allocation7 + $0xc6c] ss:$16 sps:$4 sm:$0xff]  }
 0x3f8   : > { %7564 = vmatprep.subr.bf16.mxu0 %v9592_v6  ;;  %v9662_v6 = vld [vmem:[#allocation7 + $0xc68] ss:$16 sps:$4 sm:$0xff]  }
 0x3f9   : > { %7604 = vmatpush1.bf16.msra.mxu1 %v9587_v5  ;;  %v9667_v5 = vld [vmem:[#allocation7 + $0xe6c] ss:$16 sps:$4 sm:$0xff]  }
 0x3fa   : > { %7605 = vmatprep.subr.bf16.mxu1 %v9595_v7  ;;  %v9665_v7 = vld [vmem:[#allocation7 + $0xe68] ss:$16 sps:$4 sm:$0xff]  }
 0x3fb   : > { %7565 = vmatpush2.bf16.msra.mxu0 %v9590_v8  ;;  %v9670_v8 = vld [vmem:[#allocation7 + $0xc4c] ss:$16 sps:$4 sm:$0xff]  }
 0x3fc   : > { %7566 = vmatprep.subr.bf16.mxu0 %v9598_v10  ;;  %v9668_v10 = vld [vmem:[#allocation7 + $0xc48] ss:$16 sps:$4 sm:$0xff]  }
 0x3fd   : > { %7606 = vmatpush2.bf16.msra.mxu1 %v9593_v9  ;;  %v9673_v9 = vld [vmem:[#allocation7 + $0xe4c] ss:$16 sps:$4 sm:$0xff]  }
 0x3fe   : > { %7607 = vmatprep.subr.bf16.mxu1 %v9601_v53  ;;  %v9671_v53 = vld [vmem:[#allocation7 + $0xe48] ss:$16 sps:$4 sm:$0xff]  }
 0x3ff   : > { %7567 = vmatpush2.bf16.msra.mxu0 %v9596_v12  ;;  %v9676_v12 = vld [vmem:[#allocation7 + $0xc2c] ss:$16 sps:$4 sm:$0xff]  }
 0x400   : > { %7568 = vmatprep.subr.bf16.mxu0 %v9604_v14  ;;  %v9674_v14 = vld [vmem:[#allocation7 + $0xc28] ss:$16 sps:$4 sm:$0xff]  }
 0x401   : > { %7608 = vmatpush2.bf16.msra.mxu1 %v9599_v39  ;;  %v9679_v39 = vld [vmem:[#allocation7 + $0xe2c] ss:$16 sps:$4 sm:$0xff]  }
 0x402   : > { %7609 = vmatprep.subr.bf16.mxu1 %v9607_v17  ;;  %v9677_v17 = vld [vmem:[#allocation7 + $0xe28] ss:$16 sps:$4 sm:$0xff]  }
 0x403   : > { %7569 = vmatpush2.bf16.msra.mxu0 %v9602_v57  ;;  %v9682_v57 = vld [vmem:[#allocation7 + $0xc0c] ss:$16 sps:$4 sm:$0xff]  }
 0x404   : > { %7570 = vmatprep.subr.bf16.mxu0 %v9610_v21  ;;  %v9680_v21 = vld [vmem:[#allocation7 + $0xc08] ss:$16 sps:$4 sm:$0xff]  }
 0x405   : > { %7610 = vmatpush2.bf16.msra.mxu1 %v9605_v18  ;;  %v9685_v18 = vld [vmem:[#allocation7 + $0xe0c] ss:$16 sps:$4 sm:$0xff]  }
 0x406   : > { %7611 = vmatprep.subr.bf16.mxu1 %v9613_v22  ;;  %v9683_v22 = vld [vmem:[#allocation7 + $0xe08] ss:$16 sps:$4 sm:$0xff]  }
 0x407   : > { %7571 = vmatpush2.bf16.msra.mxu0 %v9608_v23  ;;  %v9688_v23 = vld [vmem:[#allocation7 + $0xdec] ss:$16 sps:$4 sm:$0xff]  }
 0x408   : > { %7572 = vmatprep.subr.bf16.mxu0 %v9616_v44  ;;  %v9686_v44 = vld [vmem:[#allocation7 + $0xde8] ss:$16 sps:$4 sm:$0xff]  }
 0x409   : > { %7612 = vmatpush2.bf16.msra.mxu1 %v9611_v51  ;;  %v9691_v51 = vld [vmem:[#allocation7 + $0xfec] ss:$16 sps:$4 sm:$0xff]  }
 0x40a   : > { %7613 = vmatprep.subr.bf16.mxu1 %v9619_v63  ;;  %v9689_v63 = vld [vmem:[#allocation7 + $0xfe8] ss:$16 sps:$4 sm:$0xff]  }
 0x40b   : > { %7573 = vmatpush2.bf16.msra.mxu0 %v9614_v43  ;;  %v9694_v43 = vld [vmem:[#allocation7 + $0xdcc] ss:$16 sps:$4 sm:$0xff]  }
 0x40c   : > { %7574 = vmatprep.subr.bf16.mxu0 %v9622_v13  ;;  %v9692_v13 = vld [vmem:[#allocation7 + $0xdc8] ss:$16 sps:$4 sm:$0xff]  }
 0x40d   : > { %7614 = vmatpush2.bf16.msra.mxu1 %v9617_v28  ;;  %v9697_v28 = vld [vmem:[#allocation7 + $0xfcc] ss:$16 sps:$4 sm:$0xff]  }
 0x40e   : > { %7615 = vmatprep.subr.bf16.mxu1 %v9625_v40  ;;  %v9695_v40 = vld [vmem:[#allocation7 + $0xfc8] ss:$16 sps:$4 sm:$0xff]  }
 0x40f   : > { %7575 = vmatpush2.bf16.msra.mxu0 %v9620_v30  ;;  %v9700_v30 = vld [vmem:[#allocation7 + $0xdac] ss:$16 sps:$4 sm:$0xff]  }
 0x410   : > { %7576 = vmatprep.subr.bf16.mxu0 %v9628_v35  ;;  %v9698_v35 = vld [vmem:[#allocation7 + $0xda8] ss:$16 sps:$4 sm:$0xff]  }
 0x411   : > { %7616 = vmatpush2.bf16.msra.mxu1 %v9623_v60  ;;  %v9703_v60 = vld [vmem:[#allocation7 + $0xfac] ss:$16 sps:$4 sm:$0xff]  }
 0x412   : > { %7617 = vmatprep.subr.bf16.mxu1 %v9631_v3  ;;  %v9701_v3 = vld [vmem:[#allocation7 + $0xfa8] ss:$16 sps:$4 sm:$0xff]  }
 0x413   : > { %7577 = vmatpush2.bf16.msra.mxu0 %v9626_v31  ;;  %v9706_v31 = vld [vmem:[#allocation7 + $0xd8c] ss:$16 sps:$4 sm:$0xff]  }
 0x414   : > { %7578 = vmatprep.subr.bf16.mxu0 %v9634_v38  ;;  %v9704_v38 = vld [vmem:[#allocation7 + $0xd88] ss:$16 sps:$4 sm:$0xff]  }
 0x415   : > { %7618 = vmatpush2.bf16.msra.mxu1 %v9629_v26  ;;  %v9709_v26 = vld [vmem:[#allocation7 + $0xf8c] ss:$16 sps:$4 sm:$0xff]  }
 0x416   : > { %7619 = vmatprep.subr.bf16.mxu1 %v9637_v11  ;;  %v9707_v11 = vld [vmem:[#allocation7 + $0xf88] ss:$16 sps:$4 sm:$0xff]  }
 0x417   : > { %7579 = vmatpush2.bf16.msra.mxu0 %v9632_v59  ;;  %v9712_v59 = vld [vmem:[#allocation7 + $0xd6c] ss:$16 sps:$4 sm:$0xff]  }
 0x418   : > { %7630 = vmatprep.subr.bf16.mxu0 %v9640_v27  ;;  %v9710_v27 = vld [vmem:[#allocation7 + $0xd68] ss:$16 sps:$4 sm:$0xff]  }
 0x419   : > { %7620 = vmatpush2.bf16.msra.mxu1 %v9635_v16  ;;  %v9715_v16 = vld [vmem:[#allocation7 + $0xf6c] ss:$16 sps:$4 sm:$0xff]  }
 0x41a   : > { %7671 = vmatprep.subr.bf16.mxu1 %v9643_v41  ;;  %v7336_v29 = vpop.f32.mrf.mxu0  ;;  %7581 = vmatmul.mubr.bf16.vlgmr.msra.gmra.mxu0 %v10173_v54  ;;  %v9713_v41 = vld [vmem:[#allocation7 + $0xf68] ss:$16 sps:$4 sm:$0xff]  }
 0x41b   : > { %v7337_v46 = vadd.f32 %v7336_v29, %v10218_v37  ;;  %7631 = vmatpush1.bf16.msra.mxu0 %v9638_v19  ;;  %7662 = vmatprep.mubr.bf16.mxu0 %v10177_v15  ;;  %v9655_v37 = vld [vmem:[#allocation7 + $0xeac] ss:$16 sps:$4 sm:$0xff]   ;;  %v9650_v15 = vld [vmem:[#allocation7 + $0xca8] ss:$16 sps:$4 sm:$0xff]  }
 0x41c   : > { %v7377_v47 = vpop.f32.mrf.mxu1  ;;  %7622 = vmatmul.mubr.bf16.vlgmr.msra.gmra.mxu1 %v10175_v58  ;;  %v7338_v33 = vpop.f32.mrf.mxu0  ;;  %7632 = vmatprep.subr.bf16.mxu0 %v9646_v45  ;;  %v9718_v19 = vld [vmem:[#allocation7 + $0xd4c] ss:$16 sps:$4 sm:$0xff]   ;;  %v9716_v45 = vld [vmem:[#allocation7 + $0xd48] ss:$16 sps:$4 sm:$0xff]  }
 0x41d   : > { %7672 = vmatpush1.bf16.msra.mxu1 %v9641_v42  ;;  %v10228_v52 = vadd.f32 %v7377_v47, %v7337_v46  ;;  %7703 = vmatprep.mubr.bf16.mxu1 %v10186_v20  ;;  %v7339_v54 = vadd.f32 %v7338_v33, %v10222_v2  ;;  %v9661_v20 = vld [vmem:[#allocation7 + $0xe8c] ss:$16 sps:$4 sm:$0xff]   ;;  %v9656_v2 = vld [vmem:[#allocation7 + $0xc88] ss:$16 sps:$4 sm:$0xff]  }
 0x41e   : > { %v7379_v36 = vpop.f32.mrf.mxu1  ;;  %v7340_v32 = vpop.f32.mrf.mxu0  ;;  %7673 = vmatprep.subr.bf16.mxu1 %v9649_v55  ;;  %v9721_v42 = vld [vmem:[#allocation7 + $0xf4c] ss:$16 sps:$4 sm:$0xff]   ;;  %v9719_v29 = vld [vmem:[#allocation7 + $0xf48] ss:$16 sps:$4 sm:$0xff]  }
 0x41f   : > { %v10232_v58 = vadd.f32 %v7379_v36, %v7339_v54  ;;  %7633 = vmatpush1.bf16.msra.mxu0 %v9644_v48  ;;  %v9724_v55 = vld [vmem:[#allocation7 + $0xd2c] ss:$16 sps:$4 sm:$0xff]   ;;  %v9722_v47 = vld [vmem:[#allocation7 + $0xd28] ss:$16 sps:$4 sm:$0xff]  }
 0x420   : > { %v7381_v25 = vpop.f32.mrf.mxu1  ;;  %v7341_v56 = vpop.f32.mrf.mxu0  ;;  %7634 = vmatprep.subr.bf16.mxu0 %v9652_v50  ;;  %v9727_v46 = vld [vmem:[#allocation7 + $0xf2c] ss:$16 sps:$4 sm:$0xff]   ;;  %v9725_v48 = vld [vmem:[#allocation7 + $0xf28] ss:$16 sps:$4 sm:$0xff]  }
 0x421   : > { %7674 = vmatpush1.bf16.msra.mxu1 %v9647_v49  ;;  %v9730_v33 = vld [vmem:[#allocation7 + $0xd0c] ss:$16 sps:$4 sm:$0xff]   ;;  %v9728_v50 = vld [vmem:[#allocation7 + $0xd08] ss:$16 sps:$4 sm:$0xff]  }
 0x422   : > { %v7382_v0 = vpop.f32.mrf.mxu1  ;;  %7675 = vmatprep.subr.bf16.mxu1 %v9655_v37  ;;  %v9733_v49 = vld [vmem:[#allocation7 + $0xf0c] ss:$16 sps:$4 sm:$0xff]   ;;  %v9731_v54 = vld [vmem:[#allocation7 + $0xf08] ss:$16 sps:$4 sm:$0xff]  }
 0x423   : > { %7635 = vmatpush1.bf16.msra.mxu0 %v9650_v15 }
 0x424   : > { %7636 = vmatprep.subr.bf16.mxu0 %v9658_v61 }
 0x425   : > { %7676 = vmatpush1.bf16.msra.mxu1 %v9653_v24 }
 0x426   : > { %7677 = vmatprep.subr.bf16.mxu1 %v9661_v20 }
 0x427   : > { %7637 = vmatpush1.bf16.msra.mxu0 %v9656_v2 }
 0x428   : > { %7638 = vmatprep.subr.bf16.mxu0 %v9664_v4 }
 0x429   : > { %7678 = vmatpush1.bf16.msra.mxu1 %v9659_v1 }
 0x42a   : > { %7679 = vmatprep.subr.bf16.mxu1 %v9667_v5 }
 0x42b   : > { %7639 = vmatpush1.bf16.msra.mxu0 %v9662_v6 }
 0x42c   : > { %7640 = vmatprep.subr.bf16.mxu0 %v9670_v8 }
 0x42d   : > { %7680 = vmatpush1.bf16.msra.mxu1 %v9665_v7 }
 0x42e   : > { %7681 = vmatprep.subr.bf16.mxu1 %v9673_v9 }
 0x42f   : > { %7641 = vmatpush1.bf16.msra.mxu0 %v9668_v10 }
 0x430   : > { %7642 = vmatprep.subr.bf16.mxu0 %v9676_v12 }
 0x431   : > { %7682 = vmatpush1.bf16.msra.mxu1 %v9671_v53 }
 0x432   : > { %7683 = vmatprep.subr.bf16.mxu1 %v9679_v39 }
 0x433   : > { %7643 = vmatpush1.bf16.msra.mxu0 %v9674_v14 }
 0x434   : > { %7644 = vmatprep.subr.bf16.mxu0 %v9682_v57 }
 0x435   : > { %7684 = vmatpush1.bf16.msra.mxu1 %v9677_v17 }
 0x436   : > { %7685 = vmatprep.subr.bf16.mxu1 %v9685_v18 }
 0x437   : > { %7645 = vmatpush1.bf16.msra.mxu0 %v9680_v21 }
 0x438   : > { %7646 = vmatprep.subr.bf16.mxu0 %v9688_v23 }
 0x439   : > { %7686 = vmatpush1.bf16.msra.mxu1 %v9683_v22 }
 0x43a   : > { %7687 = vmatprep.subr.bf16.mxu1 %v9691_v51 }
 0x43b   : > { %7647 = vmatpush2.bf16.msra.mxu0 %v9686_v44 }
 0x43c   : > { %7648 = vmatprep.subr.bf16.mxu0 %v9694_v43  ;;  %v9736_v43 = vld [vmem:[%s10042_s6 + $0x8] sm:$0xff] }
 0x43d   : > { %7688 = vmatpush2.bf16.msra.mxu1 %v9689_v63 }
 0x43e   : > { %7689 = vmatprep.subr.bf16.mxu1 %v9697_v28  ;;  %v7713_v28 = vadd.f32 %v9736_v43, %v10232_v58  ;;  %v9739_v58 = vld [vmem:[%s10042_s6 + $0x18] sm:$0xff] }
 0x43f   : > { %7649 = vmatpush2.bf16.msra.mxu0 %v9692_v13 }
 0x440   : > { %7650 = vmatprep.subr.bf16.mxu0 %v9700_v30 }
 0x441   : > { %7690 = vmatpush2.bf16.msra.mxu1 %v9695_v40 }
 0x442   : > { %7691 = vmatprep.subr.bf16.mxu1 %v9703_v60 }
 0x443   : > { %7651 = vmatpush2.bf16.msra.mxu0 %v9698_v35  ;;  %v9737_v35 = vld [vmem:[%s10042_s6] sm:$0xff] }
 0x444   : > { %7652 = vmatprep.subr.bf16.mxu0 %v9706_v31 }
 0x445   : > { %7692 = vmatpush2.bf16.msra.mxu1 %v9701_v3  ;;  %v7712_v3 = vadd.f32 %v9737_v35, %v10228_v52 }
 0x446   : > { %7693 = vmatprep.subr.bf16.mxu1 %v9709_v26 }
 0x447   : > { %7653 = vmatpush2.bf16.msra.mxu0 %v9704_v38 }
 0x448   : > { %7654 = vmatprep.subr.bf16.mxu0 %v9712_v59  ;;  %v9738_v59 = vld [vmem:[%s10042_s6 + $0x10] sm:$0xff] }
 0x449   : > { %7694 = vmatpush2.bf16.msra.mxu1 %v9707_v11 }
 0x44a   : > { %7695 = vmatprep.subr.bf16.mxu1 %v9715_v16 }
 0x44b   : > { %7655 = vmatpush2.bf16.msra.mxu0 %v9710_v27 }
 0x44c   : > { %7656 = vmatprep.subr.bf16.mxu0 %v9718_v19  ;;  %v7716_v19 = vadd.f32 %v7713_v28, %v7712_v3 }
 0x44d   : > { %7696 = vmatpush2.bf16.msra.mxu1 %v9713_v41 }
 0x44e   : > { %7697 = vmatprep.subr.bf16.mxu1 %v9721_v42 }
 0x44f   : > { %7657 = vmatpush2.bf16.msra.mxu0 %v9716_v45 }
 0x450   : > { %7658 = vmatprep.subr.bf16.mxu0 %v9724_v55 }
 0x451   : > { %7698 = vmatpush2.bf16.msra.mxu1 %v9719_v29 }
 0x452   : > { %7699 = vmatprep.subr.bf16.mxu1 %v9727_v46 }
 0x453   : > { %7659 = vmatpush2.bf16.msra.mxu0 %v9722_v47 }
 0x454   : > { %7660 = vmatprep.subr.bf16.mxu0 %v9730_v33 }
 0x455   : > { %7700 = vmatpush2.bf16.msra.mxu1 %v9725_v48 }
 0x456   : > { %7701 = vmatprep.subr.bf16.mxu1 %v9733_v49 }
 0x457   : > { %7661 = vmatpush2.bf16.msra.mxu0 %v9728_v50 }
 0x459   : > { %7702 = vmatpush2.bf16.msra.mxu1 %v9731_v54 }
 0x45a   : > { %v7418_v36 = vpop.f32.mrf.mxu0  ;;  %7663 = vmatmul.mubr.bf16.vlgmr.msra.gmra.mxu0 %v10192_v34 }
 0x45c   : > { %v7459_v37 = vpop.f32.mrf.mxu1  ;;  %7704 = vmatmul.mubr.bf16.vlgmr.msra.gmra.mxu1 %v10194_v62  ;;  %v7420_v25 = vpop.f32.mrf.mxu0 }
 0x45d   : > { %v7460_v32 = vadd.f32 %v7459_v37, %v7418_v36 }
 0x45e   : > { %v7461_v15 = vpop.f32.mrf.mxu1  ;;  %v7422_v24 = vpop.f32.mrf.mxu0 }
 0x45f   : > { %v7462_v56 = vadd.f32 %v7461_v15, %v7420_v25 }
 0x460   : > { %v7463_v61 = vpop.f32.mrf.mxu1  ;;  %v7423_v0 = vpop.f32.mrf.mxu0 }
 0x462   : > { %v7464_v20 = vpop.f32.mrf.mxu1 }
 0x49a   : > { %v7500_v2 = vpop.f32.mrf.mxu0 }
 0x49b   : > { %v7501_v1 = vadd.f32 %v7500_v2, %v7460_v32 }
 0x49c   : > { %v7541_v4 = vpop.f32.mrf.mxu1  ;;  %v7502_v5 = vpop.f32.mrf.mxu0 }
 0x49d   : > { %v7542_v6 = vadd.f32 %v7541_v4, %v7501_v1  ;;  %v7503_v7 = vadd.f32 %v7502_v5, %v7462_v56 }
 0x49e   : > { %v7543_v8 = vpop.f32.mrf.mxu1  ;;  %v7504_v9 = vpop.f32.mrf.mxu0 }
 0x49f   : > { %v7544_v34 = vadd.f32 %v7543_v8, %v7503_v7 }
 0x4a0   : > { %v7545_v10 = vpop.f32.mrf.mxu1  ;;  %v7505_v62 = vpop.f32.mrf.mxu0 }
 0x4a2   : > { %v7546_v53 = vpop.f32.mrf.mxu1 }
 0x4da   : > { %v7582_v12 = vpop.f32.mrf.mxu0 }
 0x4db   : > { %v7583_v23 = vadd.f32 %v7582_v12, %v7542_v6 }
 0x4dc   : > { %v7623_v39 = vpop.f32.mrf.mxu1  ;;  %v7584_v14 = vpop.f32.mrf.mxu0 }
 0x4dd   : > { %v7585_v51 = vadd.f32 %v7584_v14, %v7544_v34  ;;  %v7624_v44 = vadd.f32 %v7623_v39, %v7583_v23 }
 0x4de   : > { %v7625_v17 = vpop.f32.mrf.mxu1  ;;  %v7586_v57 = vpop.f32.mrf.mxu0 }
 0x4df   : > { %v7626_v13 = vadd.f32 %v7625_v17, %v7585_v51 }
 0x4e0   : > { %v7627_v18 = vpop.f32.mrf.mxu1  ;;  %v7587_v21 = vpop.f32.mrf.mxu0 }
 0x4e2   : > { %v7628_v22 = vpop.f32.mrf.mxu1 }
 0x51a   : > { %v7664_v63 = vpop.f32.mrf.mxu0 }
 0x51b   : > { %v7665_v40 = vadd.f32 %v7664_v63, %v7624_v44 }
 0x51c   : > { %v7705_v30 = vpop.f32.mrf.mxu1  ;;  %v7666_v60 = vpop.f32.mrf.mxu0 }
 0x51d   : > { %v7706_v31 = vadd.f32 %v7705_v30, %v7665_v40  ;;  %v7667_v26 = vadd.f32 %v7666_v60, %v7626_v13 }
 0x51e   : > { %v7707_v38 = vpop.f32.mrf.mxu1  ;;  %v7668_v11 = vpop.f32.mrf.mxu0 }
 0x51f   : > { %v7714_v16 = vadd.f32 %v9738_v59, %v7706_v31  ;;  %v7708_v27 = vadd.f32 %v7707_v38, %v7667_v26 }
 0x520   : > { %v7709_v41 = vpop.f32.mrf.mxu1  ;;  %v7669_v42 = vpop.f32.mrf.mxu0 }
 0x521   : > { %v7715_v29 = vadd.f32 %v9739_v58, %v7708_v27  ;;  %v7717_v55 = vadd.f32 %v7716_v19, %v7714_v16 }
 0x522   : > { %v7710_v45 = vpop.f32.mrf.mxu1 }
 0x523   : > { %v7718_v46 = vadd.f32 %v7717_v55, %v7715_v29 }
 0x525   : > { %7719 = vadd.xlane.f32.xlu0 %v7718_v46 }
 0x5ae   : > { %v7720_v47 = vpop.xlane.xlu0 %7719 }
 0x5af   : > { %v7722_v48 = vmul.f32 0.001953125, %v7720_v47 }
 0x5b1   : > { %v7723_v33 = vsub.f32 %v7712_v3, %v7722_v48  ;;  %v7724_v52 = vsub.f32 %v7713_v28, %v7722_v48  ;;  %v7725_v49 = vsub.f32 %v7714_v16, %v7722_v48  ;;  %v7726_v50 = vsub.f32 %v7715_v29, %v7722_v48 }
 0x5b3   : > { %v7727_v54 = vmul.f32 %v7723_v33, %v7723_v33  ;;  %v7728_v36 = vmul.f32 %v7724_v52, %v7724_v52  ;;  %v7729_v37 = vmul.f32 %v7725_v49, %v7725_v49  ;;  %v7730_v25 = vmul.f32 %v7726_v50, %v7726_v50 }
 0x5b5   : > { %v7731_v32 = vadd.f32 %v7728_v36, %v7727_v54 }
 0x5b7   : > { %v7732_v15 = vadd.f32 %v7731_v32, %v7729_v37 }
 0x5b9   : > { %v7733_v56 = vadd.f32 %v7732_v15, %v7730_v25 }
 0x5bb   : > { %7734 = vadd.xlane.f32.xlu0 %v7733_v56 }
 0x644   : > { %v7735_v24 = vpop.xlane.xlu0 %7734 }
 0x645   : > { %v7736_v61 = vmul.f32 0.001953125, %v7735_v24 }
 0x647   : > { %v7737_v0 = vadd.f32 1e-05, %v7736_v61 }
 0x649   : > { %9734 = vrsqrt.f32 %v7737_v0 }
 0x656   : > { %v9735_v20 = vpop.eup %9734 }
 0x657   : > { %v7739_v2 = vmul.f32 %v9735_v20, %v7723_v33  ;;  %v7740_v1 = vmul.f32 %v9735_v20, %v7724_v52  ;;  %v7741_v4 = vmul.f32 %v9735_v20, %v7725_v49  ;;  %v7742_v5 = vmul.f32 %v9735_v20, %v7726_v50 }
 0x659   : > { %7743 = vst [vmem:[%s215_s20] sm:$0xff] %v7739_v2  ;;  %7744 = vst [vmem:[%s215_s20 + $0x8] sm:$0xff] %v7740_v1 }
 0x65a   : > { %7745 = vst [vmem:[%s215_s20 + $0x10] sm:$0xff] %v7741_v4  ;;  %7746 = vst [vmem:[%s215_s20 + $0x18] sm:$0xff] %v7742_v5 }
 0x65b   : > { %9833 = shalt.err (!%p9830_p9)
}
 0x65c   : > { %s9834_s23 = scalar_lea.hbm %s10248_s4, 512  ;;  %s9838_s25 = scalar_lea.hbm %s10294_s3, 1024 }
 0x65d   : > { %p9835_p13 = scmp.ne.s32.totalorder %s10248_s4, %s9834_s23  ;;  %p9839_p4 = scmp.lt.s32.totalorder %s10248_s4, %s10294_s3 }
 0x65e   : > { %p9840_p8 = scmp.lt.s32.totalorder %s9838_s25, %s9834_s23 }
 0x65f   : > { %p9836_p5 = pnand %p9835_p13, %p10310_p0 }
 0x660   : > { %p9841_p7 = por %p9840_p8, %p9839_p4 }
 0x661   : > { %p9837_p10 = pneg %p9836_p5 }
 0x663   : > { %p9842_p11 = pnand %p9841_p7, %p9837_p10 }
 0x665   : > { %9845 = shalt.err (!%p9842_p11)
}
 0x666   : > { %8905 = dma.vmem_to_hbm [thread:$0]  (%p10310_p0), %s10250_s27, 512, %s10248_s4, %s7748_s16  }
 0x667 PF: > { %s7774_s5 = sand.u32 1, %s9876_s12   ;;  %p10311_p1 = scmp.ne.s32.totalorder %s10300_s19, 0 }
 0x668   : > { %p10312_p2 = scmp.ge.s32.totalorder %s9888_s15, 2  ;;  %s7775_s6 = scalar_lea.sflag [#allocation4], %s7774_s5 }
 0x66a   : > { %p8919_p6 = pnand %p10312_p2, %p10311_p1 }
 0x66c   : > { %p8920_p12 = pneg %p8919_p6 }
 0x66e   : > { %9871 = dma.done.wait (%p8920_p12), %s7775_s6, 512  }
 0x66f   : > { %9873 = vsyncadd (%p8920_p12), %s7775_s6, 4294966784  ;;  %p17_p3 = scmp.ge.s32.totalorder %s9990_s9, 4   ;;  %s10313_s12 = smov %s9880_s13 }
 0x670   : > { %s10314_s13 = smov %s9884_s14  ;;  %s10315_s14 = smov %s9999_s17 }
 0x671   : > { %s10316_s15 = smov %s9990_s9  ;;  %19 = sbr.rel (!%p17_p3) target bundleno = 6 (0x6), region = 85 }
 0x676   :  { %7780 = vsyncpa [#allocation3], 1 }
 0x677   :  { %7782 = vsyncpa [#allocation3 + $0x1], 1 }
 0x678   :  { %7783 = vsyncpa [#allocation6], 1 }
 0x679   :  { %7784 = vsyncpa [#allocation4], 1 }
 0x67a   :  { %7786 = vsyncpa [#allocation4 + $0x1], 1 }

</bundles_post_ra>
